<compile_context>
chip_gen: v7x
topology: tpu7x:2x2x1
jax: 0.10.0
libtpu: 0.0.40
codegen_flags: <defaults>
</compile_context>

<pallas_src>
import functools

import jax
import jax.numpy as jnp
from jax.experimental import pallas as pl
from jax.experimental.pallas import tpu as pltpu

EPS = 1e-5  # InstanceNorm2d default eps

# padded-input row/col offsets per (output parity bit r/c, tap index)
_OFF = ((1, 0), (2, 1))
# deconv kernel taps per (output parity bit r/c, tap index) for k=4, s=2, p=1
_KH = ((1, 3), (0, 2))


def _upsampling_kernel(xp_ref, w_ref, g_ref, b_ref, o_ref, u_ref, *,
                       ht, concat_taps):
    # xp_ref: (1, H+2, W+2, Cin) bf16   zero-padded input (one sample)
    # w_ref : (4, 4*Cin, Cg)     bf16   per-parity, tap-concatenated deconv weights
    # g_ref : (1, Cg)            f32    InstanceNorm gamma (this Cout group)
    # b_ref : (1, Cg)            f32    InstanceNorm beta  (this Cout group)
    # o_ref : (1, 4*H, W, Cg)    bf16   output; row index = (2*r + c) * H + a
    # u_ref : (4*H, W, Cg)       f32    scratch: un-normalized conv output
    H4, W, Cg = o_ref.shape[1], o_ref.shape[2], o_ref.shape[3]
    H = H4 // 4
    Cin = xp_ref.shape[3]
    n_tiles = H // ht

    # ---- pass 1: deconv via parity/tap MXU matmuls, M-tiled over rows -------
    def conv_tile(t, s1):
        h0 = pl.multiple_of(t * ht, ht)
        for r in range(2):
            for c in range(2):
                p = 2 * r + c
                if concat_taps:
                    # Cin < 128: concatenate the 4 taps along K so one matmul
                    # per parity fills the MXU K dimension.
                    patch = jnp.concatenate(
                        [xp_ref[0, pl.ds(h0 + _OFF[r][dh], ht),
                                pl.ds(_OFF[c][dw], W), :]
                         for dh in range(2) for dw in range(2)],
                        axis=-1).reshape(ht * W, 4 * Cin)
                    acc = jax.lax.dot_general(
                        patch, w_ref[p], (((1,), (0,)), ((), ())),
                        preferred_element_type=jnp.float32)
                else:
                    # Cin >= 128: K is already full; accumulate per tap to keep
                    # only one (ht*W, Cin) slab live and skip the lane concat.
                    acc = jnp.zeros((ht * W, Cg), jnp.float32)
                    for dh in range(2):
                        for dw in range(2):
                            tap = xp_ref[0, pl.ds(h0 + _OFF[r][dh], ht),
                                         pl.ds(_OFF[c][dw], W), :]
                            acc = acc + jax.lax.dot_general(
                                tap.reshape(ht * W, Cin),
                                w_ref[p, pl.ds((2 * dh + dw) * Cin, Cin), :],
                                (((1,), (0,)), ((), ())),
                                preferred_element_type=jnp.float32)
                u_ref[pl.ds(p * H + h0, ht), :, :] = acc.reshape(ht, W, Cg)
                s1 = s1 + jnp.sum(acc, axis=0, keepdims=True)
        return s1

    s1 = jax.lax.fori_loop(0, n_tiles, conv_tile,
                           jnp.zeros((1, Cg), jnp.float32))

    count = 4.0 * H * W
    mean = s1 / count                                   # (1, Cg)
    mean_b = mean.reshape(1, 1, Cg)

    # ---- pass 2a: exact two-pass (centered) variance from the f32 scratch ---
    def css_tile(t, css):
        h0 = pl.multiple_of(t * ht, ht)
        d = u_ref[pl.ds(h0, ht), :, :] - mean_b         # (ht, W, Cg) f32
        return css + jnp.sum(d * d, axis=(0, 1)).reshape(1, Cg)

    css = jax.lax.fori_loop(0, 4 * n_tiles, css_tile,
                            jnp.zeros((1, Cg), jnp.float32))
    inv = jax.lax.rsqrt(css / count + EPS)              # (1, Cg)
    scale = (g_ref[...] * inv).reshape(1, 1, Cg)
    shift = (b_ref[...] - mean * g_ref[...] * inv).reshape(1, 1, Cg)

    # ---- pass 2b: normalize + ReLU, lane-dense bf16 stores -------------------
    def norm_tile(t, carry):
        h0 = pl.multiple_of(t * ht, ht)
        y = u_ref[pl.ds(h0, ht), :, :] * scale + shift
        o_ref[0, pl.ds(h0, ht), :, :] = jnp.maximum(y, 0.0).astype(o_ref.dtype)
        return carry

    jax.lax.fori_loop(0, 4 * n_tiles, norm_tile, jnp.int32(0))


def _pick_row_tile(H, W, target_pixels=1024):
    ht = max(1, min(H, target_pixels // max(W, 1)))
    while H % ht:
        ht -= 1
    return ht


def _pick_cout_block(Cout, cout_block):
    if cout_block is not None:
        assert Cout % cout_block == 0
        return cout_block
    # auto: split only when each group stays lane-aligned (multiple of 128)
    if Cout > 128 and Cout % 128 == 0:
        return 128
    return Cout


def upsampling_forward(x_nchw, weight, gamma, beta, *,
                       cout_block=None, vmem_limit_bytes=None):
    """x_nchw: (N, Cin, H, W); weight: (Cin, Cout, 4, 4) (PyTorch ConvTranspose2d).

    Returns NCHW (N, Cout, 2H, 2W) in bf16 (kernel emits bf16 output to halve
    HBM writeback; cast in the caller if f32 is required)."""
    N, Cin, H, W = x_nchw.shape
    Cout = weight.shape[1]
    Cg = _pick_cout_block(Cout, cout_block)
    G = Cout // Cg
    ht = _pick_row_tile(H, W)

    # NCHW -> NHWC + zero pad, bf16 to halve input-side HBM traffic.
    x = jnp.transpose(x_nchw.astype(jnp.bfloat16), (0, 2, 3, 1))     # (N, H, W, Cin)
    xp = jnp.pad(x, ((0, 0), (1, 1), (1, 1), (0, 0)))                # (N, H+2, W+2, Cin)

    # Parity/tap decomposition of the k=4, s=2, p=1 transposed conv:
    #   out[2a+r, 2b+c] = sum_{dh,dw} xp[a+_OFF[r][dh], b+_OFF[c][dw]]
    #                                 @ W[:, :, _KH[r][dh], _KH[c][dw]]
    # Taps of each parity are concatenated along Cin (K = 4*Cin per parity).
    w_cat = jnp.stack([
        jnp.concatenate(
            [weight[:, :, _KH[r][dh], _KH[c][dw]]
             for dh in range(2) for dw in range(2)], axis=0)
        for r in range(2) for c in range(2)
    ], axis=0).astype(jnp.bfloat16)                                  # (4, 4*Cin, Cout)

    g = gamma.reshape(1, Cout).astype(jnp.float32)
    b = beta.reshape(1, Cout).astype(jnp.float32)

    # Explicit VMEM budget (v5e default scoped limit is only 16 MiB).
    if vmem_limit_bytes is None:
        in_blk = (H + 2) * (W + 2) * Cin * 2
        w_blk = 4 * 4 * Cin * Cg * 2
        out_blk = 4 * H * W * Cg * 2
        scratch = 4 * H * W * Cg * 4
        trans = 2 * ht * W * (4 * Cin * 2 + Cg * 4)
        est = 2 * (in_blk + w_blk + out_blk) + scratch + trans
        vmem_limit_bytes = max(32 << 20, min(int(1.25 * est) + (4 << 20), 100 << 20))

    flops = 2 * 16 * N * H * W * Cin * Cout
    bytes_accessed = (xp.size * 2 + w_cat.size * 2 + (g.size + b.size) * 4
                      + N * 4 * H * W * Cout * 2)
    cost = pl.CostEstimate(flops=flops, transcendentals=0,
                           bytes_accessed=bytes_accessed)

    kernel = functools.partial(_upsampling_kernel, ht=ht,
                               concat_taps=(Cin < 128))

    # TODO(synk): on v7x, if a layer still exceeds 64 MiB VMEM, set
    # pipeline_mode=pl.Buffered(1) on out_specs (compute-bound there, so losing
    # output double-buffering costs ~10-15%) and/or lower cout_block; small-Cout
    # layers could also swap matmul operands to fill the 256-wide MXU N dim.
    out = pl.pallas_call(
        kernel,
        out_shape=jax.ShapeDtypeStruct((N, 4 * H, W, Cout), jnp.bfloat16),
        grid_spec=pltpu.PrefetchScalarGridSpec(
            num_scalar_prefetch=0,
            grid=(N, G),
            in_specs=[
                pl.BlockSpec((1, H + 2, W + 2, Cin), lambda n, gi: (n, 0, 0, 0)),
                pl.BlockSpec((4, 4 * Cin, Cg), lambda n, gi: (0, 0, gi)),
                pl.BlockSpec((1, Cg), lambda n, gi: (0, gi)),
                pl.BlockSpec((1, Cg), lambda n, gi: (0, gi)),
            ],
            out_specs=pl.BlockSpec((1, 4 * H, W, Cg),
                                   lambda n, gi: (n, 0, 0, gi)),
            scratch_shapes=[pltpu.VMEM((4 * H, W, Cg), jnp.float32)],
        ),
        compiler_params=pltpu.CompilerParams(
            dimension_semantics=("parallel", "parallel"),  # per-sample, per-Cout-group
            vmem_limit_bytes=vmem_limit_bytes,
        ),
        cost_estimate=cost,
    )(xp, w_cat, g, b)

    # (N, 4*H, W, Cout) with row index (2r+c)*H+a  ->  NCHW (N, Cout, 2H, 2W)
    y = out.reshape(N, 2, 2, H, W, Cout)
    y = jnp.transpose(y, (0, 5, 3, 1, 4, 2)).reshape(N, Cout, 2 * H, 2 * W)
    return y


def reference_forward(x_nchw, weight, gamma, beta):
    """Plain-JAX reference matching PyTorch semantics (f32)."""
    K, s, p = 4, 2, 1
    w = jnp.flip(weight, axis=(2, 3))
    w = jnp.transpose(w, (1, 0, 2, 3))                               # OIHW
    y = jax.lax.conv_general_dilated(
        x_nchw.astype(jnp.float32), w.astype(jnp.float32),
        window_strides=(1, 1),
        padding=[(K - 1 - p, K - 1 - p)] * 2,
        lhs_dilation=(s, s),
        dimension_numbers=('NCHW', 'OIHW', 'NCHW'),
        precision=jax.lax.Precision.HIGHEST)
    mean = y.mean(axis=(2, 3), keepdims=True)
    var = ((y - mean) ** 2).mean(axis=(2, 3), keepdims=True)
    yn = (y - mean) / jnp.sqrt(var + EPS)
    yn = yn * gamma.reshape(1, -1, 1, 1) + beta.reshape(1, -1, 1, 1)
    return jnp.maximum(yn, 0.0)


if __name__ == "__main__":
    key = jax.random.PRNGKey(0)
    k1, k2, k3, k4 = jax.random.split(key, 4)

    N, Cin, Cout, H, W = 2, 4, 8, 16, 16
    x = jax.random.normal(k1, (N, Cin, H, W), jnp.float32)
    # ConvTranspose2d weight: (in_channels, out_channels, kH, kW), bias=False
    weight = jax.random.normal(k2, (Cin, Cout, 4, 4), jnp.float32) * 0.1
    # InstanceNorm2d(affine=True) parameters
    gamma = jax.random.uniform(k3, (Cout,), jnp.float32, 0.5, 1.5)
    beta = jax.random.normal(k4, (Cout,), jnp.float32) * 0.1
    # (dropout=False in the module's default config, so no Dropout layer.)

    out = upsampling_forward(x, weight, gamma, beta)
    out = jax.block_until_ready(out)
    out_f32 = out.astype(jnp.float32)

    # Check against the same math on bf16-rounded operands (kernel uses bf16
    # operands, f32 accumulation, bf16 final store).
    ref_bf16 = reference_forward(
        x.astype(jnp.bfloat16).astype(jnp.float32),
        weight.astype(jnp.bfloat16).astype(jnp.float32), gamma, beta)
    if not jnp.allclose(out_f32, ref_bf16, atol=2e-2, rtol=2e-2):
        raise AssertionError(
            f"bf16-ref mismatch, max abs err = "
            f"{float(jnp.max(jnp.abs(out_f32 - ref_bf16)))}")

    # Sanity check against the pure-f32 module semantics (loose: bf16 operands
    # and bf16 output).
    ref = reference_forward(x, weight, gamma, beta)
    if not jnp.allclose(out_f32, ref, atol=6e-2, rtol=6e-2):
        raise AssertionError(
            f"f32-ref mismatch, max abs err = "
            f"{float(jnp.max(jnp.abs(out_f32 - ref)))}")

    print("KERNEL_OK")
</pallas_src>

<mosaic_0001>
module attributes {stable_mosaic.version = 11 : i64} {
  func.func @_upsampling_kernel(%arg0: i32, %arg1: i32, %arg2: memref<1x18x18x4xbf16, #tpu.memory_space<vmem>>, %arg3: memref<4x16x8xbf16, #tpu.memory_space<vmem>>, %arg4: memref<1x8xf32, #tpu.memory_space<vmem>>, %arg5: memref<1x8xf32, #tpu.memory_space<vmem>>, %arg6: memref<1x64x16x8xbf16, #tpu.memory_space<vmem>>, %arg7: memref<64x16x8xf32, #tpu.memory_space<vmem>>) attributes {dimension_semantics = [#tpu.dimension_semantics<parallel>, #tpu.dimension_semantics<parallel>], iteration_bounds = array<i64: 2, 1>, scalar_prefetch = 0 : i64, scratch_operands = 1 : i64, tpu.core_type = #tpu.core_type<tc>, window_params = [{transform_indices = @transform_0, window_bounds = array<i64: 1, 18, 18, 4>}, {transform_indices = @transform_1, window_bounds = array<i64: 4, 16, 8>}, {transform_indices = @transform_2, window_bounds = array<i64: 1, 8>}, {transform_indices = @transform_3, window_bounds = array<i64: 1, 8>}, {transform_indices = @transform_4, window_bounds = array<i64: 1, 64, 16, 8>}]} {
    %cst = arith.constant 0.000000e+00 : f32
    %0 = vector.broadcast %cst : f32 to vector<1x8xf32>
    %c0_i32 = arith.constant 0 : i32
    %c16_i32 = arith.constant 16 : i32
    %1 = arith.muli %c0_i32, %c16_i32 : i32
    %2 = tpu.assume_multiple %1, 16 : i32
    %c1_i32 = arith.constant 1 : i32
    %3 = arith.addi %2, %c1_i32 : i32
    %c0 = arith.constant 0 : index
    %4 = arith.index_cast %3 : i32 to index
    %c1 = arith.constant 1 : index
    %c0_0 = arith.constant 0 : index
    %5 = vector.load %arg2[%c0, %4, %c1, %c0_0] : memref<1x18x18x4xbf16, #tpu.memory_space<vmem>>, vector<1x16x16x4xbf16>
    %6 = vector.shape_cast %5 : vector<1x16x16x4xbf16> to vector<16x16x4xbf16>
    %c1_i32_1 = arith.constant 1 : i32
    %7 = arith.addi %2, %c1_i32_1 : i32
    %c0_2 = arith.constant 0 : index
    %8 = arith.index_cast %7 : i32 to index
    %c0_3 = arith.constant 0 : index
    %c0_4 = arith.constant 0 : index
    %9 = vector.load %arg2[%c0_2, %8, %c0_3, %c0_4] : memref<1x18x18x4xbf16, #tpu.memory_space<vmem>>, vector<1x16x16x4xbf16>
    %10 = vector.shape_cast %9 : vector<1x16x16x4xbf16> to vector<16x16x4xbf16>
    %c0_i32_5 = arith.constant 0 : i32
    %11 = arith.addi %2, %c0_i32_5 : i32
    %c0_6 = arith.constant 0 : index
    %12 = arith.index_cast %11 : i32 to index
    %c1_7 = arith.constant 1 : index
    %c0_8 = arith.constant 0 : index
    %13 = vector.load %arg2[%c0_6, %12, %c1_7, %c0_8] : memref<1x18x18x4xbf16, #tpu.memory_space<vmem>>, vector<1x16x16x4xbf16>
    %14 = vector.shape_cast %13 : vector<1x16x16x4xbf16> to vector<16x16x4xbf16>
    %c0_i32_9 = arith.constant 0 : i32
    %15 = arith.addi %2, %c0_i32_9 : i32
    %c0_10 = arith.constant 0 : index
    %16 = arith.index_cast %15 : i32 to index
    %c0_11 = arith.constant 0 : index
    %c0_12 = arith.constant 0 : index
    %17 = vector.load %arg2[%c0_10, %16, %c0_11, %c0_12] : memref<1x18x18x4xbf16, #tpu.memory_space<vmem>>, vector<1x16x16x4xbf16>
    %18 = vector.shape_cast %17 : vector<1x16x16x4xbf16> to vector<16x16x4xbf16>
    %19 = tpu.concatenate %6, %10, %14, %18 in 2 : vector<16x16x4xbf16>, vector<16x16x4xbf16>, vector<16x16x4xbf16>, vector<16x16x4xbf16> -> vector<16x16x16xbf16>
    %20 = vector.shape_cast %19 : vector<16x16x16xbf16> to vector<256x16xbf16>
    %c0_13 = arith.constant 0 : index
    %c0_14 = arith.constant 0 : index
    %c0_15 = arith.constant 0 : index
    %21 = vector.load %arg3[%c0_13, %c0_14, %c0_15] : memref<4x16x8xbf16, #tpu.memory_space<vmem>>, vector<1x16x8xbf16>
    %22 = vector.shape_cast %21 : vector<1x16x8xbf16> to vector<16x8xbf16>
    %cst_16 = arith.constant dense<0.000000e+00> : vector<256x8xf32>
    %23 = tpu.matmul %20, %22, %cst_16 {dimension_numbers = #tpu.dot_dimension_numbers<[1], [0], [0], [1], [0, 0, 1, 1], [], []>} : vector<256x16xbf16>, vector<16x8xbf16>, vector<256x8xf32> -> vector<256x8xf32>
    %24 = vector.shape_cast %23 : vector<256x8xf32> to vector<16x16x8xf32>
    %c0_i32_17 = arith.constant 0 : i32
    %25 = arith.addi %c0_i32_17, %2 : i32
    %26 = arith.index_cast %25 : i32 to index
    %c0_18 = arith.constant 0 : index
    %c0_19 = arith.constant 0 : index
    %27 = vector.load %arg7[%26, %c0_18, %c0_19] : memref<64x16x8xf32, #tpu.memory_space<vmem>>, vector<16x16x8xf32>
    tpu.vector_store %arg7[%26, %c0_18, %c0_19], %24 {strides = array<i32>} : memref<64x16x8xf32, #tpu.memory_space<vmem>>, vector<16x16x8xf32>,
    %cst_20 = arith.constant dense<0.000000e+00> : vector<8xf32>
    %28 = vector.multi_reduction <add>, %23, %cst_20 [0] : vector<256x8xf32> to vector<8xf32>
    %29 = vector.shape_cast %28 : vector<8xf32> to vector<1x8xf32>
    %30 = arith.addf %0, %29 : vector<1x8xf32>
    %c1_i32_21 = arith.constant 1 : i32
    %31 = arith.addi %2, %c1_i32_21 : i32
    %c0_22 = arith.constant 0 : index
    %32 = arith.index_cast %31 : i32 to index
    %c2 = arith.constant 2 : index
    %c0_23 = arith.constant 0 : index
    %33 = vector.load %arg2[%c0_22, %32, %c2, %c0_23] : memref<1x18x18x4xbf16, #tpu.memory_space<vmem>>, vector<1x16x16x4xbf16>
    %34 = vector.shape_cast %33 : vector<1x16x16x4xbf16> to vector<16x16x4xbf16>
    %c1_i32_24 = arith.constant 1 : i32
    %35 = arith.addi %2, %c1_i32_24 : i32
    %c0_25 = arith.constant 0 : index
    %36 = arith.index_cast %35 : i32 to index
    %c1_26 = arith.constant 1 : index
    %c0_27 = arith.constant 0 : index
    %37 = vector.load %arg2[%c0_25, %36, %c1_26, %c0_27] : memref<1x18x18x4xbf16, #tpu.memory_space<vmem>>, vector<1x16x16x4xbf16>
    %38 = vector.shape_cast %37 : vector<1x16x16x4xbf16> to vector<16x16x4xbf16>
    %c0_i32_28 = arith.constant 0 : i32
    %39 = arith.addi %2, %c0_i32_28 : i32
    %c0_29 = arith.constant 0 : index
    %40 = arith.index_cast %39 : i32 to index
    %c2_30 = arith.constant 2 : index
    %c0_31 = arith.constant 0 : index
    %41 = vector.load %arg2[%c0_29, %40, %c2_30, %c0_31] : memref<1x18x18x4xbf16, #tpu.memory_space<vmem>>, vector<1x16x16x4xbf16>
    %42 = vector.shape_cast %41 : vector<1x16x16x4xbf16> to vector<16x16x4xbf16>
    %c0_i32_32 = arith.constant 0 : i32
    %43 = arith.addi %2, %c0_i32_32 : i32
    %c0_33 = arith.constant 0 : index
    %44 = arith.index_cast %43 : i32 to index
    %c1_34 = arith.constant 1 : index
    %c0_35 = arith.constant 0 : index
    %45 = vector.load %arg2[%c0_33, %44, %c1_34, %c0_35] : memref<1x18x18x4xbf16, #tpu.memory_space<vmem>>, vector<1x16x16x4xbf16>
    %46 = vector.shape_cast %45 : vector<1x16x16x4xbf16> to vector<16x16x4xbf16>
    %47 = tpu.concatenate %34, %38, %42, %46 in 2 : vector<16x16x4xbf16>, vector<16x16x4xbf16>, vector<16x16x4xbf16>, vector<16x16x4xbf16> -> vector<16x16x16xbf16>
    %48 = vector.shape_cast %47 : vector<16x16x16xbf16> to vector<256x16xbf16>
    %c1_36 = arith.constant 1 : index
    %c0_37 = arith.constant 0 : index
    %c0_38 = arith.constant 0 : index
    %49 = vector.load %arg3[%c1_36, %c0_37, %c0_38] : memref<4x16x8xbf16, #tpu.memory_space<vmem>>, vector<1x16x8xbf16>
    %50 = vector.shape_cast %49 : vector<1x16x8xbf16> to vector<16x8xbf16>
    %cst_39 = arith.constant dense<0.000000e+00> : vector<256x8xf32>
    %51 = tpu.matmul %48, %50, %cst_39 {dimension_numbers = #tpu.dot_dimension_numbers<[1], [0], [0], [1], [0, 0, 1, 1], [], []>} : vector<256x16xbf16>, vector<16x8xbf16>, vector<256x8xf32> -> vector<256x8xf32>
    %52 = vector.shape_cast %51 : vector<256x8xf32> to vector<16x16x8xf32>
    %c16_i32_40 = arith.constant 16 : i32
    %53 = arith.addi %c16_i32_40, %2 : i32
    %54 = arith.index_cast %53 : i32 to index
    %c0_41 = arith.constant 0 : index
    %c0_42 = arith.constant 0 : index
    %55 = vector.load %arg7[%54, %c0_41, %c0_42] : memref<64x16x8xf32, #tpu.memory_space<vmem>>, vector<16x16x8xf32>
    tpu.vector_store %arg7[%54, %c0_41, %c0_42], %52 {strides = array<i32>} : memref<64x16x8xf32, #tpu.memory_space<vmem>>, vector<16x16x8xf32>,
    %cst_43 = arith.constant dense<0.000000e+00> : vector<8xf32>
    %56 = vector.multi_reduction <add>, %51, %cst_43 [0] : vector<256x8xf32> to vector<8xf32>
    %57 = vector.shape_cast %56 : vector<8xf32> to vector<1x8xf32>
    %58 = arith.addf %30, %57 : vector<1x8xf32>
    %c2_i32 = arith.constant 2 : i32
    %59 = arith.addi %2, %c2_i32 : i32
    %c0_44 = arith.constant 0 : index
    %60 = arith.index_cast %59 : i32 to index
    %c1_45 = arith.constant 1 : index
    %c0_46 = arith.constant 0 : index
    %61 = vector.load %arg2[%c0_44, %60, %c1_45, %c0_46] : memref<1x18x18x4xbf16, #tpu.memory_space<vmem>>, vector<1x16x16x4xbf16>
    %62 = vector.shape_cast %61 : vector<1x16x16x4xbf16> to vector<16x16x4xbf16>
    %c2_i32_47 = arith.constant 2 : i32
    %63 = arith.addi %2, %c2_i32_47 : i32
    %c0_48 = arith.constant 0 : index
    %64 = arith.index_cast %63 : i32 to index
    %c0_49 = arith.constant 0 : index
    %c0_50 = arith.constant 0 : index
    %65 = vector.load %arg2[%c0_48, %64, %c0_49, %c0_50] : memref<1x18x18x4xbf16, #tpu.memory_space<vmem>>, vector<1x16x16x4xbf16>
    %66 = vector.shape_cast %65 : vector<1x16x16x4xbf16> to vector<16x16x4xbf16>
    %c1_i32_51 = arith.constant 1 : i32
    %67 = arith.addi %2, %c1_i32_51 : i32
    %c0_52 = arith.constant 0 : index
    %68 = arith.index_cast %67 : i32 to index
    %c1_53 = arith.constant 1 : index
    %c0_54 = arith.constant 0 : index
    %69 = vector.load %arg2[%c0_52, %68, %c1_53, %c0_54] : memref<1x18x18x4xbf16, #tpu.memory_space<vmem>>, vector<1x16x16x4xbf16>
    %70 = vector.shape_cast %69 : vector<1x16x16x4xbf16> to vector<16x16x4xbf16>
    %c1_i32_55 = arith.constant 1 : i32
    %71 = arith.addi %2, %c1_i32_55 : i32
    %c0_56 = arith.constant 0 : index
    %72 = arith.index_cast %71 : i32 to index
    %c0_57 = arith.constant 0 : index
    %c0_58 = arith.constant 0 : index
    %73 = vector.load %arg2[%c0_56, %72, %c0_57, %c0_58] : memref<1x18x18x4xbf16, #tpu.memory_space<vmem>>, vector<1x16x16x4xbf16>
    %74 = vector.shape_cast %73 : vector<1x16x16x4xbf16> to vector<16x16x4xbf16>
    %75 = tpu.concatenate %62, %66, %70, %74 in 2 : vector<16x16x4xbf16>, vector<16x16x4xbf16>, vector<16x16x4xbf16>, vector<16x16x4xbf16> -> vector<16x16x16xbf16>
    %76 = vector.shape_cast %75 : vector<16x16x16xbf16> to vector<256x16xbf16>
    %c2_59 = arith.constant 2 : index
    %c0_60 = arith.constant 0 : index
    %c0_61 = arith.constant 0 : index
    %77 = vector.load %arg3[%c2_59, %c0_60, %c0_61] : memref<4x16x8xbf16, #tpu.memory_space<vmem>>, vector<1x16x8xbf16>
    %78 = vector.shape_cast %77 : vector<1x16x8xbf16> to vector<16x8xbf16>
    %cst_62 = arith.constant dense<0.000000e+00> : vector<256x8xf32>
    %79 = tpu.matmul %76, %78, %cst_62 {dimension_numbers = #tpu.dot_dimension_numbers<[1], [0], [0], [1], [0, 0, 1, 1], [], []>} : vector<256x16xbf16>, vector<16x8xbf16>, vector<256x8xf32> -> vector<256x8xf32>
    %80 = vector.shape_cast %79 : vector<256x8xf32> to vector<16x16x8xf32>
    %c32_i32 = arith.constant 32 : i32
    %81 = arith.addi %c32_i32, %2 : i32
    %82 = arith.index_cast %81 : i32 to index
    %c0_63 = arith.constant 0 : index
    %c0_64 = arith.constant 0 : index
    %83 = vector.load %arg7[%82, %c0_63, %c0_64] : memref<64x16x8xf32, #tpu.memory_space<vmem>>, vector<16x16x8xf32>
    tpu.vector_store %arg7[%82, %c0_63, %c0_64], %80 {strides = array<i32>} : memref<64x16x8xf32, #tpu.memory_space<vmem>>, vector<16x16x8xf32>,
    %cst_65 = arith.constant dense<0.000000e+00> : vector<8xf32>
    %84 = vector.multi_reduction <add>, %79, %cst_65 [0] : vector<256x8xf32> to vector<8xf32>
    %85 = vector.shape_cast %84 : vector<8xf32> to vector<1x8xf32>
    %86 = arith.addf %58, %85 : vector<1x8xf32>
    %c2_i32_66 = arith.constant 2 : i32
    %87 = arith.addi %2, %c2_i32_66 : i32
    %c0_67 = arith.constant 0 : index
    %88 = arith.index_cast %87 : i32 to index
    %c2_68 = arith.constant 2 : index
    %c0_69 = arith.constant 0 : index
    %89 = vector.load %arg2[%c0_67, %88, %c2_68, %c0_69] : memref<1x18x18x4xbf16, #tpu.memory_space<vmem>>, vector<1x16x16x4xbf16>
    %90 = vector.shape_cast %89 : vector<1x16x16x4xbf16> to vector<16x16x4xbf16>
    %c2_i32_70 = arith.constant 2 : i32
    %91 = arith.addi %2, %c2_i32_70 : i32
    %c0_71 = arith.constant 0 : index
    %92 = arith.index_cast %91 : i32 to index
    %c1_72 = arith.constant 1 : index
    %c0_73 = arith.constant 0 : index
    %93 = vector.load %arg2[%c0_71, %92, %c1_72, %c0_73] : memref<1x18x18x4xbf16, #tpu.memory_space<vmem>>, vector<1x16x16x4xbf16>
    %94 = vector.shape_cast %93 : vector<1x16x16x4xbf16> to vector<16x16x4xbf16>
    %c1_i32_74 = arith.constant 1 : i32
    %95 = arith.addi %2, %c1_i32_74 : i32
    %c0_75 = arith.constant 0 : index
    %96 = arith.index_cast %95 : i32 to index
    %c2_76 = arith.constant 2 : index
    %c0_77 = arith.constant 0 : index
    %97 = vector.load %arg2[%c0_75, %96, %c2_76, %c0_77] : memref<1x18x18x4xbf16, #tpu.memory_space<vmem>>, vector<1x16x16x4xbf16>
    %98 = vector.shape_cast %97 : vector<1x16x16x4xbf16> to vector<16x16x4xbf16>
    %c1_i32_78 = arith.constant 1 : i32
    %99 = arith.addi %2, %c1_i32_78 : i32
    %c0_79 = arith.constant 0 : index
    %100 = arith.index_cast %99 : i32 to index
    %c1_80 = arith.constant 1 : index
    %c0_81 = arith.constant 0 : index
    %101 = vector.load %arg2[%c0_79, %100, %c1_80, %c0_81] : memref<1x18x18x4xbf16, #tpu.memory_space<vmem>>, vector<1x16x16x4xbf16>
    %102 = vector.shape_cast %101 : vector<1x16x16x4xbf16> to vector<16x16x4xbf16>
    %103 = tpu.concatenate %90, %94, %98, %102 in 2 : vector<16x16x4xbf16>, vector<16x16x4xbf16>, vector<16x16x4xbf16>, vector<16x16x4xbf16> -> vector<16x16x16xbf16>
    %104 = vector.shape_cast %103 : vector<16x16x16xbf16> to vector<256x16xbf16>
    %c3 = arith.constant 3 : index
    %c0_82 = arith.constant 0 : index
    %c0_83 = arith.constant 0 : index
    %105 = vector.load %arg3[%c3, %c0_82, %c0_83] : memref<4x16x8xbf16, #tpu.memory_space<vmem>>, vector<1x16x8xbf16>
    %106 = vector.shape_cast %105 : vector<1x16x8xbf16> to vector<16x8xbf16>
    %cst_84 = arith.constant dense<0.000000e+00> : vector<256x8xf32>
    %107 = tpu.matmul %104, %106, %cst_84 {dimension_numbers = #tpu.dot_dimension_numbers<[1], [0], [0], [1], [0, 0, 1, 1], [], []>} : vector<256x16xbf16>, vector<16x8xbf16>, vector<256x8xf32> -> vector<256x8xf32>
    %108 = vector.shape_cast %107 : vector<256x8xf32> to vector<16x16x8xf32>
    %c48_i32 = arith.constant 48 : i32
    %109 = arith.addi %c48_i32, %2 : i32
    %110 = arith.index_cast %109 : i32 to index
    %c0_85 = arith.constant 0 : index
    %c0_86 = arith.constant 0 : index
    %111 = vector.load %arg7[%110, %c0_85, %c0_86] : memref<64x16x8xf32, #tpu.memory_space<vmem>>, vector<16x16x8xf32>
    tpu.vector_store %arg7[%110, %c0_85, %c0_86], %108 {strides = array<i32>} : memref<64x16x8xf32, #tpu.memory_space<vmem>>, vector<16x16x8xf32>,
    %cst_87 = arith.constant dense<0.000000e+00> : vector<8xf32>
    %112 = vector.multi_reduction <add>, %107, %cst_87 [0] : vector<256x8xf32> to vector<8xf32>
    %113 = vector.shape_cast %112 : vector<8xf32> to vector<1x8xf32>
    %114 = arith.addf %86, %113 : vector<1x8xf32>
    %c1_i32_88 = arith.constant 1 : i32
    %cst_89 = arith.constant 1.024000e+03 : f32
    %115 = vector.broadcast %cst_89 : f32 to vector<1x8xf32>
    %116 = arith.divf %114, %115 : vector<1x8xf32>
    %117 = vector.shape_cast %116 : vector<1x8xf32> to vector<1x1x8xf32>
    %cst_90 = arith.constant 0.000000e+00 : f32
    %118 = vector.broadcast %cst_90 : f32 to vector<1x8xf32>
    %c0_i32_91 = arith.constant 0 : i32
    %c4_i32 = arith.constant 4 : i32
    %119 = arith.addi %c0_i32_91, %c4_i32 : i32
    %c1_i32_92 = arith.constant 1 : i32
    %120 = scf.for %arg8 = %c0_i32_91 to %119 step %c1_i32_92 iter_args(%arg9 = %118) -> (vector<1x8xf32>)  : i32 {
      %c16_i32_106 = arith.constant 16 : i32
      %136 = arith.muli %arg8, %c16_i32_106 : i32
      %137 = tpu.assume_multiple %136, 16 : i32
      %138 = arith.index_cast %137 : i32 to index
      %c0_107 = arith.constant 0 : index
      %c0_108 = arith.constant 0 : index
      %139 = vector.load %arg7[%138, %c0_107, %c0_108] : memref<64x16x8xf32, #tpu.memory_space<vmem>>, vector<16x16x8xf32>
      %140 = vector.broadcast %117 : vector<1x1x8xf32> to vector<16x16x8xf32>
      %141 = arith.subf %139, %140 : vector<16x16x8xf32>
      %142 = arith.mulf %141, %141 : vector<16x16x8xf32>
      %cst_109 = arith.constant dense<0.000000e+00> : vector<8xf32>
      %143 = vector.multi_reduction <add>, %142, %cst_109 [0, 1] : vector<16x16x8xf32> to vector<8xf32>
      %144 = vector.shape_cast %143 : vector<8xf32> to vector<1x8xf32>
      %145 = arith.addf %arg9, %144 : vector<1x8xf32>
      scf.yield %145 : vector<1x8xf32>
    }
    %c4_i32_93 = arith.constant 4 : i32
    %cst_94 = arith.constant 1.024000e+03 : f32
    %121 = vector.broadcast %cst_94 : f32 to vector<1x8xf32>
    %122 = arith.divf %120, %121 : vector<1x8xf32>
    %cst_95 = arith.constant 9.99999974E-6 : f32
    %123 = vector.broadcast %cst_95 : f32 to vector<1x8xf32>
    %124 = arith.addf %122, %123 : vector<1x8xf32>
    %125 = math.rsqrt %124 : vector<1x8xf32>
    %c0_96 = arith.constant 0 : index
    %c0_97 = arith.constant 0 : index
    %126 = vector.load %arg4[%c0_96, %c0_97] : memref<1x8xf32, #tpu.memory_space<vmem>>, vector<1x8xf32>
    %127 = arith.mulf %126, %125 : vector<1x8xf32>
    %128 = vector.shape_cast %127 : vector<1x8xf32> to vector<1x1x8xf32>
    %c0_98 = arith.constant 0 : index
    %c0_99 = arith.constant 0 : index
    %129 = vector.load %arg5[%c0_98, %c0_99] : memref<1x8xf32, #tpu.memory_space<vmem>>, vector<1x8xf32>
    %c0_100 = arith.constant 0 : index
    %c0_101 = arith.constant 0 : index
    %130 = vector.load %arg4[%c0_100, %c0_101] : memref<1x8xf32, #tpu.memory_space<vmem>>, vector<1x8xf32>
    %131 = arith.mulf %116, %130 : vector<1x8xf32>
    %132 = arith.mulf %131, %125 : vector<1x8xf32>
    %133 = arith.subf %129, %132 : vector<1x8xf32>
    %134 = vector.shape_cast %133 : vector<1x8xf32> to vector<1x1x8xf32>
    %c0_i32_102 = arith.constant 0 : i32
    %c4_i32_103 = arith.constant 4 : i32
    %135 = arith.addi %c0_i32_102, %c4_i32_103 : i32
    %c1_i32_104 = arith.constant 1 : i32
    scf.for %arg8 = %c0_i32_102 to %135 step %c1_i32_104  : i32 {
      %c16_i32_106 = arith.constant 16 : i32
      %136 = arith.muli %arg8, %c16_i32_106 : i32
      %137 = tpu.assume_multiple %136, 16 : i32
      %138 = arith.index_cast %137 : i32 to index
      %c0_107 = arith.constant 0 : index
      %c0_108 = arith.constant 0 : index
      %139 = vector.load %arg7[%138, %c0_107, %c0_108] : memref<64x16x8xf32, #tpu.memory_space<vmem>>, vector<16x16x8xf32>
      %140 = vector.broadcast %128 : vector<1x1x8xf32> to vector<16x16x8xf32>
      %141 = arith.mulf %139, %140 : vector<16x16x8xf32>
      %142 = vector.broadcast %134 : vector<1x1x8xf32> to vector<16x16x8xf32>
      %143 = arith.addf %141, %142 : vector<16x16x8xf32>
      %cst_109 = arith.constant 0.000000e+00 : f32
      %144 = vector.broadcast %cst_109 : f32 to vector<16x16x8xf32>
      %145 = arith.maximumf %143, %144 : vector<16x16x8xf32>
      %146 = arith.truncf %145 : vector<16x16x8xf32> to vector<16x16x8xbf16>
      %c0_110 = arith.constant 0 : index
      %147 = arith.index_cast %137 : i32 to index
      %c0_111 = arith.constant 0 : index
      %c0_112 = arith.constant 0 : index
      %148 = vector.load %arg6[%c0_110, %147, %c0_111, %c0_112] : memref<1x64x16x8xbf16, #tpu.memory_space<vmem>>, vector<1x16x16x8xbf16>
      %149 = vector.shape_cast %148 : vector<1x16x16x8xbf16> to vector<16x16x8xbf16>
      %150 = vector.shape_cast %146 : vector<16x16x8xbf16> to vector<1x16x16x8xbf16>
      tpu.vector_store %arg6[%c0_110, %147, %c0_111, %c0_112], %150 {strides = array<i32>} : memref<1x64x16x8xbf16, #tpu.memory_space<vmem>>, vector<1x16x16x8xbf16>,
    }
    %c4_i32_105 = arith.constant 4 : i32
    return
  }
  func.func @transform_0(%arg0: i32, %arg1: i32) -> (i32, i32, i32, i32) {
    %c0_i32 = arith.constant 0 : i32
    %c0_i32_0 = arith.constant 0 : i32
    %c0_i32_1 = arith.constant 0 : i32
    %c0_i32_2 = arith.constant 0 : i32
    return %arg0, %c0_i32, %c0_i32_0, %c0_i32_1 : i32, i32, i32, i32
  }
  func.func @transform_1(%arg0: i32, %arg1: i32) -> (i32, i32, i32) {
    %c0_i32 = arith.constant 0 : i32
    %c0_i32_0 = arith.constant 0 : i32
    %c0_i32_1 = arith.constant 0 : i32
    return %c0_i32, %c0_i32_0, %arg1 : i32, i32, i32
  }
  func.func @transform_2(%arg0: i32, %arg1: i32) -> (i32, i32) {
    %c0_i32 = arith.constant 0 : i32
    %c0_i32_0 = arith.constant 0 : i32
    return %c0_i32, %arg1 : i32, i32
  }
  func.func @transform_3(%arg0: i32, %arg1: i32) -> (i32, i32) {
    %c0_i32 = arith.constant 0 : i32
    %c0_i32_0 = arith.constant 0 : i32
    return %c0_i32, %arg1 : i32, i32
  }
  func.func @transform_4(%arg0: i32, %arg1: i32) -> (i32, i32, i32, i32) {
    %c0_i32 = arith.constant 0 : i32
    %c0_i32_0 = arith.constant 0 : i32
    %c0_i32_1 = arith.constant 0 : i32
    return %arg0, %c0_i32, %c0_i32_0, %arg1 : i32, i32, i32, i32
  }
}

</mosaic_0001>

<bundles_post_ra>
// kernel: tpu_custom_call.1
= control target key start
LH: loop header
LB: loop body
LE: loop exit
PB: predicated region body
PF: predicated region fallthrough
CT: control target
= control target key end

     0   :  { %s8660_s15 = smov 0   ;;  %s8662_s16 = smov 0   ;;  %s11778_s0 = inlined_call_operand.vmem [shape: bf16[2,18,18,4], index: 0, kind: input, shape index: {}]   ;;  %s11779_s1 = inlined_call_operand.vmem [shape: bf16[4,16,8], index: 1, kind: input, shape index: {}]   ;;  %s11780_s2 = inlined_call_operand.vmem [shape: f32[1,8], index: 2, kind: input, shape index: {}]   ;;  %s11781_s3 = inlined_call_operand.vmem [shape: f32[1,8], index: 3, kind: input, shape index: {}]   ;;  %s11782_s4 = inlined_call_operand.vmem [shape: bf16[2,64,16,8], index: 4, kind: output, shape index: {}]  }
   0x1   :  { %s8664_s17 = smov 0  }
   0x2 LB: > { %s26_s18 = sadd.s32 1, %s8614_s16  ;;  %p7116_p0 = scmp.ge.s32.totalorder %s8618_s17, 1  ;;  %s8618_s17 = sphi %s8664_s17, %s14_s17   ;;  %s8614_s16 = sphi %s8662_s16, %s11876_s16   ;;  %s8610_s15 = sphi %s8660_s15, %s11875_s15  }
   0x3   : > { %p28_p1 = scmp.ge.s32.totalorder %s26_s18, 2  ;;  %p201_p2 = scmp.lt.s32.totalorder %s8618_s17, 3 }
   0x5   : > { %s11878_s18 = smov (%p28_p1, %s26_s18), 0  ;;  %p202_p3 = pnand %p7116_p0, %p201_p2 }
   0x7   : > { %205 = sbr.rel (%p202_p3) target bundleno = 1295 (0x50f), region = 36 }
   0xe   : > { %p240_p4 = scmp.lt.s32.totalorder %s8610_s15, 1  ;;  %s8632_s27 = smov 4   ;;  %vm2037_vm0 = vsmask.f32 256  ;;  %vm1039_vm1 = vcmask 31744   ;;  %vm1120_vm2 = vcmask 64512  }
   0xf   : > { %s8633_s28 = smov 8   ;;  %s8634_s5 = smov 12   ;;  %vm1185_vm3 = vcmask 97280   ;;  %vm1250_vm4 = vsmask.f32 7424  ;;  %vm1419_vm5 = vcmask 130048  }
  0x10   : > { %s11880_s15 = smov (!%p240_p4, %s8610_s15), 1  ;;  %vm2998_vm6 = vcmask 1046528   ;;  %s11458_s12 = smov 0  }
  0x11   : > { %s8131_s19 = smul.u32 216, %s11880_s15  ;;  %s7890_s20 = sshll.u32 %s11880_s15, 9 }
  0x12   : > { %s8681_s23 = scalar_lea.vmem %s11782_s4, %s7890_s20 }
  0x13   : > { %s8686_s26 = scalar_lea.vmem %s11778_s0, %s8131_s19 }
  0x14   : > { %v8183_v0 = vld [vmem:[%s8686_s26 + $0x18] sm:$0xff]   ;;  %v8184_v1 = vld [vmem:[%s8686_s26 + $0xc] sm:$0xff]   ;;  %v8185_v5 = vld [vmem:[%s8686_s26 + $0x24] sm:$0xff]  }
  0x15   : > { %v503_v2 = vshrl.u32 %v8183_v0, 16  ;;  %v496_v3 = vshrl.u32 %v8184_v1, 16  ;;  %v499_v4 = vshll.u32 %v8184_v1, 16  ;;  %v8186_v6 = vld [vmem:[%s8686_s26 + $0x30] sm:$0xff]   ;;  %v510_v9 = vshrl.u32 %v8185_v5, 16  ;;  %v8187_v11 = vld [vmem:[%s8686_s26 + $0x3c] sm:$0xff]  }
  0x16   : > { %v517_v10 = vshrl.u32 %v8186_v6, 16  ;;  %v513_v14 = vshll.u32 %v8185_v5, 16  ;;  %v524_v16 = vshrl.u32 %v8187_v11, 16  ;;  %v520_v18 = vshll.u32 %v8186_v6, 16  ;;  %v8188_v19 = vld [vmem:[%s8686_s26 + $0x48] sm:$0xff]   ;;  %v8189_v22 = vld [vmem:[%s8686_s26 + $0x54] sm:$0xff]  }
  0x17   : > { %v505_v7 = vrot.slane %v503_v2, 7  ;;  %v498_v8 = vrot.slane %v496_v3, 7  ;;  %v512_v13 = vrot.slane %v510_v9, 7  ;;  %v506_v20 = vshll.u32 %v8183_v0, 16  ;;  %v8190_v28 = vld [vmem:[%s8686_s26 + $0x60] sm:$0xff]   ;;  %v8191_v35 = vld [vmem:[%s8686_s26 + $0x6c] sm:$0xff]  }
  0x18   : > { %v519_v15 = vrot.slane %v517_v10, 7  ;;  %v526_v21 = vrot.slane %v524_v16, 7  ;;  %v527_v24 = vshll.u32 %v8187_v11, 16  ;;  %v531_v25 = vshrl.u32 %v8188_v19, 16  ;;  %v8192_v37 = vld [vmem:[%s8686_s26 + $0x78] sm:$0xff]   ;;  %v8193_v43 = vld [vmem:[%s8686_s26 + $0x84] sm:$0xff]  }
  0x19   : > { %613 = vrot.lane.b32.xlu1 %v505_v7, %s8632_s27  ;;  %609 = vrot.lane.b32.xlu0 %v498_v8, %s8632_s27  ;;  %v501_v12 = vor.u32 %v499_v4, %v498_v8  ;;  %v515_v17 = vor.u32 %v513_v14, %v512_v13  ;;  %v508_v26 = vor.u32 %v506_v20, %v505_v7  ;;  %v538_v27 = vshrl.u32 %v8189_v22, 16  ;;  %v8194_v47 = vld [vmem:[%s8686_s26 + $0x90] sm:$0xff]   ;;  %v8195_v53 = vld [vmem:[%s8686_s26 + $0x9c] sm:$0xff]  }
  0x1a   : > { %v522_v23 = vor.u32 %v520_v18, %v519_v15  ;;  %v529_v29 = vor.u32 %v527_v24, %v526_v21  ;;  %v533_v30 = vrot.slane %v531_v25, 7  ;;  %v534_v31 = vshll.u32 %v8188_v19, 16  ;;  %v8196_v60 = vld [vmem:[%s8686_s26 + $0xa8] sm:$0xff]   ;;  %v8197_v1 = vld [vmem:[%s8686_s26 + $0xb4] sm:$0xff]   ;;  %v8198_v7 = vld [vmem:[%s8686_s26 + $0xc0] sm:$0xff]  }
  0x1b   : > { %v540_v32 = vrot.slane %v538_v27, 7  ;;  %v541_v33 = vshll.u32 %v8189_v22, 16  ;;  %v545_v34 = vshrl.u32 %v8190_v28, 16  ;;  %v548_v40 = vshll.u32 %v8190_v28, 16  ;;  %v8745_v19 = vld [vmem:[%s8686_s26 + $0xc] sm:$0xff]   ;;  %v8773_v27 = vld [vmem:[%s8686_s26 + $0x3c] sm:$0xff]  }
  0x1c   : > { %v536_v36 = vor.u32 %v534_v31, %v533_v30  ;;  %v552_v41 = vshrl.u32 %v8191_v35, 16  ;;  %v559_v42 = vshrl.u32 %v8192_v37, 16  ;;  %v555_v46 = vshll.u32 %v8191_v35, 16  ;;  %v8199_v16 = vld [vmem:[%s8686_s26 + $0x8] ss:$0 sps:$4 sm:$0x11]  }
  0x1d   : > { %617 = vrot.lane.b32.xlu1 %v512_v13, %s8632_s27  ;;  %607 = vrot.lane.b32.xlu0 %v501_v12, %s8632_s27  ;;  %v543_v38 = vor.u32 %v541_v33, %v540_v32  ;;  %v547_v39 = vrot.slane %v545_v34, 7  ;;  %v562_v49 = vshll.u32 %v8192_v37, 16  ;;  %v566_v50 = vshrl.u32 %v8193_v43, 16  ;;  %v8201_v18 = vld [vmem:[%s8686_s26 + $0x14] ss:$0 sps:$4 sm:$0x11]  }
  0x1e   : > { %v554_v45 = vrot.slane %v552_v41, 7  ;;  %v561_v48 = vrot.slane %v559_v42, 7  ;;  %v573_v52 = vshrl.u32 %v8194_v47, 16  ;;  %v569_v56 = vshll.u32 %v8193_v43, 16  ;;  %v8766_v25 = vld [vmem:[%s8686_s26 + $0x30] sm:$0xff]   ;;  %v8794_v33 = vld [vmem:[%s8686_s26 + $0x60] sm:$0xff]  }
  0x1f   : > { %v550_v44 = vor.u32 %v548_v40, %v547_v39  ;;  %v568_v55 = vrot.slane %v566_v50, 7  ;;  %v576_v58 = vshll.u32 %v8194_v47, 16  ;;  %v580_v59 = vshrl.u32 %v8195_v53, 16  ;;  %v8203_v20 = vld [vmem:[%s8686_s26 + $0x20] ss:$0 sps:$4 sm:$0x11]  }
  0x20   : > { %v557_v51 = vor.u32 %v555_v46, %v554_v45  ;;  %v564_v54 = vor.u32 %v562_v49, %v561_v48  ;;  %v575_v57 = vrot.slane %v573_v52, 7  ;;  %v583_v63 = vshll.u32 %v8195_v53, 16  ;;  %v8205_v22 = vld [vmem:[%s8686_s26 + $0x2c] ss:$0 sps:$4 sm:$0x11]   ;;  %v8787_v31 = vld [vmem:[%s8686_s26 + $0x54] sm:$0xff]  }
  0x21   : > { %621 = vrot.lane.b32.xlu1 %v519_v15, %s8632_s27  ;;  %615 = vrot.lane.b32.xlu0 %v515_v17, %s8632_s27  ;;  %v571_v61 = vor.u32 %v569_v56, %v568_v55  ;;  %v582_v62 = vrot.slane %v580_v59, 7  ;;  %v587_v0 = vshrl.u32 %v8196_v60, 16  ;;  %v590_v5 = vshll.u32 %v8196_v60, 16  ;;  %v8738_v17 = vld [vmem:[%s8686_s26] sm:$0xff]   ;;  %v8801_v35 = vld [vmem:[%s8686_s26 + $0x6c] sm:$0xff]  }
  0x22   : > { %v578_v2 = vor.u32 %v576_v58, %v575_v57  ;;  %v594_v6 = vshrl.u32 %v8197_v1, 16  ;;  %v597_v10 = vshll.u32 %v8197_v1, 16  ;;  %v601_v11 = vshrl.u32 %v8198_v7, 16  ;;  %v8207_v24 = vld [vmem:[%s8686_s26 + $0x38] ss:$0 sps:$4 sm:$0x11]  }
  0x23   : > { %v585_v3 = vor.u32 %v583_v63, %v582_v62  ;;  %v589_v4 = vrot.slane %v587_v0, 7  ;;  %v604_v14 = vshll.u32 %v8198_v7, 16  ;;  %v8211_v28 = vld [vmem:[%s8686_s26 + $0x50] ss:$0 sps:$4 sm:$0x11]   ;;  %v8808_v37 = vld [vmem:[%s8686_s26 + $0x78] sm:$0xff]  }
  0x24   : > { %v596_v9 = vrot.slane %v594_v6, 7  ;;  %v603_v13 = vrot.slane %v601_v11, 7  ;;  %v8217_v34 = vld [vmem:[%s8686_s26 + $0x74] ss:$0 sps:$4 sm:$0x11]   ;;  %v8829_v43 = vld [vmem:[%s8686_s26 + $0x9c] sm:$0xff]  }
  0x25   : > { %625 = vrot.lane.b32.xlu1 %v526_v21, %s8632_s27  ;;  %619 = vrot.lane.b32.xlu0 %v522_v23, %s8632_s27  ;;  %v592_v8 = vor.u32 %v590_v5, %v589_v4  ;;  %v8752_v21 = vld [vmem:[%s8686_s26 + $0x18] sm:$0xff]   ;;  %v8759_v23 = vld [vmem:[%s8686_s26 + $0x24] sm:$0xff]   ;;  %v871_v50 = vshrl.u32 %v8745_v19, 16 }
  0x26   : > { %v599_v12 = vor.u32 %v597_v10, %v596_v9  ;;  %v606_v15 = vor.u32 %v604_v14, %v603_v13  ;;  %v8223_v40 = vld [vmem:[%s8686_s26 + $0x98] ss:$0 sps:$4 sm:$0x11]   ;;  %v8822_v41 = vld [vmem:[%s8686_s26 + $0x90] sm:$0xff]   ;;  %v8840_v47 = vld [vmem:[%s8686_s26 + $0xa8] sm:$0xff]   ;;  %v892_v10 = vshrl.u32 %v8766_v25, 16 }
  0x27   : > { %v8227_v42 = vld [vmem:[%s8686_s26 + $0xa4] ss:$0 sps:$4 sm:$0x11]   ;;  %v8230_v46 = vld [vmem:[%s8686_s26 + $0xb0] ss:$0 sps:$4 sm:$0x11]  }
  0x28   : > { %v8233_v52 = vld [vmem:[%s8686_s26 + $0xbc] ss:$0 sps:$4 sm:$0x11]   ;;  %v8851_v53 = vld [vmem:[%s8686_s26 + $0xb4] sm:$0xff]   ;;  %v8277_v58 = vld [vmem:[%s11779_s1] sm:$0xff]   ;;  %v873_v60 = vrot.slane %v871_v50, 7 }
  0x29   : > { %611 = vrot.lane.b32.xlu1 %v508_v26, %s8632_s27  ;;  %623 = vrot.lane.b32.xlu0 %v529_v29, %s8632_s27  ;;  %v8209_v26 = vld [vmem:[%s8686_s26 + $0x44] ss:$0 sps:$4 sm:$0x11]   ;;  %v8780_v29 = vld [vmem:[%s8686_s26 + $0x48] sm:$0xff]   ;;  %v923_v50 = vshll.u32 %v8794_v33, 16 }
  0x2a   : > { %7995 = vmatprep.subr.bf16.mxu0 %v8277_v58 }
  0x2b   : > { %7996 = vmatpush3.bf16.msra.mxu0 %v8277_v58 }
  0x2d   : > { %629 = vrot.lane.b32.xlu1 %v533_v30, %s8632_s27  ;;  %627 = vrot.lane.b32.xlu0 %v536_v36, %s8632_s27  ;;  %v8213_v30 = vld [vmem:[%s8686_s26 + $0x5c] ss:$0 sps:$4 sm:$0x11]   ;;  %v8219_v36 = vld [vmem:[%s8686_s26 + $0x80] ss:$0 sps:$4 sm:$0x11]  }
  0x31   : > { %633 = vrot.lane.b32.xlu1 %v540_v32, %s8632_s27  ;;  %631 = vrot.lane.b32.xlu0 %v543_v38, %s8632_s27  ;;  %v8215_v32 = vld [vmem:[%s8686_s26 + $0x68] ss:$0 sps:$4 sm:$0x11]   ;;  %v8221_v38 = vld [vmem:[%s8686_s26 + $0x8c] ss:$0 sps:$4 sm:$0x11]  }
  0x35   : > { %637 = vrot.lane.b32.xlu1 %v547_v39, %s8632_s27  ;;  %635 = vrot.lane.b32.xlu0 %v550_v44, %s8632_s27  ;;  %v8815_v39 = vld [vmem:[%s8686_s26 + $0x84] sm:$0xff]  }
  0x39   : > { %641 = vrot.lane.b32.xlu1 %v554_v45, %s8632_s27  ;;  %639 = vrot.lane.b32.xlu0 %v557_v51, %s8632_s27 }
  0x3d   : > { %645 = vrot.lane.b32.xlu1 %v561_v48, %s8632_s27  ;;  %643 = vrot.lane.b32.xlu0 %v564_v54, %s8632_s27  ;;  %v864_v48 = vshrl.u32 %v8738_v17, 16 }
  0x3f   : > { %v866_v54 = vrot.slane %v864_v48, 7 }
  0x41   : > { %649 = vrot.lane.b32.xlu1 %v568_v55, %s8632_s27  ;;  %647 = vrot.lane.b32.xlu0 %v571_v61, %s8632_s27  ;;  %v867_v55 = vshll.u32 %v8738_v17, 16  ;;  %v878_v61 = vshrl.u32 %v8752_v21, 16 }
  0x43   : > { %v880_v1 = vrot.slane %v878_v61, 7 }
  0x45   : > { %653 = vrot.lane.b32.xlu1 %v575_v57, %s8632_s27  ;;  %651 = vrot.lane.b32.xlu0 %v578_v2, %s8632_s27  ;;  %v874_v57 = vshll.u32 %v8745_v19, 16  ;;  %v881_v2 = vshll.u32 %v8752_v21, 16 }
  0x49   : > { %657 = vrot.lane.b32.xlu1 %v582_v62, %s8632_s27  ;;  %655 = vrot.lane.b32.xlu0 %v585_v3, %s8632_s27  ;;  %v869_v62 = vor.u32 %v867_v55, %v866_v54  ;;  %v885_v3 = vshrl.u32 %v8759_v23, 16 }
  0x4b   : > { %v887_v7 = vrot.slane %v885_v3, 7 }
  0x4d   : > { %661 = vrot.lane.b32.xlu1 %v589_v4, %s8632_s27  ;;  %659 = vrot.lane.b32.xlu0 %v592_v8, %s8632_s27  ;;  %v876_v4 = vor.u32 %v874_v57, %v873_v60  ;;  %v883_v8 = vor.u32 %v881_v2, %v880_v1  ;;  %v941_v2 = vshrl.u32 %v8815_v39, 16 }
  0x51   : > { %665 = vrot.lane.b32.xlu1 %v596_v9, %s8632_s27  ;;  %663 = vrot.lane.b32.xlu0 %v599_v12, %s8632_s27  ;;  %v888_v9 = vshll.u32 %v8759_v23, 16 }
  0x53   : > { %v890_v14 = vor.u32 %v888_v9, %v887_v7  ;;  %v948_v9 = vshrl.u32 %v8822_v41, 16 }
  0x55   : > { %669 = vrot.lane.b32.xlu1 %v603_v13, %s8632_s27  ;;  %667 = vrot.lane.b32.xlu0 %v606_v15, %s8632_s27  ;;  %v895_v13 = vshll.u32 %v8766_v25, 16  ;;  %v894_v15 = vrot.slane %v892_v10, 7 }
  0x59   : > { %801 = vrot.lane.b32.xlu1 %v8199_v16, %s8633_s28  ;;  %799 = vrot.lane.b32.xlu0 %v8738_v17, %s8633_s28  ;;  %v899_v16 = vshrl.u32 %v8773_v27, 16 }
  0x5d   : > { %805 = vrot.lane.b32.xlu1 %v8201_v18, %s8633_s28  ;;  %803 = vrot.lane.b32.xlu0 %v8745_v19, %s8633_s28  ;;  %v902_v19 = vshll.u32 %v8773_v27, 16 }
  0x61   : > { %809 = vrot.lane.b32.xlu1 %v8203_v20, %s8633_s28  ;;  %807 = vrot.lane.b32.xlu0 %v8752_v21, %s8633_s28  ;;  %v897_v20 = vor.u32 %v895_v13, %v894_v15  ;;  %v901_v21 = vrot.slane %v899_v16, 7  ;;  %v955_v16 = vshrl.u32 %v8829_v43, 16 }
  0x65   : > { %813 = vrot.lane.b32.xlu1 %v8205_v22, %s8633_s28  ;;  %811 = vrot.lane.b32.xlu0 %v8759_v23, %s8633_s28  ;;  %v906_v22 = vshrl.u32 %v8780_v29, 16 }
  0x69   : > { %817 = vrot.lane.b32.xlu1 %v8207_v24, %s8633_s28  ;;  %815 = vrot.lane.b32.xlu0 %v8766_v25, %s8633_s28  ;;  %v909_v25 = vshll.u32 %v8780_v29, 16 }
  0x6d   : > { %821 = vrot.lane.b32.xlu1 %v8209_v26, %s8633_s28  ;;  %819 = vrot.lane.b32.xlu0 %v8773_v27, %s8633_s28  ;;  %v904_v26 = vor.u32 %v902_v19, %v901_v21  ;;  %v908_v27 = vrot.slane %v906_v22, 7  ;;  %v958_v22 = vshll.u32 %v8829_v43, 16 }
  0x71   : > { %825 = vrot.lane.b32.xlu1 %v8211_v28, %s8633_s28  ;;  %823 = vrot.lane.b32.xlu0 %v8780_v29, %s8633_s28  ;;  %v913_v28 = vshrl.u32 %v8787_v31, 16 }
  0x73   : > { %v915_v29 = vrot.slane %v913_v28, 7  ;;  %v7297_v28 = vld [vmem:[%s8686_s26 + $0xc] sm:$0xf] }
  0x75   : > { %829 = vrot.lane.b32.xlu1 %v8213_v30, %s8633_s28  ;;  %827 = vrot.lane.b32.xlu0 %v8787_v31, %s8633_s28 }
  0x79   : > { %833 = vrot.lane.b32.xlu1 %v8215_v32, %s8633_s28  ;;  %831 = vrot.lane.b32.xlu0 %v8794_v33, %s8633_s28 }
  0x7d   : > { %837 = vrot.lane.b32.xlu1 %v8217_v34, %s8633_s28  ;;  %835 = vrot.lane.b32.xlu0 %v8801_v35, %s8633_s28  ;;  %v920_v34 = vshrl.u32 %v8794_v33, 16  ;;  %v937_v33 = vshll.u32 %v8808_v37, 16 }
  0x81   : > { %841 = vrot.lane.b32.xlu1 %v8219_v36, %s8633_s28  ;;  %839 = vrot.lane.b32.xlu0 %v8808_v37, %s8633_s28  ;;  %v911_v36 = vor.u32 %v909_v25, %v908_v27  ;;  %v962_v25 = vshrl.u32 %v8840_v47, 16 }
  0x85   : > { %845 = vrot.lane.b32.xlu1 %v8221_v38, %s8633_s28  ;;  %843 = vrot.lane.b32.xlu0 %v8815_v39, %s8633_s28  ;;  %v916_v38 = vshll.u32 %v8787_v31, 16  ;;  %v930_v31 = vshll.u32 %v8801_v35, 16 }
  0x87   : > { %v918_v48 = vor.u32 %v916_v38, %v915_v29  ;;  %v964_v38 = vrot.slane %v962_v25, 7 }
  0x89   : > { %849 = vrot.lane.b32.xlu1 %v8223_v40, %s8633_s28  ;;  %847 = vrot.lane.b32.xlu0 %v8822_v41, %s8633_s28 }
  0x8b   : > { %v8831_v44 = vpop.permute.xlu1 %613  ;;  %v8833_v45 = vpop.permute.xlu0 %609 }
  0x8d   : > { %853 = vrot.lane.b32.xlu1 %v8227_v42, %s8633_s28  ;;  %851 = vrot.lane.b32.xlu0 %v8829_v43, %s8633_s28  ;;  %v965_v43 = vshll.u32 %v8840_v47, 16 }
  0x8f   : > { %v8843_v49 = vpop.permute.xlu1 %617  ;;  %v8846_v51 = vpop.permute.xlu0 %607 }
  0x91   : > { %857 = vrot.lane.b32.xlu1 %v8230_v46, %s8633_s28  ;;  %855 = vrot.lane.b32.xlu0 %v8840_v47, %s8633_s28  ;;  %v922_v46 = vrot.slane %v920_v34, 7 }
  0x93   : > { %v8856_v56 = vpop.permute.xlu1 %621  ;;  %v8862_v59 = vpop.permute.xlu0 %615  ;;  %v925_v57 = vor.u32 %v923_v50, %v922_v46  ;;  %v7298_v50 = vld [vmem:[%s8686_s26 + $0x18] sm:$0xf] }
  0x95   : > { %861 = vrot.lane.b32.xlu1 %v8233_v52, %s8633_s28  ;;  %859 = vrot.lane.b32.xlu0 %v8851_v53, %s8633_s28  ;;  %v927_v52 = vshrl.u32 %v8801_v35, 16 }
  0x97   : > { %v8868_v63 = vpop.permute.xlu1 %625  ;;  %v8870_v0 = vpop.permute.xlu0 %619  ;;  %v929_v58 = vrot.slane %v927_v52, 7 }
  0x99   : > { %977 = vrot.lane.b32.xlu1 %v866_v54, %s8634_s5  ;;  %975 = vrot.lane.b32.xlu0 %v869_v62, %s8634_s5 }
  0x9b   : > { %v8876_v5 = vpop.permute.xlu1 %611  ;;  %v8878_v6 = vpop.permute.xlu0 %623 }
  0x9d   : > { %981 = vrot.lane.b32.xlu1 %v873_v60, %s8634_s5  ;;  %979 = vrot.lane.b32.xlu0 %v876_v4, %s8634_s5  ;;  %v934_v60 = vshrl.u32 %v8808_v37, 16  ;;  %v943_v37 = vrot.slane %v941_v2, 7  ;;  %v7256_v2 = vld [vmem:[%s8686_s26 + $0x28] sm:$0xf] }
  0x9f   : > { %v8884_v11 = vpop.permute.xlu1 %629  ;;  %v8886_v12 = vpop.permute.xlu0 %627  ;;  %v936_v35 = vrot.slane %v934_v60, 7 }
  0xa1   : > { %985 = vrot.lane.b32.xlu1 %v880_v1, %s8634_s5  ;;  %983 = vrot.lane.b32.xlu0 %v883_v8, %s8634_s5  ;;  %v932_v1 = vor.u32 %v930_v31, %v929_v58  ;;  %v939_v8 = vor.u32 %v937_v33, %v936_v35  ;;  %v967_v33 = vor.u32 %v965_v43, %v964_v38 }
  0xa3   : > { %v8892_v17 = vpop.permute.xlu1 %633  ;;  %v8894_v18 = vpop.permute.xlu0 %631 }
  0xa5   : > { %989 = vrot.lane.b32.xlu1 %v887_v7, %s8634_s5  ;;  %987 = vrot.lane.b32.xlu0 %v890_v14, %s8634_s5  ;;  %v944_v7 = vshll.u32 %v8815_v39, 16  ;;  %v951_v14 = vshll.u32 %v8822_v41, 16  ;;  %v957_v41 = vrot.slane %v955_v16, 7 }
  0xa7   : > { %v8900_v23 = vpop.permute.xlu1 %637  ;;  %v8902_v24 = vpop.permute.xlu0 %635  ;;  %v946_v39 = vor.u32 %v944_v7, %v943_v37  ;;  %v7299_v7 = vld [vmem:[%s8686_s26 + $0x24] sm:$0xf] }
  0xa8   : > { %v7347_v16 = vcombine.low %v7299_v7, %v7256_v2  ;;  %v8253_v2 = vld [vmem:[%s8686_s26 + $0x38] ss:$0 sps:$4 sm:$0x11]  }
  0xa9   : > { %993 = vrot.lane.b32.xlu1 %v894_v15, %s8634_s5  ;;  %991 = vrot.lane.b32.xlu0 %v897_v20, %s8634_s5  ;;  %v950_v15 = vrot.slane %v948_v9, 7  ;;  %v8249_v9 = vld [vmem:[%s8686_s26 + $0x20] ss:$0 sps:$4 sm:$0x11]  }
  0xab   : > { %v8908_v30 = vpop.permute.xlu1 %641  ;;  %v8910_v32 = vpop.permute.xlu0 %639 }
  0xad   : > { %997 = vrot.lane.b32.xlu1 %v901_v21, %s8634_s5  ;;  %995 = vrot.lane.b32.xlu0 %v904_v26, %s8634_s5  ;;  %v953_v21 = vor.u32 %v951_v14, %v950_v15 }
  0xaf   : > { %v8916_v40 = vpop.permute.xlu1 %645  ;;  %v8918_v42 = vpop.permute.xlu0 %643 }
  0xb1   : > { %1001 = vrot.lane.b32.xlu1 %v908_v27, %s8634_s5  ;;  %999 = vrot.lane.b32.xlu0 %v911_v36, %s8634_s5  ;;  %v7250_v27 = vld [vmem:[%s8686_s26 + $0x10] sm:$0xf]  ;;  %v969_v36 = vshrl.u32 %v8851_v53, 16 }
  0xb3   : > { %v8924_v54 = vpop.permute.xlu1 %649  ;;  %v8926_v55 = vpop.permute.xlu0 %647 }
  0xb4   : > { %11784 = vst [vmem:[#allocation3_spill] sm:$0xff] %v8926_v55 }
  0xb5   : > { %1005 = vrot.lane.b32.xlu1 %v915_v29, %s8634_s5  ;;  %1003 = vrot.lane.b32.xlu0 %v918_v48, %s8634_s5  ;;  %v960_v29 = vor.u32 %v958_v22, %v957_v41  ;;  %v7253_v48 = vld [vmem:[%s8686_s26 + $0x1c] sm:$0xf]  ;;  %v7300_v22 = vld [vmem:[%s8686_s26 + $0x30] sm:$0xf] }
  0xb6   : > { %v7346_v60 = vcombine.low %v7298_v50, %v7253_v48 }
  0xb7   : > { %v8932_v61 = vpop.permute.xlu1 %653  ;;  %v8934_v62 = vpop.permute.xlu0 %651 }
  0xb8   : > { %11785 = vst [vmem:[#allocation4_spill] sm:$0xff] %v8932_v61  ;;  %11786 = vst [vmem:[#allocation5_spill] sm:$0xff] %v8934_v62 }
  0xb9   : > { %1009 = vrot.lane.b32.xlu1 %v922_v46, %s8634_s5  ;;  %1007 = vrot.lane.b32.xlu0 %v925_v57, %s8634_s5  ;;  %v7345_v46 = vcombine.low %v7297_v28, %v7250_v27  ;;  %v971_v57 = vrot.slane %v969_v36, 7  ;;  %v2057_v28 = vshll.u32 %v8249_v9, 16  ;;  %v2053_v36 = vshll.u32 %v7346_v60, 16 }
  0xbb   : > { %v8940_v3 = vpop.permute.xlu1 %657  ;;  %v8942_v4 = vpop.permute.xlu0 %655  ;;  %v2039_v47 = vshrl.u32 %v7345_v46, 16 }
  0xbc   : > { %11787 = vst [vmem:[#allocation6_spill] sm:$0xff] %v8940_v3  ;;  %11788 = vst [vmem:[#allocation7_spill] sm:$0xff] %v8942_v4  ;;  %v7307_v3 = vld [vmem:[%s8686_s26 + $0x84] sm:$0xf] }
  0xbd   : > { %1013 = vrot.lane.b32.xlu1 %v929_v58, %s8634_s5  ;;  %1011 = vrot.lane.b32.xlu0 %v932_v1, %s8634_s5  ;;  %v972_v58 = vshll.u32 %v8851_v53, 16  ;;  %v8247_v1 = vld [vmem:[%s8686_s26 + $0x14] ss:$0 sps:$4 sm:$0x11]   ;;  %v2050_v53 = vshrl.u32 %v7346_v60, 16  ;;  %v2041_v14 = vrot.slane %v2039_v47, 7 }
  0xbe   : > { %v2064_v47 = vshll.u32 %v7347_v16, 16 }
  0xbf   : > { %v8948_v10 = vpop.permute.xlu1 %661  ;;  %v8950_v13 = vpop.permute.xlu0 %659  ;;  %v2052_v27 = vrot.slane %v2050_v53, 7 }
  0xc0   : > { %11789 = vst [vmem:[#allocation8_spill] sm:$0xff] %v8948_v10  ;;  %11790 = vst [vmem:[#allocation9_spill] sm:$0xff] %v8950_v13 }
  0xc1   : > { %1017 = vrot.lane.b32.xlu1 %v936_v35, %s8634_s5  ;;  %1015 = vrot.lane.b32.xlu0 %v939_v8, %s8634_s5  ;;  %v2055_v7 = vor.u32 %v2053_v36, %v2052_v27 }
  0xc3   : > { %v8956_v19 = vpop.permute.xlu1 %665  ;;  %v8958_v20 = vpop.permute.xlu0 %663 }
  0xc4   : > { %11791 = vst [vmem:[#allocation10_spill] sm:$0xff] %v8956_v19  ;;  %11792 = vst [vmem:[#allocation11_spill] sm:$0xff] %v8958_v20  ;;  %v7305_v19 = vld [vmem:[%s8686_s26 + $0x6c] sm:$0xf] }
  0xc5   : > { %1021 = vrot.lane.b32.xlu1 %v943_v37, %s8634_s5  ;;  %1019 = vrot.lane.b32.xlu0 %v946_v39, %s8634_s5  ;;  %v974_v37 = vor.u32 %v972_v58, %v971_v57  ;;  %v2046_v39 = vshll.u32 %v8247_v1, 16  ;;  %v7262_v58 = vld [vmem:[%s8686_s26 + $0x40] sm:$0xf] }
  0xc7   : > { %v8964_v26 = vpop.permute.xlu1 %669  ;;  %v8968_v34 = vpop.permute.xlu0 %667 }
  0xc8   : > { %11793 = vst [vmem:[#allocation12_spill] sm:$0xff] %v8964_v26  ;;  %11794 = vst [vmem:[#allocation13_spill] sm:$0xff] %v8968_v34 }
  0xc9   : > { %1025 = vrot.lane.b32.xlu1 %v950_v15, %s8634_s5  ;;  %1023 = vrot.lane.b32.xlu0 %v953_v21, %s8634_s5  ;;  %v2042_v15 = vshll.u32 %v7345_v46, 16  ;;  %v2061_v46 = vshrl.u32 %v7347_v16, 16 }
  0xcb   : > { %v8976_v52 = vpop.permute.xlu1 %801  ;;  %v8978_v31 = vpop.permute.xlu0 %799  ;;  %v2044_v43 = vor.u32 %v2042_v15, %v2041_v14 }
  0xcd   : > { %1029 = vrot.lane.b32.xlu1 %v957_v41, %s8634_s5  ;;  %1027 = vrot.lane.b32.xlu0 %v960_v29, %s8634_s5  ;;  %v7259_v41 = vld [vmem:[%s8686_s26 + $0x34] sm:$0xf]  ;;  %v8251_v29 = vld [vmem:[%s8686_s26 + $0x2c] ss:$0 sps:$4 sm:$0x11]  }
  0xce   : > { %v7348_v48 = vcombine.low %v7300_v22, %v7259_v41  ;;  %v2068_v60 = vshll.u32 %v8251_v29, 16  ;;  %v2079_v22 = vshll.u32 %v8253_v2, 16  ;;  %v8257_v2 = vld [vmem:[%s8686_s26 + $0x50] ss:$0 sps:$4 sm:$0x11]  }
  0xcf   : > { %v8984_v35 = vpop.permute.xlu1 %805  ;;  %v8988_v8 = vpop.permute.xlu0 %803 }
  0xd0   : > { %v2072_v9 = vshrl.u32 %v7348_v48, 16  ;;  %v2075_v16 = vshll.u32 %v7348_v48, 16 }
  0xd1   : > { %1033 = vrot.lane.b32.xlu1 %v964_v38, %s8634_s5  ;;  %1031 = vrot.lane.b32.xlu0 %v967_v33, %s8634_s5  ;;  %v2048_v38 = vsel %vm2037_vm0, %v2041_v14, %v2046_v39  ;;  %v7301_v33 = vld [vmem:[%s8686_s26 + $0x3c] sm:$0xf]  ;;  %v7265_v14 = vld [vmem:[%s8686_s26 + $0x4c] sm:$0xf] }
  0xd2   : > { %v7349_v53 = vcombine.low %v7301_v33, %v7262_v58  ;;  %v7302_v39 = vld [vmem:[%s8686_s26 + $0x48] sm:$0xf]  ;;  %v7268_v58 = vld [vmem:[%s8686_s26 + $0x58] sm:$0xf]  ;;  %v7303_v33 = vld [vmem:[%s8686_s26 + $0x54] sm:$0xf] }
  0xd3   : > { %v8993_v21 = vpop.permute.xlu1 %809  ;;  %v8997_v25 = vpop.permute.xlu0 %807  ;;  %v7350_v29 = vcombine.low %v7302_v39, %v7265_v14  ;;  %v7304_v39 = vld [vmem:[%s8686_s26 + $0x60] sm:$0xf] }
  0xd5   : > { %1037 = vrot.lane.b32.xlu1 %v971_v57, %s8634_s5  ;;  %1035 = vrot.lane.b32.xlu0 %v974_v37, %s8634_s5  ;;  %v2059_v57 = vsel %vm2037_vm0, %v2052_v27, %v2057_v28  ;;  %v2063_v37 = vrot.slane %v2061_v46, 7  ;;  %v8255_v28 = vld [vmem:[%s8686_s26 + $0x44] ss:$0 sps:$4 sm:$0x11]   ;;  %v2094_v14 = vshrl.u32 %v7350_v29, 16 }
  0xd6   : > { %v2090_v48 = vshll.u32 %v8255_v28, 16  ;;  %v2101_v28 = vshll.u32 %v8257_v2, 16 }
  0xd7   : > { %v9003_v50 = vpop.permute.xlu1 %813  ;;  %v9007_v1 = vpop.permute.xlu0 %811  ;;  %v2070_v27 = vsel %vm2037_vm0, %v2063_v37, %v2068_v60  ;;  %v2066_v36 = vor.u32 %v2064_v47, %v2063_v37  ;;  %v7351_v37 = vcombine.low %v7303_v33, %v7268_v58  ;;  %v7274_v33 = vld [vmem:[%s8686_s26 + $0x70] sm:$0xf] }
  0xd9   : > { %2216 = vrot.lane.b32.xlu1 %v2048_v38, %s8632_s27  ;;  %2214 = vrot.lane.b32.xlu0 %v2044_v43, %s8632_s27  ;;  %v2074_v38 = vrot.slane %v2072_v9, 7  ;;  %v2083_v43 = vshrl.u32 %v7349_v53, 16  ;;  %v7271_v9 = vld [vmem:[%s8686_s26 + $0x64] sm:$0xf] }
  0xdb   : > { %v9015_v15 = vpop.permute.xlu1 %817  ;;  %v9017_v41 = vpop.permute.xlu0 %815  ;;  %v2081_v60 = vsel %vm2037_vm0, %v2074_v38, %v2079_v22  ;;  %v2077_v47 = vor.u32 %v2075_v16, %v2074_v38  ;;  %v8259_v38 = vld [vmem:[%s8686_s26 + $0x5c] ss:$0 sps:$4 sm:$0x11]  }
  0xdd   : > { %2220 = vrot.lane.b32.xlu1 %v2059_v57, %s8632_s27  ;;  %2218 = vrot.lane.b32.xlu0 %v2055_v7, %s8632_s27  ;;  %v2086_v57 = vshll.u32 %v7349_v53, 16  ;;  %v2085_v7 = vrot.slane %v2083_v43, 7  ;;  %v2096_v53 = vrot.slane %v2094_v14, 7  ;;  %v2105_v43 = vshrl.u32 %v7351_v37, 16 }
  0xde   : > { %v2108_v14 = vshll.u32 %v7351_v37, 16 }
  0xdf   : > { %v9023_v46 = vpop.permute.xlu1 %821  ;;  %v9027_v34 = vpop.permute.xlu0 %819  ;;  %v2092_v22 = vsel %vm2037_vm0, %v2085_v7, %v2090_v48  ;;  %v2088_v16 = vor.u32 %v2086_v57, %v2085_v7  ;;  %v2103_v2 = vsel %vm2037_vm0, %v2096_v53, %v2101_v28  ;;  %v2107_v48 = vrot.slane %v2105_v43, 7 }
  0xe0   : > { %v2112_v57 = vshll.u32 %v8259_v38, 16  ;;  %v7353_v7 = vcombine.low %v7305_v19, %v7274_v33  ;;  %v7280_v33 = vld [vmem:[%s8686_s26 + $0x88] sm:$0xf] }
  0xe1   : > { %2224 = vrot.lane.b32.xlu1 %v2070_v27, %s8632_s27  ;;  %2222 = vrot.lane.b32.xlu0 %v2066_v36, %s8632_s27  ;;  %v7352_v27 = vcombine.low %v7304_v39, %v7271_v9  ;;  %v2097_v36 = vshll.u32 %v7350_v29, 16  ;;  %v7277_v9 = vld [vmem:[%s8686_s26 + $0x7c] sm:$0xf]  ;;  %v7306_v39 = vld [vmem:[%s8686_s26 + $0x78] sm:$0xf] }
  0xe2   : > { %v2127_v38 = vshrl.u32 %v7353_v7, 16 }
  0xe3   : > { %v9035_v26 = vpop.permute.xlu1 %825  ;;  %v9037_v20 = vpop.permute.xlu0 %823  ;;  %v2099_v29 = vor.u32 %v2097_v36, %v2096_v53  ;;  %v2114_v53 = vsel %vm2037_vm0, %v2107_v48, %v2112_v57  ;;  %v2119_v19 = vshll.u32 %v7352_v27, 16  ;;  %v8263_v36 = vld [vmem:[%s8686_s26 + $0x74] ss:$0 sps:$4 sm:$0x11]   ;;  %v7355_v57 = vcombine.low %v7307_v3, %v7280_v33  ;;  %v7286_v33 = vld [vmem:[%s8686_s26 + $0xa0] sm:$0xf] }
  0xe5   : > { %2228 = vrot.lane.b32.xlu1 %v2081_v60, %s8632_s27  ;;  %2226 = vrot.lane.b32.xlu0 %v2077_v47, %s8632_s27  ;;  %v8261_v60 = vld [vmem:[%s8686_s26 + $0x68] ss:$0 sps:$4 sm:$0x11]   ;;  %v2116_v47 = vshrl.u32 %v7352_v27, 16 }
  0xe6   : > { %v2123_v28 = vshll.u32 %v8261_v60, 16  ;;  %v2130_v60 = vshll.u32 %v7353_v7, 16 }
  0xe7   : > { %v9043_v58 = vpop.permute.xlu1 %829  ;;  %v9047_v13 = vpop.permute.xlu0 %827  ;;  %v2118_v37 = vrot.slane %v2116_v47, 7  ;;  %v8265_v47 = vld [vmem:[%s8686_s26 + $0x80] ss:$0 sps:$4 sm:$0x11]  }
  0xe9   : > { %2232 = vrot.lane.b32.xlu1 %v2092_v22, %s8632_s27  ;;  %2230 = vrot.lane.b32.xlu0 %v2088_v16, %s8632_s27  ;;  %v7354_v22 = vcombine.low %v7306_v39, %v7277_v9  ;;  %v2110_v16 = vor.u32 %v2108_v14, %v2107_v48  ;;  %v2121_v27 = vor.u32 %v2119_v19, %v2118_v37  ;;  %v2129_v14 = vrot.slane %v2127_v38, 7  ;;  %v7283_v9 = vld [vmem:[%s8686_s26 + $0x94] sm:$0xf]  ;;  %v7308_v39 = vld [vmem:[%s8686_s26 + $0x90] sm:$0xf] }
  0xea   : > { %v2134_v48 = vshll.u32 %v8263_v36, 16  ;;  %v8267_v19 = vld [vmem:[%s8686_s26 + $0x8c] ss:$0 sps:$4 sm:$0x11]   ;;  %v2149_v36 = vshrl.u32 %v7355_v57, 16 }
  0xeb   : > { %v9055_v10 = vpop.permute.xlu1 %833  ;;  %v9057_v4 = vpop.permute.xlu0 %831  ;;  %v2141_v3 = vshll.u32 %v7354_v22, 16 }
  0xed   : > { %2236 = vrot.lane.b32.xlu1 %v2103_v2, %s8632_s27  ;;  %2234 = vrot.lane.b32.xlu0 %v2099_v29, %s8632_s27  ;;  %v2125_v2 = vsel %vm2037_vm0, %v2118_v37, %v2123_v28  ;;  %v2138_v29 = vshrl.u32 %v7354_v22, 16  ;;  %v2145_v28 = vshll.u32 %v8265_v47, 16  ;;  %v2136_v37 = vsel %vm2037_vm0, %v2129_v14, %v2134_v48 }
  0xee   : > { %v2152_v47 = vshll.u32 %v7355_v57, 16 }
  0xef   : > { %v9063_v43 = vpop.permute.xlu1 %837  ;;  %v9067_v62 = vpop.permute.xlu0 %835  ;;  %v2140_v7 = vrot.slane %v2138_v29, 7  ;;  %v8269_v29 = vld [vmem:[%s8686_s26 + $0x98] ss:$0 sps:$4 sm:$0x11]  }
  0xf0   : > { %11795 = vst [vmem:[#allocation14_spill] sm:$0xff] %v9067_v62 }
  0xf1   : > { %2240 = vrot.lane.b32.xlu1 %v2114_v53, %s8632_s27  ;;  %2238 = vrot.lane.b32.xlu0 %v2110_v16, %s8632_s27  ;;  %v7356_v53 = vcombine.low %v7308_v39, %v7283_v9  ;;  %v2132_v16 = vor.u32 %v2130_v60, %v2129_v14  ;;  %v2143_v22 = vor.u32 %v2141_v3, %v2140_v7  ;;  %v2151_v60 = vrot.slane %v2149_v36, 7  ;;  %v7289_v9 = vld [vmem:[%s8686_s26 + $0xac] sm:$0xf]  ;;  %v7310_v39 = vld [vmem:[%s8686_s26 + $0xa8] sm:$0xf] }
  0xf2   : > { %v2156_v14 = vshll.u32 %v8267_v19, 16  ;;  %v8271_v3 = vld [vmem:[%s8686_s26 + $0xa4] ss:$0 sps:$4 sm:$0x11]  }
  0xf3   : > { %v9075_v61 = vpop.permute.xlu1 %841  ;;  %v9077_v55 = vpop.permute.xlu0 %839 }
  0xf4   : > { %11796 = vst [vmem:[#allocation15_spill] sm:$0xff] %v9075_v61  ;;  %11797 = vst [vmem:[#allocation16_spill] sm:$0xff] %v9077_v55  ;;  %v7309_v55 = vld [vmem:[%s8686_s26 + $0x9c] sm:$0xf] }
  0xf5   : > { %2244 = vrot.lane.b32.xlu1 %v2125_v2, %s8632_s27  ;;  %2242 = vrot.lane.b32.xlu0 %v2121_v27, %s8632_s27  ;;  %v2147_v2 = vsel %vm2037_vm0, %v2140_v7, %v2145_v28  ;;  %v2160_v27 = vshrl.u32 %v7356_v53, 16  ;;  %v7357_v48 = vcombine.low %v7309_v55, %v7286_v33  ;;  %v2167_v28 = vshll.u32 %v8269_v29, 16  ;;  %v7292_v33 = vld [vmem:[%s8686_s26 + $0xb8] sm:$0xf] }
  0xf6   : > { %v2158_v7 = vsel %vm2037_vm0, %v2151_v60, %v2156_v14  ;;  %v2163_v55 = vshll.u32 %v7356_v53, 16 }
  0xf7   : > { %v9083_v38 = vpop.permute.xlu1 %845  ;;  %v9087_v61 = vpop.permute.xlu0 %843  ;;  %v2162_v57 = vrot.slane %v2160_v27, 7  ;;  %v2171_v19 = vshrl.u32 %v7357_v48, 16  ;;  %v2174_v29 = vshll.u32 %v7357_v48, 16  ;;  %v8273_v27 = vld [vmem:[%s8686_s26 + $0xb0] ss:$0 sps:$4 sm:$0x11]  }
  0xf8   : > { %11798 = vst [vmem:[#allocation17_spill] sm:$0xff] %v9083_v38  ;;  %11799 = vst [vmem:[#allocation18_spill] sm:$0xff] %v9087_v61 }
  0xf9   : > { %2248 = vrot.lane.b32.xlu1 %v2136_v37, %s8632_s27  ;;  %2246 = vrot.lane.b32.xlu0 %v2132_v16, %s8632_s27  ;;  %v7358_v37 = vcombine.low %v7310_v39, %v7289_v9  ;;  %v2154_v16 = vor.u32 %v2152_v47, %v2151_v60  ;;  %v2165_v53 = vor.u32 %v2163_v55, %v2162_v57  ;;  %v2173_v47 = vrot.slane %v2171_v19, 7  ;;  %v7295_v9 = vld [vmem:[%s8686_s26 + $0xc4] sm:$0xf]  ;;  %v7312_v39 = vld [vmem:[%s8686_s26 + $0xc0] sm:$0xf] }
  0xfa   : > { %v2178_v60 = vshll.u32 %v8271_v3, 16  ;;  %v8275_v3 = vld [vmem:[%s8686_s26 + $0xbc] ss:$0 sps:$4 sm:$0x11]  }
  0xfb   : > { %v9095_v38 = vpop.permute.xlu1 %849  ;;  %v9097_v61 = vpop.permute.xlu0 %847  ;;  %v2185_v55 = vshll.u32 %v7358_v37, 16 }
  0xfc   : > { %11800 = vst [vmem:[#allocation19_spill] sm:$0xff] %v9095_v38  ;;  %11801 = vst [vmem:[#allocation20_spill] sm:$0xff] %v9097_v61  ;;  %v7311_v61 = vld [vmem:[%s8686_s26 + $0xb4] sm:$0xf] }
  0xfd   : > { %2252 = vrot.lane.b32.xlu1 %v2147_v2, %s8632_s27  ;;  %2250 = vrot.lane.b32.xlu0 %v2143_v22, %s8632_s27  ;;  %v2169_v2 = vsel %vm2037_vm0, %v2162_v57, %v2167_v28  ;;  %v2182_v22 = vshrl.u32 %v7358_v37, 16  ;;  %v7359_v14 = vcombine.low %v7311_v61, %v7292_v33  ;;  %v8226_v28 = vld [vmem:[%s8686_s26 + $0x14] ss:$0 sps:$4 sm:$0x11]   ;;  %v2180_v61 = vsel %vm2037_vm0, %v2173_v47, %v2178_v60 }
  0xfe   : > { %v2176_v57 = vor.u32 %v2174_v29, %v2173_v47  ;;  %v8225_v33 = vld [vmem:[%s8686_s26 + $0x20] ss:$0 sps:$4 sm:$0x11]   ;;  %v8278_v29 = vld [vmem:[%s8686_s26 + $0xc8] ss:$0 sps:$4 sm:$0x11]  }
  0xff   : > { %v9103_v36 = vpop.permute.xlu1 %853  ;;  %v9107_v38 = vpop.permute.xlu0 %851  ;;  %v2184_v48 = vrot.slane %v2182_v22, 7  ;;  %v2193_v19 = vshrl.u32 %v7359_v14, 16  ;;  %v2200_v47 = vshll.u32 %v8275_v3, 16  ;;  %v2196_v60 = vshll.u32 %v7359_v14, 16 }
 0x100   : > { %11802 = vst [vmem:[#allocation21_spill] sm:$0xff] %v9103_v36  ;;  %11803 = vst [vmem:[#allocation22_spill] sm:$0xff] %v9107_v38 }
 0x101   : > { %2256 = vrot.lane.b32.xlu1 %v2158_v7, %s8632_s27  ;;  %2254 = vrot.lane.b32.xlu0 %v2154_v16, %s8632_s27  ;;  %v2189_v7 = vshll.u32 %v8273_v27, 16  ;;  %v7360_v16 = vcombine.low %v7312_v39, %v7295_v9  ;;  %v2187_v22 = vor.u32 %v2185_v55, %v2184_v48  ;;  %v8491_v9 = vld [vmem:[%s8686_s26 + $0xc] sm:$0xff]   ;;  %v2211_v55 = vshll.u32 %v8278_v29, 16 }
 0x102   : > { %v1041_v39 = vsel %vm1039_vm1, %v8491_v9, %v8846_v51 }
 0x103   : > { %v9115_v36 = vpop.permute.xlu1 %857  ;;  %v9117_v38 = vpop.permute.xlu0 %855  ;;  %v2191_v27 = vsel %vm2037_vm0, %v2184_v48, %v2189_v7  ;;  %v2204_v37 = vshrl.u32 %v7360_v16, 16  ;;  %v1049_v7 = vsel %vm1039_vm1, %v8225_v33, %v8831_v44  ;;  %v1122_v48 = vsel %vm1120_vm2, %v1041_v39, %v8978_v31  ;;  %v8492_v31 = vld [vmem:[%s8686_s26 + $0x18] sm:$0xff]  }
 0x104   : > { %11804 = vst [vmem:[#allocation23_spill] sm:$0xff] %v9115_v36  ;;  %11805 = vst [vmem:[#allocation24_spill] sm:$0xff] %v9117_v38  ;;  %v8229_v38 = vld [vmem:[%s8686_s26 + $0x2c] ss:$0 sps:$4 sm:$0x11]   ;;  %v2207_v3 = vshll.u32 %v7360_v16, 16  ;;  %v1046_v33 = vsel %vm1039_vm1, %v8492_v31, %v8876_v5 }
 0x105   : > { %2260 = vrot.lane.b32.xlu1 %v2169_v2, %s8632_s27  ;;  %2258 = vrot.lane.b32.xlu0 %v2165_v53, %s8632_s27  ;;  %v1044_v2 = vsel %vm1039_vm1, %v8226_v28, %v8833_v45  ;;  %v2195_v53 = vrot.slane %v2193_v19, 7  ;;  %v1126_v16 = vsel %vm1120_vm2, %v1046_v33, %v8988_v8  ;;  %v8494_v31 = vld [vmem:[%s8686_s26 + $0x30] sm:$0xff]  }
 0x106   : > { %v1124_v45 = vsel %vm1120_vm2, %v1044_v2, %v8976_v52  ;;  %v2206_v52 = vrot.slane %v2204_v37, 7 }
 0x107   : > { %v9125_v36 = vpop.permute.xlu1 %861  ;;  %v9128_v62 = vpop.permute.xlu0 %859  ;;  %v2202_v44 = vsel %vm2037_vm0, %v2195_v53, %v2200_v47 }
 0x108   : > { %v2209_v39 = vor.u32 %v2207_v3, %v2206_v52 }
 0x109   : > { %2264 = vrot.lane.b32.xlu1 %v2180_v61, %s8632_s27  ;;  %2262 = vrot.lane.b32.xlu0 %v2176_v57, %s8632_s27  ;;  %v1054_v61 = vsel %vm1039_vm1, %v8229_v38, %v8843_v49  ;;  %v2198_v49 = vor.u32 %v2196_v60, %v2195_v53  ;;  %v8232_v38 = vld [vmem:[%s8686_s26 + $0x38] ss:$0 sps:$4 sm:$0x11]   ;;  %v8493_v60 = vld [vmem:[%s8686_s26 + $0x24] sm:$0xff]  }
 0x10a   : > { %v1051_v5 = vsel %vm1039_vm1, %v8493_v60, %v8862_v59  ;;  %v1059_v59 = vsel %vm1039_vm1, %v8232_v38, %v8856_v56  ;;  %v1056_v56 = vsel %vm1039_vm1, %v8494_v31, %v8870_v0 }
 0x10b   : > { %v978_v28 = vpop.permute.xlu1 %977  ;;  %v976_v57 = vpop.permute.xlu0 %975 }
 0x10c   : > { %v1189_v14 = vsel %vm1185_vm3, %v1124_v45, %v978_v28  ;;  %v1187_v51 = vsel %vm1185_vm3, %v1122_v48, %v976_v57  ;;  %v1797_v45 = vld [vmem:[%s8686_s26] sm:$0xe]  ;;  %v8235_v57 = vld [vmem:[%s8686_s26 + $0x44] ss:$0 sps:$4 sm:$0x11]  }
 0x10d   : > { %2268 = vrot.lane.b32.xlu1 %v2191_v27, %s8632_s27  ;;  %v1257_v19 = vshll.u32 %v1189_v14, 16  ;;  %v1253_v2 = vshll.u32 %v1187_v51, 16  ;;  %2266 = vrot.lane.b32.xlu0 %v2187_v22, %s8632_s27  ;;  %v1128_v27 = vsel %vm1120_vm2, %v1049_v7, %v8984_v35  ;;  %v1251_v29 = vshrl.u32 %v1187_v51, 16  ;;  %v9170_v14 = vld [vmem:[%s8686_s26 + $0x4] sm:$0xf] }
 0x10e   : > { %v2213_v35 = vsel %vm2037_vm0, %v2206_v52, %v2211_v55  ;;  %v1132_v51 = vsel %vm1120_vm2, %v1054_v61, %v8993_v21  ;;  %v1130_v52 = vsel %vm1120_vm2, %v1051_v5, %v8997_v25  ;;  %v9188_v21 = vld [vmem:[%s8686_s26 + $0x8] ss:$0 sps:$4 sm:$0x11]   ;;  %v7361_v25 = vcombine.low %v1797_v45, %v9170_v14  ;;  %v1800_v61 = vld [vmem:[%s8686_s26 + $0xc] sm:$0xe] }
 0x10f   : > { %v982_v37 = vpop.permute.xlu1 %981  ;;  %v1255_v22 = vrot.slane %v1253_v2, 1  ;;  %v980_v47 = vpop.permute.xlu0 %979  ;;  %v1259_v8 = vrot.slane %v1257_v19, 1  ;;  %v1064_v0 = vsel %vm1039_vm1, %v8235_v57, %v8868_v63 }
 0x110   : > { %v1193_v53 = vsel %vm1185_vm3, %v1128_v27, %v982_v37  ;;  %v1191_v9 = vsel %vm1185_vm3, %v1126_v16, %v980_v47  ;;  %v1134_v47 = vsel %vm1120_vm2, %v1056_v56, %v9007_v1 }
 0x111   : > { %2272 = vrot.lane.b32.xlu1 %v2202_v44, %s8632_s27  ;;  %v1256_v28 = vor.u32 %v1255_v22, %v1251_v29  ;;  %v1267_v7 = vshll.u32 %v1193_v53, 16  ;;  %v1263_v48 = vshll.u32 %v1191_v9, 16  ;;  %2270 = vrot.lane.b32.xlu0 %v2198_v49, %s8632_s27  ;;  %v1261_v3 = vshrl.u32 %v1191_v9, 16  ;;  %v9194_v29 = vld [vmem:[%s8686_s26 + $0x10] sm:$0xf] }
 0x112   : > { %v8236_v22 = vld [vmem:[%s8686_s26 + $0x50] ss:$0 sps:$4 sm:$0x11]   ;;  %v1136_v53 = vsel %vm1120_vm2, %v1059_v59, %v9003_v50  ;;  %v9213_v50 = vld [vmem:[%s8686_s26 + $0x14] ss:$0 sps:$4 sm:$0x11]   ;;  %v7363_v1 = vcombine.low %v1800_v61, %v9194_v29 }
 0x113   : > { %v986_v55 = vpop.permute.xlu1 %985  ;;  %v1265_v19 = vrot.slane %v1263_v48, 1  ;;  %v984_v44 = vpop.permute.xlu0 %983  ;;  %v1260_v49 = vsel %vm1250_vm4, %v1256_v28, %v1259_v8  ;;  %v1269_v33 = vrot.slane %v1267_v7, 1  ;;  %v8495_v8 = vld [vmem:[%s8686_s26 + $0x3c] sm:$0xff]   ;;  %v1803_v7 = vld [vmem:[%s8686_s26 + $0x18] sm:$0xe] }
 0x114   : > { %v1197_v2 = vsel %vm1185_vm3, %v1132_v51, %v986_v55  ;;  %v1195_v38 = vsel %vm1185_vm3, %v1130_v52, %v984_v44  ;;  %7997 = vmatprep.mubr.msk.bf16.mxu0 %vm1419_vm5, %v1260_v49  ;;  %v1061_v63 = vsel %vm1039_vm1, %v8495_v8, %v8878_v6  ;;  %v9219_v6 = vld [vmem:[%s8686_s26 + $0x1c] sm:$0xf]  ;;  %v1069_v52 = vsel %vm1039_vm1, %v8236_v22, %v8884_v11 }
 0x115   : > { %2276 = vrot.lane.b32.xlu1 %v2213_v35, %s8632_s27  ;;  %v1266_v27 = vor.u32 %v1265_v19, %v1261_v3  ;;  %v1277_v37 = vshll.u32 %v1197_v2, 16  ;;  %v1273_v16 = vshll.u32 %v1195_v38, 16  ;;  %2274 = vrot.lane.b32.xlu0 %v2209_v39, %s8632_s27  ;;  %v1271_v5 = vshrl.u32 %v1195_v38, 16  ;;  %v8237_v55 = vld [vmem:[%s8686_s26 + $0x5c] ss:$0 sps:$4 sm:$0x11]  }
 0x116   : > { %v1140_v3 = vsel %vm1120_vm2, %v1064_v0, %v9015_v15  ;;  %v1138_v19 = vsel %vm1120_vm2, %v1061_v63, %v9017_v41  ;;  %v9238_v15 = vld [vmem:[%s8686_s26 + $0x20] ss:$0 sps:$4 sm:$0x11]   ;;  %v7365_v41 = vcombine.low %v1803_v7, %v9219_v6  ;;  %v1074_v22 = vsel %vm1039_vm1, %v8237_v55, %v8892_v17  ;;  %v8497_v63 = vld [vmem:[%s8686_s26 + $0x54] sm:$0xff]  }
 0x117   : > { %v990_v60 = vpop.permute.xlu1 %989  ;;  %v1275_v9 = vrot.slane %v1273_v16, 1  ;;  %v988_v39 = vpop.permute.xlu0 %987  ;;  %v1270_v45 = vsel %vm1250_vm4, %v1266_v27, %v1269_v33  ;;  %v1279_v48 = vrot.slane %v1277_v37, 1  ;;  %v1806_v33 = vld [vmem:[%s8686_s26 + $0x24] sm:$0xe]  ;;  %v1071_v17 = vsel %vm1039_vm1, %v8497_v63, %v8894_v18  ;;  %v9269_v18 = vld [vmem:[%s8686_s26 + $0x34] sm:$0xf] }
 0x118   : > { %v1201_v35 = vsel %vm1185_vm3, %v1136_v53, %v990_v60  ;;  %v1199_v28 = vsel %vm1185_vm3, %v1134_v47, %v988_v39  ;;  %7998 = vmatmul.mubr.msk.bf16.vlgmr.msra.gmra.mrb[0].mxu0 %vm1419_vm5, %v1270_v45  ;;  %v8238_v53 = vld [vmem:[%s8686_s26 + $0x68] ss:$0 sps:$4 sm:$0x11]   ;;  %v1144_v47 = vsel %vm1120_vm2, %v1069_v52, %v9023_v46  ;;  %v8239_v52 = vld [vmem:[%s8686_s26 + $0x74] ss:$0 sps:$4 sm:$0x11]   ;;  %v1148_v55 = vsel %vm1120_vm2, %v1074_v22, %v9035_v26 }
 0x119   : > { %2408 = vrot.lane.b32.xlu1 %v9188_v21, %s8633_s28  ;;  %v1276_v59 = vor.u32 %v1275_v9, %v1271_v5  ;;  %v1287_v57 = vshll.u32 %v1201_v35, 16  ;;  %v1283_v51 = vshll.u32 %v1199_v28, 16  ;;  %2406 = vrot.lane.b32.xlu0 %v7361_v25, %s8633_s28  ;;  %v1281_v44 = vshrl.u32 %v1199_v28, 16  ;;  %v8496_v25 = vld [vmem:[%s8686_s26 + $0x48] sm:$0xff]  }
 0x11a   : > { %v1066_v11 = vsel %vm1039_vm1, %v8496_v25, %v8886_v12  ;;  %v9244_v12 = vld [vmem:[%s8686_s26 + $0x28] sm:$0xf] }
 0x11b   : > { %v994_v2 = vpop.permute.xlu1 %993  ;;  %v1285_v49 = vrot.slane %v1283_v51, 1  ;;  %v992_v56 = vpop.permute.xlu0 %991  ;;  %v1280_v38 = vsel %vm1250_vm4, %v1276_v59, %v1279_v48  ;;  %v1289_v27 = vrot.slane %v1287_v57, 1  ;;  %v1142_v60 = vsel %vm1120_vm2, %v1066_v11, %v9027_v34  ;;  %v9263_v34 = vld [vmem:[%s8686_s26 + $0x2c] ss:$0 sps:$4 sm:$0x11]  }
 0x11c   : > { %v1205_v31 = vsel %vm1185_vm3, %v1140_v3, %v994_v2  ;;  %v1203_v61 = vsel %vm1185_vm3, %v1138_v19, %v992_v56  ;;  %8001 = vmatprep.mubr.msk.bf16.mxu0 %vm1419_vm5, %v1280_v38  ;;  %v7367_v46 = vcombine.low %v1806_v33, %v9244_v12  ;;  %v1079_v51 = vsel %vm1039_vm1, %v8238_v53, %v8900_v23  ;;  %v8498_v38 = vld [vmem:[%s8686_s26 + $0x60] sm:$0xff]   ;;  %v1812_v11 = vld [vmem:[%s8686_s26 + $0x3c] sm:$0xe] }
 0x11d   : > { %2412 = vrot.lane.b32.xlu1 %v9213_v50, %s8633_s28  ;;  %v1286_v37 = vor.u32 %v1285_v49, %v1281_v44  ;;  %v1297_v16 = vshll.u32 %v1205_v31, 16  ;;  %v1293_v0 = vshll.u32 %v1203_v61, 16  ;;  %2410 = vrot.lane.b32.xlu0 %v7363_v1, %s8633_s28  ;;  %v1291_v9 = vshrl.u32 %v1203_v61, 16  ;;  %v1809_v1 = vld [vmem:[%s8686_s26 + $0x30] sm:$0xe] }
 0x11e   : > { %v1146_v3 = vsel %vm1120_vm2, %v1071_v17, %v9037_v20  ;;  %v1076_v23 = vsel %vm1039_vm1, %v8498_v38, %v8902_v24  ;;  %v9288_v20 = vld [vmem:[%s8686_s26 + $0x38] ss:$0 sps:$4 sm:$0x11]   ;;  %v7369_v26 = vcombine.low %v1809_v1, %v9269_v18  ;;  %v9294_v24 = vld [vmem:[%s8686_s26 + $0x40] sm:$0xf] }
 0x11f   : > { %v998_v5 = vpop.permute.xlu1 %997  ;;  %v1295_v35 = vrot.slane %v1293_v0, 1  ;;  %v996_v45 = vpop.permute.xlu0 %995  ;;  %v1290_v8 = vsel %vm1250_vm4, %v1286_v37, %v1289_v27  ;;  %v1299_v7 = vrot.slane %v1297_v16, 1  ;;  %v1084_v37 = vsel %vm1039_vm1, %v8239_v52, %v8908_v30  ;;  %v8240_v16 = vld [vmem:[%s8686_s26 + $0x80] ss:$0 sps:$4 sm:$0x11]  }
 0x120   : > { %v1209_v39 = vsel %vm1185_vm3, %v1144_v47, %v998_v5  ;;  %v1207_v28 = vsel %vm1185_vm3, %v1142_v60, %v996_v45  ;;  %8002 = vmatmul.mubr.msk.bf16.gmra.mrb[4].mxu0 %vm1419_vm5, %v1290_v8  ;;  %v1152_v0 = vsel %vm1120_vm2, %v1079_v51, %v9043_v58  ;;  %v1150_v22 = vsel %vm1120_vm2, %v1076_v23, %v9047_v13  ;;  %v9313_v13 = vld [vmem:[%s8686_s26 + $0x44] ss:$0 sps:$4 sm:$0x11]   ;;  %v1815_v8 = vld [vmem:[%s8686_s26 + $0x48] sm:$0xe] }
 0x121   : > { %2416 = vrot.lane.b32.xlu1 %v9238_v15, %s8633_s28  ;;  %v1296_v48 = vor.u32 %v1295_v35, %v1291_v9  ;;  %v1307_v59 = vshll.u32 %v1209_v39, 16  ;;  %v1303_v57 = vshll.u32 %v1207_v28, 16  ;;  %2414 = vrot.lane.b32.xlu0 %v7365_v41, %s8633_s28  ;;  %v1301_v2 = vshrl.u32 %v1207_v28, 16  ;;  %v8499_v39 = vld [vmem:[%s8686_s26 + $0x6c] sm:$0xff]  }
 0x122   : > { %v1081_v30 = vsel %vm1039_vm1, %v8499_v39, %v8910_v32  ;;  %v7371_v58 = vcombine.low %v1812_v11, %v9294_v24  ;;  %v9319_v32 = vld [vmem:[%s8686_s26 + $0x4c] sm:$0xf]  ;;  %v1089_v1 = vsel %vm1039_vm1, %v8240_v16, %v8916_v40 }
 0x123   : > { %v1002_v19 = vpop.permute.xlu1 %1001  ;;  %v1305_v44 = vrot.slane %v1303_v57, 1  ;;  %v1000_v31 = vpop.permute.xlu0 %999  ;;  %v1300_v56 = vsel %vm1250_vm4, %v1296_v48, %v1299_v7  ;;  %v1309_v61 = vrot.slane %v1307_v59, 1  ;;  %v8241_v7 = vld [vmem:[%s8686_s26 + $0x8c] ss:$0 sps:$4 sm:$0x11]   ;;  %v1156_v48 = vsel %vm1120_vm2, %v1084_v37, %v9055_v10 }
 0x124   : > { %v1213_v49 = vsel %vm1185_vm3, %v1148_v55, %v1002_v19  ;;  %v1211_v25 = vsel %vm1185_vm3, %v1146_v3, %v1000_v31  ;;  %8005 = vmatprep.mubr.msk.bf16.mxu0 %vm1419_vm5, %v1300_v56  ;;  %v1154_v59 = vsel %vm1120_vm2, %v1081_v30, %v9057_v4  ;;  %v9338_v4 = vld [vmem:[%s8686_s26 + $0x50] ss:$0 sps:$4 sm:$0x11]   ;;  %v7373_v10 = vcombine.low %v1815_v8, %v9319_v32  ;;  %v11808_v8 = vld [vmem:[#allocation4_spill] sm:$0xff] }
 0x125   : > { %2420 = vrot.lane.b32.xlu1 %v9263_v34, %s8633_s28  ;;  %v1306_v41 = vor.u32 %v1305_v44, %v1301_v2  ;;  %v1317_v33 = vshll.u32 %v1213_v49, 16  ;;  %v1313_v27 = vshll.u32 %v1211_v25, 16  ;;  %2418 = vrot.lane.b32.xlu0 %v7367_v46, %s8633_s28  ;;  %v1311_v47 = vshrl.u32 %v1211_v25, 16  ;;  %v8500_v2 = vld [vmem:[%s8686_s26 + $0x78] sm:$0xff]   ;;  %v1818_v49 = vld [vmem:[%s8686_s26 + $0x54] sm:$0xe] }
 0x126   : > { %v1086_v40 = vsel %vm1039_vm1, %v8500_v2, %v8918_v42  ;;  %v9344_v42 = vld [vmem:[%s8686_s26 + $0x58] sm:$0xf]  ;;  %v1094_v25 = vsel %vm1039_vm1, %v8241_v7, %v8924_v54  ;;  %v1160_v11 = vsel %vm1120_vm2, %v1089_v1, %v9063_v43  ;;  %v11807_v54 = vld [vmem:[#allocation3_spill] sm:$0xff]  ;;  %v9363_v43 = vld [vmem:[%s8686_s26 + $0x5c] ss:$0 sps:$4 sm:$0x11]  }
 0x127   : > { %v1006_v53 = vpop.permute.xlu1 %1005  ;;  %v1315_v60 = vrot.slane %v1313_v27, 1  ;;  %v1004_v9 = vpop.permute.xlu0 %1003  ;;  %v1310_v35 = vsel %vm1250_vm4, %v1306_v41, %v1309_v61  ;;  %v1319_v63 = vrot.slane %v1317_v33, 1  ;;  %v11806_v61 = vld [vmem:[#allocation14_spill] sm:$0xff]  ;;  %v11810_v1 = vld [vmem:[#allocation16_spill] sm:$0xff] }
 0x128   : > { %v1217_v5 = vsel %vm1185_vm3, %v1152_v0, %v1006_v53  ;;  %v1215_v45 = vsel %vm1185_vm3, %v1150_v22, %v1004_v9  ;;  %8006 = vmatmul.mubr.msk.bf16.gmra.mrb[8].mxu0 %vm1419_vm5, %v1310_v35  ;;  %v1158_v41 = vsel %vm1120_vm2, %v1086_v40, %v11806_v61  ;;  %v8501_v53 = vld [vmem:[%s8686_s26 + $0x84] sm:$0xff]   ;;  %v1821_v9 = vld [vmem:[%s8686_s26 + $0x60] sm:$0xe]  ;;  %v8244_v61 = vld [vmem:[%s8686_s26 + $0xb0] ss:$0 sps:$4 sm:$0x11]  }
 0x129   : > { %2424 = vrot.lane.b32.xlu1 %v9288_v20, %s8633_s28  ;;  %v1316_v17 = vor.u32 %v1315_v60, %v1311_v47  ;;  %v1327_v28 = vshll.u32 %v1217_v5, 16  ;;  %v1323_v46 = vshll.u32 %v1215_v45, 16  ;;  %2422 = vrot.lane.b32.xlu0 %v7369_v26, %s8633_s28  ;;  %v1321_v51 = vshrl.u32 %v1215_v45, 16  ;;  %v8242_v26 = vld [vmem:[%s8686_s26 + $0x98] ss:$0 sps:$4 sm:$0x11]  }
 0x12a   : > { %v1091_v47 = vsel %vm1039_vm1, %v8501_v53, %v11807_v54  ;;  %v7375_v5 = vcombine.low %v1818_v49, %v9344_v42  ;;  %v1824_v49 = vld [vmem:[%s8686_s26 + $0x6c] sm:$0xe] }
 0x12b   : > { %v1010_v57 = vpop.permute.xlu1 %1009  ;;  %v1325_v52 = vrot.slane %v1323_v46, 1  ;;  %v1008_v3 = vpop.permute.xlu0 %1007  ;;  %v1320_v19 = vsel %vm1250_vm4, %v1316_v17, %v1319_v63  ;;  %v1329_v31 = vrot.slane %v1327_v28, 1  ;;  %v1099_v63 = vsel %vm1039_vm1, %v8242_v26, %v11808_v8  ;;  %v8243_v17 = vld [vmem:[%s8686_s26 + $0xa4] ss:$0 sps:$4 sm:$0x11]   ;;  %v11812_v26 = vld [vmem:[#allocation6_spill] sm:$0xff] }
 0x12c   : > { %v1221_v55 = vsel %vm1185_vm3, %v1156_v48, %v1010_v57  ;;  %v1219_v44 = vsel %vm1185_vm3, %v1154_v59, %v1008_v3  ;;  %8009 = vmatprep.mubr.msk.bf16.mxu0 %vm1419_vm5, %v1320_v19  ;;  %v11809_v28 = vld [vmem:[#allocation15_spill] sm:$0xff]  ;;  %v1162_v7 = vsel %vm1120_vm2, %v1091_v47, %v11810_v1  ;;  %v8502_v3 = vld [vmem:[%s8686_s26 + $0x90] sm:$0xff]   ;;  %v11816_v1 = vld [vmem:[#allocation8_spill] sm:$0xff] }
 0x12d   : > { %2428 = vrot.lane.b32.xlu1 %v9313_v13, %s8633_s28  ;;  %v1326_v56 = vor.u32 %v1325_v52, %v1321_v51  ;;  %v1337_v38 = vshll.u32 %v1221_v55, 16  ;;  %v1333_v23 = vshll.u32 %v1219_v44, 16  ;;  %2426 = vrot.lane.b32.xlu0 %v7371_v58, %s8633_s28  ;;  %v1331_v27 = vshrl.u32 %v1219_v44, 16  ;;  %v9369_v58 = vld [vmem:[%s8686_s26 + $0x64] sm:$0xf]  ;;  %v11811_v19 = vld [vmem:[#allocation5_spill] sm:$0xff] }
 0x12e   : > { %v1164_v46 = vsel %vm1120_vm2, %v1094_v25, %v11809_v28  ;;  %v1096_v2 = vsel %vm1039_vm1, %v8502_v3, %v11811_v19  ;;  %v9388_v44 = vld [vmem:[%s8686_s26 + $0x68] ss:$0 sps:$4 sm:$0x11]   ;;  %v9394_v25 = vld [vmem:[%s8686_s26 + $0x70] sm:$0xf] }
 0x12f   : > { %v1014_v33 = vpop.permute.xlu1 %1013  ;;  %v1335_v37 = vrot.slane %v1333_v23, 1  ;;  %v1012_v0 = vpop.permute.xlu0 %1011  ;;  %v1330_v22 = vsel %vm1250_vm4, %v1326_v56, %v1329_v31  ;;  %v1339_v35 = vrot.slane %v1337_v38, 1 }
 0x130   : > { %v1225_v16 = vsel %vm1185_vm3, %v1160_v11, %v1014_v33  ;;  %v1223_v60 = vsel %vm1185_vm3, %v1158_v41, %v1012_v0  ;;  %8010 = vmatmul.mubr.msk.bf16.gmra.mrb[12].mxu0 %vm1419_vm5, %v1330_v22  ;;  %v1104_v11 = vsel %vm1039_vm1, %v8243_v17, %v11812_v26  ;;  %v11813_v41 = vld [vmem:[#allocation17_spill] sm:$0xff] }
 0x131   : > { %2432 = vrot.lane.b32.xlu1 %v9338_v4, %s8633_s28  ;;  %v1336_v39 = vor.u32 %v1335_v37, %v1331_v27  ;;  %v1347_v30 = vshll.u32 %v1225_v16, 16  ;;  %v1343_v45 = vshll.u32 %v1223_v60, 16  ;;  %2430 = vrot.lane.b32.xlu0 %v7373_v10, %s8633_s28  ;;  %v1341_v59 = vshrl.u32 %v1223_v60, 16  ;;  %v11814_v27 = vld [vmem:[#allocation18_spill] sm:$0xff] }
 0x132   : > { %v7377_v10 = vcombine.low %v1821_v9, %v9369_v58  ;;  %v1168_v33 = vsel %vm1120_vm2, %v1099_v63, %v11813_v41  ;;  %v1166_v37 = vsel %vm1120_vm2, %v1096_v2, %v11814_v27  ;;  %v8503_v60 = vld [vmem:[%s8686_s26 + $0x9c] sm:$0xff]  }
 0x133   : > { %v1018_v48 = vpop.permute.xlu1 %1017  ;;  %v1345_v57 = vrot.slane %v1343_v45, 1  ;;  %v1016_v52 = vpop.permute.xlu0 %1015  ;;  %v1340_v55 = vsel %vm1250_vm4, %v1336_v39, %v1339_v35  ;;  %v1349_v31 = vrot.slane %v1347_v30, 1  ;;  %v9413_v39 = vld [vmem:[%s8686_s26 + $0x74] ss:$0 sps:$4 sm:$0x11]   ;;  %v7379_v30 = vcombine.low %v1824_v49, %v9394_v25  ;;  %v8504_v49 = vld [vmem:[%s8686_s26 + $0xa8] sm:$0xff]  }
 0x134   : > { %v1229_v51 = vsel %vm1185_vm3, %v1164_v46, %v1018_v48  ;;  %v1227_v40 = vsel %vm1185_vm3, %v1162_v7, %v1016_v52  ;;  %8013 = vmatprep.mubr.msk.bf16.mxu0 %vm1419_vm5, %v1340_v55  ;;  %v1827_v45 = vld [vmem:[%s8686_s26 + $0x78] sm:$0xe]  ;;  %v9419_v46 = vld [vmem:[%s8686_s26 + $0x7c] sm:$0xf]  ;;  %v1109_v7 = vsel %vm1039_vm1, %v8244_v61, %v11816_v1 }
 0x135   : > { %2436 = vrot.lane.b32.xlu1 %v9363_v43, %s8633_s28  ;;  %v1346_v56 = vor.u32 %v1345_v57, %v1341_v59  ;;  %v1357_v38 = vshll.u32 %v1229_v51, 16  ;;  %v1353_v23 = vshll.u32 %v1227_v40, 16  ;;  %2434 = vrot.lane.b32.xlu0 %v7375_v5, %s8633_s28  ;;  %v1351_v0 = vshrl.u32 %v1227_v40, 16  ;;  %v11815_v5 = vld [vmem:[#allocation7_spill] sm:$0xff]  ;;  %v11818_v51 = vld [vmem:[#allocation20_spill] sm:$0xff] }
 0x136   : > { %v1101_v9 = vsel %vm1039_vm1, %v8503_v60, %v11815_v5  ;;  %v8245_v48 = vld [vmem:[%s8686_s26 + $0xbc] ss:$0 sps:$4 sm:$0x11]   ;;  %v11817_v59 = vld [vmem:[#allocation19_spill] sm:$0xff]  ;;  %v7381_v26 = vcombine.low %v1827_v45, %v9419_v46 }
 0x137   : > { %v1022_v16 = vpop.permute.xlu1 %1021  ;;  %v1355_v22 = vrot.slane %v1353_v23, 1  ;;  %v1020_v54 = vpop.permute.xlu0 %1019  ;;  %v1350_v47 = vsel %vm1250_vm4, %v1346_v56, %v1349_v31  ;;  %v1359_v8 = vrot.slane %v1357_v38, 1  ;;  %v1172_v57 = vsel %vm1120_vm2, %v1104_v11, %v11817_v59  ;;  %v11819_v31 = vld [vmem:[#allocation9_spill] sm:$0xff]  ;;  %v9438_v23 = vld [vmem:[%s8686_s26 + $0x80] ss:$0 sps:$4 sm:$0x11]  }
 0x138   : > { %v1233_v53 = vsel %vm1185_vm3, %v1168_v33, %v1022_v16  ;;  %v1231_v35 = vsel %vm1185_vm3, %v1166_v37, %v1020_v54  ;;  %8014 = vmatmul.mubr.msk.bf16.gmra.mrb[16].mxu0 %vm1419_vm5, %v1350_v47  ;;  %v1170_v52 = vsel %vm1120_vm2, %v1101_v9, %v11818_v51  ;;  %v1106_v56 = vsel %vm1039_vm1, %v8504_v49, %v11819_v31  ;;  %v1830_v11 = vld [vmem:[%s8686_s26 + $0x84] sm:$0xe]  ;;  %v9444_v37 = vld [vmem:[%s8686_s26 + $0x88] sm:$0xf]  ;;  %v11820_v16 = vld [vmem:[#allocation10_spill] sm:$0xff] }
 0x139   : > { %2440 = vrot.lane.b32.xlu1 %v9388_v44, %s8633_s28  ;;  %v1356_v63 = vor.u32 %v1355_v22, %v1351_v0  ;;  %v1367_v17 = vshll.u32 %v1233_v53, 16  ;;  %v1363_v28 = vshll.u32 %v1231_v35, 16  ;;  %2438 = vrot.lane.b32.xlu0 %v7377_v10, %s8633_s28  ;;  %v1361_v3 = vshrl.u32 %v1231_v35, 16  ;;  %v8246_v22 = vld [vmem:[%s8686_s26 + $0xc8] ss:$0 sps:$4 sm:$0x11]  }
 0x13a   : > { %v1114_v0 = vsel %vm1039_vm1, %v8245_v48, %v11820_v16  ;;  %v11821_v53 = vld [vmem:[#allocation21_spill] sm:$0xff]  ;;  %v11822_v47 = vld [vmem:[#allocation22_spill] sm:$0xff]  ;;  %v7383_v48 = vcombine.low %v1830_v11, %v9444_v37  ;;  %v11826_v49 = vld [vmem:[#allocation24_spill] sm:$0xff] }
 0x13b   : > { %v1026_v55 = vpop.permute.xlu1 %1025  ;;  %v1365_v19 = vrot.slane %v1363_v28, 1  ;;  %v1024_v40 = vpop.permute.xlu0 %1023  ;;  %v1360_v10 = vsel %vm1250_vm4, %v1356_v63, %v1359_v8  ;;  %v1369_v61 = vrot.slane %v1367_v17, 1  ;;  %v1176_v54 = vsel %vm1120_vm2, %v1109_v7, %v11821_v53  ;;  %v8505_v63 = vld [vmem:[%s8686_s26 + $0xb4] sm:$0xff]   ;;  %v11823_v17 = vld [vmem:[#allocation11_spill] sm:$0xff]  ;;  %v1833_v59 = vld [vmem:[%s8686_s26 + $0x90] sm:$0xe] }
 0x13c   : > { %v1237_v2 = vsel %vm1185_vm3, %v1172_v57, %v1026_v55  ;;  %v1235_v38 = vsel %vm1185_vm3, %v1170_v52, %v1024_v40  ;;  %8017 = vmatprep.mubr.msk.bf16.mxu0 %vm1419_vm5, %v1360_v10  ;;  %v1174_v60 = vsel %vm1120_vm2, %v1106_v56, %v11822_v47  ;;  %v1111_v28 = vsel %vm1039_vm1, %v8505_v63, %v11823_v17  ;;  %v9463_v7 = vld [vmem:[%s8686_s26 + $0x8c] ss:$0 sps:$4 sm:$0x11]   ;;  %v11825_v40 = vld [vmem:[#allocation23_spill] sm:$0xff]  ;;  %v11827_v16 = vld [vmem:[#allocation13_spill] sm:$0xff] }
 0x13d   : > { %2444 = vrot.lane.b32.xlu1 %v9413_v39, %s8633_s28  ;;  %v1366_v41 = vor.u32 %v1365_v19, %v1361_v3  ;;  %v1377_v33 = vshll.u32 %v1237_v2, 16  ;;  %v1373_v27 = vshll.u32 %v1235_v38, 16  ;;  %2442 = vrot.lane.b32.xlu0 %v7379_v30, %s8633_s28  ;;  %v1371_v9 = vshrl.u32 %v1235_v38, 16  ;;  %v9469_v3 = vld [vmem:[%s8686_s26 + $0x94] sm:$0xf]  ;;  %v11824_v19 = vld [vmem:[#allocation12_spill] sm:$0xff] }
 0x13e   : > { %v1119_v2 = vsel %vm1039_vm1, %v8246_v22, %v11824_v19  ;;  %v1180_v10 = vsel %vm1120_vm2, %v1114_v0, %v11825_v40  ;;  %v1178_v31 = vsel %vm1120_vm2, %v1111_v28, %v11826_v49  ;;  %v1845_v38 = vld [vmem:[%s8686_s26] sm:$0xf]  ;;  %v9488_v53 = vld [vmem:[%s8686_s26 + $0x98] ss:$0 sps:$4 sm:$0x11]  }
 0x13f   : > { %v1030_v5 = vpop.permute.xlu1 %1029  ;;  %v1375_v35 = vrot.slane %v1373_v27, 1  ;;  %v1028_v30 = vpop.permute.xlu0 %1027  ;;  %v1370_v8 = vsel %vm1250_vm4, %v1366_v41, %v1369_v61  ;;  %v1379_v57 = vrot.slane %v1377_v33, 1  ;;  %v8506_v27 = vld [vmem:[%s8686_s26 + $0xc0] sm:$0xff]   ;;  %v1836_v47 = vld [vmem:[%s8686_s26 + $0x9c] sm:$0xe] }
 0x140   : > { %v1241_v45 = vsel %vm1185_vm3, %v1176_v54, %v1030_v5  ;;  %v1239_v1 = vsel %vm1185_vm3, %v1174_v60, %v1028_v30  ;;  %8018 = vmatmul.mubr.msk.bf16.gmra.mrb[20].mxu0 %vm1419_vm5, %v1370_v8  ;;  %v1116_v22 = vsel %vm1039_vm1, %v8506_v27, %v11827_v16  ;;  %v7385_v54 = vcombine.low %v1833_v59, %v9469_v3  ;;  %v9517_v49 = vld [vmem:[%s8686_s26 + $0xac] sm:$0xf] }
 0x141   : > { %2448 = vrot.lane.b32.xlu1 %v9438_v23, %s8633_s28  ;;  %v1376_v51 = vor.u32 %v1375_v35, %v1371_v9  ;;  %v1387_v52 = vshll.u32 %v1241_v45, 16  ;;  %v1383_v55 = vshll.u32 %v1239_v1, 16  ;;  %2446 = vrot.lane.b32.xlu0 %v7381_v26, %s8633_s28  ;;  %v1381_v11 = vshrl.u32 %v1239_v1, 16  ;;  %v9494_v45 = vld [vmem:[%s8686_s26 + $0xa0] sm:$0xf] }
 0x142   : > { %v1184_v30 = vsel %vm1120_vm2, %v1119_v2, %v9125_v36  ;;  %v1182_v8 = vsel %vm1120_vm2, %v1116_v22, %v9128_v62  ;;  %v9508_v62 = vld [vmem:[%s8686_s26 + $0xa4] ss:$0 sps:$4 sm:$0x11]   ;;  %v7387_v36 = vcombine.low %v1836_v47, %v9494_v45  ;;  %v8364_v47 = vld [vmem:[%s11779_s1 + $0x8] sm:$0xff]  }
 0x143   : > { %v1034_v56 = vpop.permute.xlu1 %1033  ;;  %v1385_v61 = vrot.slane %v1383_v55, 1  ;;  %v1032_v26 = vpop.permute.xlu0 %1031  ;;  %v1380_v33 = vsel %vm1250_vm4, %v1376_v51, %v1379_v57  ;;  %v1389_v60 = vrot.slane %v1387_v52, 1  ;;  %v1846_v52 = vld [vmem:[%s8686_s26 + $0xc] sm:$0xf]  ;;  %8029 = vmatprep.subr.bf16.mxu1 %v8364_v47 }
 0x144   : > { %v1245_v41 = vsel %vm1185_vm3, %v1180_v10, %v1034_v56  ;;  %v1243_v0 = vsel %vm1185_vm3, %v1178_v31, %v1032_v26  ;;  %8021 = vmatprep.mubr.msk.bf16.mxu0 %vm1419_vm5, %v1380_v33  ;;  %v1839_v10 = vld [vmem:[%s8686_s26 + $0xa8] sm:$0xe]  ;;  %v1847_v26 = vld [vmem:[%s8686_s26 + $0x18] sm:$0xf]  ;;  %8030 = vmatpush3.bf16.msra.mxu1 %v8364_v47 }
 0x145   : > { %2452 = vrot.lane.b32.xlu1 %v9463_v7, %s8633_s28  ;;  %v1386_v5 = vor.u32 %v1385_v61, %v1381_v11  ;;  %v1397_v9 = vshll.u32 %v1245_v41, 16  ;;  %v1393_v35 = vshll.u32 %v1243_v0, 16  ;;  %2450 = vrot.lane.b32.xlu0 %v7383_v48, %s8633_s28  ;;  %v1391_v17 = vshrl.u32 %v1243_v0, 16  ;;  %v9527_v41 = vld [vmem:[%s8686_s26 + $0xb0] ss:$0 sps:$4 sm:$0x11]  }
 0x146   : > { %v7393_v48 = vcombine.low %v1845_v38, %v9170_v14  ;;  %v7394_v61 = vcombine.low %v1846_v52, %v9194_v29  ;;  %v7389_v16 = vcombine.low %v1839_v10, %v9517_v49  ;;  %v1842_v29 = vld [vmem:[%s8686_s26 + $0xb4] sm:$0xe]  ;;  %v1849_v52 = vld [vmem:[%s8686_s26 + $0x30] sm:$0xf] }
 0x147   : > { %v1038_v63 = vpop.permute.xlu1 %1037  ;;  %v1395_v28 = vrot.slane %v1393_v35, 1  ;;  %v1036_v59 = vpop.permute.xlu0 %1035  ;;  %v1390_v57 = vsel %vm1250_vm4, %v1386_v5, %v1389_v60  ;;  %v1399_v55 = vrot.slane %v1397_v9, 1  ;;  %v7395_v9 = vcombine.low %v1847_v26, %v9219_v6  ;;  %v9549_v35 = vld [vmem:[%s8686_s26 + $0xbc] ss:$0 sps:$4 sm:$0x11]  }
 0x148   : > { %v1249_v1 = vsel %vm1185_vm3, %v1184_v30, %v1038_v63  ;;  %v1247_v51 = vsel %vm1185_vm3, %v1182_v8, %v1036_v59  ;;  %8022 = vmatmul.mubr.msk.bf16.gmra.mrb[24].mxu0 %vm1419_vm5, %v1390_v57  ;;  %v2519_v22 = vshrl.u32 %v7393_v48, 16  ;;  %v2530_v30 = vshrl.u32 %v7394_v61, 16  ;;  %v1848_v8 = vld [vmem:[%s8686_s26 + $0x24] sm:$0xf] }
 0x149   : > { %2456 = vrot.lane.b32.xlu1 %v9488_v53, %s8633_s28  ;;  %v1396_v19 = vor.u32 %v1395_v28, %v1391_v17  ;;  %v1407_v2 = vshll.u32 %v1249_v1, 16  ;;  %v1403_v40 = vshll.u32 %v1247_v51, 16  ;;  %2454 = vrot.lane.b32.xlu0 %v7385_v54, %s8633_s28  ;;  %v1401_v31 = vshrl.u32 %v1247_v51, 16  ;;  %v9536_v54 = vld [vmem:[%s8686_s26 + $0xb8] sm:$0xf] }
 0x14a   : > { %v7391_v63 = vcombine.low %v1842_v29, %v9536_v54  ;;  %v2521_v17 = vrot.slane %v2519_v22, 7  ;;  %v2526_v28 = vshll.u32 %v9188_v21, 16  ;;  %v2522_v1 = vshll.u32 %v7393_v48, 16  ;;  %v1851_v29 = vld [vmem:[%s8686_s26 + $0x48] sm:$0xf] }
 0x14b   : > { %v9513_v14 = vpop.permute.xlu1 %2216  ;;  %v1405_v56 = vrot.slane %v1403_v40, 1  ;;  %v9519_v38 = vpop.permute.xlu0 %2214  ;;  %v1400_v11 = vsel %vm1250_vm4, %v1396_v19, %v1399_v55  ;;  %v1409_v33 = vrot.slane %v1407_v2, 1  ;;  %v7396_v57 = vcombine.low %v1848_v8, %v9244_v12 }
 0x14c   : > { %8025 = vmatprep.mubr.msk.bf16.mxu0 %vm1419_vm5, %v1400_v11  ;;  %v2532_v51 = vrot.slane %v2530_v30, 7  ;;  %v2528_v21 = vsel %vm2037_vm0, %v2521_v17, %v2526_v28  ;;  %v2524_v48 = vor.u32 %v2522_v1, %v2521_v17  ;;  %v2537_v55 = vshll.u32 %v9213_v50, 16  ;;  %v1852_v28 = vld [vmem:[%s8686_s26 + $0x54] sm:$0xf] }
 0x14d   : > { %2460 = vrot.lane.b32.xlu1 %v9508_v62, %s8633_s28  ;;  %v1406_v27 = vor.u32 %v1405_v56, %v1401_v31  ;;  %2458 = vrot.lane.b32.xlu0 %v7387_v36, %s8633_s28  ;;  %v2533_v36 = vshll.u32 %v7394_v61, 16  ;;  %v2541_v19 = vshrl.u32 %v7395_v9, 16  ;;  %v7397_v12 = vcombine.low %v1849_v52, %v9269_v18  ;;  %v1850_v56 = vld [vmem:[%s8686_s26 + $0x3c] sm:$0xf] }
 0x14e   : > { %v2552_v31 = vshrl.u32 %v7396_v57, 16  ;;  %v2539_v11 = vsel %vm2037_vm0, %v2532_v51, %v2537_v55  ;;  %v2548_v50 = vshll.u32 %v9238_v15, 16  ;;  %v2544_v26 = vshll.u32 %v7395_v9, 16  ;;  %v1853_v55 = vld [vmem:[%s8686_s26 + $0x60] sm:$0xf] }
 0x14f   : > { %v9532_v0 = vpop.permute.xlu1 %2220  ;;  %v9541_v60 = vpop.permute.xlu0 %2218  ;;  %v1410_v5 = vsel %vm1250_vm4, %v1406_v27, %v1409_v33  ;;  %v2535_v10 = vor.u32 %v2533_v36, %v2532_v51  ;;  %v2543_v61 = vrot.slane %v2541_v19, 7  ;;  %v7398_v18 = vcombine.low %v1850_v56, %v9294_v24 }
 0x150   : > { %8026 = vmatmul.mubr.msk.bf16.gmra.mrb[28].mxu0 %vm1419_vm5, %v1410_v5  ;;  %v2555_v22 = vshll.u32 %v7396_v57, 16  ;;  %v2559_v15 = vshll.u32 %v9263_v34, 16  ;;  %v2563_v9 = vshrl.u32 %v7397_v12, 16  ;;  %v7399_v24 = vcombine.low %v1851_v29, %v9319_v32 }
 0x151   : > { %2464 = vrot.lane.b32.xlu1 %v9527_v41, %s8633_s28  ;;  %2462 = vrot.lane.b32.xlu0 %v7389_v16, %s8633_s28  ;;  %v2554_v16 = vrot.slane %v2552_v31, 7  ;;  %v2550_v47 = vsel %vm2037_vm0, %v2543_v61, %v2548_v50  ;;  %v2546_v5 = vor.u32 %v2544_v26, %v2543_v61  ;;  %v2574_v17 = vshrl.u32 %v7398_v18, 16  ;;  %v1854_v50 = vld [vmem:[%s8686_s26 + $0x6c] sm:$0xf] }
 0x152   : > { %v2565_v57 = vrot.slane %v2563_v9, 7  ;;  %v2570_v34 = vshll.u32 %v9288_v20, 16  ;;  %v2566_v51 = vshll.u32 %v7397_v12, 16  ;;  %v7400_v32 = vcombine.low %v1852_v28, %v9344_v42 }
 0x153   : > { %v9555_v6 = vpop.permute.xlu1 %2224  ;;  %v9557_v59 = vpop.permute.xlu0 %2222  ;;  %v2561_v1 = vsel %vm2037_vm0, %v2554_v16, %v2559_v15  ;;  %v2581_v20 = vshll.u32 %v9313_v13, 16  ;;  %v2585_v12 = vshrl.u32 %v7399_v24, 16  ;;  %v7401_v42 = vcombine.low %v1853_v55, %v9369_v58  ;;  %v1855_v15 = vld [vmem:[%s8686_s26 + $0x78] sm:$0xf] }
 0x154   : > { %v2572_v19 = vsel %vm2037_vm0, %v2565_v57, %v2570_v34  ;;  %v2596_v61 = vshrl.u32 %v7400_v32, 16  ;;  %v2592_v13 = vshll.u32 %v9338_v4, 16  ;;  %v7402_v58 = vcombine.low %v1854_v50, %v9394_v25  ;;  %v1856_v34 = vld [vmem:[%s8686_s26 + $0x84] sm:$0xf] }
 0x155   : > { %2468 = vrot.lane.b32.xlu1 %v9549_v35, %s8633_s28  ;;  %2466 = vrot.lane.b32.xlu0 %v7391_v63, %s8633_s28  ;;  %v2557_v63 = vor.u32 %v2555_v22, %v2554_v16  ;;  %v2588_v16 = vshll.u32 %v7399_v24, 16  ;;  %v2603_v4 = vshll.u32 %v9363_v43, 16  ;;  %v2607_v24 = vshrl.u32 %v7401_v42, 16 }
 0x156   : > { %v7403_v25 = vcombine.low %v1855_v15, %v9419_v46  ;;  %v2614_v43 = vshll.u32 %v9388_v44, 16  ;;  %v7404_v46 = vcombine.low %v1856_v34, %v9444_v37  ;;  %v2625_v44 = vshll.u32 %v9413_v39, 16 }
 0x157   : > { %v9566_v2 = vpop.permute.xlu1 %2228  ;;  %v9568_v40 = vpop.permute.xlu0 %2226  ;;  %v2636_v39 = vshll.u32 %v9438_v23, 16  ;;  %v2647_v23 = vshll.u32 %v9463_v7, 16 }
 0x159   : > { %2696 = vrot.lane.b32.xlu1 %v2528_v21, %s8634_s5  ;;  %2694 = vrot.lane.b32.xlu0 %v2524_v48, %s8634_s5  ;;  %v2576_v21 = vrot.slane %v2574_v17, 7  ;;  %v2577_v48 = vshll.u32 %v7398_v18, 16  ;;  %v2587_v18 = vrot.slane %v2585_v12, 7 }
 0x15b   : > { %v9576_v33 = vpop.permute.xlu1 %2232  ;;  %v9578_v27 = vpop.permute.xlu0 %2230  ;;  %v2583_v26 = vsel %vm2037_vm0, %v2576_v21, %v2581_v20  ;;  %v2594_v9 = vsel %vm2037_vm0, %v2587_v18, %v2592_v13  ;;  %v1857_v20 = vld [vmem:[%s8686_s26 + $0x90] sm:$0xf]  ;;  %v1858_v13 = vld [vmem:[%s8686_s26 + $0x9c] sm:$0xf] }
 0x15c   : > { %v7405_v37 = vcombine.low %v1857_v20, %v9469_v3  ;;  %v7406_v3 = vcombine.low %v1858_v13, %v9494_v45 }
 0x15d   : > { %2700 = vrot.lane.b32.xlu1 %v2539_v11, %s8634_s5  ;;  %2698 = vrot.lane.b32.xlu0 %v2535_v10, %s8634_s5  ;;  %v2568_v10 = vor.u32 %v2566_v51, %v2565_v57  ;;  %v2579_v11 = vor.u32 %v2577_v48, %v2576_v21  ;;  %v2618_v57 = vshrl.u32 %v7402_v58, 16  ;;  %v2610_v21 = vshll.u32 %v7401_v42, 16 }
 0x15e   : > { %v2629_v42 = vshrl.u32 %v7403_v25, 16  ;;  %v2654_v7 = vshll.u32 %v7405_v37, 16 }
 0x15f   : > { %v9586_v30 = vpop.permute.xlu1 %2236  ;;  %v9588_v8 = vpop.permute.xlu0 %2234 }
 0x161   : > { %2704 = vrot.lane.b32.xlu1 %v2550_v47, %s8634_s5  ;;  %2702 = vrot.lane.b32.xlu0 %v2546_v5, %s8634_s5  ;;  %v2598_v47 = vrot.slane %v2596_v61, 7  ;;  %v2599_v5 = vshll.u32 %v7400_v32, 16  ;;  %v2609_v32 = vrot.slane %v2607_v24, 7 }
 0x163   : > { %v9596_v36 = vpop.permute.xlu1 %2240  ;;  %v9598_v52 = vpop.permute.xlu0 %2238  ;;  %v2605_v51 = vsel %vm2037_vm0, %v2598_v47, %v2603_v4  ;;  %v2616_v12 = vsel %vm2037_vm0, %v2609_v32, %v2614_v43  ;;  %v1859_v4 = vld [vmem:[%s8686_s26 + $0xa8] sm:$0xf]  ;;  %v1860_v43 = vld [vmem:[%s8686_s26 + $0xb4] sm:$0xf] }
 0x164   : > { %v7407_v45 = vcombine.low %v1859_v4, %v9517_v49  ;;  %v2691_v4 = vshll.u32 %v9549_v35, 16 }
 0x165   : > { %2708 = vrot.lane.b32.xlu1 %v2561_v1, %s8634_s5  ;;  %2706 = vrot.lane.b32.xlu0 %v2557_v63, %s8634_s5  ;;  %v2590_v63 = vor.u32 %v2588_v16, %v2587_v18  ;;  %v2601_v1 = vor.u32 %v2599_v5, %v2598_v47  ;;  %v2640_v18 = vshrl.u32 %v7404_v46, 16  ;;  %v2632_v47 = vshll.u32 %v7403_v25, 16 }
 0x166   : > { %v2651_v25 = vshrl.u32 %v7405_v37, 16 }
 0x167   : > { %v9606_v31 = vpop.permute.xlu1 %2244  ;;  %v9608_v56 = vpop.permute.xlu0 %2242 }
 0x169   : > { %2712 = vrot.lane.b32.xlu1 %v2572_v19, %s8634_s5  ;;  %2710 = vrot.lane.b32.xlu0 %v2568_v10, %s8634_s5  ;;  %v2620_v19 = vrot.slane %v2618_v57, 7  ;;  %v2621_v10 = vshll.u32 %v7402_v58, 16  ;;  %v2631_v58 = vrot.slane %v2629_v42, 7 }
 0x16b   : > { %v9616_v22 = vpop.permute.xlu1 %2248  ;;  %v9618_v29 = vpop.permute.xlu0 %2246  ;;  %v2627_v16 = vsel %vm2037_vm0, %v2620_v19, %v2625_v44  ;;  %v2638_v24 = vsel %vm2037_vm0, %v2631_v58, %v2636_v39  ;;  %v2680_v39 = vshll.u32 %v9527_v41, 16  ;;  %v8345_v41 = vld [vmem:[%s8686_s26 + $0x24] sm:$0xff]  }
 0x16d   : > { %2716 = vrot.lane.b32.xlu1 %v2583_v26, %s8634_s5  ;;  %2714 = vrot.lane.b32.xlu0 %v2579_v11, %s8634_s5  ;;  %v2612_v11 = vor.u32 %v2610_v21, %v2609_v32  ;;  %v2623_v26 = vor.u32 %v2621_v10, %v2620_v19  ;;  %v2662_v32 = vshrl.u32 %v7406_v3, 16  ;;  %v2658_v19 = vshll.u32 %v9488_v53, 16 }
 0x16e   : > { %v2673_v53 = vshrl.u32 %v7407_v45, 16 }
 0x16f   : > { %v9626_v17 = vpop.permute.xlu1 %2252  ;;  %v9628_v28 = vpop.permute.xlu0 %2250  ;;  %v2664_v49 = vrot.slane %v2662_v32, 7 }
 0x171   : > { %2720 = vrot.lane.b32.xlu1 %v2594_v9, %s8634_s5  ;;  %2718 = vrot.lane.b32.xlu0 %v2590_v63, %s8634_s5  ;;  %v2642_v9 = vrot.slane %v2640_v18, 7  ;;  %v2643_v63 = vshll.u32 %v7404_v46, 16  ;;  %v2653_v46 = vrot.slane %v2651_v25, 7 }
 0x173   : > { %v9636_v48 = vpop.permute.xlu1 %2256  ;;  %v9638_v55 = vpop.permute.xlu0 %2254  ;;  %v2649_v21 = vsel %vm2037_vm0, %v2642_v9, %v2647_v23  ;;  %v2660_v44 = vsel %vm2037_vm0, %v2653_v46, %v2658_v19  ;;  %v2656_v42 = vor.u32 %v2654_v7, %v2653_v46  ;;  %v3606_v46 = vshrl.u32 %v8345_v41, 16  ;;  %v8346_v19 = vld [vmem:[%s8686_s26 + $0x30] sm:$0xff]  }
 0x175   : > { %2724 = vrot.lane.b32.xlu1 %v2605_v51, %s8634_s5  ;;  %2722 = vrot.lane.b32.xlu0 %v2601_v1, %s8634_s5  ;;  %v2634_v1 = vor.u32 %v2632_v47, %v2631_v58  ;;  %v2645_v51 = vor.u32 %v2643_v63, %v2642_v9  ;;  %v2675_v58 = vrot.slane %v2673_v53, 7  ;;  %v2676_v47 = vshll.u32 %v7407_v45, 16 }
 0x177   : > { %v9646_v61 = vpop.permute.xlu1 %2260  ;;  %v9648_v50 = vpop.permute.xlu0 %2258 }
 0x178   : > { %11828 = vst [vmem:[#allocation14_spill] sm:$0xff] %v9646_v61  ;;  %11829 = vst [vmem:[#allocation3_spill] sm:$0xff] %v9648_v50  ;;  %v8511_v61 = vld [vmem:[%s8686_s26 + $0x20] ss:$0 sps:$4 sm:$0x11]  }
 0x179   : > { %2728 = vrot.lane.b32.xlu1 %v2616_v12, %s8634_s5  ;;  %2726 = vrot.lane.b32.xlu0 %v2612_v11, %s8634_s5  ;;  %v7408_v12 = vcombine.low %v1860_v43, %v9536_v54  ;;  %v2665_v11 = vshll.u32 %v7406_v3, 16  ;;  %v8344_v3 = vld [vmem:[%s8686_s26 + $0x18] sm:$0xff]  }
 0x17a   : > { %v3599_v25 = vshrl.u32 %v8344_v3, 16 }
 0x17b   : > { %v9656_v5 = vpop.permute.xlu1 %2264  ;;  %v9658_v15 = vpop.permute.xlu0 %2262  ;;  %v2667_v54 = vor.u32 %v2665_v11, %v2664_v49  ;;  %v2684_v13 = vshrl.u32 %v7408_v12, 16  ;;  %v2687_v23 = vshll.u32 %v7408_v12, 16  ;;  %v3608_v11 = vrot.slane %v3606_v46, 7 }
 0x17c   : > { %11830 = vst [vmem:[#allocation4_spill] sm:$0xff] %v9656_v5  ;;  %11831 = vst [vmem:[#allocation15_spill] sm:$0xff] %v9658_v15  ;;  %v3601_v43 = vrot.slane %v3599_v25, 7  ;;  %v8350_v25 = vld [vmem:[%s8686_s26 + $0x54] sm:$0xff]  }
 0x17d   : > { %2732 = vrot.lane.b32.xlu1 %v2627_v16, %s8634_s5  ;;  %2730 = vrot.lane.b32.xlu0 %v2623_v26, %s8634_s5  ;;  %v2669_v26 = vshll.u32 %v9508_v62, 16  ;;  %v2686_v63 = vrot.slane %v2684_v13, 7  ;;  %v8359_v5 = vld [vmem:[%s8686_s26 + $0x2c] ss:$0 sps:$4 sm:$0x11]  }
 0x17f   : > { %v9666_v57 = vpop.permute.xlu1 %2268  ;;  %v9668_v34 = vpop.permute.xlu0 %2266  ;;  %v2671_v16 = vsel %vm2037_vm0, %v2664_v49, %v2669_v26  ;;  %v2693_v32 = vsel %vm2037_vm0, %v2686_v63, %v2691_v4  ;;  %v2689_v35 = vor.u32 %v2687_v23, %v2686_v63  ;;  %v8347_v26 = vld [vmem:[%s8686_s26 + $0x3c] sm:$0xff]  }
 0x180   : > { %11832 = vst [vmem:[#allocation16_spill] sm:$0xff] %v9666_v57  ;;  %11833 = vst [vmem:[#allocation5_spill] sm:$0xff] %v9668_v34 }
 0x181   : > { %2736 = vrot.lane.b32.xlu1 %v2638_v24, %s8634_s5  ;;  %2734 = vrot.lane.b32.xlu0 %v2634_v1, %s8634_s5  ;;  %v2682_v24 = vsel %vm2037_vm0, %v2675_v58, %v2680_v39  ;;  %v2678_v1 = vor.u32 %v2676_v47, %v2675_v58  ;;  %v3616_v58 = vshll.u32 %v8346_v19, 16  ;;  %v3620_v39 = vshrl.u32 %v8347_v26, 16  ;;  %v8348_v47 = vld [vmem:[%s8686_s26 + $0x48] sm:$0xff]  }
 0x182   : > { %v3627_v23 = vshrl.u32 %v8348_v47, 16  ;;  %v3630_v46 = vshll.u32 %v8348_v47, 16 }
 0x183   : > { %v9676_v10 = vpop.permute.xlu1 %2272  ;;  %v9678_v20 = vpop.permute.xlu0 %2270 }
 0x184   : > { %11834 = vst [vmem:[#allocation6_spill] sm:$0xff] %v9676_v10  ;;  %11835 = vst [vmem:[#allocation17_spill] sm:$0xff] %v9678_v20  ;;  %v7656_v20 = vld [vmem:[%s8686_s26 + $0x24] sm:$0xf] }
 0x185   : > { %2740 = vrot.lane.b32.xlu1 %v2649_v21, %s8634_s5  ;;  %2738 = vrot.lane.b32.xlu0 %v2645_v51, %s8634_s5  ;;  %v3602_v21 = vshll.u32 %v8344_v3, 16 }
 0x187   : > { %v9685_v37 = vpop.permute.xlu1 %2276  ;;  %v9687_v18 = vpop.permute.xlu0 %2274  ;;  %v3604_v49 = vor.u32 %v3602_v21, %v3601_v43  ;;  %v3629_v21 = vrot.slane %v3627_v23, 7  ;;  %v7608_v23 = vld [vmem:[%s8686_s26 + $0x1c] sm:$0xf] }
 0x188   : > { %11836 = vst [vmem:[#allocation18_spill] sm:$0xff] %v9685_v37  ;;  %11837 = vst [vmem:[#allocation7_spill] sm:$0xff] %v9687_v18  ;;  %v7611_v37 = vld [vmem:[%s8686_s26 + $0x28] sm:$0xf] }
 0x189   : > { %2744 = vrot.lane.b32.xlu1 %v2660_v44, %s8634_s5  ;;  %2742 = vrot.lane.b32.xlu0 %v2656_v42, %s8634_s5  ;;  %v3609_v44 = vshll.u32 %v8345_v41, 16  ;;  %v3613_v42 = vshrl.u32 %v8346_v19, 16  ;;  %v3634_v19 = vshrl.u32 %v8350_v25, 16  ;;  %v7768_v34 = vcombine.low %v7656_v20, %v7611_v37  ;;  %v8353_v20 = vld [vmem:[%s8686_s26 + $0x20] ss:$0 sps:$4 sm:$0x11]  }
 0x18b   : > { %v9694_v62 = vpop.permute.xlu1 %2408  ;;  %v9696_v9 = vpop.permute.xlu0 %2406  ;;  %v3611_v13 = vor.u32 %v3609_v44, %v3608_v11 }
 0x18d   : > { %2748 = vrot.lane.b32.xlu1 %v2671_v16, %s8634_s5  ;;  %2746 = vrot.lane.b32.xlu0 %v2667_v54, %s8634_s5  ;;  %v3615_v16 = vrot.slane %v3613_v42, 7  ;;  %v8351_v42 = vld [vmem:[%s8686_s26 + $0x18] sm:$0xff]  }
 0x18e   : > { %v3977_v18 = vshll.u32 %v8351_v42, 16 }
 0x18f   : > { %v9703_v45 = vpop.permute.xlu1 %2412  ;;  %v9705_v51 = vpop.permute.xlu0 %2410  ;;  %v3618_v4 = vor.u32 %v3616_v58, %v3615_v16 }
 0x191   : > { %2752 = vrot.lane.b32.xlu1 %v2682_v24, %s8634_s5  ;;  %2750 = vrot.lane.b32.xlu0 %v2678_v1, %s8634_s5  ;;  %v3622_v24 = vrot.slane %v3620_v39, 7  ;;  %v3623_v1 = vshll.u32 %v8347_v26, 16  ;;  %v3632_v26 = vor.u32 %v3630_v46, %v3629_v21 }
 0x193   : > { %v9711_v7 = vpop.permute.xlu1 %2416  ;;  %v9713_v12 = vpop.permute.xlu0 %2414 }
 0x195   : > { %2756 = vrot.lane.b32.xlu1 %v2693_v32, %s8634_s5  ;;  %2754 = vrot.lane.b32.xlu0 %v2689_v35, %s8634_s5  ;;  %v8349_v35 = vld [vmem:[%s8686_s26 + $0xc] sm:$0xff]  }
 0x196   : > { %v3967_v44 = vshrl.u32 %v8349_v35, 16 }
 0x197   : > { %v9718_v53 = vpop.permute.xlu1 %2420  ;;  %v9720_v54 = vpop.permute.xlu0 %2418 }
 0x198   : > { %v3969_v47 = vrot.slane %v3967_v44, 7 }
 0x199   : > { %3712 = vrot.lane.b32.xlu1 %v3601_v43, %s8632_s27  ;;  %3710 = vrot.lane.b32.xlu0 %v3604_v49, %s8632_s27  ;;  %v3625_v43 = vor.u32 %v3623_v1, %v3622_v24 }
 0x19b   : > { %v9725_v3 = vpop.permute.xlu1 %2424  ;;  %v9727_v63 = vpop.permute.xlu0 %2422 }
 0x19d   : > { %3716 = vrot.lane.b32.xlu1 %v3608_v11, %s8632_s27  ;;  %3714 = vrot.lane.b32.xlu0 %v3611_v13, %s8632_s27  ;;  %v9746_v13 = vrot.slane %v3634_v19, 7 }
 0x19f   : > { %v9732_v41 = vpop.permute.xlu1 %2428  ;;  %v9734_v32 = vpop.permute.xlu0 %2426  ;;  %11838 = vst [vmem:[#allocation8_spill] sm:$0xff] %v9746_v13 }
 0x1a1   : > { %3720 = vrot.lane.b32.xlu1 %v3615_v16, %s8632_s27  ;;  %3718 = vrot.lane.b32.xlu0 %v3618_v4, %s8632_s27  ;;  %v3637_v16 = vshll.u32 %v8350_v25, 16  ;;  %v3970_v4 = vshll.u32 %v8349_v35, 16 }
 0x1a3   : > { %v9739_v49 = vpop.permute.xlu1 %2432  ;;  %v9741_v11 = vpop.permute.xlu0 %2430  ;;  %v3639_v1 = vor.u32 %v3637_v16, %v9746_v13  ;;  %v3972_v19 = vor.u32 %v3970_v4, %v3969_v47  ;;  %v8402_v4 = vld [vmem:[%s11779_s1 + $0x10] sm:$0xff]  }
 0x1a4   : > { %8063 = vmatprep.subr.bf16.mxu0 %v8402_v4 }
 0x1a5   : > { %3724 = vrot.lane.b32.xlu1 %v3622_v24, %s8632_s27  ;;  %3722 = vrot.lane.b32.xlu0 %v3625_v43, %s8632_s27  ;;  %v3974_v24 = vshrl.u32 %v8351_v42, 16  ;;  %v7655_v43 = vld [vmem:[%s8686_s26 + $0x18] sm:$0xf] }
 0x1a6   : > { %v7767_v44 = vcombine.low %v7655_v43, %v7608_v23  ;;  %v5149_v43 = vshrl.u32 %v7768_v34, 16  ;;  %8064 = vmatpush3.bf16.msra.mxu0 %v8402_v4 }
 0x1a7   : > { %v9748_v58 = vpop.permute.xlu1 %2436  ;;  %v9750_v39 = vpop.permute.xlu0 %2434 }
 0x1a8   : > { %v5138_v10 = vshrl.u32 %v7767_v44, 16  ;;  %v5151_v15 = vrot.slane %v5149_v43, 7 }
 0x1a9   : > { %3728 = vrot.lane.b32.xlu1 %v3629_v21, %s8632_s27  ;;  %3726 = vrot.lane.b32.xlu0 %v3632_v26, %s8632_s27  ;;  %v3976_v21 = vrot.slane %v3974_v24, 7 }
 0x1aa   : > { %v5140_v23 = vrot.slane %v5138_v10, 7  ;;  %v7719_v10 = vld [vmem:[%s8686_s26 + $0xc] sm:$0xf] }
 0x1ab   : > { %v9757_v46 = vpop.permute.xlu1 %2440  ;;  %v9759_v25 = vpop.permute.xlu0 %2438  ;;  %v3979_v13 = vor.u32 %v3977_v18, %v3976_v21  ;;  %v5141_v18 = vshll.u32 %v7767_v44, 16 }
 0x1ad   : > { %3902 = vrot.lane.b32.xlu1 %v8349_v35, %s8633_s28  ;;  %3730 = vrot.lane.b32.xlu0 %v3639_v1, %s8632_s27  ;;  %v8352_v35 = vld [vmem:[%s8686_s26 + $0x14] ss:$0 sps:$4 sm:$0x11]   ;;  %v5143_v57 = vor.u32 %v5141_v18, %v5140_v23 }
 0x1af   : > { %v9765_v26 = vpop.permute.xlu1 %2444  ;;  %v9767_v16 = vpop.permute.xlu0 %2442 }
 0x1b1   : > { %4078 = vrot.lane.b32.xlu1 %v3972_v19, %s8634_s5  ;;  %3906 = vrot.lane.b32.xlu0 %v8351_v42, %s8633_s28  ;;  %v8356_v42 = vld [vmem:[%s8686_s26 + $0x20] ss:$0 sps:$4 sm:$0x11]  }
 0x1b2   : > { %v5145_v4 = vshll.u32 %v8356_v42, 16 }
 0x1b3   : > { %v9775_v24 = vpop.permute.xlu1 %2448  ;;  %v9777_v1 = vpop.permute.xlu0 %2446 }
 0x1b4   : > { %11839 = vst [vmem:[#allocation19_spill] sm:$0xff] %v9775_v24  ;;  %11840 = vst [vmem:[#allocation20_spill] sm:$0xff] %v9777_v1  ;;  %v5147_v43 = vsel %vm2037_vm0, %v5140_v23, %v5145_v4 }
 0x1b5   : > { %4082 = vrot.lane.b32.xlu1 %v3979_v13, %s8634_s5  ;;  %3904 = vrot.lane.b32.xlu0 %v8352_v35, %s8633_s28  ;;  %v5152_v13 = vshll.u32 %v7768_v34, 16  ;;  %v7671_v34 = vld [vmem:[%s8686_s26 + $0xc] sm:$0xe] }
 0x1b7   : > { %v9782_v37 = vpop.permute.xlu1 %2452  ;;  %v9785_v19 = vpop.permute.xlu0 %2450 }
 0x1b8   : > { %11841 = vst [vmem:[#allocation9_spill] sm:$0xff] %v9782_v37  ;;  %11842 = vst [vmem:[#allocation10_spill] sm:$0xff] %v9785_v19  ;;  %v7672_v37 = vld [vmem:[%s8686_s26 + $0x10] sm:$0xf]  ;;  %v5154_v19 = vor.u32 %v5152_v13, %v5151_v15  ;;  %v7675_v13 = vld [vmem:[%s8686_s26 + $0x1c] sm:$0xf] }
 0x1b9   : > { %4080 = vrot.lane.b32.xlu1 %v3969_v47, %s8634_s5  ;;  %3908 = vrot.lane.b32.xlu0 %v8353_v20, %s8633_s28  ;;  %v7815_v47 = vcombine.low %v7719_v10, %v7672_v37  ;;  %v5156_v20 = vshll.u32 %v8359_v5, 16  ;;  %v7249_v5 = vld [vmem:[%s8686_s26 + $0xc] sm:$0xe] }
 0x1bb   : > { %v9790_v44 = vpop.permute.xlu1 %2456  ;;  %v9793_v35 = vpop.permute.xlu0 %2454  ;;  %v5158_v10 = vsel %vm2037_vm0, %v5151_v15, %v5156_v20  ;;  %v5621_v4 = vshll.u32 %v7815_v47, 16  ;;  %v8507_v15 = vld [vmem:[%s8686_s26 + $0x10] sm:$0xf] }
 0x1bc   : > { %11843 = vst [vmem:[#allocation21_spill] sm:$0xff] %v9790_v44  ;;  %11844 = vst [vmem:[#allocation22_spill] sm:$0xff] %v9793_v35  ;;  %v7783_v35 = vcombine.low %v7671_v34, %v7672_v37  ;;  %v5618_v44 = vshrl.u32 %v7815_v47, 16  ;;  %v7313_v20 = vcombine.low %v7249_v5, %v8507_v15  ;;  %v8363_v15 = vld [vmem:[%s8686_s26 + $0x20] ss:$0 sps:$4 sm:$0x11]  }
 0x1bd   : > { %5313 = vrot.lane.b32.xlu1 %v5143_v57, %s8632_s27  ;;  %4084 = vrot.lane.b32.xlu0 %v3976_v21, %s8634_s5  ;;  %v7674_v57 = vld [vmem:[%s8686_s26 + $0x18] sm:$0xe] }
 0x1be   : > { %v7785_v37 = vcombine.low %v7674_v57, %v7675_v13  ;;  %v8508_v57 = vld [vmem:[%s8686_s26 + $0x14] ss:$0 sps:$4 sm:$0x11]  }
 0x1bf   : > { %v9799_v18 = vpop.permute.xlu1 %2460  ;;  %v9802_v42 = vpop.permute.xlu0 %2458 }
 0x1c0   : > { %11845 = vst [vmem:[#allocation11_spill] sm:$0xff] %v9799_v18  ;;  %11846 = vst [vmem:[#allocation12_spill] sm:$0xff] %v9802_v42  ;;  %v7720_v18 = vld [vmem:[%s8686_s26 + $0x18] sm:$0xf] }
 0x1c1   : > { %5317 = vrot.lane.b32.xlu1 %v5154_v19, %s8632_s27  ;;  %5315 = vrot.lane.b32.xlu0 %v5147_v43, %s8632_s27  ;;  %v5620_v19 = vrot.slane %v5618_v44, 7  ;;  %v9817_v34 = vcombine.low %v7720_v18, %v7675_v13  ;;  %v8362_v43 = vld [vmem:[%s8686_s26 + $0x14] ss:$0 sps:$4 sm:$0x11]   ;;  %v7255_v44 = vld [vmem:[%s8686_s26 + $0x24] sm:$0xe]  ;;  %v2762_v13 = vsel %vm1039_vm1, %v8508_v57, %v9513_v14 }
 0x1c2   : > { %v9834_v18 = vld [vmem:[%s8686_s26 + $0x24] sm:$0xff]   ;;  %v5625_v1 = vshll.u32 %v8362_v43, 16 }
 0x1c3   : > { %v9808_v21 = vpop.permute.xlu1 %2464  ;;  %v9813_v23 = vpop.permute.xlu0 %2462  ;;  %v5623_v47 = vor.u32 %v5621_v4, %v5620_v19  ;;  %v2841_v4 = vsel %vm1120_vm2, %v2762_v13, %v9694_v62  ;;  %v3981_v14 = vshrl.u32 %v9834_v18, 16  ;;  %v8510_v57 = vld [vmem:[%s8686_s26 + $0x28] sm:$0xf]  ;;  %v5632_v13 = vshll.u32 %v9817_v34, 16 }
 0x1c4   : > { %11847 = vst [vmem:[#allocation23_spill] sm:$0xff] %v9808_v21  ;;  %11848 = vst [vmem:[#allocation24_spill] sm:$0xff] %v9813_v23  ;;  %v7252_v21 = vld [vmem:[%s8686_s26 + $0x18] sm:$0xe] }
 0x1c5   : > { %5505 = vrot.lane.b32.xlu1 %v7783_v35, %s8633_s28  ;;  %5319 = vrot.lane.b32.xlu0 %v5158_v10, %s8632_s27  ;;  %v9829_v35 = vld [vmem:[%s11779_s1 + $0x18] sm:$0xff]  }
 0x1c6   : > { %v8509_v10 = vld [vmem:[%s8686_s26 + $0x1c] sm:$0xf]  ;;  %8097 = vmatprep.subr.bf16.mxu1 %v9829_v35 }
 0x1c7   : > { %v9822_v42 = vpop.permute.xlu1 %2468  ;;  %v9824_v23 = vpop.permute.xlu0 %2466  ;;  %v7315_v5 = vcombine.low %v7252_v21, %v8509_v10  ;;  %v7317_v21 = vcombine.low %v7255_v44, %v8510_v57  ;;  %v7657_v57 = vld [vmem:[%s8686_s26 + $0x30] sm:$0xf] }
 0x1c8   : > { %11849 = vst [vmem:[#allocation13_spill] sm:$0xff] %v9822_v42  ;;  %11850 = vst [vmem:[#allocation25_spill] sm:$0xff] %v9824_v23  ;;  %v5629_v23 = vshrl.u32 %v9817_v34, 16 }
 0x1c9   : > { %5509 = vrot.lane.b32.xlu1 %v7785_v37, %s8633_s28  ;;  %5507 = vrot.lane.b32.xlu0 %v8362_v43, %s8633_s28  ;;  %v2760_v37 = vsel %vm1039_vm1, %v7313_v20, %v9519_v38  ;;  %v2767_v38 = vsel %vm1039_vm1, %v8511_v61, %v9532_v0  ;;  %v9859_v43 = vld [vmem:[%s8686_s26 + $0x30] sm:$0xff]   ;;  %v2765_v0 = vsel %vm1039_vm1, %v7315_v5, %v9541_v60  ;;  %v3984_v60 = vshll.u32 %v9834_v18, 16 }
 0x1ca   : > { %v2839_v10 = vsel %vm1120_vm2, %v2760_v37, %v9696_v9  ;;  %v5631_v9 = vrot.slane %v5629_v23, 7  ;;  %v7258_v61 = vld [vmem:[%s8686_s26 + $0x30] sm:$0xe]  ;;  %v9869_v37 = vrot.slane %v3981_v14, 7  ;;  %v7614_v5 = vld [vmem:[%s8686_s26 + $0x34] sm:$0xf] }
 0x1cb   : > { %v2697_v42 = vpop.permute.xlu1 %2696  ;;  %v2695_v50 = vpop.permute.xlu0 %2694 }
 0x1cc   : > { %v2905_v24 = vsel %vm1185_vm3, %v2841_v4, %v2697_v42  ;;  %v2903_v62 = vsel %vm1185_vm3, %v2839_v10, %v2695_v50  ;;  %v5636_v42 = vshll.u32 %v8363_v15, 16  ;;  %v2845_v50 = vsel %vm1120_vm2, %v2767_v38, %v9703_v45 }
 0x1cd   : > { %v3000_v20 = vrot.slane %v2905_v24, 1  ;;  %5793 = vrot.lane.b32.xlu1 %v5623_v47, %s8634_s5  ;;  %v2999_v44 = vrot.slane %v2903_v62, 1  ;;  %5511 = vrot.lane.b32.xlu0 %v8363_v15, %s8633_s28  ;;  %v5627_v47 = vsel %vm2037_vm0, %v5620_v19, %v5625_v1  ;;  %v2843_v4 = vsel %vm1120_vm2, %v2765_v0, %v9705_v51  ;;  %v8512_v1 = vld [vmem:[%s8686_s26 + $0x2c] ss:$0 sps:$4 sm:$0x11]  }
 0x1ce   : > { %v3988_v51 = vshrl.u32 %v9859_v43, 16  ;;  %v2772_v19 = vsel %vm1039_vm1, %v8512_v1, %v9555_v6  ;;  %v5638_v38 = vsel %vm2037_vm0, %v5631_v9, %v5636_v42  ;;  %v2770_v62 = vsel %vm1039_vm1, %v7317_v21, %v9557_v59 }
 0x1cf   : > { %v2701_v24 = vpop.permute.xlu1 %2700  ;;  %v2699_v15 = vpop.permute.xlu0 %2698  ;;  %v3001_v34 = vsel %vm2998_vm6, %v2999_v44, %v3000_v20  ;;  %v5634_v20 = vor.u32 %v5632_v13, %v5631_v9  ;;  %v8513_v44 = vld [vmem:[%s8686_s26 + $0x34] sm:$0xf]  ;;  %v2847_v6 = vsel %vm1120_vm2, %v2770_v62, %v9713_v12  ;;  %v3986_v21 = vor.u32 %v3984_v60, %v9869_v37  ;;  %v7658_v60 = vld [vmem:[%s8686_s26 + $0x3c] sm:$0xf] }
 0x1d0   : > { %v2909_v23 = vsel %vm1185_vm3, %v2845_v50, %v2701_v24  ;;  %v2907_v10 = vsel %vm1185_vm3, %v2843_v4, %v2699_v15  ;;  %8031 = vmatprep.mubr.msk.bf16.mxu1 %vm1419_vm5, %v3001_v34  ;;  %v7319_v0 = vcombine.low %v7258_v61, %v8513_v44  ;;  %v9893_v24 = vcombine.low %v7657_v57, %v7614_v5  ;;  %v7261_v4 = vld [vmem:[%s8686_s26 + $0x3c] sm:$0xe]  ;;  %v7617_v34 = vld [vmem:[%s8686_s26 + $0x40] sm:$0xf] }
 0x1d1   : > { %v3003_v45 = vrot.slane %v2909_v23, 1  ;;  %3910 = vrot.lane.b32.xlu1 %v9834_v18, %s8633_s28  ;;  %v3002_v14 = vrot.slane %v2907_v10, 1  ;;  %5795 = vrot.lane.b32.xlu0 %v5627_v47, %s8634_s5  ;;  %v2849_v18 = vsel %vm1120_vm2, %v2772_v19, %v9711_v7  ;;  %v9904_v61 = vrot.slane %v3988_v51, 7  ;;  %v8514_v47 = vld [vmem:[%s8686_s26 + $0x38] ss:$0 sps:$4 sm:$0x11]  }
 0x1d2   : > { %v3991_v12 = vshll.u32 %v9859_v43, 16  ;;  %v2777_v23 = vsel %vm1039_vm1, %v8514_v47, %v9566_v2  ;;  %v2775_v5 = vsel %vm1039_vm1, %v7319_v0, %v9568_v40  ;;  %v8515_v57 = vld [vmem:[%s8686_s26 + $0x40] sm:$0xf]  ;;  %v5160_v1 = vshrl.u32 %v9893_v24, 16  ;;  %v7264_v2 = vld [vmem:[%s8686_s26 + $0x48] sm:$0xe] }
 0x1d3   : > { %v2705_v50 = vpop.permute.xlu1 %2704  ;;  %v2703_v42 = vpop.permute.xlu0 %2702  ;;  %v3004_v59 = vsel %vm2998_vm6, %v3002_v14, %v3003_v45  ;;  %v7321_v45 = vcombine.low %v7261_v4, %v8515_v57  ;;  %v2853_v10 = vsel %vm1120_vm2, %v2777_v23, %v9718_v53  ;;  %v2851_v19 = vsel %vm1120_vm2, %v2775_v5, %v9720_v54  ;;  %v8516_v54 = vld [vmem:[%s8686_s26 + $0x44] ss:$0 sps:$4 sm:$0x11]   ;;  %v8517_v4 = vld [vmem:[%s8686_s26 + $0x4c] sm:$0xf] }
 0x1d4   : > { %v2913_v9 = vsel %vm1185_vm3, %v2849_v18, %v2705_v50  ;;  %v2911_v7 = vsel %vm1185_vm3, %v2847_v6, %v2703_v42  ;;  %8032 = vmatmul.mubr.msk.bf16.vlgmr.msra.gmra.mrb[0].mxu1 %vm1419_vm5, %v3004_v59  ;;  %v3993_v53 = vor.u32 %v3991_v12, %v9904_v61  ;;  %v9929_v62 = vcombine.low %v7658_v60, %v7617_v34  ;;  %v8367_v18 = vld [vmem:[%s8686_s26 + $0x2c] ss:$0 sps:$4 sm:$0x11]   ;;  %v8518_v23 = vld [vmem:[%s8686_s26 + $0x50] ss:$0 sps:$4 sm:$0x11]  }
 0x1d5   : > { %v3006_v13 = vrot.slane %v2913_v9, 1  ;;  %5799 = vrot.lane.b32.xlu1 %v5638_v38, %s8634_s5  ;;  %v3005_v15 = vrot.slane %v2911_v7, 1  ;;  %5797 = vrot.lane.b32.xlu0 %v5634_v20, %s8634_s5  ;;  %v2782_v44 = vsel %vm1039_vm1, %v8516_v54, %v9576_v33  ;;  %v2780_v50 = vsel %vm1039_vm1, %v7321_v45, %v9578_v27  ;;  %v9946_v33 = vld [vmem:[%s8686_s26 + $0x60] sm:$0xe]  ;;  %v9961_v34 = vld [vmem:[%s8686_s26 + $0x6c] sm:$0xe] }
 0x1d6   : > { %8098 = vmatpush3.bf16.msra.mxu1 %v9829_v35  ;;  %v7323_v6 = vcombine.low %v7264_v2, %v8517_v4  ;;  %v2857_v9 = vsel %vm1120_vm2, %v2782_v44, %v9725_v3  ;;  %v9942_v59 = vrot.slane %v5160_v1, 7  ;;  %v5163_v3 = vshll.u32 %v9893_v24, 16  ;;  %v8368_v60 = vld [vmem:[%s8686_s26 + $0x38] ss:$0 sps:$4 sm:$0x11]  }
 0x1d7   : > { %v2709_v51 = vpop.permute.xlu1 %2708  ;;  %v2707_v14 = vpop.permute.xlu0 %2706  ;;  %v3007_v40 = vsel %vm2998_vm6, %v3005_v15, %v3006_v13  ;;  %v2787_v15 = vsel %vm1039_vm1, %v8518_v23, %v9586_v30  ;;  %v8519_v57 = vld [vmem:[%s8686_s26 + $0x58] sm:$0xf]  ;;  %v9999_v4 = vld [vmem:[%s8686_s26 + $0x70] sm:$0xf] }
 0x1d8   : > { %v2917_v35 = vsel %vm1185_vm3, %v2853_v10, %v2709_v51  ;;  %v2915_v20 = vsel %vm1185_vm3, %v2851_v19, %v2707_v14  ;;  %8035 = vmatprep.mubr.msk.bf16.mxu1 %vm1419_vm5, %v3007_v40  ;;  %v2785_v5 = vsel %vm1039_vm1, %v7323_v6, %v9588_v8  ;;  %v8520_v10 = vld [vmem:[%s8686_s26 + $0x64] sm:$0xf]  ;;  %v2861_v1 = vsel %vm1120_vm2, %v2787_v15, %v9732_v41  ;;  %v8371_v30 = vld [vmem:[%s8686_s26 + $0x38] ss:$0 sps:$4 sm:$0x11]  }
 0x1d9   : > { %v3009_v38 = vrot.slane %v2917_v35, 1  ;;  %4086 = vrot.lane.b32.xlu1 %v3986_v21, %s8634_s5  ;;  %v3008_v0 = vrot.slane %v2915_v20, 1  ;;  %3914 = vrot.lane.b32.xlu0 %v9859_v43, %s8633_s28  ;;  %v7267_v21 = vld [vmem:[%s8686_s26 + $0x54] sm:$0xe]  ;;  %v2855_v43 = vsel %vm1120_vm2, %v2780_v50, %v9727_v63  ;;  %v5171_v63 = vshrl.u32 %v9929_v62, 16 }
 0x1da   : > { %v7325_v45 = vcombine.low %v7267_v21, %v8519_v57  ;;  %v7327_v51 = vcombine.low %v9946_v33, %v8520_v10  ;;  %v7721_v19 = vld [vmem:[%s8686_s26 + $0x24] sm:$0xf]  ;;  %v9975_v35 = vld [vmem:[%s8686_s26 + $0x78] sm:$0xe]  ;;  %v2859_v8 = vsel %vm1120_vm2, %v2785_v5, %v9734_v32  ;;  %v5165_v41 = vor.u32 %v5163_v3, %v9942_v59  ;;  %v10013_v21 = vld [vmem:[%s8686_s26 + $0x7c] sm:$0xf] }
 0x1db   : > { %v2713_v42 = vpop.permute.xlu1 %2712  ;;  %v2711_v27 = vpop.permute.xlu0 %2710  ;;  %v3010_v7 = vsel %vm2998_vm6, %v3008_v0, %v3009_v38  ;;  %v9978_v14 = vld [vmem:[%s8686_s26 + $0x84] sm:$0xe]  ;;  %v9989_v44 = vrot.slane %v5171_v63, 7  ;;  %v5174_v32 = vshll.u32 %v9929_v62, 16  ;;  %v9993_v0 = vld [vmem:[%s8686_s26 + $0x28] sm:$0xf]  ;;  %v7329_v6 = vcombine.low %v9961_v34, %v9999_v4 }
 0x1dc   : > { %v2921_v13 = vsel %vm1185_vm3, %v2857_v9, %v2713_v42  ;;  %v2919_v47 = vsel %vm1185_vm3, %v2855_v43, %v2711_v27  ;;  %8036 = vmatmul.mubr.msk.bf16.gmra.mrb[4].mxu1 %vm1419_vm5, %v3010_v7  ;;  %v10004_v9 = vld [vmem:[%s8686_s26 + $0x90] sm:$0xe]  ;;  %v10008_v62 = vcombine.low %v7721_v19, %v9993_v0  ;;  %v2790_v42 = vsel %vm1039_vm1, %v7325_v45, %v9598_v52  ;;  %v10018_v33 = vld [vmem:[%s8686_s26 + $0x9c] sm:$0xe]  ;;  %v10024_v3 = vld [vmem:[%s8686_s26 + $0x88] sm:$0xf] }
 0x1dd   : > { %v3012_v12 = vrot.slane %v2921_v13, 1  ;;  %4090 = vrot.lane.b32.xlu1 %v3993_v53, %s8634_s5  ;;  %v3011_v24 = vrot.slane %v2919_v47, 1  ;;  %3912 = vrot.lane.b32.xlu0 %v8367_v18, %s8633_s28  ;;  %v8521_v18 = vld [vmem:[%s8686_s26 + $0x5c] ss:$0 sps:$4 sm:$0x11]   ;;  %v5167_v27 = vshll.u32 %v8371_v30, 16  ;;  %v7333_v52 = vcombine.low %v9978_v14, %v10024_v3 }
 0x1de   : > { %v2792_v50 = vsel %vm1039_vm1, %v8521_v18, %v9596_v36  ;;  %v7331_v36 = vcombine.low %v9975_v35, %v10013_v21  ;;  %v8374_v7 = vld [vmem:[%s8686_s26 + $0x44] ss:$0 sps:$4 sm:$0x11]   ;;  %v8526_v57 = vld [vmem:[%s8686_s26 + $0x68] ss:$0 sps:$4 sm:$0x11]  }
 0x1df   : > { %v2717_v2 = vpop.permute.xlu1 %2716  ;;  %v2715_v38 = vpop.permute.xlu0 %2714  ;;  %v3013_v20 = vsel %vm2998_vm6, %v3011_v24, %v3012_v12  ;;  %v2865_v43 = vsel %vm1120_vm2, %v2792_v50, %v9739_v49  ;;  %v2863_v12 = vsel %vm1120_vm2, %v2790_v42, %v9741_v11  ;;  %v10033_v49 = vld [vmem:[%s8686_s26 + $0x94] sm:$0xf]  ;;  %v10038_v24 = vld [vmem:[%s8686_s26 + $0xa8] sm:$0xe]  ;;  %v5176_v11 = vor.u32 %v5174_v32, %v9989_v44  ;;  %v10048_v10 = vld [vmem:[%s8686_s26 + $0xa0] sm:$0xf] }
 0x1e0   : > { %v2925_v40 = vsel %vm1185_vm3, %v2861_v1, %v2717_v2  ;;  %v2923_v54 = vsel %vm1185_vm3, %v2859_v8, %v2715_v38  ;;  %8039 = vmatprep.mubr.msk.bf16.mxu1 %vm1419_vm5, %v3013_v20  ;;  %v7335_v15 = vcombine.low %v10004_v9, %v10033_v49  ;;  %v2797_v45 = vsel %vm1039_vm1, %v8526_v57, %v9606_v31  ;;  %v10053_v2 = vld [vmem:[%s8686_s26 + $0xb4] sm:$0xe]  ;;  %v7677_v19 = vld [vmem:[%s8686_s26 + $0x24] sm:$0xe]  ;;  %v10078_v32 = vld [vmem:[%s8686_s26 + $0xb8] sm:$0xf] }
 0x1e1   : > { %v3015_v53 = vrot.slane %v2925_v40, 1  ;;  %4088 = vrot.lane.b32.xlu1 %v9869_v37, %s8634_s5  ;;  %v3014_v37 = vrot.slane %v2923_v54, 1  ;;  %3916 = vrot.lane.b32.xlu0 %v8368_v60, %s8633_s28  ;;  %v7337_v1 = vcombine.low %v10018_v33, %v10048_v10  ;;  %v5640_v8 = vshrl.u32 %v10008_v62, 16  ;;  %v10071_v54 = vld [vmem:[%s8686_s26 + $0xc0] sm:$0xe] }
 0x1e2   : > { %v2795_v40 = vsel %vm1039_vm1, %v7327_v51, %v9608_v56  ;;  %v2869_v31 = vsel %vm1120_vm2, %v2797_v45, %v9748_v58  ;;  %v5169_v20 = vsel %vm2037_vm0, %v9942_v59, %v5167_v27  ;;  %v7341_v18 = vcombine.low %v10053_v2, %v10078_v32  ;;  %v7680_v42 = vld [vmem:[%s8686_s26 + $0x30] sm:$0xe]  ;;  %v7620_v10 = vld [vmem:[%s8686_s26 + $0x4c] sm:$0xf]  ;;  %v7623_v32 = vld [vmem:[%s8686_s26 + $0x58] sm:$0xf] }
 0x1e3   : > { %v2721_v13 = vpop.permute.xlu1 %2720  ;;  %v2719_v63 = vpop.permute.xlu0 %2718  ;;  %v3016_v23 = vsel %vm2998_vm6, %v3014_v37, %v3015_v53  ;;  %v10066_v53 = vld [vmem:[%s8686_s26 + $0xac] sm:$0xf]  ;;  %v2867_v56 = vsel %vm1120_vm2, %v2795_v40, %v9750_v39  ;;  %v7787_v39 = vcombine.low %v7677_v19, %v9993_v0  ;;  %v2800_v0 = vsel %vm1039_vm1, %v7329_v6, %v9618_v29 }
 0x1e4   : > { %v2929_v47 = vsel %vm1185_vm3, %v2865_v43, %v2721_v13  ;;  %v2927_v5 = vsel %vm1185_vm3, %v2863_v12, %v2719_v63  ;;  %8040 = vmatmul.mubr.msk.bf16.gmra.mrb[8].mxu1 %vm1419_vm5, %v3016_v23  ;;  %v7681_v43 = vld [vmem:[%s8686_s26 + $0x34] sm:$0xf]  ;;  %v7722_v12 = vld [vmem:[%s8686_s26 + $0x30] sm:$0xf]  ;;  %v5643_v63 = vshll.u32 %v10008_v62, 16  ;;  %v2871_v29 = vsel %vm1120_vm2, %v2800_v0, %v9759_v25 }
 0x1e5   : > { %v3018_v60 = vrot.slane %v2929_v47, 1  ;;  %5321 = vrot.lane.b32.xlu1 %v5165_v41, %s8632_s27  ;;  %v3017_v30 = vrot.slane %v2927_v5, 1  ;;  %4092 = vrot.lane.b32.xlu0 %v9904_v61, %s8634_s5  ;;  %v5178_v41 = vshll.u32 %v8374_v7, 16  ;;  %v7339_v61 = vcombine.low %v10038_v24, %v10066_v53  ;;  %v8530_v13 = vld [vmem:[%s8686_s26 + $0x74] ss:$0 sps:$4 sm:$0x11]  }
 0x1e6   : > { %v2802_v27 = vsel %vm1039_vm1, %v8530_v13, %v9616_v22  ;;  %v10093_v47 = vrot.slane %v5640_v8, 7  ;;  %v10102_v23 = vld [vmem:[%s8686_s26 + $0xc4] sm:$0xf]  ;;  %v8532_v62 = vld [vmem:[%s8686_s26 + $0x80] ss:$0 sps:$4 sm:$0x11]   ;;  %v10121_v19 = vcombine.low %v7722_v12, %v7681_v43  ;;  %v2805_v8 = vsel %vm1039_vm1, %v7331_v36, %v9628_v28 }
 0x1e7   : > { %v2725_v38 = vpop.permute.xlu1 %2724  ;;  %v2723_v51 = vpop.permute.xlu0 %2722  ;;  %v3019_v59 = vsel %vm2998_vm6, %v3017_v30, %v3018_v60  ;;  %v7343_v60 = vcombine.low %v10071_v54, %v10102_v23  ;;  %v2873_v22 = vsel %vm1120_vm2, %v2802_v27, %v9757_v46  ;;  %v2807_v57 = vsel %vm1039_vm1, %v8532_v62, %v9626_v17  ;;  %v8377_v25 = vld [vmem:[%s8686_s26 + $0x2c] ss:$0 sps:$4 sm:$0x11]   ;;  %v8378_v12 = vld [vmem:[%s8686_s26 + $0x38] ss:$0 sps:$4 sm:$0x11]  }
 0x1e8   : > { %v2933_v58 = vsel %vm1185_vm3, %v2869_v31, %v2725_v38  ;;  %v2931_v37 = vsel %vm1185_vm3, %v2867_v56, %v2723_v51  ;;  %8043 = vmatprep.mubr.msk.bf16.mxu1 %vm1419_vm5, %v3019_v59  ;;  %v7789_v17 = vcombine.low %v7680_v42, %v7681_v43  ;;  %v8533_v40 = vld [vmem:[%s8686_s26 + $0x8c] ss:$0 sps:$4 sm:$0x11]   ;;  %v2810_v35 = vsel %vm1039_vm1, %v7333_v52, %v9638_v55  ;;  %v10154_v59 = vld [vmem:[%s8686_s26 + $0x3c] sm:$0xff]  }
 0x1e9   : > { %v3021_v50 = vrot.slane %v2933_v58, 1  ;;  %5325 = vrot.lane.b32.xlu1 %v5176_v11, %s8632_s27  ;;  %v3020_v7 = vrot.slane %v2931_v37, 1  ;;  %5323 = vrot.lane.b32.xlu0 %v5169_v20, %s8632_s27  ;;  %v5180_v11 = vsel %vm2037_vm0, %v9989_v44, %v5178_v41  ;;  %v2812_v31 = vsel %vm1039_vm1, %v8533_v40, %v9636_v48  ;;  %v8534_v37 = vld [vmem:[%s8686_s26 + $0x98] ss:$0 sps:$4 sm:$0x11]   ;;  %v11852_v43 = vld [vmem:[#allocation3_spill] sm:$0xff] }
 0x1ea   : > { %v5645_v41 = vor.u32 %v5643_v63, %v10093_v47  ;;  %v2877_v28 = vsel %vm1120_vm2, %v2807_v57, %v9765_v26  ;;  %v2875_v48 = vsel %vm1120_vm2, %v2805_v8, %v9767_v16  ;;  %v5647_v56 = vshll.u32 %v8377_v25, 16  ;;  %v11853_v63 = vld [vmem:[#allocation19_spill] sm:$0xff]  ;;  %v11854_v57 = vld [vmem:[#allocation20_spill] sm:$0xff] }
 0x1eb   : > { %v2729_v5 = vpop.permute.xlu1 %2728  ;;  %v7999_v4 = vpop.f32.mrb[0].mxu0  ;;  %v3022_v45 = vsel %vm2998_vm6, %v3020_v7, %v3021_v50  ;;  %v5651_v50 = vshrl.u32 %v10121_v19, 16  ;;  %v2815_v13 = vsel %vm1039_vm1, %v7335_v15, %v11852_v43  ;;  %v2881_v0 = vsel %vm1120_vm2, %v2812_v31, %v11853_v63  ;;  %v8535_v31 = vld [vmem:[%s8686_s26 + $0xa4] ss:$0 sps:$4 sm:$0x11]  }
 0x1ec   : > { %v2937_v34 = vsel %vm1185_vm3, %v2873_v22, %v2729_v5  ;;  %v2727_v6 = vpop.permute.xlu0 %2726  ;;  %1633 = vst.msk [vmem:[#allocation2 + $0x10] sm:$0xff] %vm1120_vm2, %v7999_v4  ;;  %v1502_v30 = vpop.f32.mrb[1].mxu0  ;;  %8044 = vmatmul.mubr.msk.bf16.gmra.mrb[12].mxu1 %vm1419_vm5, %v3022_v45  ;;  %v1666_v27 = vsel %vm1120_vm2, %v7999_v4, 0.0  ;;  %v3995_v62 = vshrl.u32 %v10154_v59, 16  ;;  %v2879_v9 = vsel %vm1120_vm2, %v2810_v35, %v11854_v57  ;;  %v11856_v35 = vld [vmem:[#allocation9_spill] sm:$0xff] }
 0x1ed   : > { %v3024_v46 = vrot.slane %v2937_v34, 1  ;;  %v2935_v44 = vsel %vm1185_vm3, %v2871_v29, %v2727_v6  ;;  %5513 = vrot.lane.b32.xlu1 %v7787_v39, %s8633_s28  ;;  %1631 = vst.msk [vmem:[#allocation2] sm:$0xff] %vm1120_vm2, %v1502_v30  ;;  %v8000_v20 = vpop.f32.mrb[2].mxu0  ;;  %5327 = vrot.lane.b32.xlu0 %v5180_v11, %s8632_s27  ;;  %v1663_v58 = vsel %vm1120_vm2, %v1502_v30, 0.0  ;;  %v11851_v39 = vld [vmem:[#allocation14_spill] sm:$0xff]  ;;  %v5649_v11 = vsel %vm2037_vm0, %v10093_v47, %v5647_v56 }
 0x1ee   : > { %v3023_v38 = vrot.slane %v2935_v44, 1  ;;  %1634 = vst.msk [vmem:[#allocation2 + $0x18] sm:$0xff] %vm1120_vm2, %v8000_v20  ;;  %v1505_v21 = vpop.f32.mrb[3].mxu0  ;;  %v2817_v42 = vsel %vm1039_vm1, %v8534_v37, %v11851_v39  ;;  %v1668_v49 = vsel %vm1120_vm2, %v8000_v20, 0.0  ;;  %v5653_v44 = vrot.slane %v5651_v50, 7  ;;  %v11857_v56 = vld [vmem:[#allocation10_spill] sm:$0xff] }
 0x1ef   : > { %v2733_v36 = vpop.permute.xlu1 %2732  ;;  %1632 = vst.msk [vmem:[#allocation2 + $0x8] sm:$0xff] %vm1120_vm2, %v1505_v21  ;;  %v1664_v14 = vsel %vm1120_vm2, %v1505_v21, 0.0  ;;  %v5658_v8 = vshll.u32 %v8378_v12, 16  ;;  %v5654_v40 = vshll.u32 %v10121_v19, 16  ;;  %v10206_v50 = vld [vmem:[%s8686_s26 + $0x48] sm:$0xff]  }
 0x1f0   : > { %v2941_v55 = vsel %vm1185_vm3, %v2877_v28, %v2733_v36  ;;  %v2731_v26 = vpop.permute.xlu0 %2730  ;;  %v3025_v3 = vsel %vm2998_vm6, %v3023_v38, %v3024_v46  ;;  %v1665_v16 = vadd.f32 %v1664_v14, %v1663_v58  ;;  %v11855_v38 = vld [vmem:[#allocation4_spill] sm:$0xff]  ;;  %v2885_v28 = vsel %vm1120_vm2, %v2817_v42, %v11856_v35 }
 0x1f1   : > { %v3027_v52 = vrot.slane %v2941_v55, 1  ;;  %v2939_v51 = vsel %vm1185_vm3, %v2875_v48, %v2731_v26  ;;  %8047 = vmatprep.mubr.msk.bf16.mxu1 %vm1419_vm5, %v3025_v3  ;;  %5517 = vrot.lane.b32.xlu1 %v7789_v17, %s8633_s28  ;;  %v2822_v20 = vsel %vm1039_vm1, %v8535_v31, %v11855_v38  ;;  %v10192_v36 = vrot.slane %v3995_v62, 7 }
 0x1f2   : > { %v3026_v7 = vrot.slane %v2939_v51, 1  ;;  %5515 = vrot.lane.b32.xlu0 %v8377_v25, %s8633_s28  ;;  %v1667_v22 = vadd.f32 %v1666_v27, %v1665_v16  ;;  %v2883_v58 = vsel %vm1120_vm2, %v2815_v13, %v11857_v56  ;;  %v3998_v51 = vshll.u32 %v10154_v59, 16  ;;  %v11858_v13 = vld [vmem:[#allocation15_spill] sm:$0xff] }
 0x1f3   : > { %v2737_v5 = vpop.permute.xlu1 %2736  ;;  %v8003_v29 = vpop.f32.mrb[4].mxu0  ;;  %v5660_v42 = vsel %vm2037_vm0, %v5653_v44, %v5658_v8  ;;  %v5656_v43 = vor.u32 %v5654_v40, %v5653_v44  ;;  %v2820_v27 = vsel %vm1039_vm1, %v7337_v1, %v11858_v13  ;;  %v7659_v1 = vld [vmem:[%s8686_s26 + $0x48] sm:$0xf]  ;;  %v11863_v8 = vld [vmem:[#allocation11_spill] sm:$0xff] }
 0x1f4   : > { %v2945_v15 = vsel %vm1185_vm3, %v2881_v0, %v2737_v5  ;;  %v2735_v34 = vpop.permute.xlu0 %2734  ;;  %v3028_v4 = vsel %vm2998_vm6, %v3026_v7, %v3027_v52  ;;  %1637 = vst.msk [vmem:[#allocation2 + $0x30] sm:$0xff] %vm1120_vm2, %v8003_v29  ;;  %v1518_v47 = vpop.f32.mrb[5].mxu0  ;;  %v1669_v46 = vadd.f32 %v1668_v49, %v1667_v22  ;;  %v1674_v37 = vsel %vm1120_vm2, %v8003_v29, 0.0  ;;  %v11859_v7 = vld [vmem:[#allocation21_spill] sm:$0xff]  ;;  %v11860_v22 = vld [vmem:[#allocation22_spill] sm:$0xff] }
 0x1f5   : > { %v3030_v6 = vrot.slane %v2945_v15, 1  ;;  %v2943_v45 = vsel %vm1185_vm3, %v2879_v9, %v2735_v34  ;;  %8048 = vmatmul.mubr.msk.bf16.gmra.mrb[16].mxu1 %vm1419_vm5, %v3028_v4  ;;  %5801 = vrot.lane.b32.xlu1 %v5645_v41, %s8634_s5  ;;  %1635 = vst.msk [vmem:[#allocation2 + $0x20] sm:$0xff] %vm1120_vm2, %v1518_v47  ;;  %v1670_v17 = vsel %vm1120_vm2, %v1518_v47, 0.0  ;;  %v8004_v25 = vpop.f32.mrb[6].mxu0  ;;  %v4002_v0 = vshrl.u32 %v10206_v50, 16 }
 0x1f6   : > { %v3029_v30 = vrot.slane %v2943_v45, 1  ;;  %5519 = vrot.lane.b32.xlu0 %v8378_v12, %s8633_s28  ;;  %v1671_v41 = vadd.f32 %v1670_v17, %v1669_v46  ;;  %1638 = vst.msk [vmem:[#allocation2 + $0x38] sm:$0xff] %vm1120_vm2, %v8004_v25  ;;  %v1521_v48 = vpop.f32.mrb[7].mxu0  ;;  %v2887_v5 = vsel %vm1120_vm2, %v2820_v27, %v11860_v22  ;;  %v4000_v4 = vor.u32 %v3998_v51, %v10192_v36  ;;  %v11861_v45 = vld [vmem:[#allocation16_spill] sm:$0xff]  ;;  %v11862_v46 = vld [vmem:[#allocation5_spill] sm:$0xff]  ;;  %v11868_v27 = vld [vmem:[#allocation23_spill] sm:$0xff] }
 0x1f7   : > { %v2741_v21 = vpop.permute.xlu1 %2740  ;;  %1636 = vst.msk [vmem:[#allocation2 + $0x28] sm:$0xff] %vm1120_vm2, %v1521_v48  ;;  %v1672_v19 = vsel %vm1120_vm2, %v1521_v48, 0.0  ;;  %v2825_v44 = vsel %vm1039_vm1, %v7339_v61, %v11862_v46  ;;  %v10245_v24 = vrot.slane %v4002_v0, 7  ;;  %v10247_v53 = vcombine.low %v7659_v1, %v7620_v10  ;;  %v11864_v61 = vld [vmem:[#allocation12_spill] sm:$0xff] }
 0x1f8   : > { %v2949_v14 = vsel %vm1185_vm3, %v2885_v28, %v2741_v21  ;;  %v2739_v55 = vpop.permute.xlu0 %2738  ;;  %v3031_v26 = vsel %vm2998_vm6, %v3029_v30, %v3030_v6  ;;  %v1673_v3 = vadd.f32 %v1672_v19, %v1671_v41  ;;  %v8536_v6 = vld [vmem:[%s8686_s26 + $0xb0] ss:$0 sps:$4 sm:$0x11]   ;;  %v2891_v35 = vsel %vm1120_vm2, %v2825_v44, %v11864_v61 }
 0x1f9   : > { %v3033_v16 = vrot.slane %v2949_v14, 1  ;;  %v2947_v52 = vsel %vm1185_vm3, %v2883_v58, %v2739_v55  ;;  %8051 = vmatprep.mubr.msk.bf16.mxu1 %vm1419_vm5, %v3031_v26  ;;  %3918 = vrot.lane.b32.xlu1 %v10154_v59, %s8633_s28  ;;  %v2889_v59 = vsel %vm1120_vm2, %v2822_v20, %v11859_v7  ;;  %v2827_v47 = vsel %vm1039_vm1, %v8536_v6, %v11861_v45  ;;  %v8381_v14 = vld [vmem:[%s8686_s26 + $0x44] ss:$0 sps:$4 sm:$0x11]   ;;  %v11872_v44 = vld [vmem:[#allocation13_spill] sm:$0xff] }
 0x1fa   : > { %v3032_v39 = vrot.slane %v2947_v52, 1  ;;  %5803 = vrot.lane.b32.xlu0 %v5649_v11, %s8634_s5  ;;  %v1675_v12 = vadd.f32 %v1674_v37, %v1673_v3  ;;  %v1676_v11 = vsel %vm1120_vm2, %v8004_v25, 0.0  ;;  %v2893_v40 = vsel %vm1120_vm2, %v2827_v47, %v11863_v8  ;;  %v8537_v26 = vld [vmem:[%s8686_s26 + $0xbc] ss:$0 sps:$4 sm:$0x11]   ;;  %v11866_v52 = vld [vmem:[#allocation17_spill] sm:$0xff] }
 0x1fb   : > { %v2745_v63 = vpop.permute.xlu1 %2744  ;;  %v8007_v57 = vpop.f32.mrb[8].mxu0  ;;  %v4005_v55 = vshll.u32 %v10206_v50, 16  ;;  %v11865_v3 = vld [vmem:[#allocation6_spill] sm:$0xff]  ;;  %v2830_v51 = vsel %vm1039_vm1, %v7341_v18, %v11866_v52  ;;  %v5182_v2 = vshrl.u32 %v10247_v53, 16  ;;  %v7660_v18 = vld [vmem:[%s8686_s26 + $0x54] sm:$0xf] }
 0x1fc   : > { %v2953_v62 = vsel %vm1185_vm3, %v2889_v59, %v2745_v63  ;;  %v2743_v9 = vpop.permute.xlu0 %2742  ;;  %v3034_v33 = vsel %vm2998_vm6, %v3032_v39, %v3033_v16  ;;  %1641 = vst.msk [vmem:[#allocation2 + $0x50] sm:$0xff] %vm1120_vm2, %v8007_v57  ;;  %v1534_v29 = vpop.f32.mrb[9].mxu0  ;;  %v1677_v34 = vadd.f32 %v1676_v11, %v1675_v12  ;;  %v2832_v16 = vsel %vm1039_vm1, %v8537_v26, %v11865_v3  ;;  %v11869_v63 = vld [vmem:[#allocation24_spill] sm:$0xff]  ;;  %v11873_v8 = vld [vmem:[#allocation25_spill] sm:$0xff] }
 0x1fd   : > { %v3036_v49 = vrot.slane %v2953_v62, 1  ;;  %v2951_v15 = vsel %vm1185_vm3, %v2887_v5, %v2743_v9  ;;  %8052 = vmatmul.mubr.msk.bf16.gmra.mrb[20].mxu1 %vm1419_vm5, %v3034_v33  ;;  %5807 = vrot.lane.b32.xlu1 %v5660_v42, %s8634_s5  ;;  %1639 = vst.msk [vmem:[#allocation2 + $0x40] sm:$0xff] %vm1120_vm2, %v1534_v29  ;;  %v1678_v17 = vsel %vm1120_vm2, %v1534_v29, 0.0  ;;  %v8008_v25 = vpop.f32.mrb[10].mxu0  ;;  %v1682_v37 = vsel %vm1120_vm2, %v8007_v57, 0.0  ;;  %v11870_v29 = vld [vmem:[#allocation7_spill] sm:$0xff] }
 0x1fe   : > { %v3035_v30 = vrot.slane %v2951_v15, 1  ;;  %5805 = vrot.lane.b32.xlu0 %v5656_v43, %s8634_s5  ;;  %v1679_v31 = vadd.f32 %v1678_v17, %v1677_v34  ;;  %1642 = vst.msk [vmem:[#allocation2 + $0x58] sm:$0xff] %vm1120_vm2, %v8008_v25  ;;  %v1537_v38 = vpop.f32.mrb[11].mxu0  ;;  %v8538_v42 = vld [vmem:[%s8686_s26 + $0xc8] ss:$0 sps:$4 sm:$0x11]   ;;  %v2897_v7 = vsel %vm1120_vm2, %v2832_v16, %v11868_v27  ;;  %v2895_v0 = vsel %vm1120_vm2, %v2830_v51, %v11869_v63 }
 0x1ff   : > { %v2749_v20 = vpop.permute.xlu1 %2748  ;;  %1640 = vst.msk [vmem:[#allocation2 + $0x48] sm:$0xff] %vm1120_vm2, %v1537_v38  ;;  %v1680_v28 = vsel %vm1120_vm2, %v1537_v38, 0.0  ;;  %v11867_v43 = vld [vmem:[#allocation18_spill] sm:$0xff]  ;;  %v1684_v22 = vsel %vm1120_vm2, %v8008_v25, 0.0  ;;  %v2835_v34 = vsel %vm1039_vm1, %v7343_v60, %v11870_v29  ;;  %v11871_v47 = vld [vmem:[#allocation8_spill] sm:$0xff]  ;;  %v10300_v46 = vcombine.low %v7660_v18, %v7623_v32 }
 0x200   : > { %v2957_v41 = vsel %vm1185_vm3, %v2893_v40, %v2749_v20  ;;  %v2747_v48 = vpop.permute.xlu0 %2746  ;;  %v3037_v21 = vsel %vm2998_vm6, %v3035_v30, %v3036_v49  ;;  %v1681_v56 = vadd.f32 %v1680_v28, %v1679_v31  ;;  %v2837_v13 = vsel %vm1039_vm1, %v8538_v42, %v11867_v43  ;;  %v8382_v57 = vld [vmem:[%s8686_s26 + $0x50] ss:$0 sps:$4 sm:$0x11]   ;;  %v7723_v42 = vld [vmem:[%s8686_s26 + $0x3c] sm:$0xf]  ;;  %v10332_v43 = vld [vmem:[%s8686_s26 + $0x60] sm:$0xff]  }
 0x201   : > { %v3039_v58 = vrot.slane %v2957_v41, 1  ;;  %v2955_v19 = vsel %vm1185_vm3, %v2891_v35, %v2747_v48  ;;  %8055 = vmatprep.mubr.msk.bf16.mxu1 %vm1419_vm5, %v3037_v21  ;;  %4094 = vrot.lane.b32.xlu1 %v4000_v4, %s8634_s5  ;;  %v4007_v49 = vor.u32 %v4005_v55, %v10245_v24  ;;  %v8385_v15 = vld [vmem:[%s8686_s26 + $0x50] ss:$0 sps:$4 sm:$0x11]   ;;  %v2901_v30 = vsel %vm1120_vm2, %v2837_v13, %v11872_v44  ;;  %v7684_v18 = vld [vmem:[%s8686_s26 + $0x40] sm:$0xf] }
 0x202   : > { %v3038_v39 = vrot.slane %v2955_v19, 1  ;;  %3922 = vrot.lane.b32.xlu0 %v10206_v50, %s8633_s28  ;;  %v1683_v59 = vadd.f32 %v1682_v37, %v1681_v56  ;;  %v5184_v60 = vrot.slane %v5182_v2, 7  ;;  %v5185_v25 = vshll.u32 %v10247_v53, 16  ;;  %v8388_v56 = vld [vmem:[%s8686_s26 + $0x5c] ss:$0 sps:$4 sm:$0x11]  }
 0x203   : > { %v2753_v12 = vpop.permute.xlu1 %2752  ;;  %v8011_v5 = vpop.f32.mrb[12].mxu0  ;;  %v2899_v40 = vsel %vm1120_vm2, %v2835_v34, %v11873_v8  ;;  %v5189_v53 = vshll.u32 %v8385_v15, 16  ;;  %v10359_v15 = vld [vmem:[%s8686_s26 + $0x44] ss:$0 sps:$4 sm:$0x11]  }
 0x204   : > { %v2961_v50 = vsel %vm1185_vm3, %v2897_v7, %v2753_v12  ;;  %v2751_v11 = vpop.permute.xlu0 %2750  ;;  %v3040_v62 = vsel %vm2998_vm6, %v3038_v39, %v3039_v58  ;;  %1645 = vst.msk [vmem:[#allocation2 + $0x70] sm:$0xff] %vm1120_vm2, %v8011_v5  ;;  %v1550_v10 = vpop.f32.mrb[13].mxu0  ;;  %v1685_v1 = vadd.f32 %v1684_v22, %v1683_v59  ;;  %v1690_v48 = vsel %vm1120_vm2, %v8011_v5, 0.0 }
 0x205   : > { %v3042_v9 = vrot.slane %v2961_v50, 1  ;;  %v2959_v33 = vsel %vm1185_vm3, %v2895_v0, %v2751_v11  ;;  %8056 = vmatmul.mubr.msk.bf16.gmra.mrb[24].mxu1 %vm1419_vm5, %v3040_v62  ;;  %3920 = vrot.lane.b32.xlu1 %v8381_v14, %s8633_s28  ;;  %1643 = vst.msk [vmem:[#allocation2 + $0x60] sm:$0xff] %vm1120_vm2, %v1550_v10  ;;  %v1686_v6 = vsel %vm1120_vm2, %v1550_v10, 0.0  ;;  %v8012_v45 = vpop.f32.mrb[14].mxu0  ;;  %v5193_v58 = vshrl.u32 %v10300_v46, 16 }
 0x206   : > { %v3041_v4 = vrot.slane %v2959_v33, 1  ;;  %3732 = vrot.lane.b32.xlu0 %v11871_v47, %s8632_s27  ;;  %v1687_v17 = vadd.f32 %v1686_v6, %v1685_v1  ;;  %1646 = vst.msk [vmem:[#allocation2 + $0x78] sm:$0xff] %vm1120_vm2, %v8012_v45  ;;  %v1553_v54 = vpop.f32.mrb[15].mxu0  ;;  %v1692_v55 = vsel %vm1120_vm2, %v8012_v45, 0.0  ;;  %v5191_v37 = vsel %vm2037_vm0, %v5184_v60, %v5189_v53  ;;  %v7683_v33 = vld [vmem:[%s8686_s26 + $0x3c] sm:$0xe] }
 0x207   : > { %v2757_v23 = vpop.permute.xlu1 %2756  ;;  %1644 = vst.msk [vmem:[#allocation2 + $0x68] sm:$0xff] %vm1120_vm2, %v1553_v54  ;;  %v1688_v31 = vsel %vm1120_vm2, %v1553_v54, 0.0  ;;  %v5187_v39 = vor.u32 %v5185_v25, %v5184_v60  ;;  %v5195_v7 = vrot.slane %v5193_v58, 7  ;;  %v5200_v59 = vshll.u32 %v8388_v56, 16  ;;  %v7686_v6 = vld [vmem:[%s8686_s26 + $0x48] sm:$0xe] }
 0x208   : > { %v2965_v38 = vsel %vm1185_vm3, %v2901_v30, %v2757_v23  ;;  %v2755_v20 = vpop.permute.xlu0 %2754  ;;  %v3043_v61 = vsel %vm2998_vm6, %v3041_v4, %v3042_v9  ;;  %v1689_v35 = vadd.f32 %v1688_v31, %v1687_v17  ;;  %v5196_v12 = vshll.u32 %v10300_v46, 16  ;;  %v8399_v46 = vld [vmem:[%s8686_s26 + $0x6c] sm:$0xff]   ;;  %v7724_v23 = vld [vmem:[%s8686_s26 + $0x48] sm:$0xf] }
 0x209   : > { %v3045_v28 = vrot.slane %v2965_v38, 1  ;;  %v2963_v41 = vsel %vm1185_vm3, %v2899_v40, %v2755_v20  ;;  %8059 = vmatprep.mubr.msk.bf16.mxu1 %vm1419_vm5, %v3043_v61  ;;  %3924 = vrot.lane.b32.xlu1 %v8382_v57, %s8633_s28  ;;  %v3641_v50 = vshrl.u32 %v10332_v43, 16  ;;  %v5202_v11 = vsel %vm2037_vm0, %v5195_v7, %v5200_v59  ;;  %v7687_v54 = vld [vmem:[%s8686_s26 + $0x4c] sm:$0xf] }
 0x20a   : > { %v3044_v21 = vrot.slane %v2963_v41, 1  ;;  %4098 = vrot.lane.b32.xlu0 %v4007_v49, %s8634_s5  ;;  %v1691_v19 = vadd.f32 %v1690_v48, %v1689_v35  ;;  %v5198_v62 = vor.u32 %v5196_v12, %v5195_v7  ;;  %v3644_v47 = vshll.u32 %v10332_v43, 16 }
 0x20b   : > { %v10319_v14 = vpop.permute.xlu1 %3712  ;;  %v8015_v26 = vpop.f32.mrb[16].mxu0  ;;  %v10364_v45 = vrot.slane %v3641_v50, 7  ;;  %v7791_v17 = vcombine.low %v7683_v33, %v7684_v18  ;;  %v7793_v35 = vcombine.low %v7686_v6, %v7687_v54  ;;  %v3648_v41 = vshrl.u32 %v8399_v46, 16  ;;  %v8539_v50 = vld [vmem:[%s8686_s26 + $0x18] sm:$0xff]  }
 0x20c   : > { %v10322_v3 = vpop.permute.xlu0 %3710  ;;  %v3046_v16 = vsel %vm2998_vm6, %v3044_v21, %v3045_v28  ;;  %1649 = vst.msk [vmem:[#allocation2 + $0x90] sm:$0xff] %vm1120_vm2, %v8015_v26  ;;  %v1566_v52 = vpop.f32.mrb[17].mxu0  ;;  %v1693_v51 = vadd.f32 %v1692_v55, %v1691_v19  ;;  %v1698_v5 = vsel %vm1120_vm2, %v8015_v26, 0.0  ;;  %v7820_v28 = vcombine.low %v7724_v23, %v7687_v54  ;;  %v8540_v54 = vld [vmem:[%s8686_s26 + $0x24] sm:$0xff]  }
 0x20d   : > { %8060 = vmatmul.mubr.msk.bf16.gmra.mrb[28].mxu1 %vm1419_vm5, %v3046_v16  ;;  %4100 = vrot.lane.b32.xlu1 %v10245_v24, %s8634_s5  ;;  %1647 = vst.msk [vmem:[#allocation2 + $0x80] sm:$0xff] %vm1120_vm2, %v1566_v52  ;;  %v1694_v13 = vsel %vm1120_vm2, %v1566_v52, 0.0  ;;  %v8016_v27 = vpop.f32.mrb[18].mxu0  ;;  %v3646_v48 = vor.u32 %v3644_v47, %v10364_v45  ;;  %v5669_v12 = vshll.u32 %v10359_v15, 16 }
 0x20e   : > { %4096 = vrot.lane.b32.xlu0 %v10192_v36, %s8634_s5  ;;  %v1695_v24 = vadd.f32 %v1694_v13, %v1693_v51  ;;  %1650 = vst.msk [vmem:[#allocation2 + $0x98] sm:$0xff] %vm1120_vm2, %v8016_v27  ;;  %v1569_v2 = vpop.f32.mrb[19].mxu0  ;;  %v7819_v36 = vcombine.low %v7723_v42, %v7684_v18  ;;  %v1700_v10 = vsel %vm1120_vm2, %v8016_v27, 0.0  ;;  %v10392_v51 = vrot.slane %v3648_v41, 7 }
 0x20f   : > { %v10340_v32 = vpop.permute.xlu1 %3716  ;;  %1648 = vst.msk [vmem:[#allocation2 + $0x88] sm:$0xff] %vm1120_vm2, %v1569_v2  ;;  %v1696_v63 = vsel %vm1120_vm2, %v1569_v2, 0.0  ;;  %v10398_v13 = vld [vmem:[%s8686_s26 + $0x50] ss:$0 sps:$4 sm:$0x11]  }
 0x210   : > { %v10345_v0 = vpop.permute.xlu0 %3714  ;;  %v1697_v22 = vadd.f32 %v1696_v63, %v1695_v24  ;;  %v5662_v29 = vshrl.u32 %v7819_v36, 16  ;;  %v5665_v20 = vshll.u32 %v7819_v36, 16 }
 0x211   : > { %5331 = vrot.lane.b32.xlu1 %v5191_v37, %s8632_s27  ;;  %v3651_v37 = vshll.u32 %v8399_v46, 16  ;;  %v8383_v46 = vld [vmem:[%s8686_s26 + $0x20] ss:$0 sps:$4 sm:$0x11]   ;;  %v4148_v23 = vsel %vm1039_vm1, %v8540_v54, %v10345_v0 }
 0x212   : > { %5329 = vrot.lane.b32.xlu0 %v5187_v39, %s8632_s27  ;;  %v1699_v57 = vadd.f32 %v1698_v5, %v1697_v22  ;;  %v5664_v38 = vrot.slane %v5662_v29, 7  ;;  %v5673_v39 = vshrl.u32 %v7820_v28, 16  ;;  %v5676_v22 = vshll.u32 %v7820_v28, 16 }
 0x213   : > { %v10352_v9 = vpop.permute.xlu1 %3720  ;;  %v8019_v1 = vpop.f32.mrb[20].mxu0  ;;  %v3653_v63 = vor.u32 %v3651_v37, %v10392_v51  ;;  %v4143_v5 = vsel %vm1039_vm1, %v8539_v50, %v10322_v3 }
 0x214   : > { %v10356_v49 = vpop.permute.xlu0 %3718  ;;  %1653 = vst.msk [vmem:[#allocation2 + $0xb0] sm:$0xff] %vm1120_vm2, %v8019_v1  ;;  %v1582_v34 = vpop.f32.mrb[21].mxu0  ;;  %v1701_v4 = vadd.f32 %v1700_v10, %v1699_v57  ;;  %v1706_v53 = vsel %vm1120_vm2, %v8019_v1, 0.0  ;;  %v5667_v26 = vor.u32 %v5665_v20, %v5664_v38  ;;  %v5675_v36 = vrot.slane %v5673_v39, 7  ;;  %v8400_v1 = vld [vmem:[%s8686_s26 + $0x54] sm:$0xff]  }
 0x215   : > { %5335 = vrot.lane.b32.xlu1 %v5202_v11, %s8632_s27  ;;  %1651 = vst.msk [vmem:[#allocation2 + $0xa0] sm:$0xff] %vm1120_vm2, %v1582_v34  ;;  %v1702_v44 = vsel %vm1120_vm2, %v1582_v34, 0.0  ;;  %v8020_v30 = vpop.f32.mrb[22].mxu0  ;;  %v5671_v10 = vsel %vm2037_vm0, %v5664_v38, %v5669_v12  ;;  %v4009_v47 = vshrl.u32 %v8400_v1, 16  ;;  %v5680_v38 = vshll.u32 %v10398_v13, 16 }
 0x216   : > { %5333 = vrot.lane.b32.xlu0 %v5198_v62, %s8632_s27  ;;  %v1703_v60 = vadd.f32 %v1702_v44, %v1701_v4  ;;  %1654 = vst.msk [vmem:[#allocation2 + $0xb8] sm:$0xff] %vm1120_vm2, %v8020_v30  ;;  %v1585_v25 = vpop.f32.mrb[23].mxu0  ;;  %v1708_v58 = vsel %vm1120_vm2, %v8020_v30, 0.0  ;;  %v5678_v6 = vor.u32 %v5676_v22, %v5675_v36 }
 0x217   : > { %v10374_v8 = vpop.permute.xlu1 %3724  ;;  %1652 = vst.msk [vmem:[#allocation2 + $0xa8] sm:$0xff] %vm1120_vm2, %v1585_v25  ;;  %v1704_v40 = vsel %vm1120_vm2, %v1585_v25, 0.0  ;;  %v10435_v0 = vrot.slane %v4009_v47, 7  ;;  %v5682_v37 = vsel %vm2037_vm0, %v5675_v36, %v5680_v38  ;;  %v7661_v36 = vld [vmem:[%s8686_s26 + $0x60] sm:$0xf] }
 0x218   : > { %v10378_v31 = vpop.permute.xlu0 %3722  ;;  %v1705_v61 = vadd.f32 %v1704_v40, %v1703_v60  ;;  %v7662_v47 = vld [vmem:[%s8686_s26 + $0x6c] sm:$0xf] }
 0x219   : > { %5523 = vrot.lane.b32.xlu1 %v10359_v15, %s8633_s28 }
 0x21a   : > { %5521 = vrot.lane.b32.xlu0 %v7791_v17, %s8633_s28  ;;  %v1707_v21 = vadd.f32 %v1706_v53, %v1705_v61  ;;  %v4012_v53 = vshll.u32 %v8400_v1, 16 }
 0x21b   : > { %v10385_v56 = vpop.permute.xlu1 %3728  ;;  %v8023_v19 = vpop.f32.mrb[24].mxu0 }
 0x21c   : > { %v10388_v55 = vpop.permute.xlu0 %3726  ;;  %1657 = vst.msk [vmem:[#allocation2 + $0xd0] sm:$0xff] %vm1120_vm2, %v8023_v19  ;;  %v1598_v16 = vpop.f32.mrb[25].mxu0  ;;  %v1709_v52 = vadd.f32 %v1708_v58, %v1707_v21  ;;  %v1714_v11 = vsel %vm1120_vm2, %v8023_v19, 0.0  ;;  %v8384_v58 = vld [vmem:[%s8686_s26 + $0x2c] ss:$0 sps:$4 sm:$0x11]   ;;  %v4014_v12 = vor.u32 %v4012_v53, %v10435_v0 }
 0x21d   : > { %5525 = vrot.lane.b32.xlu1 %v7793_v35, %s8633_s28  ;;  %1655 = vst.msk [vmem:[#allocation2 + $0xc0] sm:$0xff] %vm1120_vm2, %v1598_v16  ;;  %v1710_v42 = vsel %vm1120_vm2, %v1598_v16, 0.0  ;;  %v8024_v43 = vpop.f32.mrb[26].mxu0  ;;  %v4151_v22 = vsel %vm1039_vm1, %v8384_v58, %v10340_v32  ;;  %v8407_v53 = vld [vmem:[%s8686_s26 + $0x74] ss:$0 sps:$4 sm:$0x11]  }
 0x21e   : > { %3734 = vrot.lane.b32.xlu0 %v3646_v48, %s8632_s27  ;;  %v1711_v27 = vadd.f32 %v1710_v42, %v1709_v52  ;;  %1658 = vst.msk [vmem:[#allocation2 + $0xd8] sm:$0xff] %vm1120_vm2, %v8024_v43  ;;  %v1601_v7 = vpop.f32.mrb[27].mxu0  ;;  %v1716_v3 = vsel %vm1120_vm2, %v8024_v43, 0.0  ;;  %v4146_v48 = vsel %vm1039_vm1, %v8383_v46, %v10319_v14  ;;  %v8401_v14 = vld [vmem:[%s8686_s26 + $0x60] sm:$0xff]   ;;  %v8541_v58 = vld [vmem:[%s8686_s26 + $0x1c] sm:$0xf] }
 0x21f   : > { %v3903_v59 = vpop.permute.xlu1 %3902  ;;  %1656 = vst.msk [vmem:[#allocation2 + $0xc8] sm:$0xff] %vm1120_vm2, %v1601_v7  ;;  %v1712_v24 = vsel %vm1120_vm2, %v1601_v7, 0.0 }
 0x220   : > { %v10404_v2 = vpop.permute.xlu0 %3730  ;;  %v1713_v18 = vadd.f32 %v1712_v24, %v1711_v27  ;;  %v4223_v57 = vsel %vm1120_vm2, %v4143_v5, %v3903_v59 }
 0x221   : > { %5809 = vrot.lane.b32.xlu1 %v5667_v26, %s8634_s5 }
 0x222   : > { %5527 = vrot.lane.b32.xlu0 %v10398_v13, %s8633_s28  ;;  %v1715_v62 = vadd.f32 %v1714_v11, %v1713_v18  ;;  %v4016_v18 = vshrl.u32 %v8401_v14, 16 }
 0x223   : > { %v4079_v33 = vpop.permute.xlu1 %4078  ;;  %v8027_v29 = vpop.f32.mrb[28].mxu0 }
 0x224   : > { %v4287_v15 = vsel %vm1185_vm3, %v4223_v57, %v4079_v33  ;;  %v3907_v34 = vpop.permute.xlu0 %3906  ;;  %1661 = vst.msk [vmem:[#allocation2 + $0xf0] sm:$0xff] %vm1120_vm2, %v8027_v29  ;;  %v1614_v4 = vpop.f32.mrb[29].mxu0  ;;  %v1717_v44 = vadd.f32 %v1716_v3, %v1715_v62  ;;  %v1722_v26 = vsel %vm1120_vm2, %v8027_v29, 0.0  ;;  %v4019_v3 = vshll.u32 %v8401_v14, 16 }
 0x225   : > { %3738 = vrot.lane.b32.xlu1 %v3653_v63, %s8632_s27  ;;  %1659 = vst.msk [vmem:[#allocation2 + $0xe0] sm:$0xff] %vm1120_vm2, %v1614_v4  ;;  %v1718_v30 = vsel %vm1120_vm2, %v1614_v4, 0.0  ;;  %v8028_v17 = vpop.f32.mrb[30].mxu0  ;;  %v4352_v60 = vshll.u32 %v4287_v15, 16  ;;  %v4227_v20 = vsel %vm1120_vm2, %v4148_v23, %v3907_v34  ;;  %v4350_v27 = vshrl.u32 %v4287_v15, 16 }
 0x226   : > { %5811 = vrot.lane.b32.xlu0 %v5671_v10, %s8634_s5  ;;  %1662 = vst.msk [vmem:[#allocation2 + $0xf8] sm:$0xff] %vm1120_vm2, %v8028_v17  ;;  %v1617_v25 = vpop.f32.mrb[31].mxu0  ;;  %v1719_v61 = vadd.f32 %v1718_v30, %v1717_v44  ;;  %v1724_v7 = vsel %vm1120_vm2, %v8028_v17, 0.0  ;;  %v7626_v63 = vld [vmem:[%s8686_s26 + $0x64] sm:$0xf]  ;;  %v4018_v34 = vrot.slane %v4016_v18, 7 }
 0x227   : > { %v4083_v40 = vpop.permute.xlu1 %4082  ;;  %1660 = vst.msk [vmem:[#allocation2 + $0xe8] sm:$0xff] %vm1120_vm2, %v1617_v25  ;;  %v1720_v35 = vsel %vm1120_vm2, %v1617_v25, 0.0  ;;  %v4354_v19 = vrot.slane %v4352_v60, 1  ;;  %v7773_v15 = vcombine.low %v7661_v36, %v7626_v63  ;;  %v8404_v17 = vld [vmem:[%s8686_s26 + $0x68] ss:$0 sps:$4 sm:$0x11]  }
 0x228   : > { %v3905_v28 = vpop.permute.xlu0 %3904  ;;  %v4291_v41 = vsel %vm1185_vm3, %v4227_v20, %v4083_v40  ;;  %v1721_v21 = vadd.f32 %v1720_v35, %v1719_v61  ;;  %v4021_v60 = vor.u32 %v4019_v3, %v4018_v34  ;;  %v8405_v25 = vld [vmem:[%s8686_s26 + $0x68] ss:$0 sps:$4 sm:$0x11]   ;;  %v7607_v61 = vld [vmem:[%s8686_s26 + $0x18] sm:$0xe] }
 0x229   : > { %5813 = vrot.lane.b32.xlu1 %v5678_v6, %s8634_s5  ;;  %v4225_v16 = vsel %vm1120_vm2, %v4146_v48, %v3905_v28  ;;  %v4362_v42 = vshll.u32 %v4291_v41, 16  ;;  %v4355_v50 = vor.u32 %v4354_v19, %v4350_v27  ;;  %v4360_v29 = vshrl.u32 %v4291_v41, 16  ;;  %v7629_v6 = vld [vmem:[%s8686_s26 + $0x70] sm:$0xf]  ;;  %v7610_v27 = vld [vmem:[%s8686_s26 + $0x24] sm:$0xe] }
 0x22a   : > { %3926 = vrot.lane.b32.xlu0 %v8400_v1, %s8633_s28  ;;  %v1723_v39 = vadd.f32 %v1722_v26, %v1721_v21  ;;  %v8403_v1 = vld [vmem:[%s8686_s26 + $0x5c] ss:$0 sps:$4 sm:$0x11]   ;;  %v5204_v54 = vshrl.u32 %v7773_v15, 16  ;;  %v7774_v40 = vcombine.low %v7662_v47, %v7629_v6  ;;  %v5207_v28 = vshll.u32 %v7773_v15, 16  ;;  %v8417_v47 = vld [vmem:[%s8686_s26 + $0x84] sm:$0xff]  }
 0x22b   : > { %v4081_v52 = vpop.permute.xlu1 %4080  ;;  %v4364_v62 = vrot.slane %v4362_v42, 1  ;;  %v5211_v41 = vshll.u32 %v8405_v25, 16  ;;  %v7735_v19 = vcombine.low %v7607_v61, %v8541_v58  ;;  %v5222_v42 = vshll.u32 %v8407_v53, 16  ;;  %v7693_v15 = vld [vmem:[%s8686_s26 + $0x64] sm:$0xf] }
 0x22c   : > { %v4289_v43 = vsel %vm1185_vm3, %v4225_v16, %v4081_v52  ;;  %v3909_v13 = vpop.permute.xlu0 %3908  ;;  %v10450_v24 = vadd.f32 %v1724_v7, %v1723_v39  ;;  %v5206_v35 = vrot.slane %v5204_v54, 7  ;;  %v7725_v16 = vld [vmem:[%s8686_s26 + $0x54] sm:$0xf]  ;;  %v10483_v52 = vld [vmem:[%s8686_s26 + $0x78] sm:$0xff]   ;;  %v7726_v54 = vld [vmem:[%s8686_s26 + $0x60] sm:$0xf] }
 0x22d   : > { %v4356_v59 = vshll.u32 %v4289_v43, 16  ;;  %3736 = vrot.lane.b32.xlu1 %v10364_v45, %s8632_s27  ;;  %v4229_v45 = vsel %vm1120_vm2, %v4151_v22, %v3909_v13  ;;  %v4365_v46 = vor.u32 %v4364_v62, %v4360_v29  ;;  %v5218_v43 = vshll.u32 %v7774_v40, 16  ;;  %v7689_v22 = vld [vmem:[%s8686_s26 + $0x54] sm:$0xe] }
 0x22e   : > { %5815 = vrot.lane.b32.xlu0 %v5682_v37, %s8634_s5  ;;  %v5209_v26 = vor.u32 %v5207_v28, %v5206_v35  ;;  %v5213_v37 = vsel %vm2037_vm0, %v5206_v35, %v5211_v41  ;;  %v3662_v58 = vshrl.u32 %v8417_v47, 16 }
 0x22f   : > { %v4358_v5 = vrot.slane %v4356_v59, 1  ;;  %v5314_v11 = vpop.permute.xlu1 %5313 }
 0x230   : > { %v4085_v57 = vpop.permute.xlu0 %4084 }
 0x231   : > { %v4293_v33 = vsel %vm1185_vm3, %v4229_v45, %v4085_v57  ;;  %4102 = vrot.lane.b32.xlu1 %v4014_v12, %s8634_s5  ;;  %v4359_v10 = vsel %vm1250_vm4, %v4355_v50, %v4358_v5  ;;  %v5859_v12 = vsel %vm1039_vm1, %v7735_v19, %v5314_v11  ;;  %v8542_v50 = vld [vmem:[%s8686_s26 + $0x28] sm:$0xf]  ;;  %v8543_v11 = vld [vmem:[%s8686_s26 + $0x20] ss:$0 sps:$4 sm:$0x11]   ;;  %v8545_v19 = vld [vmem:[%s8686_s26 + $0x30] sm:$0xff]  }
 0x232   : > { %v4366_v32 = vshll.u32 %v4293_v33, 16  ;;  %3930 = vrot.lane.b32.xlu0 %v8401_v14, %s8633_s28  ;;  %8065 = vmatprep.mubr.msk.bf16.mxu0 %vm1419_vm5, %v4359_v10  ;;  %v7690_v14 = vld [vmem:[%s8686_s26 + $0x58] sm:$0xf]  ;;  %v7737_v5 = vcombine.low %v7610_v27, %v8542_v50 }
 0x233   : > { %v10464_v4 = vpop.permute.xlu1 %5317  ;;  %v7821_v59 = vcombine.low %v7725_v16, %v7690_v14  ;;  %v7795_v3 = vcombine.low %v7689_v22, %v7690_v14  ;;  %v3665_v14 = vshll.u32 %v8417_v47, 16 }
 0x234   : > { %v4368_v44 = vrot.slane %v4366_v32, 1  ;;  %v5316_v30 = vpop.permute.xlu0 %5315 }
 0x235   : > { %3928 = vrot.lane.b32.xlu1 %v8403_v1, %s8633_s28  ;;  %v5861_v62 = vsel %vm1039_vm1, %v8543_v11, %v5316_v30  ;;  %v7692_v1 = vld [vmem:[%s8686_s26 + $0x60] sm:$0xe]  ;;  %v5684_v29 = vshrl.u32 %v7821_v59, 16  ;;  %v5687_v61 = vshll.u32 %v7821_v59, 16 }
 0x236   : > { %v4369_v23 = vsel %vm1250_vm4, %v4365_v46, %v4368_v44  ;;  %3740 = vrot.lane.b32.xlu0 %v10392_v51, %s8632_s27  ;;  %v5215_v51 = vshrl.u32 %v7774_v40, 16  ;;  %v8544_v46 = vld [vmem:[%s8686_s26 + $0x2c] ss:$0 sps:$4 sm:$0x11]  }
 0x237   : > { %8066 = vmatmul.mubr.msk.bf16.vlgmr.msra.gmra.mrb[32].mxu0 %vm1419_vm5, %v4369_v23  ;;  %v5506_v38 = vpop.permute.xlu1 %5505  ;;  %v3658_v23 = vshll.u32 %v10483_v52, 16  ;;  %v5686_v53 = vrot.slane %v5684_v29, 7  ;;  %v8416_v59 = vld [vmem:[%s8686_s26 + $0x68] ss:$0 sps:$4 sm:$0x11]   ;;  %v8418_v29 = vld [vmem:[%s8686_s26 + $0x6c] sm:$0xff]  }
 0x238   : > { %v5320_v20 = vpop.permute.xlu0 %5319  ;;  %v5217_v39 = vrot.slane %v5215_v51, 7  ;;  %v5938_v18 = vsel %vm1120_vm2, %v5859_v12, %v5506_v38  ;;  %v7797_v38 = vcombine.low %v7692_v1, %v7693_v15  ;;  %v8546_v12 = vld [vmem:[%s8686_s26 + $0x3c] sm:$0xff]  }
 0x239   : > { %3932 = vrot.lane.b32.xlu1 %v8404_v17, %s8633_s28  ;;  %v5866_v44 = vsel %vm1039_vm1, %v8544_v46, %v5320_v20 }
 0x23a   : > { %4106 = vrot.lane.b32.xlu0 %v4021_v60, %s8634_s5  ;;  %v5224_v63 = vsel %vm2037_vm0, %v5217_v39, %v5222_v42  ;;  %v5220_v36 = vor.u32 %v5218_v43, %v5217_v39  ;;  %v5864_v60 = vsel %vm1039_vm1, %v7737_v5, %v10464_v4  ;;  %v7822_v4 = vcombine.low %v7726_v54, %v7693_v15 }
 0x23b   : > { %v5510_v48 = vpop.permute.xlu1 %5509 }
 0x23c   : > { %v5508_v21 = vpop.permute.xlu0 %5507  ;;  %v5942_v35 = vsel %vm1120_vm2, %v5864_v60, %v5510_v48  ;;  %v4153_v48 = vsel %vm1039_vm1, %v8545_v19, %v10356_v49  ;;  %v5689_v49 = vor.u32 %v5687_v61, %v5686_v53  ;;  %v5695_v27 = vshrl.u32 %v7822_v4, 16  ;;  %v8419_v19 = vld [vmem:[%s8686_s26 + $0x78] sm:$0xff]  }
 0x23d   : > { %4108 = vrot.lane.b32.xlu1 %v4018_v34, %s8634_s5  ;;  %v5940_v33 = vsel %vm1120_vm2, %v5861_v62, %v5508_v21  ;;  %v10507_v34 = vld [vmem:[%s8686_s26 + $0x5c] ss:$0 sps:$4 sm:$0x11]   ;;  %v5702_v60 = vshll.u32 %v8416_v59, 16 }
 0x23e   : > { %4104 = vrot.lane.b32.xlu0 %v10435_v0, %s8634_s5  ;;  %v3655_v0 = vshrl.u32 %v10483_v52, 16  ;;  %v5697_v62 = vrot.slane %v5695_v27, 7  ;;  %v4033_v27 = vshll.u32 %v8419_v19, 16 }
 0x23f   : > { %v5794_v13 = vpop.permute.xlu1 %5793 }
 0x240   : > { %v5512_v7 = vpop.permute.xlu0 %5511  ;;  %v6002_v45 = vsel %vm1185_vm3, %v5938_v18, %v5794_v13  ;;  %v10509_v6 = vrot.slane %v3655_v0, 7  ;;  %v10537_v13 = vrot.slane %v3662_v58, 7  ;;  %v4158_v0 = vsel %vm1039_vm1, %v8546_v12, %v10378_v31  ;;  %v8390_v31 = vld [vmem:[%s8686_s26 + $0x44] ss:$0 sps:$4 sm:$0x11]  }
 0x241   : > { %5339 = vrot.lane.b32.xlu1 %v5213_v37, %s8632_s27  ;;  %v6097_v30 = vrot.slane %v6002_v45, 1  ;;  %v5944_v25 = vsel %vm1120_vm2, %v5866_v44, %v5512_v7  ;;  %v8387_v7 = vld [vmem:[%s8686_s26 + $0x38] ss:$0 sps:$4 sm:$0x11]   ;;  %v5698_v45 = vshll.u32 %v7822_v4, 16 }
 0x242   : > { %5337 = vrot.lane.b32.xlu0 %v5209_v26, %s8632_s27  ;;  %v3660_v16 = vor.u32 %v3658_v23, %v10509_v6  ;;  %v3667_v11 = vor.u32 %v3665_v14, %v10537_v13 }
 0x243   : > { %v3911_v57 = vpop.permute.xlu1 %3910  ;;  %v5700_v44 = vor.u32 %v5698_v45, %v5697_v62  ;;  %v7616_v45 = vld [vmem:[%s8686_s26 + $0x3c] sm:$0xe] }
 0x244   : > { %v5796_v10 = vpop.permute.xlu0 %5795  ;;  %v4231_v52 = vsel %vm1120_vm2, %v4153_v48, %v3911_v57  ;;  %v4156_v57 = vsel %vm1039_vm1, %v8387_v7, %v10352_v9  ;;  %v4023_v9 = vshrl.u32 %v8418_v29, 16  ;;  %v7635_v7 = vld [vmem:[%s8686_s26 + $0x88] sm:$0xf] }
 0x245   : > { %v6004_v32 = vsel %vm1185_vm3, %v5940_v33, %v5796_v10  ;;  %5343 = vrot.lane.b32.xlu1 %v5224_v63, %s8632_s27 }
 0x246   : > { %v6098_v17 = vrot.slane %v6004_v32, 1  ;;  %5341 = vrot.lane.b32.xlu0 %v5220_v36, %s8632_s27  ;;  %v5691_v36 = vshll.u32 %v10507_v34, 16 }
 0x247   : > { %v5800_v40 = vpop.permute.xlu1 %5799 }
 0x248   : > { %v6008_v20 = vsel %vm1185_vm3, %v5944_v25, %v5800_v40  ;;  %v5798_v28 = vpop.permute.xlu0 %5797  ;;  %v6099_v41 = vsel %vm2998_vm6, %v6097_v30, %v6098_v17  ;;  %v5693_v15 = vsel %vm2037_vm0, %v5686_v53, %v5691_v36  ;;  %v4161_v30 = vsel %vm1039_vm1, %v8390_v31, %v10374_v8 }
 0x249   : > { %v6101_v51 = vrot.slane %v6008_v20, 1  ;;  %v6006_v21 = vsel %vm1185_vm3, %v5942_v35, %v5798_v28  ;;  %8099 = vmatprep.mubr.msk.bf16.mxu1 %vm1419_vm5, %v6099_v41  ;;  %5531 = vrot.lane.b32.xlu1 %v10507_v34, %s8633_s28  ;;  %v10566_v20 = vrot.slane %v4023_v9, 7  ;;  %v4026_v8 = vshll.u32 %v8418_v29, 16 }
 0x24a   : > { %v6100_v26 = vrot.slane %v6006_v21, 1  ;;  %5529 = vrot.lane.b32.xlu0 %v7795_v3, %s8633_s28 }
 0x24b   : > { %v4087_v37 = vpop.permute.xlu1 %4086  ;;  %v4028_v48 = vor.u32 %v4026_v8, %v10566_v20 }
 0x24c   : > { %v6102_v39 = vsel %vm2998_vm6, %v6100_v26, %v6101_v51  ;;  %v4295_v42 = vsel %vm1185_vm3, %v4231_v52, %v4087_v37  ;;  %v3915_v43 = vpop.permute.xlu0 %3914  ;;  %v5704_v51 = vsel %vm2037_vm0, %v5697_v62, %v5702_v60  ;;  %v7632_v26 = vld [vmem:[%s8686_s26 + $0x7c] sm:$0xf]  ;;  %v4030_v37 = vshrl.u32 %v8419_v19, 16 }
 0x24d   : > { %8100 = vmatmul.mubr.msk.bf16.vlgmr.msra.gmra.mrb[32].mxu1 %vm1419_vm5, %v6102_v39  ;;  %5533 = vrot.lane.b32.xlu1 %v7797_v38, %s8633_s28  ;;  %v4372_v18 = vshll.u32 %v4295_v42, 16  ;;  %v4235_v22 = vsel %vm1120_vm2, %v4158_v0, %v3915_v43  ;;  %v4370_v47 = vshrl.u32 %v4295_v42, 16 }
 0x24e   : > { %3742 = vrot.lane.b32.xlu0 %v3660_v16, %s8632_s27  ;;  %v7663_v16 = vld [vmem:[%s8686_s26 + $0x78] sm:$0xf]  ;;  %v4032_v14 = vrot.slane %v4030_v37, 7 }
 0x24f   : > { %v4091_v63 = vpop.permute.xlu1 %4090  ;;  %v4374_v33 = vrot.slane %v4372_v18, 1  ;;  %v7775_v43 = vcombine.low %v7663_v16, %v7632_v26  ;;  %v7696_v16 = vld [vmem:[%s8686_s26 + $0x70] sm:$0xf] }
 0x250   : > { %v3913_v50 = vpop.permute.xlu0 %3912  ;;  %v4299_v5 = vsel %vm1185_vm3, %v4235_v22, %v4091_v63  ;;  %v8547_v63 = vld [vmem:[%s8686_s26 + $0x34] sm:$0xf]  ;;  %v8421_v22 = vld [vmem:[%s8686_s26 + $0x80] ss:$0 sps:$4 sm:$0x11]  }
 0x251   : > { %5817 = vrot.lane.b32.xlu1 %v5689_v49, %s8634_s5  ;;  %v4233_v10 = vsel %vm1120_vm2, %v4156_v57, %v3913_v50  ;;  %v4382_v32 = vshll.u32 %v4299_v5, 16  ;;  %v4375_v17 = vor.u32 %v4374_v33, %v4370_v47  ;;  %v4380_v28 = vshrl.u32 %v4299_v5, 16  ;;  %v8420_v49 = vld [vmem:[%s8686_s26 + $0x74] ss:$0 sps:$4 sm:$0x11]  }
 0x252   : > { %5535 = vrot.lane.b32.xlu0 %v8416_v59, %s8633_s28  ;;  %v7664_v59 = vld [vmem:[%s8686_s26 + $0x84] sm:$0xf]  ;;  %v5226_v18 = vshrl.u32 %v7775_v43, 16  ;;  %v8422_v50 = vld [vmem:[%s8686_s26 + $0x80] ss:$0 sps:$4 sm:$0x11]  }
 0x253   : > { %v4089_v1 = vpop.permute.xlu1 %4088  ;;  %v4384_v25 = vrot.slane %v4382_v32, 1  ;;  %v7776_v5 = vcombine.low %v7664_v59, %v7635_v7  ;;  %v5229_v33 = vshll.u32 %v7775_v43, 16  ;;  %v10630_v59 = vld [vmem:[%s8686_s26 + $0x74] ss:$0 sps:$4 sm:$0x11]  }
 0x254   : > { %v4297_v34 = vsel %vm1185_vm3, %v4233_v10, %v4089_v1  ;;  %v3917_v3 = vpop.permute.xlu0 %3916  ;;  %v5228_v31 = vrot.slane %v5226_v18, 7  ;;  %v5233_v1 = vshll.u32 %v8422_v50, 16 }
 0x255   : > { %v4376_v46 = vshll.u32 %v4297_v34, 16  ;;  %3746 = vrot.lane.b32.xlu1 %v3667_v11, %s8632_s27  ;;  %v4237_v40 = vsel %vm1120_vm2, %v4161_v30, %v3917_v3  ;;  %v4385_v21 = vor.u32 %v4384_v25, %v4380_v28  ;;  %v4035_v11 = vor.u32 %v4033_v27, %v4032_v14  ;;  %v8549_v3 = vld [vmem:[%s8686_s26 + $0x38] ss:$0 sps:$4 sm:$0x11]   ;;  %v7727_v28 = vld [vmem:[%s8686_s26 + $0x6c] sm:$0xf] }
 0x256   : > { %5819 = vrot.lane.b32.xlu0 %v5693_v15, %s8634_s5  ;;  %v8424_v15 = vld [vmem:[%s8686_s26 + $0x8c] ss:$0 sps:$4 sm:$0x11]   ;;  %v5240_v8 = vshll.u32 %v7776_v5, 16 }
 0x257   : > { %v4378_v54 = vrot.slane %v4376_v46, 1  ;;  %v5322_v23 = vpop.permute.xlu1 %5321  ;;  %v5244_v25 = vshll.u32 %v8424_v15, 16 }
 0x258   : > { %v4093_v38 = vpop.permute.xlu0 %4092 }
 0x259   : > { %v4301_v61 = vsel %vm1185_vm3, %v4237_v40, %v4093_v38  ;;  %5821 = vrot.lane.b32.xlu1 %v5700_v44, %s8634_s5  ;;  %v4379_v35 = vsel %vm1250_vm4, %v4375_v17, %v4378_v54  ;;  %v5231_v17 = vor.u32 %v5229_v33, %v5228_v31  ;;  %v8550_v40 = vld [vmem:[%s8686_s26 + $0x44] ss:$0 sps:$4 sm:$0x11]  }
 0x25a   : > { %v4386_v41 = vshll.u32 %v4301_v61, 16  ;;  %3934 = vrot.lane.b32.xlu0 %v8418_v29, %s8633_s28  ;;  %8069 = vmatprep.mubr.msk.bf16.mxu0 %vm1419_vm5, %v4379_v35  ;;  %v5237_v29 = vshrl.u32 %v7776_v5, 16 }
 0x25b   : > { %v10570_v53 = vpop.permute.xlu1 %5325 }
 0x25c   : > { %v4388_v4 = vrot.slane %v4386_v41, 1  ;;  %v5324_v58 = vpop.permute.xlu0 %5323  ;;  %v5239_v60 = vrot.slane %v5237_v29, 7  ;;  %v8432_v41 = vld [vmem:[%s8686_s26 + $0x90] sm:$0xff]  }
 0x25d   : > { %3744 = vrot.lane.b32.xlu1 %v10509_v6, %s8632_s27  ;;  %v7613_v6 = vld [vmem:[%s8686_s26 + $0x30] sm:$0xe]  ;;  %v5871_v47 = vsel %vm1039_vm1, %v8549_v3, %v5324_v58  ;;  %v3669_v43 = vshrl.u32 %v8432_v41, 16  ;;  %v3672_v50 = vshll.u32 %v8432_v41, 16 }
 0x25e   : > { %5823 = vrot.lane.b32.xlu0 %v5704_v51, %s8634_s5  ;;  %v4389_v52 = vsel %vm1250_vm4, %v4385_v21, %v4388_v4  ;;  %v7739_v36 = vcombine.low %v7613_v6, %v8547_v63  ;;  %v8434_v6 = vld [vmem:[%s8686_s26 + $0x9c] sm:$0xff]   ;;  %v8394_v3 = vld [vmem:[%s8686_s26 + $0x50] ss:$0 sps:$4 sm:$0x11]  }
 0x25f   : > { %8070 = vmatmul.mubr.msk.bf16.gmra.mrb[36].mxu0 %vm1419_vm5, %v4389_v52  ;;  %v5514_v39 = vpop.permute.xlu1 %5513  ;;  %v3676_v5 = vshrl.u32 %v8434_v6, 16 }
 0x260   : > { %v5328_v42 = vpop.permute.xlu0 %5327  ;;  %v5869_v10 = vsel %vm1039_vm1, %v7739_v36, %v5322_v23  ;;  %v5235_v23 = vsel %vm2037_vm0, %v5228_v31, %v5233_v1  ;;  %v7728_v36 = vld [vmem:[%s8686_s26 + $0x78] sm:$0xf] }
 0x261   : > { %4110 = vrot.lane.b32.xlu1 %v4028_v48, %s8634_s5  ;;  %v5946_v32 = vsel %vm1120_vm2, %v5869_v10, %v5514_v39  ;;  %v5876_v38 = vsel %vm1039_vm1, %v8550_v40, %v5328_v42  ;;  %v5246_v39 = vsel %vm2037_vm0, %v5239_v60, %v5244_v25  ;;  %v5242_v42 = vor.u32 %v5240_v8, %v5239_v60 }
 0x262   : > { %3938 = vrot.lane.b32.xlu0 %v8419_v19, %s8633_s28 }
 0x263   : > { %v5518_v12 = vpop.permute.xlu1 %5517 }
 0x264   : > { %v5516_v0 = vpop.permute.xlu0 %5515 }
 0x265   : > { %3936 = vrot.lane.b32.xlu1 %v8420_v49, %s8633_s28  ;;  %v5948_v9 = vsel %vm1120_vm2, %v5871_v47, %v5516_v0  ;;  %v7699_v0 = vld [vmem:[%s8686_s26 + $0x7c] sm:$0xf]  ;;  %v8552_v47 = vld [vmem:[%s8686_s26 + $0x54] sm:$0xff]  }
 0x266   : > { %3748 = vrot.lane.b32.xlu0 %v10537_v13, %s8632_s27  ;;  %v8548_v13 = vld [vmem:[%s8686_s26 + $0x40] sm:$0xf]  ;;  %v7824_v1 = vcombine.low %v7728_v36, %v7699_v0 }
 0x267   : > { %v5802_v62 = vpop.permute.xlu1 %5801  ;;  %v7741_v34 = vcombine.low %v7616_v45, %v8548_v13 }
 0x268   : > { %v5520_v57 = vpop.permute.xlu0 %5519  ;;  %v6010_v46 = vsel %vm1185_vm3, %v5946_v32, %v5802_v62  ;;  %v8426_v32 = vld [vmem:[%s8686_s26 + $0x5c] ss:$0 sps:$4 sm:$0x11]   ;;  %v5717_v60 = vshrl.u32 %v7824_v1, 16  ;;  %v5720_v41 = vshll.u32 %v7824_v1, 16 }
 0x269   : > { %3940 = vrot.lane.b32.xlu1 %v8421_v22, %s8633_s28  ;;  %v6103_v61 = vrot.slane %v6010_v46, 1  ;;  %v5874_v51 = vsel %vm1039_vm1, %v7741_v34, %v10570_v53  ;;  %v5952_v21 = vsel %vm1120_vm2, %v5876_v38, %v5520_v57  ;;  %v7823_v53 = vcombine.low %v7727_v28, %v7696_v16  ;;  %v8433_v38 = vld [vmem:[%s8686_s26 + $0x80] ss:$0 sps:$4 sm:$0x11]   ;;  %v7665_v1 = vld [vmem:[%s8686_s26 + $0x90] sm:$0xf] }
 0x26a   : > { %4114 = vrot.lane.b32.xlu0 %v4035_v11, %s8634_s5  ;;  %v5950_v58 = vsel %vm1120_vm2, %v5874_v51, %v5518_v12  ;;  %v7698_v12 = vld [vmem:[%s8686_s26 + $0x78] sm:$0xe]  ;;  %v10638_v22 = vrot.slane %v3669_v43, 7  ;;  %v8551_v11 = vld [vmem:[%s8686_s26 + $0x48] sm:$0xff]   ;;  %v3679_v34 = vshll.u32 %v8434_v6, 16  ;;  %v4168_v46 = vsel %vm1039_vm1, %v8552_v47, %v10404_v2 }
 0x26b   : > { %v3919_v44 = vpop.permute.xlu1 %3918  ;;  %v5706_v18 = vshrl.u32 %v7823_v53, 16  ;;  %v4163_v62 = vsel %vm1039_vm1, %v8551_v11, %v10388_v55  ;;  %v7801_v33 = vcombine.low %v7698_v12, %v7699_v0  ;;  %v5709_v29 = vshll.u32 %v7823_v53, 16  ;;  %v8435_v43 = vld [vmem:[%s8686_s26 + $0x84] sm:$0xff]  }
 0x26c   : > { %v5804_v30 = vpop.permute.xlu0 %5803  ;;  %v4239_v57 = vsel %vm1120_vm2, %v4163_v62, %v3919_v44  ;;  %v3674_v13 = vor.u32 %v3672_v50, %v10638_v22  ;;  %v10650_v55 = vrot.slane %v3676_v5, 7  ;;  %v4166_v2 = vsel %vm1039_vm1, %v8394_v3, %v10385_v56 }
 0x26d   : > { %v6012_v54 = vsel %vm1185_vm3, %v5948_v9, %v5804_v30  ;;  %4116 = vrot.lane.b32.xlu1 %v4032_v14, %s8634_s5  ;;  %v7695_v14 = vld [vmem:[%s8686_s26 + $0x6c] sm:$0xe]  ;;  %v5708_v15 = vrot.slane %v5706_v18, 7  ;;  %v5713_v28 = vshll.u32 %v10630_v59, 16  ;;  %v5719_v56 = vrot.slane %v5717_v60, 7 }
 0x26e   : > { %v6104_v35 = vrot.slane %v6012_v54, 1  ;;  %4112 = vrot.lane.b32.xlu0 %v10566_v20, %s8634_s5  ;;  %v7799_v63 = vcombine.low %v7695_v14, %v7696_v16  ;;  %v5724_v18 = vshll.u32 %v8433_v38, 16  ;;  %v4040_v50 = vshll.u32 %v8435_v43, 16 }
 0x26f   : > { %v5808_v4 = vpop.permute.xlu1 %5807 }
 0x270   : > { %v6016_v19 = vsel %vm1185_vm3, %v5952_v21, %v5808_v4  ;;  %v5806_v48 = vpop.permute.xlu0 %5805  ;;  %v6105_v26 = vsel %vm2998_vm6, %v6103_v61, %v6104_v35  ;;  %v3681_v61 = vor.u32 %v3679_v34, %v10650_v55  ;;  %v5726_v11 = vsel %vm2037_vm0, %v5719_v56, %v5724_v18  ;;  %v8437_v34 = vld [vmem:[%s8686_s26 + $0x8c] ss:$0 sps:$4 sm:$0x11]   ;;  %v8556_v18 = vld [vmem:[%s8686_s26 + $0x5c] ss:$0 sps:$4 sm:$0x11]  }
 0x271   : > { %v6107_v20 = vrot.slane %v6016_v19, 1  ;;  %v6014_v52 = vsel %vm1185_vm3, %v5950_v58, %v5806_v48  ;;  %8103 = vmatprep.mubr.msk.bf16.mxu1 %vm1419_vm5, %v6105_v26  ;;  %5347 = vrot.lane.b32.xlu1 %v5235_v23, %s8632_s27  ;;  %v5711_v23 = vor.u32 %v5709_v29, %v5708_v15 }
 0x272   : > { %v6106_v37 = vrot.slane %v6014_v52, 1  ;;  %5345 = vrot.lane.b32.xlu0 %v5231_v17, %s8632_s27 }
 0x273   : > { %v4095_v49 = vpop.permute.xlu1 %4094 }
 0x274   : > { %v3923_v27 = vpop.permute.xlu0 %3922  ;;  %v6108_v7 = vsel %vm2998_vm6, %v6106_v37, %v6107_v20  ;;  %v4303_v10 = vsel %vm1185_vm3, %v4239_v57, %v4095_v49  ;;  %v7619_v57 = vld [vmem:[%s8686_s26 + $0x48] sm:$0xe] }
 0x275   : > { %8104 = vmatmul.mubr.msk.bf16.gmra.mrb[36].mxu1 %vm1419_vm5, %v6108_v7  ;;  %5351 = vrot.lane.b32.xlu1 %v5246_v39, %s8632_s27  ;;  %v4392_v9 = vshll.u32 %v4303_v10, 16  ;;  %v4243_v30 = vsel %vm1120_vm2, %v4168_v46, %v3923_v27  ;;  %v4390_v20 = vshrl.u32 %v4303_v10, 16  ;;  %v5722_v7 = vor.u32 %v5720_v41, %v5719_v56  ;;  %v7638_v10 = vld [vmem:[%s8686_s26 + $0x94] sm:$0xf]  ;;  %v7641_v46 = vld [vmem:[%s8686_s26 + $0xa0] sm:$0xf] }
 0x276   : > { %5349 = vrot.lane.b32.xlu0 %v5242_v42, %s8632_s27  ;;  %v5715_v42 = vsel %vm2037_vm0, %v5708_v15, %v5713_v28 }
 0x277   : > { %v3921_v45 = vpop.permute.xlu1 %3920  ;;  %v4394_v51 = vrot.slane %v4392_v9, 1 }
 0x278   : > { %v3733_v31 = vpop.permute.xlu0 %3732  ;;  %v4241_v21 = vsel %vm1120_vm2, %v4166_v2, %v3921_v45  ;;  %v8436_v45 = vld [vmem:[%s8686_s26 + $0x90] sm:$0xff]  }
 0x279   : > { %5539 = vrot.lane.b32.xlu1 %v10630_v59, %s8633_s28  ;;  %v4171_v25 = vsel %vm1039_vm1, %v8426_v32, %v3733_v31  ;;  %v4395_v6 = vor.u32 %v4394_v51, %v4390_v20  ;;  %v4037_v59 = vshrl.u32 %v8435_v43, 16  ;;  %v8553_v32 = vld [vmem:[%s8686_s26 + $0x4c] sm:$0xf]  ;;  %v4047_v47 = vshll.u32 %v8436_v45, 16 }
 0x27a   : > { %5537 = vrot.lane.b32.xlu0 %v7799_v63, %s8633_s28  ;;  %v8554_v2 = vld [vmem:[%s8686_s26 + $0x50] ss:$0 sps:$4 sm:$0x11]  }
 0x27b   : > { %v3925_v44 = vpop.permute.xlu1 %3924  ;;  %v10685_v36 = vrot.slane %v4037_v59, 7  ;;  %v7702_v59 = vld [vmem:[%s8686_s26 + $0x88] sm:$0xf] }
 0x27c   : > { %v4099_v17 = vpop.permute.xlu0 %4098  ;;  %v4245_v35 = vsel %vm1120_vm2, %v4171_v25, %v3925_v44  ;;  %v7666_v44 = vld [vmem:[%s8686_s26 + $0x9c] sm:$0xf]  ;;  %v7622_v25 = vld [vmem:[%s8686_s26 + $0x54] sm:$0xe] }
 0x27d   : > { %v4307_v54 = vsel %vm1185_vm3, %v4243_v30, %v4099_v17  ;;  %5541 = vrot.lane.b32.xlu1 %v7801_v33, %s8633_s28  ;;  %v4042_v31 = vor.u32 %v4040_v50, %v10685_v36  ;;  %v4044_v33 = vshrl.u32 %v8436_v45, 16  ;;  %v7778_v60 = vcombine.low %v7666_v44, %v7641_v46  ;;  %v10755_v44 = vld [vmem:[%s8686_s26 + $0x8c] ss:$0 sps:$4 sm:$0x11]  }
 0x27e   : > { %v4402_v40 = vshll.u32 %v4307_v54, 16  ;;  %3750 = vrot.lane.b32.xlu0 %v3674_v13, %s8632_s27  ;;  %v4400_v48 = vshrl.u32 %v4307_v54, 16  ;;  %v7743_v13 = vcombine.low %v7619_v57, %v8553_v32  ;;  %v8438_v54 = vld [vmem:[%s8686_s26 + $0x98] ss:$0 sps:$4 sm:$0x11]  }
 0x27f   : > { %v4101_v8 = vpop.permute.xlu1 %4100  ;;  %v4046_v3 = vrot.slane %v4044_v33, 7 }
 0x280   : > { %v4404_v4 = vrot.slane %v4402_v40, 1  ;;  %v4309_v58 = vsel %vm1185_vm3, %v4245_v35, %v4101_v8  ;;  %v4097_v19 = vpop.permute.xlu0 %4096 }
 0x281   : > { %v4406_v26 = vshll.u32 %v4309_v58, 16  ;;  %v4305_v16 = vsel %vm1185_vm3, %v4241_v21, %v4097_v19  ;;  %5825 = vrot.lane.b32.xlu1 %v5711_v23, %s8634_s5  ;;  %v8555_v21 = vld [vmem:[%s8686_s26 + $0x58] sm:$0xf]  ;;  %v8442_v19 = vld [vmem:[%s8686_s26 + $0xa4] ss:$0 sps:$4 sm:$0x11]  }
 0x282   : > { %v4396_v52 = vshll.u32 %v4305_v16, 16  ;;  %5543 = vrot.lane.b32.xlu0 %v8433_v38, %s8633_s28  ;;  %v4405_v53 = vor.u32 %v4404_v4, %v4400_v48  ;;  %v4049_v38 = vor.u32 %v4047_v47, %v4046_v3  ;;  %v7745_v4 = vcombine.low %v7622_v25, %v8555_v21  ;;  %v7705_v47 = vld [vmem:[%s8686_s26 + $0x94] sm:$0xf] }
 0x283   : > { %v4408_v37 = vrot.slane %v4406_v26, 1  ;;  %v5332_v39 = vpop.permute.xlu1 %5331  ;;  %v5259_v48 = vshrl.u32 %v7778_v60, 16 }
 0x284   : > { %v4398_v49 = vrot.slane %v4396_v52, 1  ;;  %v5330_v14 = vpop.permute.xlu0 %5329  ;;  %v5881_v35 = vsel %vm1039_vm1, %v8554_v2, %v5332_v39  ;;  %v7729_v39 = vld [vmem:[%s8686_s26 + $0x84] sm:$0xf] }
 0x285   : > { %3754 = vrot.lane.b32.xlu1 %v3681_v61, %s8632_s27  ;;  %v4409_v27 = vsel %vm1250_vm4, %v4405_v53, %v4408_v37  ;;  %v5879_v17 = vsel %vm1039_vm1, %v7743_v13, %v5330_v14  ;;  %v8440_v61 = vld [vmem:[%s8686_s26 + $0x98] ss:$0 sps:$4 sm:$0x11]   ;;  %v7701_v13 = vld [vmem:[%s8686_s26 + $0x84] sm:$0xe] }
 0x286   : > { %5827 = vrot.lane.b32.xlu0 %v5715_v42, %s8634_s5  ;;  %v4399_v12 = vsel %vm1250_vm4, %v4395_v6, %v4398_v49  ;;  %v5255_v56 = vshll.u32 %v8440_v61, 16  ;;  %v5266_v6 = vshll.u32 %v8442_v19, 16 }
 0x287   : > { %8073 = vmatprep.mubr.msk.bf16.mxu0 %vm1419_vm5, %v4399_v12  ;;  %v10679_v0 = vpop.permute.xlu1 %5335  ;;  %v8450_v12 = vld [vmem:[%s8686_s26 + $0xa8] sm:$0xff]  }
 0x288   : > { %8074 = vmatmul.mubr.msk.bf16.gmra.mrb[40].mxu0 %vm1419_vm5, %v4409_v27  ;;  %v10682_v63 = vpop.permute.xlu0 %5333  ;;  %v3686_v25 = vshll.u32 %v8450_v12, 16 }
 0x289   : > { %5829 = vrot.lane.b32.xlu1 %v5722_v7, %s8634_s5  ;;  %v5884_v42 = vsel %vm1039_vm1, %v7745_v4, %v10682_v63  ;;  %v5262_v7 = vshll.u32 %v7778_v60, 16  ;;  %v5886_v63 = vsel %vm1039_vm1, %v8556_v18, %v10679_v0 }
 0x28a   : > { %3942 = vrot.lane.b32.xlu0 %v8435_v43, %s8633_s28  ;;  %v5261_v43 = vrot.slane %v5259_v48, 7 }
 0x28b   : > { %v5524_v5 = vpop.permute.xlu1 %5523 }
 0x28c   : > { %v5522_v62 = vpop.permute.xlu0 %5521  ;;  %v5956_v41 = vsel %vm1120_vm2, %v5881_v35, %v5524_v5 }
 0x28d   : > { %3752 = vrot.lane.b32.xlu1 %v10638_v22, %s8632_s27  ;;  %v7777_v22 = vcombine.low %v7665_v1, %v7638_v10  ;;  %v5954_v40 = vsel %vm1120_vm2, %v5879_v17, %v5522_v62  ;;  %v5264_v10 = vor.u32 %v5262_v7, %v5261_v43  ;;  %v7730_v1 = vld [vmem:[%s8686_s26 + $0x90] sm:$0xf] }
 0x28e   : > { %5831 = vrot.lane.b32.xlu0 %v5726_v11, %s8634_s5  ;;  %v7825_v11 = vcombine.low %v7729_v39, %v7702_v59 }
 0x28f   : > { %v5526_v15 = vpop.permute.xlu1 %5525  ;;  %v5248_v23 = vshrl.u32 %v7777_v22, 16  ;;  %v5251_v20 = vshll.u32 %v7777_v22, 16 }
 0x290   : > { %v10697_v29 = vpop.permute.xlu0 %3734  ;;  %v5958_v49 = vsel %vm1120_vm2, %v5884_v42, %v5526_v15  ;;  %v3683_v15 = vshrl.u32 %v8450_v12, 16  ;;  %v5731_v2 = vshll.u32 %v7825_v11, 16 }
 0x291   : > { %4118 = vrot.lane.b32.xlu1 %v4042_v31, %s8634_s5  ;;  %v5268_v31 = vsel %vm2037_vm0, %v5261_v43, %v5266_v6 }
 0x292   : > { %3946 = vrot.lane.b32.xlu0 %v8436_v45, %s8633_s28  ;;  %v8452_v45 = vld [vmem:[%s8686_s26 + $0xb4] sm:$0xff]   ;;  %v10764_v60 = vrot.slane %v3683_v15, 7 }
 0x293   : > { %v5810_v9 = vpop.permute.xlu1 %5809  ;;  %v3690_v46 = vshrl.u32 %v8452_v45, 16 }
 0x294   : > { %v5528_v30 = vpop.permute.xlu0 %5527  ;;  %v6018_v8 = vsel %vm1185_vm3, %v5954_v40, %v5810_v9  ;;  %v10757_v9 = vcombine.low %v7730_v1, %v7705_v47  ;;  %v3688_v48 = vor.u32 %v3686_v25, %v10764_v60 }
 0x295   : > { %3944 = vrot.lane.b32.xlu1 %v8437_v34, %s8633_s28  ;;  %v6109_v26 = vrot.slane %v6018_v8, 1  ;;  %v5960_v62 = vsel %vm1120_vm2, %v5886_v63, %v5528_v30  ;;  %v5728_v34 = vshrl.u32 %v7825_v11, 16  ;;  %v8557_v30 = vld [vmem:[%s8686_s26 + $0x60] sm:$0xff]   ;;  %v10803_v63 = vld [vmem:[%s8686_s26 + $0x98] ss:$0 sps:$4 sm:$0x11]  }
 0x296   : > { %3756 = vrot.lane.b32.xlu0 %v10650_v55, %s8632_s27  ;;  %v5250_v55 = vrot.slane %v5248_v23, 7  ;;  %v4173_v17 = vsel %vm1039_vm1, %v8557_v30, %v10697_v29  ;;  %v7704_v23 = vld [vmem:[%s8686_s26 + $0x90] sm:$0xe] }
 0x297   : > { %v10716_v28 = vpop.permute.xlu1 %3738  ;;  %v10767_v61 = vrot.slane %v5728_v34, 7  ;;  %v7805_v4 = vcombine.low %v7704_v23, %v7705_v47 }
 0x298   : > { %v5812_v51 = vpop.permute.xlu0 %5811  ;;  %v5257_v14 = vsel %vm2037_vm0, %v5250_v55, %v5255_v56  ;;  %v5253_v27 = vor.u32 %v5251_v20, %v5250_v55  ;;  %v8444_v55 = vld [vmem:[%s8686_s26 + $0x74] ss:$0 sps:$4 sm:$0x11]   ;;  %v8439_v56 = vld [vmem:[%s8686_s26 + $0x68] ss:$0 sps:$4 sm:$0x11]  }
 0x299   : > { %v6020_v58 = vsel %vm1185_vm3, %v5956_v41, %v5812_v51  ;;  %3948 = vrot.lane.b32.xlu1 %v8438_v54, %s8633_s28  ;;  %v7803_v54 = vcombine.low %v7701_v13, %v7702_v59  ;;  %v10772_v41 = vrot.slane %v3690_v46, 7  ;;  %v3693_v51 = vshll.u32 %v8452_v45, 16 }
 0x29a   : > { %v6110_v16 = vrot.slane %v6020_v58, 1  ;;  %4122 = vrot.lane.b32.xlu0 %v4049_v38, %s8634_s5  ;;  %v5739_v58 = vshrl.u32 %v10757_v9, 16 }
 0x29b   : > { %v5814_v52 = vpop.permute.xlu1 %5813 }
 0x29c   : > { %v3927_v53 = vpop.permute.xlu0 %3926  ;;  %v6111_v37 = vsel %vm2998_vm6, %v6109_v26, %v6110_v16  ;;  %v6022_v50 = vsel %vm1185_vm3, %v5958_v49, %v5814_v52  ;;  %v8558_v26 = vld [vmem:[%s8686_s26 + $0x6c] sm:$0xff]   ;;  %v10797_v7 = vrot.slane %v5739_v58, 7 }
 0x29d   : > { %8107 = vmatprep.mubr.msk.bf16.mxu1 %vm1419_vm5, %v6111_v37  ;;  %4124 = vrot.lane.b32.xlu1 %v4046_v3, %s8634_s5  ;;  %v6112_v33 = vrot.slane %v6022_v50, 1  ;;  %v4247_v40 = vsel %vm1120_vm2, %v4173_v17, %v3927_v53  ;;  %v4178_v16 = vsel %vm1039_vm1, %v8558_v26, %v10716_v28  ;;  %v5733_v37 = vor.u32 %v5731_v2, %v10767_v61 }
 0x29e   : > { %4120 = vrot.lane.b32.xlu0 %v10685_v36, %s8634_s5  ;;  %v3695_v28 = vor.u32 %v3693_v51, %v10772_v41  ;;  %v5742_v50 = vshll.u32 %v10757_v9, 16 }
 0x29f   : > { %v10740_v5 = vpop.permute.xlu1 %3736 }
 0x2a0   : > { %v5816_v36 = vpop.permute.xlu0 %5815  ;;  %v4176_v11 = vsel %vm1039_vm1, %v8439_v56, %v10740_v5 }
 0x2a1   : > { %v6024_v57 = vsel %vm1185_vm3, %v5960_v62, %v5816_v36  ;;  %5355 = vrot.lane.b32.xlu1 %v5257_v14, %s8632_s27 }
 0x2a2   : > { %v6113_v0 = vrot.slane %v6024_v57, 1  ;;  %5353 = vrot.lane.b32.xlu0 %v5253_v27, %s8632_s27  ;;  %v5735_v27 = vshll.u32 %v10755_v44, 16 }
 0x2a3   : > { %v4103_v32 = vpop.permute.xlu1 %4102 }
 0x2a4   : > { %v3931_v22 = vpop.permute.xlu0 %3930  ;;  %v6114_v3 = vsel %vm2998_vm6, %v6112_v33, %v6113_v0  ;;  %v10770_v35 = vsel %vm1185_vm3, %v4247_v40, %v4103_v32  ;;  %v5737_v25 = vsel %vm2037_vm0, %v10767_v61, %v5735_v27  ;;  %v8453_v40 = vld [vmem:[%s8686_s26 + $0x9c] sm:$0xff]  }
 0x2a5   : > { %8108 = vmatmul.mubr.msk.bf16.gmra.mrb[40].mxu1 %vm1419_vm5, %v6114_v3  ;;  %5359 = vrot.lane.b32.xlu1 %v5268_v31, %s8632_s27  ;;  %v4412_v20 = vshll.u32 %v10770_v35, 16  ;;  %v4251_v39 = vsel %vm1120_vm2, %v4178_v16, %v3931_v22  ;;  %v4410_v3 = vshrl.u32 %v10770_v35, 16 }
 0x2a6   : > { %5357 = vrot.lane.b32.xlu0 %v5264_v10, %s8632_s27 }
 0x2a7   : > { %v3929_v38 = vpop.permute.xlu1 %3928  ;;  %v8033_v8 = vpop.f32.mrb[0].mxu1  ;;  %v4414_v62 = vrot.slane %v4412_v20, 1 }
 0x2a8   : > { %v3741_v29 = vpop.permute.xlu0 %3740  ;;  %3270 = vst.msk [vmem:[#allocation2 + $0x110] sm:$0xff] %vm1120_vm2, %v8033_v8  ;;  %v3138_v21 = vpop.f32.mrb[1].mxu1  ;;  %v3303_v59 = vsel %vm1120_vm2, %v8033_v8, 0.0  ;;  %v4249_v31 = vsel %vm1120_vm2, %v4176_v11, %v3929_v38  ;;  %v7667_v11 = vld [vmem:[%s8686_s26 + $0xa8] sm:$0xf] }
 0x2a9   : > { %5547 = vrot.lane.b32.xlu1 %v10755_v44, %s8633_s28  ;;  %3268 = vst.msk [vmem:[#allocation2 + $0x100] sm:$0xff] %vm1120_vm2, %v3138_v21  ;;  %v8034_v19 = vpop.f32.mrb[2].mxu1  ;;  %v3300_v42 = vsel %vm1120_vm2, %v3138_v21, 0.0  ;;  %v4181_v12 = vsel %vm1039_vm1, %v8444_v55, %v3741_v29  ;;  %v4415_v38 = vor.u32 %v4414_v62, %v4410_v3  ;;  %v5744_v21 = vor.u32 %v5742_v50, %v10797_v7  ;;  %v7644_v50 = vld [vmem:[%s8686_s26 + $0xac] sm:$0xf] }
 0x2aa   : > { %5545 = vrot.lane.b32.xlu0 %v7803_v54, %s8633_s28  ;;  %3271 = vst.msk [vmem:[#allocation2 + $0x118] sm:$0xff] %vm1120_vm2, %v8034_v19  ;;  %v3141_v52 = vpop.f32.mrb[3].mxu1  ;;  %v3305_v33 = vsel %vm1120_vm2, %v8034_v19, 0.0  ;;  %v7625_v62 = vld [vmem:[%s8686_s26 + $0x60] sm:$0xe] }
 0x2ab   : > { %v3933_v53 = vpop.permute.xlu1 %3932  ;;  %3269 = vst.msk [vmem:[#allocation2 + $0x108] sm:$0xff] %vm1120_vm2, %v3141_v52  ;;  %v3301_v43 = vsel %vm1120_vm2, %v3141_v52, 0.0  ;;  %v7647_v3 = vld [vmem:[%s8686_s26 + $0xb8] sm:$0xf] }
 0x2ac   : > { %v4107_v6 = vpop.permute.xlu0 %4106  ;;  %v3302_v49 = vadd.f32 %v3301_v43, %v3300_v42  ;;  %v4253_v45 = vsel %vm1120_vm2, %v4181_v12, %v3933_v53 }
 0x2ad   : > { %v4315_v14 = vsel %vm1185_vm3, %v4251_v39, %v4107_v6  ;;  %5549 = vrot.lane.b32.xlu1 %v7805_v4, %s8633_s28  ;;  %v4051_v4 = vshrl.u32 %v8453_v40, 16 }
 0x2ae   : > { %v4422_v18 = vshll.u32 %v4315_v14, 16  ;;  %3758 = vrot.lane.b32.xlu0 %v3688_v48, %s8632_s27  ;;  %v3304_v36 = vadd.f32 %v3303_v59, %v3302_v49  ;;  %v4420_v32 = vshrl.u32 %v4315_v14, 16  ;;  %v5746_v48 = vshll.u32 %v10803_v63, 16  ;;  %v8454_v14 = vld [vmem:[%s8686_s26 + $0xa8] sm:$0xff]  }
 0x2af   : > { %v4109_v57 = vpop.permute.xlu1 %4108  ;;  %v8037_v1 = vpop.f32.mrb[4].mxu1  ;;  %v10846_v53 = vrot.slane %v4051_v4, 7 }
 0x2b0   : > { %v4424_v0 = vrot.slane %v4422_v18, 1  ;;  %v4317_v10 = vsel %vm1185_vm3, %v4253_v45, %v4109_v57  ;;  %v4105_v15 = vpop.permute.xlu0 %4104  ;;  %3274 = vst.msk [vmem:[#allocation2 + $0x130] sm:$0xff] %vm1120_vm2, %v8037_v1  ;;  %v3154_v34 = vpop.f32.mrb[5].mxu1  ;;  %v3306_v22 = vadd.f32 %v3305_v33, %v3304_v36  ;;  %v3311_v58 = vsel %vm1120_vm2, %v8037_v1, 0.0 }
 0x2b1   : > { %v4426_v13 = vshll.u32 %v4317_v10, 16  ;;  %v4313_v5 = vsel %vm1185_vm3, %v4249_v31, %v4105_v15  ;;  %5833 = vrot.lane.b32.xlu1 %v5733_v37, %s8634_s5  ;;  %3272 = vst.msk [vmem:[#allocation2 + $0x120] sm:$0xff] %vm1120_vm2, %v3154_v34  ;;  %v3307_v46 = vsel %vm1120_vm2, %v3154_v34, 0.0  ;;  %v8038_v44 = vpop.f32.mrb[6].mxu1  ;;  %v4054_v37 = vshll.u32 %v8453_v40, 16 }
 0x2b2   : > { %v4416_v47 = vshll.u32 %v4313_v5, 16  ;;  %5551 = vrot.lane.b32.xlu0 %v10803_v63, %s8633_s28  ;;  %v4425_v9 = vor.u32 %v4424_v0, %v4420_v32  ;;  %v3308_v17 = vadd.f32 %v3307_v46, %v3306_v22  ;;  %3275 = vst.msk [vmem:[#allocation2 + $0x138] sm:$0xff] %vm1120_vm2, %v8038_v44  ;;  %v3157_v54 = vpop.f32.mrb[7].mxu1  ;;  %v3313_v26 = vsel %vm1120_vm2, %v8038_v44, 0.0  ;;  %v8559_v0 = vld [vmem:[%s8686_s26 + $0x64] sm:$0xf] }
 0x2b3   : > { %v4428_v30 = vrot.slane %v4426_v13, 1  ;;  %v10821_v23 = vpop.permute.xlu1 %5339  ;;  %3273 = vst.msk [vmem:[#allocation2 + $0x128] sm:$0xff] %vm1120_vm2, %v3157_v54  ;;  %v3309_v35 = vsel %vm1120_vm2, %v3157_v54, 0.0  ;;  %v5748_v49 = vsel %vm2037_vm0, %v10797_v7, %v5746_v48  ;;  %v4056_v18 = vor.u32 %v4054_v37, %v10846_v53  ;;  %v8455_v32 = vld [vmem:[%s8686_s26 + $0xa4] ss:$0 sps:$4 sm:$0x11]  }
 0x2b4   : > { %v4418_v2 = vrot.slane %v4416_v47, 1  ;;  %v10828_v8 = vpop.permute.xlu0 %5337  ;;  %v3310_v29 = vadd.f32 %v3309_v35, %v3308_v17  ;;  %v4058_v63 = vshrl.u32 %v8454_v14, 16  ;;  %v7747_v10 = vcombine.low %v7625_v62, %v8559_v0  ;;  %v7668_v47 = vld [vmem:[%s8686_s26 + $0xb4] sm:$0xf] }
 0x2b5   : > { %3762 = vrot.lane.b32.xlu1 %v3695_v28, %s8632_s27  ;;  %v4429_v51 = vsel %vm1250_vm4, %v4425_v9, %v4428_v30  ;;  %v4061_v5 = vshll.u32 %v8454_v14, 16  ;;  %v8458_v54 = vld [vmem:[%s8686_s26 + $0xb0] ss:$0 sps:$4 sm:$0x11]   ;;  %v10894_v35 = vcombine.low %v7668_v47, %v7647_v3 }
 0x2b6   : > { %5835 = vrot.lane.b32.xlu0 %v5737_v25, %s8634_s5  ;;  %v4419_v61 = vsel %vm1250_vm4, %v4415_v38, %v4418_v2  ;;  %v3312_v55 = vadd.f32 %v3311_v58, %v3310_v29  ;;  %v10876_v13 = vrot.slane %v4058_v63, 7  ;;  %v8456_v2 = vld [vmem:[%s8686_s26 + $0xb0] ss:$0 sps:$4 sm:$0x11]   ;;  %v7628_v29 = vld [vmem:[%s8686_s26 + $0x6c] sm:$0xe] }
 0x2b7   : > { %8077 = vmatprep.mubr.msk.bf16.mxu0 %vm1419_vm5, %v4419_v61  ;;  %v10837_v19 = vpop.permute.xlu1 %5343  ;;  %v8041_v16 = vpop.f32.mrb[8].mxu1  ;;  %v8560_v58 = vld [vmem:[%s8686_s26 + $0x68] ss:$0 sps:$4 sm:$0x11]  }
 0x2b8   : > { %8078 = vmatmul.mubr.msk.bf16.gmra.mrb[44].mxu0 %vm1419_vm5, %v4429_v51  ;;  %v10842_v56 = vpop.permute.xlu0 %5341  ;;  %3278 = vst.msk [vmem:[#allocation2 + $0x150] sm:$0xff] %vm1120_vm2, %v8041_v16  ;;  %v3170_v20 = vpop.f32.mrb[9].mxu1  ;;  %v3314_v52 = vadd.f32 %v3313_v26, %v3312_v55  ;;  %v3319_v7 = vsel %vm1120_vm2, %v8041_v16, 0.0  ;;  %v4063_v4 = vor.u32 %v4061_v5, %v10876_v13 }
 0x2b9   : > { %5837 = vrot.lane.b32.xlu1 %v5744_v21, %s8634_s5  ;;  %3276 = vst.msk [vmem:[#allocation2 + $0x140] sm:$0xff] %vm1120_vm2, %v3170_v20  ;;  %v3315_v39 = vsel %vm1120_vm2, %v3170_v20, 0.0  ;;  %v8042_v42 = vpop.f32.mrb[10].mxu1 }
 0x2ba   : > { %3950 = vrot.lane.b32.xlu0 %v8453_v40, %s8633_s28  ;;  %v3316_v43 = vadd.f32 %v3315_v39, %v3314_v52  ;;  %3279 = vst.msk [vmem:[#allocation2 + $0x158] sm:$0xff] %vm1120_vm2, %v8042_v42  ;;  %v3173_v6 = vpop.f32.mrb[11].mxu1  ;;  %v3321_v57 = vsel %vm1120_vm2, %v8042_v42, 0.0  ;;  %v5889_v40 = vsel %vm1039_vm1, %v7747_v10, %v10828_v8  ;;  %v5891_v8 = vsel %vm1039_vm1, %v8560_v58, %v10821_v23  ;;  %v8561_v39 = vld [vmem:[%s8686_s26 + $0x70] sm:$0xf] }
 0x2bb   : > { %v5532_v28 = vpop.permute.xlu1 %5531  ;;  %3277 = vst.msk [vmem:[#allocation2 + $0x148] sm:$0xff] %vm1120_vm2, %v3173_v6  ;;  %v3317_v27 = vsel %vm1120_vm2, %v3173_v6, 0.0  ;;  %v7749_v42 = vcombine.low %v7628_v29, %v8561_v39 }
 0x2bc   : > { %v5530_v59 = vpop.permute.xlu0 %5529  ;;  %v3318_v12 = vadd.f32 %v3317_v27, %v3316_v43  ;;  %v5964_v26 = vsel %vm1120_vm2, %v5891_v8, %v5532_v28  ;;  %v7732_v8 = vld [vmem:[%s8686_s26 + $0xa8] sm:$0xf] }
 0x2bd   : > { %3760 = vrot.lane.b32.xlu1 %v10764_v60, %s8632_s27  ;;  %v10870_v60 = vcombine.low %v7667_v11, %v7644_v50  ;;  %v5962_v51 = vsel %vm1120_vm2, %v5889_v40, %v5530_v59 }
 0x2be   : > { %5839 = vrot.lane.b32.xlu0 %v5748_v49, %s8634_s5  ;;  %v3320_v36 = vadd.f32 %v3319_v7, %v3318_v12  ;;  %v8460_v49 = vld [vmem:[%s8686_s26 + $0xbc] ss:$0 sps:$4 sm:$0x11]  }
 0x2bf   : > { %v10865_v45 = vpop.permute.xlu1 %5533  ;;  %v8045_v31 = vpop.f32.mrb[12].mxu1  ;;  %v5270_v25 = vshrl.u32 %v10870_v60, 16  ;;  %v5288_v10 = vshll.u32 %v8460_v49, 16 }
 0x2c0   : > { %v10868_v33 = vpop.permute.xlu0 %3742  ;;  %3282 = vst.msk [vmem:[#allocation2 + $0x170] sm:$0xff] %vm1120_vm2, %v8045_v31  ;;  %v3186_v1 = vpop.f32.mrb[13].mxu1  ;;  %v3322_v15 = vadd.f32 %v3321_v57, %v3320_v36  ;;  %v3327_v21 = vsel %vm1120_vm2, %v8045_v31, 0.0  ;;  %v5894_v31 = vsel %vm1039_vm1, %v7749_v42, %v10842_v56 }
 0x2c1   : > { %4126 = vrot.lane.b32.xlu1 %v4056_v18, %s8634_s5  ;;  %3280 = vst.msk [vmem:[#allocation2 + $0x160] sm:$0xff] %vm1120_vm2, %v3186_v1  ;;  %v3323_v34 = vsel %vm1120_vm2, %v3186_v1, 0.0  ;;  %v8046_v22 = vpop.f32.mrb[14].mxu1  ;;  %v5272_v37 = vrot.slane %v5270_v25, 7  ;;  %v5273_v18 = vshll.u32 %v10870_v60, 16 }
 0x2c2   : > { %3954 = vrot.lane.b32.xlu0 %v8454_v14, %s8633_s28  ;;  %v3324_v46 = vadd.f32 %v3323_v34, %v3322_v15  ;;  %3283 = vst.msk [vmem:[#allocation2 + $0x178] sm:$0xff] %vm1120_vm2, %v8046_v22  ;;  %v3189_v44 = vpop.f32.mrb[15].mxu1  ;;  %v3329_v16 = vsel %vm1120_vm2, %v8046_v22, 0.0  ;;  %v5281_v14 = vshrl.u32 %v10894_v35, 16  ;;  %v7731_v1 = vld [vmem:[%s8686_s26 + $0x9c] sm:$0xf] }
 0x2c3   : > { %v5818_v9 = vpop.permute.xlu1 %5817  ;;  %3281 = vst.msk [vmem:[#allocation2 + $0x168] sm:$0xff] %vm1120_vm2, %v3189_v44  ;;  %v3325_v30 = vsel %vm1120_vm2, %v3189_v44, 0.0  ;;  %v10934_v15 = vld [vmem:[%s8686_s26 + $0xc0] sm:$0xff]   ;;  %v5275_v56 = vor.u32 %v5273_v18, %v5272_v37  ;;  %v5284_v34 = vshll.u32 %v10894_v35, 16  ;;  %v10964_v35 = vld [vmem:[%s8686_s26 + $0xcc] sm:$0xff]  }
 0x2c4   : > { %v10886_v17 = vpop.permute.xlu0 %5535  ;;  %v3326_v38 = vadd.f32 %v3325_v30, %v3324_v46  ;;  %v6026_v55 = vsel %vm1185_vm3, %v5962_v51, %v5818_v9  ;;  %v5283_v0 = vrot.slane %v5281_v14, 7  ;;  %v8562_v22 = vld [vmem:[%s8686_s26 + $0x74] ss:$0 sps:$4 sm:$0x11]   ;;  %v3704_v49 = vshrl.u32 %v10964_v35, 16  ;;  %v8563_v14 = vld [vmem:[%s8686_s26 + $0x78] sm:$0xff]  }
 0x2c5   : > { %3952 = vrot.lane.b32.xlu1 %v8455_v32, %s8633_s28  ;;  %v6115_v28 = vrot.slane %v6026_v55, 1  ;;  %v5966_v32 = vsel %vm1120_vm2, %v5894_v31, %v10865_v45  ;;  %v10949_v45 = vld [vmem:[%s8686_s26 + $0xa0] sm:$0xf] }
 0x2c6   : > { %3764 = vrot.lane.b32.xlu0 %v10772_v41, %s8632_s27  ;;  %v3328_v61 = vadd.f32 %v3327_v21, %v3326_v38  ;;  %v5277_v41 = vshll.u32 %v8458_v54, 16  ;;  %v10955_v54 = vcombine.low %v7731_v1, %v10949_v45  ;;  %v5290_v38 = vsel %vm2037_vm0, %v5283_v0, %v5288_v10 }
 0x2c7   : > { %v10906_v48 = vpop.permute.xlu1 %3746  ;;  %v5286_v58 = vor.u32 %v5284_v34, %v5283_v0  ;;  %v11006_v10 = vrot.slane %v3704_v49, 7  ;;  %v3707_v1 = vshll.u32 %v10964_v35, 16 }
 0x2c8   : > { %v8049_v20 = vpop.f32.mrb[16].mxu1  ;;  %v5820_v52 = vpop.permute.xlu0 %5819  ;;  %v3330_v6 = vadd.f32 %v3329_v16, %v3328_v61  ;;  %v5279_v57 = vsel %vm2037_vm0, %v5272_v37, %v5277_v41  ;;  %v7710_v37 = vld [vmem:[%s8686_s26 + $0xa8] sm:$0xe]  ;;  %v7711_v41 = vld [vmem:[%s8686_s26 + $0xac] sm:$0xf]  ;;  %v5750_v39 = vshrl.u32 %v10955_v54, 16 }
 0x2c9   : > { %3286 = vst.msk [vmem:[#allocation2 + $0x190] sm:$0xff] %vm1120_vm2, %v8049_v20  ;;  %v6028_v23 = vsel %vm1185_vm3, %v5964_v26, %v5820_v52  ;;  %v3202_v43 = vpop.f32.mrb[17].mxu1  ;;  %3956 = vrot.lane.b32.xlu1 %v8456_v2, %s8633_s28  ;;  %v3335_v5 = vsel %vm1120_vm2, %v8049_v20, 0.0  ;;  %v7707_v2 = vld [vmem:[%s8686_s26 + $0x9c] sm:$0xe] }
 0x2ca   : > { %v6116_v27 = vrot.slane %v6028_v23, 1  ;;  %3284 = vst.msk [vmem:[#allocation2 + $0x180] sm:$0xff] %vm1120_vm2, %v3202_v43  ;;  %v3331_v59 = vsel %vm1120_vm2, %v3202_v43, 0.0  ;;  %v8050_v12 = vpop.f32.mrb[18].mxu1  ;;  %4130 = vrot.lane.b32.xlu0 %v4063_v4, %s8634_s5  ;;  %v7807_v43 = vcombine.low %v7707_v2, %v10949_v45  ;;  %v11000_v31 = vrot.slane %v5750_v39, 7 }
 0x2cb   : > { %v3332_v63 = vadd.f32 %v3331_v59, %v3330_v6  ;;  %3287 = vst.msk [vmem:[#allocation2 + $0x198] sm:$0xff] %vm1120_vm2, %v8050_v12  ;;  %v3205_v50 = vpop.f32.mrb[19].mxu1  ;;  %v5822_v11 = vpop.permute.xlu1 %5821  ;;  %v10980_v23 = vld [vmem:[%s8686_s26 + $0xa4] ss:$0 sps:$4 sm:$0x11]   ;;  %v10983_v6 = vcombine.low %v7732_v8, %v7711_v41  ;;  %v3709_v2 = vor.u32 %v3707_v1, %v11006_v10 }
 0x2cc   : > { %3285 = vst.msk [vmem:[#allocation2 + $0x188] sm:$0xff] %vm1120_vm2, %v3205_v50  ;;  %v3333_v62 = vsel %vm1120_vm2, %v3205_v50, 0.0  ;;  %v10923_v7 = vpop.permute.xlu0 %3934  ;;  %v6117_v36 = vsel %vm2998_vm6, %v6115_v28, %v6116_v27  ;;  %v6030_v47 = vsel %vm1185_vm3, %v5966_v32, %v5822_v11  ;;  %v4183_v28 = vsel %vm1039_vm1, %v8563_v14, %v10868_v33  ;;  %v8462_v32 = vld [vmem:[%s8686_s26 + $0x8c] ss:$0 sps:$4 sm:$0x11]  }
 0x2cd   : > { %v3334_v60 = vadd.f32 %v3333_v62, %v3332_v63  ;;  %8111 = vmatprep.mubr.msk.bf16.mxu1 %vm1419_vm5, %v6117_v36  ;;  %4132 = vrot.lane.b32.xlu1 %v10876_v13, %s8634_s5  ;;  %v5896_v13 = vsel %vm1039_vm1, %v8562_v22, %v10837_v19  ;;  %v6118_v29 = vrot.slane %v6030_v47, 1  ;;  %v4255_v18 = vsel %vm1120_vm2, %v4183_v28, %v10923_v7  ;;  %v8457_v47 = vld [vmem:[%s8686_s26 + $0x80] ss:$0 sps:$4 sm:$0x11]  }
 0x2ce   : > { %4128 = vrot.lane.b32.xlu0 %v10846_v53, %s8634_s5  ;;  %v5968_v44 = vsel %vm1120_vm2, %v5896_v13, %v10886_v17  ;;  %v3337_v53 = vsel %vm1120_vm2, %v8050_v12, 0.0  ;;  %v3697_v17 = vshrl.u32 %v10934_v15, 16  ;;  %v3700_v12 = vshll.u32 %v10934_v15, 16  ;;  %v8564_v13 = vld [vmem:[%s8686_s26 + $0x84] sm:$0xff]  }
 0x2cf   : > { %v3336_v3 = vadd.f32 %v3335_v5, %v3334_v60  ;;  %v10946_v46 = vpop.permute.xlu1 %3744  ;;  %v7809_v11 = vcombine.low %v7710_v37, %v7711_v41  ;;  %v5753_v60 = vshll.u32 %v10955_v54, 16  ;;  %v5761_v15 = vshrl.u32 %v10983_v6, 16 }
 0x2d0   : > { %v8053_v9 = vpop.f32.mrb[20].mxu1  ;;  %v5824_v30 = vpop.permute.xlu0 %5823  ;;  %v10991_v59 = vrot.slane %v3697_v17, 7  ;;  %v1726_v22 = vrot.slane %v10450_v24, 4  ;;  %v4186_v8 = vsel %vm1039_vm1, %v8457_v47, %v10946_v46 }
 0x2d1   : > { %3290 = vst.msk [vmem:[#allocation2 + $0x1b0] sm:$0xff] %vm1120_vm2, %v8053_v9  ;;  %v6032_v19 = vsel %vm1185_vm3, %v5968_v44, %v5824_v30  ;;  %v3218_v25 = vpop.f32.mrb[21].mxu1  ;;  %v3338_v40 = vadd.f32 %v3337_v53, %v3336_v3  ;;  %5363 = vrot.lane.b32.xlu1 %v5279_v57, %s8632_s27  ;;  %v3343_v27 = vsel %vm1120_vm2, %v8053_v9, 0.0  ;;  %v4188_v3 = vsel %vm1039_vm1, %v8564_v13, %v10906_v48 }
 0x2d2   : > { %v6119_v51 = vrot.slane %v6032_v19, 1  ;;  %3288 = vst.msk [vmem:[#allocation2 + $0x1a0] sm:$0xff] %vm1120_vm2, %v3218_v25  ;;  %v3339_v21 = vsel %vm1120_vm2, %v3218_v25, 0.0  ;;  %v8054_v4 = vpop.f32.mrb[22].mxu1  ;;  %5361 = vrot.lane.b32.xlu0 %v5275_v56, %s8632_s27  ;;  %v3702_v34 = vor.u32 %v3700_v12, %v10991_v59  ;;  %v5755_v25 = vor.u32 %v5753_v60, %v11000_v31 }
 0x2d3   : > { %v3340_v61 = vadd.f32 %v3339_v21, %v3338_v40  ;;  %3291 = vst.msk [vmem:[#allocation2 + $0x1b8] sm:$0xff] %vm1120_vm2, %v8054_v4  ;;  %v3221_v55 = vpop.f32.mrb[23].mxu1  ;;  %v4111_v26 = vpop.permute.xlu1 %4110  ;;  %v3345_v62 = vsel %vm1120_vm2, %v8054_v4, 0.0  ;;  %v5757_v48 = vshll.u32 %v10980_v23, 16  ;;  %v11030_v17 = vrot.slane %v5761_v15, 7 }
 0x2d4   : > { %3289 = vst.msk [vmem:[#allocation2 + $0x1a8] sm:$0xff] %vm1120_vm2, %v3221_v55  ;;  %v3341_v16 = vsel %vm1120_vm2, %v3221_v55, 0.0  ;;  %v3939_v20 = vpop.permute.xlu0 %3938  ;;  %v6120_v52 = vsel %vm2998_vm6, %v6118_v29, %v6119_v51  ;;  %v10998_v36 = vsel %vm1185_vm3, %v4255_v18, %v4111_v26  ;;  %v11036_v4 = vld [vmem:[%s8686_s26 + $0xb0] ss:$0 sps:$4 sm:$0x11]  }
 0x2d5   : > { %v3342_v42 = vadd.f32 %v3341_v16, %v3340_v61  ;;  %8112 = vmatmul.mubr.msk.bf16.gmra.mrb[44].mxu1 %vm1419_vm5, %v6120_v52  ;;  %5367 = vrot.lane.b32.xlu1 %v5290_v38, %s8632_s27  ;;  %v4432_v45 = vshll.u32 %v10998_v36, 16  ;;  %v4259_v30 = vsel %vm1120_vm2, %v4188_v3, %v3939_v20  ;;  %v4430_v14 = vshrl.u32 %v10998_v36, 16 }
 0x2d6   : > { %5365 = vrot.lane.b32.xlu0 %v5286_v58, %s8632_s27  ;;  %v5764_v58 = vshll.u32 %v10983_v6, 16  ;;  %v5759_v36 = vsel %vm2037_vm0, %v11000_v31, %v5757_v48  ;;  %v5768_v13 = vshll.u32 %v11036_v4, 16  ;;  %v8472_v48 = vld [vmem:[%s8686_s26 + $0xc0] sm:$0xff]  }
 0x2d7   : > { %v3344_v63 = vadd.f32 %v3343_v27, %v3342_v42  ;;  %v3937_v50 = vpop.permute.xlu1 %3936  ;;  %v4434_v61 = vrot.slane %v4432_v45, 1 }
 0x2d8   : > { %v8057_v33 = vpop.f32.mrb[24].mxu1  ;;  %v3749_v57 = vpop.permute.xlu0 %3748  ;;  %v4257_v20 = vsel %vm1120_vm2, %v4186_v8, %v3937_v50 }
 0x2d9   : > { %3294 = vst.msk [vmem:[#allocation2 + $0x1d0] sm:$0xff] %vm1120_vm2, %v8057_v33  ;;  %v3234_v7 = vpop.f32.mrb[25].mxu1  ;;  %v3346_v0 = vadd.f32 %v3345_v62, %v3344_v63  ;;  %5555 = vrot.lane.b32.xlu1 %v10980_v23, %s8633_s28  ;;  %v3351_v29 = vsel %vm1120_vm2, %v8057_v33, 0.0  ;;  %v4191_v51 = vsel %vm1039_vm1, %v8462_v32, %v3749_v57  ;;  %v8471_v33 = vld [vmem:[%s8686_s26 + $0xb4] sm:$0xff]   ;;  %v1727_v57 = vadd.f32 %v1726_v22, %v10450_v24 }
 0x2da   : > { %3292 = vst.msk [vmem:[#allocation2 + $0x1c0] sm:$0xff] %vm1120_vm2, %v3234_v7  ;;  %v3347_v5 = vsel %vm1120_vm2, %v3234_v7, 0.0  ;;  %v8058_v56 = vpop.f32.mrb[26].mxu1  ;;  %5553 = vrot.lane.b32.xlu0 %v7807_v43, %s8633_s28  ;;  %v4435_v60 = vor.u32 %v4434_v61, %v4430_v14 }
 0x2db   : > { %v3348_v44 = vadd.f32 %v3347_v5, %v3346_v0  ;;  %3295 = vst.msk [vmem:[#allocation2 + $0x1d8] sm:$0xff] %vm1120_vm2, %v8058_v56  ;;  %v3237_v53 = vpop.f32.mrb[27].mxu1  ;;  %v3941_v9 = vpop.permute.xlu1 %3940  ;;  %v3353_v52 = vsel %vm1120_vm2, %v8058_v56, 0.0  ;;  %v5766_v5 = vor.u32 %v5764_v58, %v11030_v17  ;;  %v4065_v56 = vshrl.u32 %v8471_v33, 16 }
 0x2dc   : > { %3293 = vst.msk [vmem:[#allocation2 + $0x1c8] sm:$0xff] %vm1120_vm2, %v3237_v53  ;;  %v3349_v54 = vsel %vm1120_vm2, %v3237_v53, 0.0  ;;  %v4115_v19 = vpop.permute.xlu0 %4114  ;;  %v4261_v26 = vsel %vm1120_vm2, %v4191_v51, %v3941_v9  ;;  %v1728_v45 = vrot.slane %v1727_v57, 2  ;;  %v4068_v9 = vshll.u32 %v8471_v33, 16 }
 0x2dd   : > { %v3350_v40 = vadd.f32 %v3349_v54, %v3348_v44  ;;  %v4323_v38 = vsel %vm1185_vm3, %v4259_v30, %v4115_v19  ;;  %5557 = vrot.lane.b32.xlu1 %v7809_v11, %s8633_s28  ;;  %v11077_v53 = vrot.slane %v4065_v56, 7  ;;  %v5770_v19 = vsel %vm2037_vm0, %v11030_v17, %v5768_v13 }
 0x2de   : > { %v4442_v21 = vshll.u32 %v4323_v38, 16  ;;  %3766 = vrot.lane.b32.xlu0 %v3702_v34, %s8632_s27  ;;  %v4440_v23 = vshrl.u32 %v4323_v38, 16  ;;  %v4072_v51 = vshrl.u32 %v8472_v48, 16 }
 0x2df   : > { %v3352_v55 = vadd.f32 %v3351_v29, %v3350_v40  ;;  %v4117_v16 = vpop.permute.xlu1 %4116  ;;  %v1729_v40 = vadd.f32 %v1728_v45, %v1727_v57  ;;  %v4070_v29 = vor.u32 %v4068_v9, %v11077_v53 }
 0x2e0   : > { %v4444_v37 = vrot.slane %v4442_v21, 1  ;;  %v4325_v41 = vsel %vm1185_vm3, %v4261_v26, %v4117_v16  ;;  %v8061_v39 = vpop.f32.mrb[28].mxu1  ;;  %v4113_v42 = vpop.permute.xlu0 %4112  ;;  %v11089_v21 = vld [vmem:[%s8686_s26 + $0xc4] sm:$0xf]  ;;  %v8565_v26 = vld [vmem:[%s8686_s26 + $0x7c] sm:$0xf] }
 0x2e1   : > { %v4446_v43 = vshll.u32 %v4325_v41, 16  ;;  %3298 = vst.msk [vmem:[#allocation2 + $0x1f0] sm:$0xff] %vm1120_vm2, %v8061_v39  ;;  %v4321_v46 = vsel %vm1185_vm3, %v4257_v20, %v4113_v42  ;;  %v3250_v6 = vpop.f32.mrb[29].mxu1  ;;  %v3354_v49 = vadd.f32 %v3353_v52, %v3352_v55  ;;  %5841 = vrot.lane.b32.xlu1 %v5755_v25, %s8634_s5  ;;  %v3359_v31 = vsel %vm1120_vm2, %v8061_v39, 0.0  ;;  %v11100_v42 = vld [vmem:[%s8686_s26 + $0xd0] sm:$0xf] }
 0x2e2   : > { %v4436_v28 = vshll.u32 %v4321_v46, 16  ;;  %3296 = vst.msk [vmem:[#allocation2 + $0x1e0] sm:$0xff] %vm1120_vm2, %v3250_v6  ;;  %v3355_v27 = vsel %vm1120_vm2, %v3250_v6, 0.0  ;;  %v8062_v12 = vpop.f32.mrb[30].mxu1  ;;  %5559 = vrot.lane.b32.xlu0 %v11036_v4, %s8633_s28  ;;  %v4445_v18 = vor.u32 %v4444_v37, %v4440_v23  ;;  %v7669_v4 = vld [vmem:[%s8686_s26 + $0xc0] sm:$0xf] }
 0x2e3   : > { %v4448_v63 = vrot.slane %v4446_v43, 1  ;;  %v3356_v50 = vadd.f32 %v3355_v27, %v3354_v49  ;;  %3299 = vst.msk [vmem:[#allocation2 + $0x1f8] sm:$0xff] %vm1120_vm2, %v8062_v12  ;;  %v3253_v11 = vpop.f32.mrb[31].mxu1  ;;  %v11054_v62 = vpop.permute.xlu1 %5347  ;;  %v3361_v3 = vsel %vm1120_vm2, %v8062_v12, 0.0  ;;  %v1730_v61 = vrot.slane %v1729_v40, 1 }
 0x2e4   : > { %v4438_v7 = vrot.slane %v4436_v28, 1  ;;  %3297 = vst.msk [vmem:[#allocation2 + $0x1e8] sm:$0xff] %vm1120_vm2, %v3253_v11  ;;  %v3357_v0 = vsel %vm1120_vm2, %v3253_v11, 0.0  ;;  %v5346_v1 = vpop.permute.xlu0 %5345  ;;  %v7781_v20 = vcombine.low %v7669_v4, %v11089_v21  ;;  %v4074_v52 = vrot.slane %v4072_v51, 7  ;;  %v7670_v23 = vld [vmem:[%s8686_s26 + $0xcc] sm:$0xf] }
 0x2e5   : > { %v3358_v15 = vadd.f32 %v3357_v0, %v3356_v50  ;;  %3770 = vrot.lane.b32.xlu1 %v3709_v2, %s8632_s27  ;;  %v4449_v32 = vsel %vm1250_vm4, %v4445_v18, %v4448_v63  ;;  %v7631_v2 = vld [vmem:[%s8686_s26 + $0x78] sm:$0xe]  ;;  %v4075_v37 = vshll.u32 %v8472_v48, 16  ;;  %v8474_v46 = vld [vmem:[%s8686_s26 + $0xc8] ss:$0 sps:$4 sm:$0x11]   ;;  %v1731_v6 = vadd.f32 %v1730_v61, %v1729_v40 }
 0x2e6   : > { %5843 = vrot.lane.b32.xlu0 %v5759_v36, %s8634_s5  ;;  %v4439_v24 = vsel %vm1250_vm4, %v4435_v60, %v4438_v7  ;;  %v7751_v16 = vcombine.low %v7631_v2, %v8565_v26  ;;  %v7634_v28 = vld [vmem:[%s8686_s26 + $0x84] sm:$0xe]  ;;  %v11108_v27 = vld [vmem:[%s8686_s26 + $0xc8] ss:$0 sps:$4 sm:$0x11]   ;;  %v5292_v12 = vshrl.u32 %v7781_v20, 16  ;;  %v7782_v50 = vcombine.low %v7670_v23, %v11100_v42 }
 0x2e7   : > { %v3360_v34 = vadd.f32 %v3359_v31, %v3358_v15  ;;  %8081 = vmatprep.mubr.msk.bf16.mxu0 %vm1419_vm5, %v4439_v24  ;;  %v11069_v22 = vpop.permute.xlu1 %5351  ;;  %v4077_v63 = vor.u32 %v4075_v37, %v4074_v52  ;;  %v8566_v36 = vld [vmem:[%s8686_s26 + $0x80] ss:$0 sps:$4 sm:$0x11]   ;;  %v8567_v7 = vld [vmem:[%s8686_s26 + $0x88] sm:$0xf]  ;;  %v5295_v56 = vshll.u32 %v7781_v20, 16 }
 0x2e8   : > { %8082 = vmatmul.mubr.msk.bf16.gmra.mrb[48].mxu0 %vm1419_vm5, %v4449_v32  ;;  %v11074_v47 = vpop.permute.xlu0 %5349  ;;  %v5899_v14 = vsel %vm1039_vm1, %v7751_v16, %v5346_v1  ;;  %v7753_v0 = vcombine.low %v7634_v28, %v8567_v7  ;;  %v5294_v32 = vrot.slane %v5292_v12, 7  ;;  %v11129_v24 = vld [vmem:[%s8686_s26 + $0xd4] ss:$0 sps:$4 sm:$0x11]   ;;  %v5306_v40 = vshll.u32 %v7782_v50, 16 }
 0x2e9   : > { %v3362_v44 = vadd.f32 %v3361_v3, %v3360_v34  ;;  %5845 = vrot.lane.b32.xlu1 %v5766_v5, %s8634_s5  ;;  %v5299_v5 = vshll.u32 %v11108_v27, 16  ;;  %v5303_v34 = vshrl.u32 %v7782_v50, 16  ;;  %v7714_v4 = vld [vmem:[%s8686_s26 + $0xb8] sm:$0xf]  ;;  %v7713_v37 = vld [vmem:[%s8686_s26 + $0xb4] sm:$0xe] }
 0x2ea   : > { %3958 = vrot.lane.b32.xlu0 %v8471_v33, %s8633_s28  ;;  %v5901_v33 = vsel %vm1039_vm1, %v8566_v36, %v11054_v62 }
 0x2eb   : > { %v3363_v30 = vrot.slane %v3362_v44, 4  ;;  %v5540_v54 = vpop.permute.xlu1 %5539  ;;  %v5301_v9 = vsel %vm2037_vm0, %v5294_v32, %v5299_v5 }
 0x2ec   : > { %v5538_v25 = vpop.permute.xlu0 %5537  ;;  %v5972_v1 = vsel %vm1120_vm2, %v5901_v33, %v5540_v54  ;;  %v7733_v54 = vld [vmem:[%s8686_s26 + $0xb4] sm:$0xf] }
 0x2ed   : > { %v3364_v38 = vadd.f32 %v3363_v30, %v3362_v44  ;;  %3768 = vrot.lane.b32.xlu1 %v10991_v59, %s8632_s27  ;;  %v8473_v59 = vld [vmem:[%s8686_s26 + $0xbc] ss:$0 sps:$4 sm:$0x11]   ;;  %v5970_v18 = vsel %vm1120_vm2, %v5899_v14, %v5538_v25  ;;  %v5904_v44 = vsel %vm1039_vm1, %v7753_v0, %v11074_v47  ;;  %v5297_v30 = vor.u32 %v5295_v56, %v5294_v32  ;;  %v7734_v47 = vld [vmem:[%s8686_s26 + $0xc0] sm:$0xf] }
 0x2ee   : > { %5847 = vrot.lane.b32.xlu0 %v5770_v19, %s8634_s5  ;;  %v5305_v25 = vrot.slane %v5303_v34, 7  ;;  %v7829_v61 = vcombine.low %v7733_v54, %v7714_v4  ;;  %v7811_v14 = vcombine.low %v7713_v37, %v7714_v4  ;;  %v8570_v32 = vld [vmem:[%s8686_s26 + $0x9c] sm:$0xff]   ;;  %v8475_v56 = vld [vmem:[%s8686_s26 + $0x98] ss:$0 sps:$4 sm:$0x11]  }
 0x2ef   : > { %v3365_v17 = vrot.slane %v3364_v38, 2  ;;  %v5542_v58 = vpop.permute.xlu1 %5541 }
 0x2f0   : > { %v11092_v8 = vpop.permute.xlu0 %3750  ;;  %v5974_v19 = vsel %vm1120_vm2, %v5904_v44, %v5542_v58  ;;  %v5308_v20 = vor.u32 %v5306_v40, %v5305_v25  ;;  %v5772_v23 = vshrl.u32 %v7829_v61, 16  ;;  %v5775_v33 = vshll.u32 %v7829_v61, 16 }
 0x2f1   : > { %v3366_v55 = vadd.f32 %v3365_v17, %v3364_v38  ;;  %4134 = vrot.lane.b32.xlu1 %v4070_v29, %s8634_s5  ;;  %v8568_v38 = vld [vmem:[%s8686_s26 + $0x8c] ss:$0 sps:$4 sm:$0x11]  }
 0x2f2   : > { %3962 = vrot.lane.b32.xlu0 %v8472_v48, %s8633_s28  ;;  %v5310_v48 = vshll.u32 %v11129_v24, 16  ;;  %v5906_v2 = vsel %vm1039_vm1, %v8568_v38, %v11069_v22  ;;  %v5774_v36 = vrot.slane %v5772_v23, 7 }
 0x2f3   : > { %v3367_v41 = vrot.slane %v3366_v55, 1  ;;  %v5826_v39 = vpop.permute.xlu1 %5825 }
 0x2f4   : > { %v5544_v43 = vpop.permute.xlu0 %5543  ;;  %v6034_v57 = vsel %vm1185_vm3, %v5970_v18, %v5826_v39  ;;  %v7716_v18 = vld [vmem:[%s8686_s26 + $0xc0] sm:$0xe]  ;;  %v5777_v44 = vor.u32 %v5775_v33, %v5774_v36  ;;  %v7637_v33 = vld [vmem:[%s8686_s26 + $0x90] sm:$0xe] }
 0x2f5   : > { %v3368_v49 = vadd.f32 %v3367_v41, %v3366_v55  ;;  %3960 = vrot.lane.b32.xlu1 %v8473_v59, %s8633_s28  ;;  %v6121_v31 = vrot.slane %v6034_v57, 1  ;;  %v5976_v17 = vsel %vm1120_vm2, %v5906_v2, %v5544_v43  ;;  %v5312_v59 = vsel %vm2037_vm0, %v5305_v25, %v5310_v48  ;;  %v8481_v43 = vld [vmem:[%s8686_s26 + $0xbc] ss:$0 sps:$4 sm:$0x11]  }
 0x2f6   : > { %3772 = vrot.lane.b32.xlu0 %v11006_v10, %s8632_s27  ;;  %v8484_v57 = vld [vmem:[%s8686_s26 + $0xc8] ss:$0 sps:$4 sm:$0x11]   ;;  %v5779_v7 = vshll.u32 %v8481_v43, 16 }
 0x2f7   : > { %v11114_v11 = vadd.f32 %v3368_v49, %v1731_v6  ;;  %v11120_v60 = vpop.permute.xlu1 %3754  ;;  %v8569_v6 = vld [vmem:[%s8686_s26 + $0x90] sm:$0xff]   ;;  %v5790_v54 = vshll.u32 %v8484_v57, 16 }
 0x2f8   : > { %v5828_v15 = vpop.permute.xlu0 %5827  ;;  %v4193_v49 = vsel %vm1039_vm1, %v8569_v6, %v11092_v8  ;;  %v4198_v5 = vsel %vm1039_vm1, %v8570_v32, %v11120_v60  ;;  %v5781_v60 = vsel %vm2037_vm0, %v5774_v36, %v5779_v7 }
 0x2f9   : > { %v6036_v10 = vsel %vm1185_vm3, %v5972_v1, %v5828_v15  ;;  %3964 = vrot.lane.b32.xlu1 %v8474_v46, %s8633_s28  ;;  %v8480_v1 = vld [vmem:[%s8686_s26 + $0xa4] ss:$0 sps:$4 sm:$0x11]  }
 0x2fa   : > { %v6122_v62 = vrot.slane %v6036_v10, 1  ;;  %4138 = vrot.lane.b32.xlu0 %v4077_v63, %s8634_s5 }
 0x2fb   : > { %v5830_v13 = vpop.permute.xlu1 %5829 }
 0x2fc   : > { %v3943_v3 = vpop.permute.xlu0 %3942  ;;  %v6123_v45 = vsel %vm2998_vm6, %v6121_v31, %v6122_v62  ;;  %v6038_v29 = vsel %vm1185_vm3, %v5974_v19, %v5830_v13 }
 0x2fd   : > { %8115 = vmatprep.mubr.msk.bf16.mxu1 %vm1419_vm5, %v6123_v45  ;;  %4140 = vrot.lane.b32.xlu1 %v4074_v52, %s8634_s5  ;;  %v6124_v16 = vrot.slane %v6038_v29, 1  ;;  %v4263_v28 = vsel %vm1120_vm2, %v4193_v49, %v3943_v3 }
 0x2fe   : > { %4136 = vrot.lane.b32.xlu0 %v11077_v53, %s8634_s5  ;;  %v7717_v53 = vld [vmem:[%s8686_s26 + $0xc4] sm:$0xf] }
 0x2ff   : > { %v11147_v51 = vpop.permute.xlu1 %3752  ;;  %v7830_v26 = vcombine.low %v7734_v47, %v7717_v53  ;;  %v7813_v10 = vcombine.low %v7716_v18, %v7717_v53 }
 0x300   : > { %v5832_v58 = vpop.permute.xlu0 %5831  ;;  %v4196_v38 = vsel %vm1039_vm1, %v8475_v56, %v11147_v51 }
 0x301   : > { %v6040_v55 = vsel %vm1185_vm3, %v5976_v17, %v5832_v58  ;;  %5371 = vrot.lane.b32.xlu1 %v5301_v9, %s8632_s27  ;;  %v5783_v46 = vshrl.u32 %v7830_v26, 16  ;;  %v5786_v0 = vshll.u32 %v7830_v26, 16 }
 0x302   : > { %v6125_v22 = vrot.slane %v6040_v55, 1  ;;  %5369 = vrot.lane.b32.xlu0 %v5297_v30, %s8632_s27 }
 0x303   : > { %v4119_v52 = vpop.permute.xlu1 %4118  ;;  %v5785_v8 = vrot.slane %v5783_v46, 7 }
 0x304   : > { %v3947_v41 = vpop.permute.xlu0 %3946  ;;  %v6126_v39 = vsel %vm2998_vm6, %v6124_v16, %v6125_v22  ;;  %v11168_v63 = vsel %vm1185_vm3, %v4263_v28, %v4119_v52 }
 0x305   : > { %8116 = vmatmul.mubr.msk.bf16.gmra.mrb[48].mxu1 %vm1419_vm5, %v6126_v39  ;;  %5375 = vrot.lane.b32.xlu1 %v5312_v59, %s8632_s27  ;;  %v4452_v31 = vshll.u32 %v11168_v63, 16  ;;  %v4267_v13 = vsel %vm1120_vm2, %v4198_v5, %v3947_v41  ;;  %v5788_v19 = vor.u32 %v5786_v0, %v5785_v8  ;;  %v4450_v51 = vshrl.u32 %v11168_v63, 16  ;;  %v8571_v0 = vld [vmem:[%s8686_s26 + $0x94] sm:$0xf] }
 0x306   : > { %5373 = vrot.lane.b32.xlu0 %v5308_v20, %s8632_s27  ;;  %v5792_v41 = vsel %vm2037_vm0, %v5785_v8, %v5790_v54 }
 0x307   : > { %v3945_v12 = vpop.permute.xlu1 %3944  ;;  %v4454_v2 = vrot.slane %v4452_v31, 1 }
 0x308   : > { %v3757_v50 = vpop.permute.xlu0 %3756  ;;  %v4265_v58 = vsel %vm1120_vm2, %v4196_v38, %v3945_v12 }
 0x309   : > { %5563 = vrot.lane.b32.xlu1 %v8481_v43, %s8633_s28  ;;  %v4201_v25 = vsel %vm1039_vm1, %v8480_v1, %v3757_v50  ;;  %v4455_v6 = vor.u32 %v4454_v2, %v4450_v51  ;;  %v7755_v1 = vcombine.low %v7637_v33, %v8571_v0 }
 0x30a   : > { %v8067_v15 = vpop.f32.mrb[32].mxu0  ;;  %5561 = vrot.lane.b32.xlu0 %v7811_v14, %s8633_s28 }
 0x30b   : > { %4733 = vst.msk [vmem:[#allocation2 + $0x210] sm:$0xff] %vm1120_vm2, %v8067_v15  ;;  %v4601_v62 = vpop.f32.mrb[33].mxu0  ;;  %v3949_v34 = vpop.permute.xlu1 %3948  ;;  %v4766_v61 = vsel %vm1120_vm2, %v8067_v15, 0.0 }
 0x30c   : > { %4731 = vst.msk [vmem:[#allocation2 + $0x200] sm:$0xff] %vm1120_vm2, %v4601_v62  ;;  %v8068_v3 = vpop.f32.mrb[34].mxu0  ;;  %v4123_v45 = vpop.permute.xlu0 %4122  ;;  %v4763_v48 = vsel %vm1120_vm2, %v4601_v62, 0.0  ;;  %v4269_v29 = vsel %vm1120_vm2, %v4201_v25, %v3949_v34 }
 0x30d   : > { %4734 = vst.msk [vmem:[#allocation2 + $0x218] sm:$0xff] %vm1120_vm2, %v8068_v3  ;;  %v4331_v9 = vsel %vm1185_vm3, %v4267_v13, %v4123_v45  ;;  %v4604_v30 = vpop.f32.mrb[35].mxu0  ;;  %5567 = vrot.lane.b32.xlu1 %v8484_v57, %s8633_s28  ;;  %v4768_v52 = vsel %vm1120_vm2, %v8068_v3, 0.0  ;;  %v7640_v3 = vld [vmem:[%s8686_s26 + $0x9c] sm:$0xe] }
 0x30e   : > { %v4462_v40 = vshll.u32 %v4331_v9, 16  ;;  %4732 = vst.msk [vmem:[#allocation2 + $0x208] sm:$0xff] %vm1120_vm2, %v4604_v30  ;;  %v4764_v47 = vsel %vm1120_vm2, %v4604_v30, 0.0  ;;  %5565 = vrot.lane.b32.xlu0 %v7813_v10, %s8633_s28  ;;  %v4460_v16 = vshrl.u32 %v4331_v9, 16 }
 0x30f   : > { %v4765_v4 = vadd.f32 %v4764_v47, %v4763_v48  ;;  %v4125_v17 = vpop.permute.xlu1 %4124  ;;  %v8572_v9 = vld [vmem:[%s8686_s26 + $0x98] ss:$0 sps:$4 sm:$0x11]   ;;  %v8573_v47 = vld [vmem:[%s8686_s26 + $0xa0] sm:$0xf] }
 0x310   : > { %v4464_v53 = vrot.slane %v4462_v40, 1  ;;  %v4333_v55 = vsel %vm1185_vm3, %v4269_v29, %v4125_v17  ;;  %v4121_v26 = vpop.permute.xlu0 %4120  ;;  %v7757_v38 = vcombine.low %v7640_v3, %v8573_v47 }
 0x311   : > { %v4767_v22 = vadd.f32 %v4766_v61, %v4765_v4  ;;  %v4466_v59 = vshll.u32 %v4333_v55, 16  ;;  %v4329_v20 = vsel %vm1185_vm3, %v4265_v58, %v4121_v26  ;;  %5851 = vrot.lane.b32.xlu1 %v5781_v60, %s8634_s5 }
 0x312   : > { %v4456_v37 = vshll.u32 %v4329_v20, 16  ;;  %5849 = vrot.lane.b32.xlu0 %v5777_v44, %s8634_s5  ;;  %v4465_v39 = vor.u32 %v4464_v53, %v4460_v16  ;;  %v8574_v16 = vld [vmem:[%s8686_s26 + $0xa4] ss:$0 sps:$4 sm:$0x11]  }
 0x313   : > { %v4468_v23 = vrot.slane %v4466_v59, 1  ;;  %v5356_v43 = vpop.permute.xlu1 %5355  ;;  %v11203_v46 = vadd.f32 %v4768_v52, %v4767_v22 }
 0x314   : > { %v4458_v49 = vrot.slane %v4456_v37, 1  ;;  %v5354_v14 = vpop.permute.xlu0 %5353  ;;  %v5911_v30 = vsel %vm1039_vm1, %v8572_v9, %v5356_v43 }
 0x315   : > { %5855 = vrot.lane.b32.xlu1 %v5792_v41, %s8634_s5  ;;  %v4469_v28 = vsel %vm1250_vm4, %v4465_v39, %v4468_v23  ;;  %v5909_v34 = vsel %vm1039_vm1, %v7755_v1, %v5354_v14 }
 0x316   : > { %5853 = vrot.lane.b32.xlu0 %v5788_v19, %s8634_s5  ;;  %v4459_v12 = vsel %vm1250_vm4, %v4455_v6, %v4458_v49 }
 0x317   : > { %8085 = vmatprep.mubr.msk.bf16.mxu0 %vm1419_vm5, %v4459_v12  ;;  %v5360_v18 = vpop.permute.xlu1 %5359 }
 0x318   : > { %8086 = vmatmul.mubr.msk.bf16.gmra.mrb[52].mxu0 %vm1419_vm5, %v4469_v28  ;;  %v5358_v63 = vpop.permute.xlu0 %5357  ;;  %v5916_v22 = vsel %vm1039_vm1, %v8574_v16, %v5360_v18 }
 0x319   : > { %v5914_v55 = vsel %vm1039_vm1, %v7757_v38, %v5358_v63 }
 0x31b   : > { %v5548_v50 = vpop.permute.xlu1 %5547 }
 0x31c   : > { %v5546_v36 = vpop.permute.xlu0 %5545  ;;  %v5980_v25 = vsel %vm1120_vm2, %v5911_v30, %v5548_v50 }
 0x31d   : > { %v5978_v45 = vsel %vm1120_vm2, %v5909_v34, %v5546_v36  ;;  %v8575_v36 = vld [vmem:[%s8686_s26 + $0xa8] sm:$0xff]  }
 0x31f   : > { %v5550_v57 = vpop.permute.xlu1 %5549 }
 0x320   : > { %v8101_v7 = vpop.f32.mrb[32].mxu1  ;;  %v11212_v8 = vpop.permute.xlu0 %3758  ;;  %v5982_v26 = vsel %vm1120_vm2, %v5914_v55, %v5550_v57 }
 0x321   : > { %6368 = vst.msk [vmem:[#allocation2 + $0x310] sm:$0xff] %vm1120_vm2, %v8101_v7  ;;  %v6236_v15 = vpop.f32.mrb[33].mxu1  ;;  %v6401_v44 = vsel %vm1120_vm2, %v8101_v7, 0.0  ;;  %v4203_v33 = vsel %vm1039_vm1, %v8575_v36, %v11212_v8 }
 0x322   : > { %6366 = vst.msk [vmem:[#allocation2 + $0x300] sm:$0xff] %vm1120_vm2, %v6236_v15  ;;  %v8102_v10 = vpop.f32.mrb[34].mxu1  ;;  %v6398_v56 = vsel %vm1120_vm2, %v6236_v15, 0.0 }
 0x323   : > { %6369 = vst.msk [vmem:[#allocation2 + $0x318] sm:$0xff] %vm1120_vm2, %v8102_v10  ;;  %v6239_v32 = vpop.f32.mrb[35].mxu1  ;;  %v5834_v5 = vpop.permute.xlu1 %5833  ;;  %v6403_v48 = vsel %vm1120_vm2, %v8102_v10, 0.0 }
 0x324   : > { %6367 = vst.msk [vmem:[#allocation2 + $0x308] sm:$0xff] %vm1120_vm2, %v6239_v32  ;;  %v6399_v31 = vsel %vm1120_vm2, %v6239_v32, 0.0  ;;  %v5552_v62 = vpop.permute.xlu0 %5551  ;;  %v6042_v54 = vsel %vm1185_vm3, %v5978_v45, %v5834_v5  ;;  %v8488_v5 = vld [vmem:[%s8686_s26 + $0xbc] ss:$0 sps:$4 sm:$0x11]  }
 0x325   : > { %v6400_v13 = vadd.f32 %v6399_v31, %v6398_v56  ;;  %v6127_v4 = vrot.slane %v6042_v54, 1  ;;  %v5984_v51 = vsel %vm1120_vm2, %v5916_v22, %v5552_v62  ;;  %v8576_v56 = vld [vmem:[%s8686_s26 + $0xb4] sm:$0xff]   ;;  %v8487_v62 = vld [vmem:[%s8686_s26 + $0xb0] ss:$0 sps:$4 sm:$0x11]  }
 0x327   : > { %v6402_v60 = vadd.f32 %v6401_v44, %v6400_v13  ;;  %v3763_v19 = vpop.permute.xlu1 %3762 }
 0x328   : > { %v5836_v40 = vpop.permute.xlu0 %5835  ;;  %v4208_v31 = vsel %vm1039_vm1, %v8576_v56, %v3763_v19  ;;  %v8578_v56 = vld [vmem:[%s8686_s26 + $0xb0] ss:$0 sps:$4 sm:$0x11]  }
 0x329   : > { %v6044_v2 = vsel %vm1185_vm3, %v5980_v25, %v5836_v40  ;;  %v11232_v29 = vadd.f32 %v6403_v48, %v6402_v60 }
 0x32a   : > { %v6128_v17 = vrot.slane %v6044_v2, 1 }
 0x32b   : > { %v5838_v58 = vpop.permute.xlu1 %5837 }
 0x32c   : > { %v3951_v61 = vpop.permute.xlu0 %3950  ;;  %v6129_v53 = vsel %vm2998_vm6, %v6127_v4, %v6128_v17  ;;  %v6046_v59 = vsel %vm1185_vm3, %v5982_v26, %v5838_v58 }
 0x32d   : > { %8119 = vmatprep.mubr.msk.bf16.mxu1 %vm1419_vm5, %v6129_v53  ;;  %v6130_v41 = vrot.slane %v6046_v59, 1 }
 0x32f   : > { %v3761_v20 = vpop.permute.xlu1 %3760 }
 0x330   : > { %v5840_v52 = vpop.permute.xlu0 %5839  ;;  %v4206_v60 = vsel %vm1039_vm1, %v8487_v62, %v3761_v20 }
 0x331   : > { %v6048_v37 = vsel %vm1185_vm3, %v5984_v51, %v5840_v52 }
 0x332   : > { %v6131_v39 = vrot.slane %v6048_v37, 1  ;;  %v8071_v23 = vpop.f32.mrb[36].mxu0 }
 0x333   : > { %4737 = vst.msk [vmem:[#allocation2 + $0x230] sm:$0xff] %vm1120_vm2, %v8071_v23  ;;  %v4617_v43 = vpop.f32.mrb[37].mxu0  ;;  %v4127_v6 = vpop.permute.xlu1 %4126  ;;  %v4774_v0 = vsel %vm1120_vm2, %v8071_v23, 0.0 }
 0x334   : > { %4735 = vst.msk [vmem:[#allocation2 + $0x220] sm:$0xff] %vm1120_vm2, %v4617_v43  ;;  %v4770_v49 = vsel %vm1120_vm2, %v4617_v43, 0.0  ;;  %v8072_v14 = vpop.f32.mrb[38].mxu0  ;;  %v3955_v28 = vpop.permute.xlu0 %3954  ;;  %v6132_v12 = vsel %vm2998_vm6, %v6130_v41, %v6131_v39 }
 0x335   : > { %v4771_v18 = vadd.f32 %v4770_v49, %v11203_v46  ;;  %4738 = vst.msk [vmem:[#allocation2 + $0x238] sm:$0xff] %vm1120_vm2, %v8072_v14  ;;  %v4620_v63 = vpop.f32.mrb[39].mxu0  ;;  %8120 = vmatmul.mubr.msk.bf16.gmra.mrb[52].mxu1 %vm1419_vm5, %v6132_v12  ;;  %v4271_v46 = vsel %vm1120_vm2, %v4203_v33, %v3951_v61  ;;  %v4776_v32 = vsel %vm1120_vm2, %v8072_v14, 0.0  ;;  %v4275_v3 = vsel %vm1120_vm2, %v4208_v31, %v3955_v28 }
 0x336   : > { %4736 = vst.msk [vmem:[#allocation2 + $0x228] sm:$0xff] %vm1120_vm2, %v4620_v63  ;;  %v4772_v50 = vsel %vm1120_vm2, %v4620_v63, 0.0  ;;  %v4335_v15 = vsel %vm1185_vm3, %v4271_v46, %v4127_v6  ;;  %v7643_v63 = vld [vmem:[%s8686_s26 + $0xa8] sm:$0xe] }
 0x337   : > { %v4773_v57 = vadd.f32 %v4772_v50, %v4771_v18  ;;  %v3953_v7 = vpop.permute.xlu1 %3952  ;;  %v4472_v8 = vshll.u32 %v4335_v15, 16  ;;  %v4470_v58 = vshrl.u32 %v4335_v15, 16 }
 0x338   : > { %v3765_v1 = vpop.permute.xlu0 %3764  ;;  %v4273_v19 = vsel %vm1120_vm2, %v4206_v60, %v3953_v7  ;;  %v8577_v7 = vld [vmem:[%s8686_s26 + $0xac] sm:$0xf] }
 0x339   : > { %v4775_v10 = vadd.f32 %v4774_v0, %v4773_v57  ;;  %v4211_v9 = vsel %vm1039_vm1, %v8488_v5, %v3765_v1  ;;  %v4474_v48 = vrot.slane %v4472_v8, 1  ;;  %v7759_v46 = vcombine.low %v7643_v63, %v8577_v7 }
 0x33b   : > { %v3957_v34 = vpop.permute.xlu1 %3956  ;;  %v11263_v13 = vadd.f32 %v4776_v32, %v4775_v10  ;;  %v4475_v16 = vor.u32 %v4474_v48, %v4470_v58  ;;  %v7646_v32 = vld [vmem:[%s8686_s26 + $0xb4] sm:$0xe] }
 0x33c   : > { %v4131_v45 = vpop.permute.xlu0 %4130  ;;  %v4277_v54 = vsel %vm1120_vm2, %v4211_v9, %v3957_v34 }
 0x33d   : > { %v4339_v44 = vsel %vm1185_vm3, %v4275_v3, %v4131_v45  ;;  %v8579_v45 = vld [vmem:[%s8686_s26 + $0xb8] sm:$0xf] }
 0x33e   : > { %v4482_v30 = vshll.u32 %v4339_v44, 16  ;;  %v4480_v2 = vshrl.u32 %v4339_v44, 16  ;;  %v7761_v44 = vcombine.low %v7646_v32, %v8579_v45 }
 0x33f   : > { %v4133_v25 = vpop.permute.xlu1 %4132 }
 0x340   : > { %v4484_v40 = vrot.slane %v4482_v30, 1  ;;  %v4341_v47 = vsel %vm1185_vm3, %v4277_v54, %v4133_v25  ;;  %v4129_v38 = vpop.permute.xlu0 %4128 }
 0x341   : > { %v4486_v4 = vshll.u32 %v4341_v47, 16  ;;  %v4337_v17 = vsel %vm1185_vm3, %v4273_v19, %v4129_v38 }
 0x342   : > { %v4476_v61 = vshll.u32 %v4337_v17, 16  ;;  %v4485_v53 = vor.u32 %v4484_v40, %v4480_v2 }
 0x343   : > { %v4488_v55 = vrot.slane %v4486_v4, 1  ;;  %v5364_v26 = vpop.permute.xlu1 %5363 }
 0x344   : > { %v4478_v22 = vrot.slane %v4476_v61, 1  ;;  %v5362_v59 = vpop.permute.xlu0 %5361  ;;  %v5921_v31 = vsel %vm1039_vm1, %v8578_v56, %v5364_v26  ;;  %v8580_v61 = vld [vmem:[%s8686_s26 + $0xbc] ss:$0 sps:$4 sm:$0x11]  }
 0x345   : > { %v4489_v20 = vsel %vm1250_vm4, %v4485_v53, %v4488_v55  ;;  %v5919_v10 = vsel %vm1039_vm1, %v7759_v46, %v5362_v59 }
 0x346   : > { %v4479_v51 = vsel %vm1250_vm4, %v4475_v16, %v4478_v22 }
 0x347   : > { %8089 = vmatprep.mubr.msk.bf16.mxu0 %vm1419_vm5, %v4479_v51  ;;  %v5368_v52 = vpop.permute.xlu1 %5367 }
 0x348   : > { %8090 = vmatmul.mubr.msk.bf16.gmra.mrb[56].mxu0 %vm1419_vm5, %v4489_v20  ;;  %v8105_v37 = vpop.f32.mrb[36].mxu1  ;;  %v5366_v41 = vpop.permute.xlu0 %5365  ;;  %v5926_v53 = vsel %vm1039_vm1, %v8580_v61, %v5368_v52 }
 0x349   : > { %6372 = vst.msk [vmem:[#allocation2 + $0x330] sm:$0xff] %vm1120_vm2, %v8105_v37  ;;  %v6252_v39 = vpop.f32.mrb[37].mxu1  ;;  %v6409_v50 = vsel %vm1120_vm2, %v8105_v37, 0.0  ;;  %v5924_v47 = vsel %vm1039_vm1, %v7761_v44, %v5366_v41 }
 0x34a   : > { %6370 = vst.msk [vmem:[#allocation2 + $0x320] sm:$0xff] %vm1120_vm2, %v6252_v39  ;;  %v6405_v23 = vsel %vm1120_vm2, %v6252_v39, 0.0  ;;  %v8106_v43 = vpop.f32.mrb[38].mxu1 }
 0x34b   : > { %v6406_v6 = vadd.f32 %v6405_v23, %v11232_v29  ;;  %6373 = vst.msk [vmem:[#allocation2 + $0x338] sm:$0xff] %vm1120_vm2, %v8106_v43  ;;  %v6255_v49 = vpop.f32.mrb[39].mxu1  ;;  %v5556_v14 = vpop.permute.xlu1 %5555  ;;  %v6411_v57 = vsel %vm1120_vm2, %v8106_v43, 0.0 }
 0x34c   : > { %6371 = vst.msk [vmem:[#allocation2 + $0x328] sm:$0xff] %vm1120_vm2, %v6255_v49  ;;  %v6407_v28 = vsel %vm1120_vm2, %v6255_v49, 0.0  ;;  %v5554_v12 = vpop.permute.xlu0 %5553  ;;  %v5988_v8 = vsel %vm1120_vm2, %v5921_v31, %v5556_v14  ;;  %v8581_v14 = vld [vmem:[%s8686_s26 + $0xc0] sm:$0xff]  }
 0x34d   : > { %v6408_v18 = vadd.f32 %v6407_v28, %v6406_v6  ;;  %v5986_v5 = vsel %vm1120_vm2, %v5919_v10, %v5554_v12 }
 0x34f   : > { %v6410_v36 = vadd.f32 %v6409_v50, %v6408_v18  ;;  %v5558_v33 = vpop.permute.xlu1 %5557 }
 0x350   : > { %v3767_v29 = vpop.permute.xlu0 %3766  ;;  %v5990_v4 = vsel %vm1120_vm2, %v5924_v47, %v5558_v33 }
 0x351   : > { %v11288_v0 = vadd.f32 %v6411_v57, %v6410_v36  ;;  %v4213_v28 = vsel %vm1039_vm1, %v8581_v14, %v3767_v29  ;;  %v8490_v36 = vld [vmem:[%s8686_s26 + $0xd4] ss:$0 sps:$4 sm:$0x11]   ;;  %v8489_v57 = vld [vmem:[%s8686_s26 + $0xc8] ss:$0 sps:$4 sm:$0x11]  }
 0x353   : > { %v5842_v1 = vpop.permute.xlu1 %5841 }
 0x354   : > { %v5560_v15 = vpop.permute.xlu0 %5559  ;;  %v6050_v62 = vsel %vm1185_vm3, %v5986_v5, %v5842_v1 }
 0x355   : > { %v6133_v30 = vrot.slane %v6050_v62, 1  ;;  %v5992_v22 = vsel %vm1120_vm2, %v5926_v53, %v5560_v15 }
 0x357   : > { %v3771_v34 = vpop.permute.xlu1 %3770 }
 0x358   : > { %v5844_v3 = vpop.permute.xlu0 %5843  ;;  %v4218_v33 = vsel %vm1039_vm1, %v10964_v35, %v3771_v34 }
 0x359   : > { %v6052_v9 = vsel %vm1185_vm3, %v5988_v8, %v5844_v3 }
 0x35a   : > { %v6134_v60 = vrot.slane %v6052_v9, 1 }
 0x35b   : > { %v8075_v54 = vpop.f32.mrb[40].mxu0  ;;  %v5846_v25 = vpop.permute.xlu1 %5845 }
 0x35c   : > { %4741 = vst.msk [vmem:[#allocation2 + $0x250] sm:$0xff] %vm1120_vm2, %v8075_v54  ;;  %v4633_v48 = vpop.f32.mrb[41].mxu0  ;;  %v3959_v19 = vpop.permute.xlu0 %3958  ;;  %v6135_v40 = vsel %vm2998_vm6, %v6133_v30, %v6134_v60  ;;  %v6054_v55 = vsel %vm1185_vm3, %v5990_v4, %v5846_v25 }
 0x35d   : > { %4739 = vst.msk [vmem:[#allocation2 + $0x240] sm:$0xff] %vm1120_vm2, %v4633_v48  ;;  %v4778_v38 = vsel %vm1120_vm2, %v4633_v48, 0.0  ;;  %v8076_v2 = vpop.f32.mrb[42].mxu0  ;;  %8123 = vmatprep.mubr.msk.bf16.mxu1 %vm1419_vm5, %v6135_v40  ;;  %v6136_v37 = vrot.slane %v6054_v55, 1  ;;  %v4279_v18 = vsel %vm1120_vm2, %v4213_v28, %v3959_v19 }
 0x35e   : > { %v4779_v17 = vadd.f32 %v4778_v38, %v11263_v13  ;;  %4742 = vst.msk [vmem:[#allocation2 + $0x258] sm:$0xff] %vm1120_vm2, %v8076_v2  ;;  %v4636_v58 = vpop.f32.mrb[43].mxu0  ;;  %v4782_v13 = vsel %vm1120_vm2, %v8075_v54, 0.0  ;;  %v4784_v39 = vsel %vm1120_vm2, %v8076_v2, 0.0 }
 0x35f   : > { %4740 = vst.msk [vmem:[#allocation2 + $0x248] sm:$0xff] %vm1120_vm2, %v4636_v58  ;;  %v4780_v26 = vsel %vm1120_vm2, %v4636_v58, 0.0  ;;  %v3769_v16 = vpop.permute.xlu1 %3768 }
 0x360   : > { %v4781_v59 = vadd.f32 %v4780_v26, %v4779_v17  ;;  %v5848_v20 = vpop.permute.xlu0 %5847  ;;  %v4216_v5 = vsel %vm1039_vm1, %v8489_v57, %v3769_v16 }
 0x361   : > { %v6056_v51 = vsel %vm1185_vm3, %v5992_v22, %v5848_v20 }
 0x362   : > { %v4783_v41 = vadd.f32 %v4782_v13, %v4781_v59  ;;  %v6137_v52 = vrot.slane %v6056_v51, 1  ;;  %v7649_v59 = vld [vmem:[%s8686_s26 + $0xc0] sm:$0xe] }
 0x363   : > { %v4135_v23 = vpop.permute.xlu1 %4134 }
 0x364   : > { %v3963_v43 = vpop.permute.xlu0 %3962  ;;  %v6138_v6 = vsel %vm2998_vm6, %v6136_v37, %v6137_v52  ;;  %v11318_v49 = vadd.f32 %v4784_v39, %v4783_v41  ;;  %v4343_v50 = vsel %vm1185_vm3, %v4279_v18, %v4135_v23  ;;  %v7763_v41 = vcombine.low %v7649_v59, %v11089_v21  ;;  %v7652_v23 = vld [vmem:[%s8686_s26 + $0xcc] sm:$0xe] }
 0x365   : > { %8124 = vmatmul.mubr.msk.bf16.gmra.mrb[56].mxu1 %vm1419_vm5, %v6138_v6  ;;  %v4492_v46 = vshll.u32 %v4343_v50, 16  ;;  %v4283_v1 = vsel %vm1120_vm2, %v4218_v33, %v3963_v43  ;;  %v4490_v30 = vshrl.u32 %v4343_v50, 16 }
 0x367   : > { %v3961_v12 = vpop.permute.xlu1 %3960  ;;  %v4494_v62 = vrot.slane %v4492_v46, 1 }
 0x368   : > { %v3773_v63 = vpop.permute.xlu0 %3772  ;;  %v4281_v8 = vsel %vm1120_vm2, %v4216_v5, %v3961_v12  ;;  %v7765_v12 = vcombine.low %v7652_v23, %v11100_v42 }
 0x369   : > { %v4221_v29 = vsel %vm1039_vm1, %v8490_v36, %v3773_v63  ;;  %v4495_v19 = vor.u32 %v4494_v62, %v4490_v30 }
 0x36b   : > { %v3965_v7 = vpop.permute.xlu1 %3964 }
 0x36c   : > { %v4139_v15 = vpop.permute.xlu0 %4138  ;;  %v4285_v56 = vsel %vm1120_vm2, %v4221_v29, %v3965_v7 }
 0x36d   : > { %v4347_v10 = vsel %vm1185_vm3, %v4283_v1, %v4139_v15 }
 0x36e   : > { %v4502_v32 = vshll.u32 %v4347_v10, 16  ;;  %v4500_v45 = vshrl.u32 %v4347_v10, 16 }
 0x36f   : > { %v4141_v31 = vpop.permute.xlu1 %4140 }
 0x370   : > { %v4504_v35 = vrot.slane %v4502_v32, 1  ;;  %v4349_v34 = vsel %vm1185_vm3, %v4285_v56, %v4141_v31  ;;  %v4137_v3 = vpop.permute.xlu0 %4136 }
 0x371   : > { %v4506_v44 = vshll.u32 %v4349_v34, 16  ;;  %v4345_v9 = vsel %vm1185_vm3, %v4281_v8, %v4137_v3 }
 0x372   : > { %v4496_v60 = vshll.u32 %v4345_v9, 16  ;;  %v4505_v54 = vor.u32 %v4504_v35, %v4500_v45 }
 0x373   : > { %v4508_v25 = vrot.slane %v4506_v44, 1  ;;  %v5372_v48 = vpop.permute.xlu1 %5371 }
 0x374   : > { %v4498_v40 = vrot.slane %v4496_v60, 1  ;;  %v5370_v47 = vpop.permute.xlu0 %5369  ;;  %v5931_v14 = vsel %vm1039_vm1, %v11108_v27, %v5372_v48 }
 0x375   : > { %v4509_v38 = vsel %vm1250_vm4, %v4505_v54, %v4508_v25  ;;  %v5929_v28 = vsel %vm1039_vm1, %v7763_v41, %v5370_v47 }
 0x376   : > { %v4499_v2 = vsel %vm1250_vm4, %v4495_v19, %v4498_v40 }
 0x377   : > { %8093 = vmatprep.mubr.msk.bf16.mxu0 %vm1419_vm5, %v4499_v2  ;;  %v5376_v4 = vpop.permute.xlu1 %5375 }
 0x378   : > { %8094 = vmatmul.mubr.msk.bf16.gmra.mrb[60].mxu0 %vm1419_vm5, %v4509_v38  ;;  %v8109_v17 = vpop.f32.mrb[40].mxu1  ;;  %v5374_v58 = vpop.permute.xlu0 %5373  ;;  %v5936_v7 = vsel %vm1039_vm1, %v11129_v24, %v5376_v4 }
 0x379   : > { %6376 = vst.msk [vmem:[#allocation2 + $0x350] sm:$0xff] %vm1120_vm2, %v8109_v17  ;;  %v6268_v61 = vpop.f32.mrb[41].mxu1  ;;  %v6417_v37 = vsel %vm1120_vm2, %v8109_v17, 0.0  ;;  %v5934_v27 = vsel %vm1039_vm1, %v7765_v12, %v5374_v58 }
 0x37a   : > { %6374 = vst.msk [vmem:[#allocation2 + $0x340] sm:$0xff] %vm1120_vm2, %v6268_v61  ;;  %v6413_v53 = vsel %vm1120_vm2, %v6268_v61, 0.0  ;;  %v8110_v55 = vpop.f32.mrb[42].mxu1 }
 0x37b   : > { %v6414_v26 = vadd.f32 %v6413_v53, %v11288_v0  ;;  %6377 = vst.msk [vmem:[#allocation2 + $0x358] sm:$0xff] %vm1120_vm2, %v8110_v55  ;;  %v6271_v16 = vpop.f32.mrb[43].mxu1  ;;  %v5564_v22 = vpop.permute.xlu1 %5563  ;;  %v6419_v0 = vsel %vm1120_vm2, %v8110_v55, 0.0 }
 0x37c   : > { %6375 = vst.msk [vmem:[#allocation2 + $0x348] sm:$0xff] %vm1120_vm2, %v6271_v16  ;;  %v6415_v20 = vsel %vm1120_vm2, %v6271_v16, 0.0  ;;  %v5562_v13 = vpop.permute.xlu0 %5561  ;;  %v5996_v18 = vsel %vm1120_vm2, %v5931_v14, %v5564_v22 }
 0x37d   : > { %v6416_v51 = vadd.f32 %v6415_v20, %v6414_v26  ;;  %v5994_v50 = vsel %vm1120_vm2, %v5929_v28, %v5562_v13 }
 0x37f   : > { %v6418_v52 = vadd.f32 %v6417_v37, %v6416_v51  ;;  %v5568_v39 = vpop.permute.xlu1 %5567 }
 0x380   : > { %v5566_v43 = vpop.permute.xlu0 %5565  ;;  %v6000_v1 = vsel %vm1120_vm2, %v5936_v7, %v5568_v39 }
 0x381   : > { %v6420_v6 = vadd.f32 %v6419_v0, %v6418_v52  ;;  %v5998_v15 = vsel %vm1120_vm2, %v5934_v27, %v5566_v43 }
 0x383   : > { %v5852_v63 = vpop.permute.xlu1 %5851 }
 0x384   : > { %v6060_v21 = vsel %vm1185_vm3, %v5996_v18, %v5852_v63  ;;  %v5850_v36 = vpop.permute.xlu0 %5849 }
 0x385   : > { %v6140_v33 = vrot.slane %v6060_v21, 1  ;;  %v6058_v57 = vsel %vm1185_vm3, %v5994_v50, %v5850_v36 }
 0x386   : > { %v6139_v46 = vrot.slane %v6058_v57, 1 }
 0x387   : > { %v5856_v42 = vpop.permute.xlu1 %5855 }
 0x388   : > { %v6064_v10 = vsel %vm1185_vm3, %v6000_v1, %v5856_v42  ;;  %v5854_v29 = vpop.permute.xlu0 %5853  ;;  %v6141_v32 = vsel %vm2998_vm6, %v6139_v46, %v6140_v33 }
 0x389   : > { %v6143_v5 = vrot.slane %v6064_v10, 1  ;;  %v6062_v56 = vsel %vm1185_vm3, %v5998_v15, %v5854_v29  ;;  %8127 = vmatprep.mubr.msk.bf16.mxu1 %vm1419_vm5, %v6141_v32 }
 0x38a   : > { %v6142_v31 = vrot.slane %v6062_v56, 1 }
 0x38b   : > { %v8079_v24 = vpop.f32.mrb[44].mxu0 }
 0x38c   : > { %4745 = vst.msk [vmem:[#allocation2 + $0x270] sm:$0xff] %vm1120_vm2, %v8079_v24  ;;  %v4649_v62 = vpop.f32.mrb[45].mxu0  ;;  %v6144_v8 = vsel %vm2998_vm6, %v6142_v31, %v6143_v5  ;;  %v4790_v30 = vsel %vm1120_vm2, %v8079_v24, 0.0 }
 0x38d   : > { %4743 = vst.msk [vmem:[#allocation2 + $0x260] sm:$0xff] %vm1120_vm2, %v4649_v62  ;;  %v4786_v35 = vsel %vm1120_vm2, %v4649_v62, 0.0  ;;  %v8080_v34 = vpop.f32.mrb[46].mxu0  ;;  %8128 = vmatmul.mubr.msk.bf16.gmra.mrb[60].mxu1 %vm1419_vm5, %v6144_v8 }
 0x38e   : > { %v4787_v3 = vadd.f32 %v4786_v35, %v11318_v49  ;;  %4746 = vst.msk [vmem:[#allocation2 + $0x278] sm:$0xff] %vm1120_vm2, %v8080_v34  ;;  %v4652_v45 = vpop.f32.mrb[47].mxu0  ;;  %v4792_v54 = vsel %vm1120_vm2, %v8080_v34, 0.0 }
 0x38f   : > { %4744 = vst.msk [vmem:[#allocation2 + $0x268] sm:$0xff] %vm1120_vm2, %v4652_v45  ;;  %v4788_v44 = vsel %vm1120_vm2, %v4652_v45, 0.0 }
 0x390   : > { %v4789_v9 = vadd.f32 %v4788_v44, %v4787_v3 }
 0x392   : > { %v4791_v60 = vadd.f32 %v4790_v30, %v4789_v9 }
 0x394   : > { %v4793_v25 = vadd.f32 %v4792_v54, %v4791_v60 }
 0x3a8   : > { %v8113_v48 = vpop.f32.mrb[44].mxu1 }
 0x3a9   : > { %6380 = vst.msk [vmem:[#allocation2 + $0x370] sm:$0xff] %vm1120_vm2, %v8113_v48  ;;  %v6284_v19 = vpop.f32.mrb[45].mxu1  ;;  %v6425_v17 = vsel %vm1120_vm2, %v8113_v48, 0.0 }
 0x3aa   : > { %6378 = vst.msk [vmem:[#allocation2 + $0x360] sm:$0xff] %vm1120_vm2, %v6284_v19  ;;  %v6421_v49 = vsel %vm1120_vm2, %v6284_v19, 0.0  ;;  %v8114_v40 = vpop.f32.mrb[46].mxu1 }
 0x3ab   : > { %v6422_v47 = vadd.f32 %v6421_v49, %v6420_v6  ;;  %6381 = vst.msk [vmem:[#allocation2 + $0x378] sm:$0xff] %vm1120_vm2, %v8114_v40  ;;  %v6287_v38 = vpop.f32.mrb[47].mxu1  ;;  %v6427_v61 = vsel %vm1120_vm2, %v8114_v40, 0.0 }
 0x3ac   : > { %6379 = vst.msk [vmem:[#allocation2 + $0x368] sm:$0xff] %vm1120_vm2, %v6287_v38  ;;  %v6423_v2 = vsel %vm1120_vm2, %v6287_v38, 0.0 }
 0x3ad   : > { %v6424_v4 = vadd.f32 %v6423_v2, %v6422_v47 }
 0x3af   : > { %v6426_v58 = vadd.f32 %v6425_v17, %v6424_v4 }
 0x3b1   : > { %v6428_v53 = vadd.f32 %v6427_v61, %v6426_v58 }
 0x3bb   : > { %v8083_v55 = vpop.f32.mrb[48].mxu0 }
 0x3bc   : > { %4749 = vst.msk [vmem:[#allocation2 + $0x290] sm:$0xff] %vm1120_vm2, %v8083_v55  ;;  %v4665_v26 = vpop.f32.mrb[49].mxu0  ;;  %v4798_v37 = vsel %vm1120_vm2, %v8083_v55, 0.0 }
 0x3bd   : > { %4747 = vst.msk [vmem:[#allocation2 + $0x280] sm:$0xff] %vm1120_vm2, %v4665_v26  ;;  %v4794_v16 = vsel %vm1120_vm2, %v4665_v26, 0.0  ;;  %v8084_v22 = vpop.f32.mrb[50].mxu0 }
 0x3be   : > { %v4795_v59 = vadd.f32 %v4794_v16, %v4793_v25  ;;  %4750 = vst.msk [vmem:[#allocation2 + $0x298] sm:$0xff] %vm1120_vm2, %v8084_v22  ;;  %v4668_v20 = vpop.f32.mrb[51].mxu0  ;;  %v4800_v52 = vsel %vm1120_vm2, %v8084_v22, 0.0 }
 0x3bf   : > { %4748 = vst.msk [vmem:[#allocation2 + $0x288] sm:$0xff] %vm1120_vm2, %v4668_v20  ;;  %v4796_v13 = vsel %vm1120_vm2, %v4668_v20, 0.0 }
 0x3c0   : > { %v4797_v51 = vadd.f32 %v4796_v13, %v4795_v59 }
 0x3c2   : > { %v4799_v41 = vadd.f32 %v4798_v37, %v4797_v51 }
 0x3c4   : > { %v4801_v39 = vadd.f32 %v4800_v52, %v4799_v41 }
 0x3d8   : > { %v8117_v23 = vpop.f32.mrb[48].mxu1 }
 0x3d9   : > { %6384 = vst.msk [vmem:[#allocation2 + $0x390] sm:$0xff] %vm1120_vm2, %v8117_v23  ;;  %v6300_v0 = vpop.f32.mrb[49].mxu1  ;;  %v6433_v63 = vsel %vm1120_vm2, %v8117_v23, 0.0 }
 0x3da   : > { %6382 = vst.msk [vmem:[#allocation2 + $0x380] sm:$0xff] %vm1120_vm2, %v6300_v0  ;;  %v6429_v43 = vsel %vm1120_vm2, %v6300_v0, 0.0  ;;  %v8118_v6 = vpop.f32.mrb[50].mxu1 }
 0x3db   : > { %v6430_v14 = vadd.f32 %v6429_v43, %v6428_v53  ;;  %6385 = vst.msk [vmem:[#allocation2 + $0x398] sm:$0xff] %vm1120_vm2, %v8118_v6  ;;  %v6303_v28 = vpop.f32.mrb[51].mxu1  ;;  %v6435_v21 = vsel %vm1120_vm2, %v8118_v6, 0.0 }
 0x3dc   : > { %6383 = vst.msk [vmem:[#allocation2 + $0x388] sm:$0xff] %vm1120_vm2, %v6303_v28  ;;  %v6431_v12 = vsel %vm1120_vm2, %v6303_v28, 0.0 }
 0x3dd   : > { %v6432_v18 = vadd.f32 %v6431_v12, %v6430_v14 }
 0x3df   : > { %v6434_v50 = vadd.f32 %v6433_v63, %v6432_v18 }
 0x3e1   : > { %v6436_v36 = vadd.f32 %v6435_v21, %v6434_v50 }
 0x3eb   : > { %v8087_v33 = vpop.f32.mrb[52].mxu0 }
 0x3ec   : > { %4753 = vst.msk [vmem:[#allocation2 + $0x2b0] sm:$0xff] %vm1120_vm2, %v8087_v33  ;;  %v4681_v57 = vpop.f32.mrb[53].mxu0  ;;  %v4806_v10 = vsel %vm1120_vm2, %v8087_v33, 0.0 }
 0x3ed   : > { %4751 = vst.msk [vmem:[#allocation2 + $0x2a0] sm:$0xff] %vm1120_vm2, %v4681_v57  ;;  %v4802_v7 = vsel %vm1120_vm2, %v4681_v57, 0.0  ;;  %v8088_v46 = vpop.f32.mrb[54].mxu0 }
 0x3ee   : > { %v4803_v27 = vadd.f32 %v4802_v7, %v4801_v39  ;;  %4754 = vst.msk [vmem:[#allocation2 + $0x2b8] sm:$0xff] %vm1120_vm2, %v8088_v46  ;;  %v4684_v1 = vpop.f32.mrb[55].mxu0  ;;  %v4808_v32 = vsel %vm1120_vm2, %v8088_v46, 0.0 }
 0x3ef   : > { %4752 = vst.msk [vmem:[#allocation2 + $0x2a8] sm:$0xff] %vm1120_vm2, %v4684_v1  ;;  %v4804_v42 = vsel %vm1120_vm2, %v4684_v1, 0.0 }
 0x3f0   : > { %v4805_v15 = vadd.f32 %v4804_v42, %v4803_v27 }
 0x3f2   : > { %v4807_v29 = vadd.f32 %v4806_v10, %v4805_v15 }
 0x3f4   : > { %v4809_v5 = vadd.f32 %v4808_v32, %v4807_v29 }
 0x408   : > { %v8121_v56 = vpop.f32.mrb[52].mxu1 }
 0x409   : > { %6388 = vst.msk [vmem:[#allocation2 + $0x3b0] sm:$0xff] %vm1120_vm2, %v8121_v56  ;;  %v6316_v31 = vpop.f32.mrb[53].mxu1  ;;  %v6441_v45 = vsel %vm1120_vm2, %v8121_v56, 0.0 }
 0x40a   : > { %6386 = vst.msk [vmem:[#allocation2 + $0x3a0] sm:$0xff] %vm1120_vm2, %v6316_v31  ;;  %v6437_v24 = vsel %vm1120_vm2, %v6316_v31, 0.0  ;;  %v8122_v62 = vpop.f32.mrb[54].mxu1 }
 0x40b   : > { %v6438_v8 = vadd.f32 %v6437_v24, %v6436_v36  ;;  %6389 = vst.msk [vmem:[#allocation2 + $0x3b8] sm:$0xff] %vm1120_vm2, %v8122_v62  ;;  %v6319_v35 = vpop.f32.mrb[55].mxu1  ;;  %v6443_v9 = vsel %vm1120_vm2, %v8122_v62, 0.0 }
 0x40c   : > { %6387 = vst.msk [vmem:[#allocation2 + $0x3a8] sm:$0xff] %vm1120_vm2, %v6319_v35  ;;  %v6439_v34 = vsel %vm1120_vm2, %v6319_v35, 0.0 }
 0x40d   : > { %v6440_v3 = vadd.f32 %v6439_v34, %v6438_v8 }
 0x40f   : > { %v6442_v44 = vadd.f32 %v6441_v45, %v6440_v3 }
 0x411   : > { %v6444_v30 = vadd.f32 %v6443_v9, %v6442_v44 }
 0x41b   : > { %v8091_v60 = vpop.f32.mrb[56].mxu0 }
 0x41c   : > { %4757 = vst.msk [vmem:[#allocation2 + $0x2d0] sm:$0xff] %vm1120_vm2, %v8091_v60  ;;  %v4697_v54 = vpop.f32.mrb[57].mxu0  ;;  %v4814_v38 = vsel %vm1120_vm2, %v8091_v60, 0.0 }
 0x41d   : > { %4755 = vst.msk [vmem:[#allocation2 + $0x2c0] sm:$0xff] %vm1120_vm2, %v4697_v54  ;;  %v4810_v25 = vsel %vm1120_vm2, %v4697_v54, 0.0  ;;  %v8092_v48 = vpop.f32.mrb[58].mxu0 }
 0x41e   : > { %v4811_v19 = vadd.f32 %v4810_v25, %v4809_v5  ;;  %4758 = vst.msk [vmem:[#allocation2 + $0x2d8] sm:$0xff] %vm1120_vm2, %v8092_v48  ;;  %v4700_v49 = vpop.f32.mrb[59].mxu0  ;;  %v4816_v4 = vsel %vm1120_vm2, %v8092_v48, 0.0 }
 0x41f   : > { %4756 = vst.msk [vmem:[#allocation2 + $0x2c8] sm:$0xff] %vm1120_vm2, %v4700_v49  ;;  %v4812_v40 = vsel %vm1120_vm2, %v4700_v49, 0.0 }
 0x420   : > { %v4813_v47 = vadd.f32 %v4812_v40, %v4811_v19 }
 0x422   : > { %v4815_v2 = vadd.f32 %v4814_v38, %v4813_v47 }
 0x424   : > { %v4817_v17 = vadd.f32 %v4816_v4, %v4815_v2 }
 0x438   : > { %v8125_v58 = vpop.f32.mrb[56].mxu1 }
 0x439   : > { %6392 = vst.msk [vmem:[#allocation2 + $0x3d0] sm:$0xff] %vm1120_vm2, %v8125_v58  ;;  %v6332_v61 = vpop.f32.mrb[57].mxu1  ;;  %v6449_v20 = vsel %vm1120_vm2, %v8125_v58, 0.0 }
 0x43a   : > { %6390 = vst.msk [vmem:[#allocation2 + $0x3c0] sm:$0xff] %vm1120_vm2, %v6332_v61  ;;  %v6445_v53 = vsel %vm1120_vm2, %v6332_v61, 0.0  ;;  %v8126_v55 = vpop.f32.mrb[58].mxu1 }
 0x43b   : > { %v6446_v26 = vadd.f32 %v6445_v53, %v6444_v30  ;;  %6393 = vst.msk [vmem:[#allocation2 + $0x3d8] sm:$0xff] %vm1120_vm2, %v8126_v55  ;;  %v6335_v16 = vpop.f32.mrb[59].mxu1  ;;  %v6451_v51 = vsel %vm1120_vm2, %v8126_v55, 0.0  ;;  %v11456_v30 = vmov 0.0  }
 0x43c   : > { %6391 = vst.msk [vmem:[#allocation2 + $0x3c8] sm:$0xff] %vm1120_vm2, %v6335_v16  ;;  %v6447_v22 = vsel %vm1120_vm2, %v6335_v16, 0.0 }
 0x43d   : > { %v6448_v59 = vadd.f32 %v6447_v22, %v6446_v26 }
 0x43f   : > { %v6450_v13 = vadd.f32 %v6449_v20, %v6448_v59 }
 0x441   : > { %v6452_v37 = vadd.f32 %v6451_v51, %v6450_v13 }
 0x44b   : > { %v8095_v41 = vpop.f32.mrb[60].mxu0 }
 0x44c   : > { %4761 = vst.msk [vmem:[#allocation2 + $0x2f0] sm:$0xff] %vm1120_vm2, %v8095_v41  ;;  %v4713_v52 = vpop.f32.mrb[61].mxu0  ;;  %v4822_v28 = vsel %vm1120_vm2, %v8095_v41, 0.0 }
 0x44d   : > { %4759 = vst.msk [vmem:[#allocation2 + $0x2e0] sm:$0xff] %vm1120_vm2, %v4713_v52  ;;  %v4818_v39 = vsel %vm1120_vm2, %v4713_v52, 0.0  ;;  %v8096_v23 = vpop.f32.mrb[62].mxu0 }
 0x44e   : > { %v4819_v0 = vadd.f32 %v4818_v39, %v4817_v17  ;;  %4762 = vst.msk [vmem:[#allocation2 + $0x2f8] sm:$0xff] %vm1120_vm2, %v8096_v23  ;;  %v4716_v43 = vpop.f32.mrb[63].mxu0  ;;  %v4824_v18 = vsel %vm1120_vm2, %v8096_v23, 0.0 }
 0x44f   : > { %4760 = vst.msk [vmem:[#allocation2 + $0x2e8] sm:$0xff] %vm1120_vm2, %v4716_v43  ;;  %v4820_v6 = vsel %vm1120_vm2, %v4716_v43, 0.0 }
 0x450   : > { %v4821_v14 = vadd.f32 %v4820_v6, %v4819_v0 }
 0x452   : > { %v4823_v12 = vadd.f32 %v4822_v28, %v4821_v14 }
 0x454   : > { %v4825_v63 = vadd.f32 %v4824_v18, %v4823_v12 }
 0x456   : > { %v4826_v50 = vrot.slane %v4825_v63, 4 }
 0x458   : > { %v4827_v21 = vadd.f32 %v4826_v50, %v4825_v63 }
 0x45a   : > { %v4828_v36 = vrot.slane %v4827_v21, 2 }
 0x45c   : > { %v4829_v33 = vadd.f32 %v4828_v36, %v4827_v21 }
 0x45e   : > { %v4830_v57 = vrot.slane %v4829_v33, 1 }
 0x460   : > { %v4831_v7 = vadd.f32 %v4830_v57, %v4829_v33  ;;  %v8129_v46 = vpop.f32.mrb[60].mxu1 }
 0x461   : > { %6396 = vst.msk [vmem:[#allocation2 + $0x3f0] sm:$0xff] %vm1120_vm2, %v8129_v46  ;;  %v6348_v27 = vpop.f32.mrb[61].mxu1  ;;  %v6457_v56 = vsel %vm1120_vm2, %v8129_v46, 0.0 }
 0x462   : > { %v4832_v1 = vadd.f32 %v4831_v7, %v11114_v11  ;;  %6394 = vst.msk [vmem:[#allocation2 + $0x3e0] sm:$0xff] %vm1120_vm2, %v6348_v27  ;;  %v6453_v42 = vsel %vm1120_vm2, %v6348_v27, 0.0  ;;  %v8130_v15 = vpop.f32.mrb[62].mxu1 }
 0x463   : > { %v6454_v10 = vadd.f32 %v6453_v42, %v6452_v37  ;;  %6397 = vst.msk [vmem:[#allocation2 + $0x3f8] sm:$0xff] %vm1120_vm2, %v8130_v15  ;;  %v6351_v29 = vpop.f32.mrb[63].mxu1  ;;  %v6459_v24 = vsel %vm1120_vm2, %v8130_v15, 0.0 }
 0x464   : > { %6395 = vst.msk [vmem:[#allocation2 + $0x3e8] sm:$0xff] %vm1120_vm2, %v6351_v29  ;;  %v6455_v32 = vsel %vm1120_vm2, %v6351_v29, 0.0 }
 0x465   : > { %v6456_v5 = vadd.f32 %v6455_v32, %v6454_v10 }
 0x467   : > { %v6458_v31 = vadd.f32 %v6457_v56, %v6456_v5 }
 0x469   : > { %v6460_v11 = vadd.f32 %v6459_v24, %v6458_v31 }
 0x46b   : > { %v6461_v62 = vrot.slane %v6460_v11, 4 }
 0x46d   : > { %v6462_v8 = vadd.f32 %v6461_v62, %v6460_v11 }
 0x46f   : > { %v6463_v35 = vrot.slane %v6462_v8, 2 }
 0x471   : > { %v6464_v34 = vadd.f32 %v6463_v35, %v6462_v8 }
 0x473   : > { %v6465_v3 = vrot.slane %v6464_v34, 1 }
 0x475   : > { %v6466_v45 = vadd.f32 %v6465_v3, %v6464_v34 }
 0x477   : > { %v6467_v44 = vadd.f32 %v6466_v45, %v4832_v1 }
 0x479   : > { %v11454_v9 = vmul.f32 0.0009765625, %v6467_v44 }
 0x47a LB: >> { %s7891_s13 = sshll.u32 %s8626_s12, 8  ;;  %s6475_s12 = sadd.s32 1, %s8626_s12   ;;  %s8626_s12 = sphi %s11458_s12, %s6475_s12   ;;  %v8622_v30 = vphi %v11456_v30, %v11874_v30  }
 0x47b   : >> { %s11467_s14 = scalar_lea.vmem [#allocation2], %s7891_s13  ;;  %p6472_p5 = scmp.ge.s32.totalorder %s6475_s12, 4  }
 0x47c   : >> { %v6480_v60 = vld [vmem:[%s11467_s14] sm:$0xff]  ;;  %v6481_v54 = vld [vmem:[%s11467_s14 + $0x8] sm:$0xff]  ;;  %v6482_v25 = vld [vmem:[%s11467_s14 + $0x10] sm:$0xff]  ;;  %s11586_s22 = smov (%p6472_p5), 0  }
 0x47d   : >> { %v6483_v48 = vld [vmem:[%s11467_s14 + $0x18] sm:$0xff]  ;;  %v6512_v19 = vsub.f32 %v6480_v60, %v11454_v9  ;;  %v6513_v49 = vsub.f32 %v6481_v54, %v11454_v9  ;;  %v6484_v40 = vld [vmem:[%s11467_s14 + $0x20] sm:$0xff]  ;;  %v6514_v47 = vsub.f32 %v6482_v25, %v11454_v9  ;;  %v6485_v2 = vld [vmem:[%s11467_s14 + $0x28] sm:$0xff] }
 0x47e   : >> { %v6515_v38 = vsub.f32 %v6483_v48, %v11454_v9  ;;  %v6516_v4 = vsub.f32 %v6484_v40, %v11454_v9  ;;  %v6486_v61 = vld [vmem:[%s11467_s14 + $0x30] sm:$0xff]  ;;  %v6517_v55 = vsub.f32 %v6485_v2, %v11454_v9  ;;  %v6487_v16 = vld [vmem:[%s11467_s14 + $0x38] sm:$0xff]  ;;  %v6488_v51 = vld [vmem:[%s11467_s14 + $0x40] sm:$0xff] }
 0x47f   : >> { %v6544_v17 = vmul.f32 %v6512_v19, %v6512_v19  ;;  %v6545_v58 = vmul.f32 %v6513_v49, %v6513_v49  ;;  %v6546_v53 = vmul.f32 %v6514_v47, %v6514_v47  ;;  %v6518_v22 = vsub.f32 %v6486_v61, %v11454_v9  ;;  %v6489_v0 = vld [vmem:[%s11467_s14 + $0x48] sm:$0xff]  ;;  %v6490_v12 = vld [vmem:[%s11467_s14 + $0x50] sm:$0xff]  ;;  %v6491_v36 = vld [vmem:[%s11467_s14 + $0x58] sm:$0xff] }
 0x480   : >> { %v6547_v26 = vmul.f32 %v6515_v38, %v6515_v38  ;;  %v6548_v59 = vmul.f32 %v6516_v4, %v6516_v4  ;;  %v6519_v52 = vsub.f32 %v6487_v16, %v11454_v9  ;;  %v6549_v39 = vmul.f32 %v6517_v55, %v6517_v55  ;;  %v6492_v27 = vld [vmem:[%s11467_s14 + $0x60] sm:$0xff]  ;;  %v6493_v29 = vld [vmem:[%s11467_s14 + $0x68] sm:$0xff]  ;;  %v6494_v24 = vld [vmem:[%s11467_s14 + $0x70] sm:$0xff] }
 0x481   : >> { %v6576_v20 = vsel %vm1120_vm2, %v6544_v17, 0.0  ;;  %v6577_v13 = vsel %vm1120_vm2, %v6545_v58, 0.0  ;;  %v6579_v41 = vsel %vm1120_vm2, %v6546_v53, 0.0  ;;  %v6520_v6 = vsub.f32 %v6488_v51, %v11454_v9  ;;  %v6495_v34 = vld [vmem:[%s11467_s14 + $0x78] sm:$0xff]  ;;  %v6496_v54 = vld [vmem:[%s11467_s14 + $0x80] sm:$0xff]  ;;  %v6497_v40 = vld [vmem:[%s11467_s14 + $0x88] sm:$0xff] }
 0x482   : >> { %v6578_v37 = vadd.f32 %v6577_v13, %v6576_v20  ;;  %v6581_v23 = vsel %vm1120_vm2, %v6547_v26, 0.0  ;;  %v6550_v14 = vmul.f32 %v6518_v22, %v6518_v22  ;;  %v6583_v28 = vsel %vm1120_vm2, %v6548_v59, 0.0  ;;  %v6498_v17 = vld [vmem:[%s11467_s14 + $0x90] sm:$0xff]  ;;  %v6499_v26 = vld [vmem:[%s11467_s14 + $0x98] sm:$0xff]  ;;  %v6500_v13 = vld [vmem:[%s11467_s14 + $0xa0] sm:$0xff] }
 0x483   : >> { %v6521_v63 = vsub.f32 %v6489_v0, %v11454_v9  ;;  %v6551_v50 = vmul.f32 %v6519_v52, %v6519_v52  ;;  %v6585_v21 = vsel %vm1120_vm2, %v6549_v39, 0.0  ;;  %v6522_v57 = vsub.f32 %v6490_v12, %v11454_v9  ;;  %v6501_v39 = vld [vmem:[%s11467_s14 + $0xa8] sm:$0xff] }
 0x484   : >> { %v6580_v43 = vadd.f32 %v6579_v41, %v6578_v37  ;;  %v6552_v7 = vmul.f32 %v6520_v6, %v6520_v6  ;;  %v6587_v46 = vsel %vm1120_vm2, %v6550_v14, 0.0  ;;  %v6523_v42 = vsub.f32 %v6491_v36, %v11454_v9  ;;  %v6502_v14 = vld [vmem:[%s11467_s14 + $0xb0] sm:$0xff] }
 0x485   : >> { %v6553_v15 = vmul.f32 %v6521_v63, %v6521_v63  ;;  %v6589_v10 = vsel %vm1120_vm2, %v6551_v50, 0.0  ;;  %v6524_v5 = vsub.f32 %v6492_v27, %v11454_v9  ;;  %v6554_v56 = vmul.f32 %v6522_v57, %v6522_v57  ;;  %v6503_v50 = vld [vmem:[%s11467_s14 + $0xb8] sm:$0xff] }
 0x486   : >> { %v6582_v18 = vadd.f32 %v6581_v23, %v6580_v43  ;;  %v6591_v31 = vsel %vm1120_vm2, %v6552_v7, 0.0  ;;  %v6525_v62 = vsub.f32 %v6493_v29, %v11454_v9  ;;  %v6555_v8 = vmul.f32 %v6523_v42, %v6523_v42  ;;  %v6504_v7 = vld [vmem:[%s11467_s14 + $0xc0] sm:$0xff] }
 0x487   : >> { %v6593_v35 = vsel %vm1120_vm2, %v6553_v15, 0.0  ;;  %v6526_v45 = vsub.f32 %v6494_v24, %v11454_v9  ;;  %v6556_v44 = vmul.f32 %v6524_v5, %v6524_v5  ;;  %v6595_v60 = vsel %vm1120_vm2, %v6554_v56, 0.0  ;;  %v6505_v15 = vld [vmem:[%s11467_s14 + $0xc8] sm:$0xff]  ;;  %v6506_v56 = vld [vmem:[%s11467_s14 + $0xd0] sm:$0xff] }
 0x488   : >> { %v6584_v33 = vadd.f32 %v6583_v28, %v6582_v18  ;;  %v6527_v48 = vsub.f32 %v6495_v34, %v11454_v9  ;;  %v6557_v19 = vmul.f32 %v6525_v62, %v6525_v62  ;;  %v6597_v49 = vsel %vm1120_vm2, %v6555_v8, 0.0  ;;  %v6507_v8 = vld [vmem:[%s11467_s14 + $0xd8] sm:$0xff] }
 0x489   : >> { %v6528_v38 = vsub.f32 %v6496_v54, %v11454_v9  ;;  %v6558_v2 = vmul.f32 %v6526_v45, %v6526_v45  ;;  %v6599_v4 = vsel %vm1120_vm2, %v6556_v44, 0.0  ;;  %v6529_v61 = vsub.f32 %v6497_v40, %v11454_v9  ;;  %v6508_v44 = vld [vmem:[%s11467_s14 + $0xe0] sm:$0xff] }
 0x48a   : >> { %v6586_v1 = vadd.f32 %v6585_v21, %v6584_v33  ;;  %v6559_v53 = vmul.f32 %v6527_v48, %v6527_v48  ;;  %v6601_v55 = vsel %vm1120_vm2, %v6557_v19, 0.0  ;;  %v6530_v22 = vsub.f32 %v6498_v17, %v11454_v9  ;;  %v6509_v19 = vld [vmem:[%s11467_s14 + $0xe8] sm:$0xff] }
 0x48b   : >> { %v6560_v59 = vmul.f32 %v6528_v38, %v6528_v38  ;;  %v6603_v20 = vsel %vm1120_vm2, %v6558_v2, 0.0  ;;  %v6531_v37 = vsub.f32 %v6499_v26, %v11454_v9  ;;  %v6561_v41 = vmul.f32 %v6529_v61, %v6529_v61  ;;  %v6510_v2 = vld [vmem:[%s11467_s14 + $0xf0] sm:$0xff] }
 0x48c   : >> { %v6588_v32 = vadd.f32 %v6587_v46, %v6586_v1  ;;  %v6605_v52 = vsel %vm1120_vm2, %v6559_v53, 0.0  ;;  %v6532_v0 = vsub.f32 %v6500_v13, %v11454_v9  ;;  %v6562_v43 = vmul.f32 %v6530_v22, %v6530_v22  ;;  %v6511_v53 = vld [vmem:[%s11467_s14 + $0xf8] sm:$0xff] }
 0x48d   : >> { %v6607_v6 = vsel %vm1120_vm2, %v6560_v59, 0.0  ;;  %v6533_v12 = vsub.f32 %v6501_v39, %v11454_v9  ;;  %v6563_v18 = vmul.f32 %v6531_v37, %v6531_v37  ;;  %v6609_v63 = vsel %vm1120_vm2, %v6561_v41, 0.0 }
 0x48e   : >> { %v6590_v11 = vadd.f32 %v6589_v10, %v6588_v32  ;;  %v6534_v36 = vsub.f32 %v6502_v14, %v11454_v9  ;;  %v6564_v33 = vmul.f32 %v6532_v0, %v6532_v0  ;;  %v6611_v57 = vsel %vm1120_vm2, %v6562_v43, 0.0 }
 0x48f   : >> { %v6535_v27 = vsub.f32 %v6503_v50, %v11454_v9  ;;  %v6565_v1 = vmul.f32 %v6533_v12, %v6533_v12  ;;  %v6613_v42 = vsel %vm1120_vm2, %v6563_v18, 0.0  ;;  %v6536_v29 = vsub.f32 %v6504_v7, %v11454_v9 }
 0x490   : >> { %v6592_v3 = vadd.f32 %v6591_v31, %v6590_v11  ;;  %v6566_v32 = vmul.f32 %v6534_v36, %v6534_v36  ;;  %v6615_v5 = vsel %vm1120_vm2, %v6564_v33, 0.0  ;;  %v6537_v24 = vsub.f32 %v6505_v15, %v11454_v9 }
 0x491   : >> { %v6567_v11 = vmul.f32 %v6535_v27, %v6535_v27  ;;  %v6617_v62 = vsel %vm1120_vm2, %v6565_v1, 0.0  ;;  %v6538_v34 = vsub.f32 %v6506_v56, %v11454_v9  ;;  %v6539_v54 = vsub.f32 %v6507_v8, %v11454_v9  ;;  %v6649_v1 = vld [vmem:[%s11780_s2] sm:$0x1] (%p6472_p5) }
 0x492   : >> { %v6594_v25 = vadd.f32 %v6593_v35, %v6592_v3  ;;  %v6568_v3 = vmul.f32 %v6536_v29, %v6536_v29  ;;  %v6619_v45 = vsel %vm1120_vm2, %v6566_v32, 0.0  ;;  %v6540_v40 = vsub.f32 %v6508_v44, %v11454_v9 }
 0x493   : >> { %v6621_v48 = vsel %vm1120_vm2, %v6567_v11, 0.0  ;;  %v6541_v17 = vsub.f32 %v6509_v19, %v11454_v9  ;;  %v6542_v26 = vsub.f32 %v6510_v2, %v11454_v9 }
 0x494   : >> { %v6596_v47 = vadd.f32 %v6595_v60, %v6594_v25  ;;  %v6569_v25 = vmul.f32 %v6537_v24, %v6537_v24  ;;  %v6623_v38 = vsel %vm1120_vm2, %v6568_v3, 0.0 }
 0x495   : >> { %v6573_v13 = vmul.f32 %v6541_v17, %v6541_v17  ;;  %v6574_v41 = vmul.f32 %v6542_v26, %v6542_v26 }
 0x496   : >> { %v6598_v58 = vadd.f32 %v6597_v49, %v6596_v47  ;;  %v6570_v47 = vmul.f32 %v6538_v34, %v6538_v34  ;;  %v6625_v61 = vsel %vm1120_vm2, %v6569_v25, 0.0 }
 0x497   : >> { %v6633_v0 = vsel %vm1120_vm2, %v6573_v13, 0.0 }
 0x498   : >> { %v6600_v16 = vadd.f32 %v6599_v4, %v6598_v58  ;;  %v6571_v58 = vmul.f32 %v6539_v54, %v6539_v54  ;;  %v6627_v22 = vsel %vm1120_vm2, %v6570_v47, 0.0 }
 0x49a   : >> { %v6602_v51 = vadd.f32 %v6601_v55, %v6600_v16  ;;  %v6572_v16 = vmul.f32 %v6540_v40, %v6540_v40 }
 0x49c   : >> { %v6604_v23 = vadd.f32 %v6603_v20, %v6602_v51  ;;  %v6543_v20 = vsub.f32 %v6511_v53, %v11454_v9  ;;  %v6629_v51 = vsel %vm1120_vm2, %v6571_v58, 0.0 }
 0x49e   : >> { %v6606_v28 = vadd.f32 %v6605_v52, %v6604_v23  ;;  %v6631_v52 = vsel %vm1120_vm2, %v6572_v16, 0.0  ;;  %v6575_v23 = vmul.f32 %v6543_v20, %v6543_v20 }
 0x4a0   : >> { %v6608_v21 = vadd.f32 %v6607_v6, %v6606_v28  ;;  %v6635_v6 = vsel %vm1120_vm2, %v6574_v41, 0.0  ;;  %v6637_v28 = vsel %vm1120_vm2, %v6575_v23, 0.0 }
 0x4a2   : >> { %v6610_v46 = vadd.f32 %v6609_v63, %v6608_v21 }
 0x4a4   : >> { %v6612_v10 = vadd.f32 %v6611_v57, %v6610_v46 }
 0x4a6   : >> { %v6614_v31 = vadd.f32 %v6613_v42, %v6612_v10  ;;  %v6652_v42 = vmul.f32 (%p6472_p5), %v6649_v1, %v11454_v9 }
 0x4a8   : >> { %v6616_v35 = vadd.f32 %v6615_v5, %v6614_v31 }
 0x4aa   : >> { %v6618_v60 = vadd.f32 %v6617_v62, %v6616_v35 }
 0x4ac   : >> { %v6620_v49 = vadd.f32 %v6619_v45, %v6618_v60 }
 0x4ae   : >> { %v6622_v4 = vadd.f32 %v6621_v48, %v6620_v49 }
 0x4b0   : >> { %v6624_v55 = vadd.f32 %v6623_v38, %v6622_v4 }
 0x4b2   : >> { %v6626_v59 = vadd.f32 %v6625_v61, %v6624_v55 }
 0x4b4   : >> { %v6628_v37 = vadd.f32 %v6627_v22, %v6626_v59 }
 0x4b6   : >> { %v6630_v39 = vadd.f32 %v6629_v51, %v6628_v37 }
 0x4b8   : >> { %v6632_v43 = vadd.f32 %v6631_v52, %v6630_v39 }
 0x4ba   : >> { %v6634_v14 = vadd.f32 %v6633_v0, %v6632_v43 }
 0x4bc   : >> { %v6636_v12 = vadd.f32 %v6635_v6, %v6634_v14 }
 0x4be   : >> { %v6638_v18 = vadd.f32 %v6637_v28, %v6636_v12 }
 0x4c0   : >> { %v6639_v63 = vrot.slane %v6638_v18, 4 }
 0x4c2   : >> { %v6640_v50 = vadd.f32 %v6639_v63, %v6638_v18 }
 0x4c4   : >> { %v6641_v21 = vrot.slane %v6640_v50, 2 }
 0x4c6   : >> { %v6642_v36 = vadd.f32 %v6641_v21, %v6640_v50 }
 0x4c8   : >> { %v6643_v33 = vrot.slane %v6642_v36, 1  ;;  %6474 = sbr.rel (!%p6472_p5) target bundleno = 1146 (0x47a), region = 102 }
 0x4ca   : >> { %v6644_v57 = vadd.f32 %v6643_v33, %v6642_v36 }
 0x4cc   : >> { %v6645_v7 = vadd.f32 %v8622_v30, %v6644_v57  }
 0x4ce   : >> { %v11874_v30 = vmov %v6645_v7  ;;  %v6646_v46 = vmul.f32 (%p6472_p5), 0.0009765625, %v6645_v7 }
 0x4cf   : > { %v11578_v30 = vld [vmem:[%s11781_s3] sm:$0x1] }
 0x4d0   : > { %v6647_v27 = vadd.f32 1e-05, %v6646_v46 }
 0x4d2   : > { %8582 = vrsqrt.f32 %v6647_v27 }
 0x4dc   : > { %v8583_v15 = vpop.eup %8582 }
 0x4dd   : > { %v11580_v10 = vmul.f32 %v8583_v15, %v6649_v1  ;;  %v11582_v29 = vmul.f32 %v8583_v15, %v6652_v42 }
 0x4df   : > { %v6654_v32 = vsub.f32 %v11578_v30, %v11582_v29 }
 0x4e0 LB: >> { %v6697_v9 = vlaneseq  ;;  %s7892_s24 = sshll.u32 %s8630_s22, 8  ;;  %vm6935_vm7 = vcmask 60416   ;;  %s7926_s26 = sshll.u32 %s8630_s22, 7  ;;  %s8630_s22 = sphi %s11586_s22, %s6660_s22  }
 0x4e1   : >> { %s11592_s25 = scalar_lea.vmem [#allocation2], %s7892_s24  ;;  %s11631_s27 = scalar_lea.vmem %s8681_s23, %s7926_s26 }
 0x4e2   : >> { %v6698_v5 = vshrl.u32 %v6697_v9, 7  ;;  %v6664_v56 = vld [vmem:[%s11592_s25] sm:$0xff]  ;;  %v6665_v24 = vld [vmem:[%s11592_s25 + $0x8] sm:$0xff]  ;;  %v6666_v11 = vld [vmem:[%s11592_s25 + $0x10] sm:$0xff]  ;;  %s6660_s22 = sadd.s32 1, %s8630_s22  }
 0x4e3   : >> { %v6667_v62 = vld [vmem:[%s11592_s25 + $0x18] sm:$0xff]  ;;  %v6668_v8 = vld [vmem:[%s11592_s25 + $0x20] sm:$0xff]  ;;  %v6669_v3 = vld [vmem:[%s11592_s25 + $0x28] sm:$0xff]  ;;  %p6657_p6 = scmp.ge.s32.totalorder %s6660_s22, 4  }
 0x4e4   : >> { %v6699_v31 = vsub.s32 0, %v6698_v5  ;;  %v6670_v45 = vld [vmem:[%s11592_s25 + $0x30] sm:$0xff]  ;;  %v6671_v44 = vld [vmem:[%s11592_s25 + $0x38] sm:$0xff]  ;;  %v6672_v26 = vld [vmem:[%s11592_s25 + $0x40] sm:$0xff] }
 0x4e5   : >> { %v6673_v13 = vld [vmem:[%s11592_s25 + $0x48] sm:$0xff]  ;;  %v6674_v51 = vld [vmem:[%s11592_s25 + $0x50] sm:$0xff]  ;;  %v6675_v23 = vld [vmem:[%s11592_s25 + $0x58] sm:$0xff] }
 0x4e6   : >> { %v11600_v35 = vrot.slane %v11580_v10, %v6699_v31  ;;  %v11605_v34 = vrot.slane %v6654_v32, %v6699_v31  ;;  %v6676_v0 = vld [vmem:[%s11592_s25 + $0x60] sm:$0xff]  ;;  %v6677_v12 = vld [vmem:[%s11592_s25 + $0x68] sm:$0xff]  ;;  %v6678_v18 = vld [vmem:[%s11592_s25 + $0x70] sm:$0xff] }
 0x4e7   : >> { %v6679_v63 = vld [vmem:[%s11592_s25 + $0x78] sm:$0xff] }
 0x4e8   : >> { %v6702_v60 = vmul.f32 %v11600_v35, %v6664_v56  ;;  %v6703_v54 = vmul.f32 %v11600_v35, %v6665_v24  ;;  %v6704_v25 = vmul.f32 %v11600_v35, %v6666_v11  ;;  %v6705_v48 = vmul.f32 %v11600_v35, %v6667_v62 }
 0x4e9   : >> { %v6706_v19 = vmul.f32 %v11600_v35, %v6668_v8  ;;  %v6707_v49 = vmul.f32 %v11600_v35, %v6669_v3  ;;  %v6708_v40 = vmul.f32 %v11600_v35, %v6670_v45  ;;  %v6709_v47 = vmul.f32 %v11600_v35, %v6671_v44  ;;  %v6680_v45 = vld [vmem:[%s11592_s25 + $0x80] sm:$0xff] }
 0x4ea   : >> { %v6740_v38 = vadd.f32 %v11605_v34, %v6702_v60  ;;  %v6741_v2 = vadd.f32 %v11605_v34, %v6703_v54  ;;  %v6742_v4 = vadd.f32 %v11605_v34, %v6704_v25  ;;  %v6743_v17 = vadd.f32 %v11605_v34, %v6705_v48  ;;  %v6681_v48 = vld [vmem:[%s11592_s25 + $0x88] sm:$0xff] }
 0x4eb   : >> { %v6744_v58 = vadd.f32 %v11605_v34, %v6706_v19  ;;  %v6745_v61 = vadd.f32 %v11605_v34, %v6707_v49  ;;  %v6746_v53 = vadd.f32 %v11605_v34, %v6708_v40  ;;  %v6747_v55 = vadd.f32 %v11605_v34, %v6709_v47  ;;  %v6682_v19 = vld [vmem:[%s11592_s25 + $0x90] sm:$0xff] }
 0x4ec   : >> { %v6772_v16 = vmax.f32 %v6740_v38, 0.0  ;;  %v6773_v22 = vmax.f32 %v6741_v2, 0.0  ;;  %v6774_v59 = vmax.f32 %v6742_v4, 0.0  ;;  %v6775_v20 = vmax.f32 %v6743_v17, 0.0  ;;  %v6683_v2 = vld [vmem:[%s11592_s25 + $0x98] sm:$0xff]  ;;  %v6684_v4 = vld [vmem:[%s11592_s25 + $0xa0] sm:$0xff] }
 0x4ed   : >> { %v6776_v37 = vmax.f32 %v6744_v58, 0.0  ;;  %v6777_v41 = vmax.f32 %v6745_v61, 0.0  ;;  %v6778_v52 = vmax.f32 %v6746_v53, 0.0  ;;  %v6779_v39 = vmax.f32 %v6747_v55, 0.0  ;;  %v6685_v55 = vld [vmem:[%s11592_s25 + $0xa8] sm:$0xff] }
 0x4ee   : >> { %v7893_v43 = vpack.c.bf16 %v6772_v16, %v6772_v16  ;;  %v7894_v6 = vpack.c.bf16 %v6773_v22, %v6773_v22  ;;  %v7895_v14 = vpack.c.bf16 %v6774_v59, %v6774_v59  ;;  %v7896_v28 = vpack.c.bf16 %v6775_v20, %v6775_v20  ;;  %v6687_v16 = vld [vmem:[%s11592_s25 + $0xb8] sm:$0xff] }
 0x4ef   : >> { %v7897_v50 = vpack.c.bf16 %v6776_v37, %v6776_v37  ;;  %v7898_v21 = vpack.c.bf16 %v6777_v41, %v6777_v41  ;;  %v7899_v36 = vpack.c.bf16 %v6778_v52, %v6778_v52  ;;  %v7900_v33 = vpack.c.bf16 %v6779_v39, %v6779_v39 }
 0x4f0   : >> { %6936 = vst.msk [vmem:[%s11631_s27] sm:$0xf] %vm6935_vm7, %v7893_v43  ;;  %6937 = vst.msk [vmem:[%s11631_s27 + $0x4] sm:$0xf] %vm6935_vm7, %v7894_v6  ;;  %v6710_v57 = vmul.f32 %v11600_v35, %v6672_v26  ;;  %v6711_v7 = vmul.f32 %v11600_v35, %v6673_v13  ;;  %v6712_v46 = vmul.f32 %v11600_v35, %v6674_v51  ;;  %v6686_v26 = vld [vmem:[%s11592_s25 + $0xb0] sm:$0xff] }
 0x4f1   : >> { %6938 = vst.msk [vmem:[%s11631_s27 + $0x8] sm:$0xf] %vm6935_vm7, %v7895_v14  ;;  %6939 = vst.msk [vmem:[%s11631_s27 + $0xc] sm:$0xf] %vm6935_vm7, %v7896_v28  ;;  %v6713_v27 = vmul.f32 %v11600_v35, %v6675_v23  ;;  %v6714_v1 = vmul.f32 %v11600_v35, %v6676_v0  ;;  %v6715_v42 = vmul.f32 %v11600_v35, %v6677_v12 }
 0x4f2   : >> { %6940 = vst.msk [vmem:[%s11631_s27 + $0x10] sm:$0xf] %vm6935_vm7, %v7897_v50  ;;  %6941 = vst.msk [vmem:[%s11631_s27 + $0x14] sm:$0xf] %vm6935_vm7, %v7898_v21  ;;  %v6716_v15 = vmul.f32 %v11600_v35, %v6678_v18  ;;  %v6717_v9 = vmul.f32 %v11600_v35, %v6679_v63  ;;  %v6748_v5 = vadd.f32 %v11605_v34, %v6710_v57 }
 0x4f3   : >> { %6942 = vst.msk [vmem:[%s11631_s27 + $0x18] sm:$0xf] %vm6935_vm7, %v7899_v36  ;;  %6943 = vst.msk [vmem:[%s11631_s27 + $0x1c] sm:$0xf] %vm6935_vm7, %v7900_v33  ;;  %v6749_v56 = vadd.f32 %v11605_v34, %v6711_v7  ;;  %v6750_v31 = vadd.f32 %v11605_v34, %v6712_v46  ;;  %v6751_v24 = vadd.f32 %v11605_v34, %v6713_v27  ;;  %v6688_v36 = vld [vmem:[%s11592_s25 + $0xc0] sm:$0xff]  ;;  %v6689_v27 = vld [vmem:[%s11592_s25 + $0xc8] sm:$0xff] }
 0x4f4   : >> { %v6752_v11 = vadd.f32 %v11605_v34, %v6714_v1  ;;  %v6753_v62 = vadd.f32 %v11605_v34, %v6715_v42  ;;  %v6754_v8 = vadd.f32 %v11605_v34, %v6716_v15  ;;  %v6755_v3 = vadd.f32 %v11605_v34, %v6717_v9  ;;  %v6690_v1 = vld [vmem:[%s11592_s25 + $0xd0] sm:$0xff] }
 0x4f5   : >> { %v6780_v44 = vmax.f32 %v6748_v5, 0.0  ;;  %v6781_v60 = vmax.f32 %v6749_v56, 0.0  ;;  %v6782_v54 = vmax.f32 %v6750_v31, 0.0  ;;  %v6783_v25 = vmax.f32 %v6751_v24, 0.0  ;;  %v6691_v56 = vld [vmem:[%s11592_s25 + $0xd8] sm:$0xff]  ;;  %v6692_v31 = vld [vmem:[%s11592_s25 + $0xe0] sm:$0xff] }
 0x4f6   : >> { %v6784_v49 = vmax.f32 %v6752_v11, 0.0  ;;  %v6785_v40 = vmax.f32 %v6753_v62, 0.0  ;;  %v6786_v47 = vmax.f32 %v6754_v8, 0.0  ;;  %v6787_v38 = vmax.f32 %v6755_v3, 0.0  ;;  %v6693_v3 = vld [vmem:[%s11592_s25 + $0xe8] sm:$0xff] }
 0x4f7   : >> { %v7901_v17 = vpack.c.bf16 %v6780_v44, %v6780_v44  ;;  %v7902_v58 = vpack.c.bf16 %v6781_v60, %v6781_v60  ;;  %v7903_v61 = vpack.c.bf16 %v6782_v54, %v6782_v54  ;;  %v7904_v53 = vpack.c.bf16 %v6783_v25, %v6783_v25  ;;  %v6695_v44 = vld [vmem:[%s11592_s25 + $0xf8] sm:$0xff] }
 0x4f8   : >> { %v7905_v22 = vpack.c.bf16 %v6784_v49, %v6784_v49  ;;  %v7906_v59 = vpack.c.bf16 %v6785_v40, %v6785_v40  ;;  %v7907_v20 = vpack.c.bf16 %v6786_v47, %v6786_v47  ;;  %v7908_v13 = vpack.c.bf16 %v6787_v38, %v6787_v38 }
 0x4f9   : >> { %6944 = vst.msk [vmem:[%s11631_s27 + $0x20] sm:$0xf] %vm6935_vm7, %v7901_v17  ;;  %6945 = vst.msk [vmem:[%s11631_s27 + $0x24] sm:$0xf] %vm6935_vm7, %v7902_v58  ;;  %v6718_v51 = vmul.f32 %v11600_v35, %v6680_v45  ;;  %v6719_v37 = vmul.f32 %v11600_v35, %v6681_v48  ;;  %v6720_v41 = vmul.f32 %v11600_v35, %v6682_v19  ;;  %v6694_v45 = vld [vmem:[%s11592_s25 + $0xf0] sm:$0xff] }
 0x4fa   : >> { %6946 = vst.msk [vmem:[%s11631_s27 + $0x28] sm:$0xf] %vm6935_vm7, %v7903_v61  ;;  %6947 = vst.msk [vmem:[%s11631_s27 + $0x2c] sm:$0xf] %vm6935_vm7, %v7904_v53  ;;  %v6721_v52 = vmul.f32 %v11600_v35, %v6683_v2  ;;  %v6722_v39 = vmul.f32 %v11600_v35, %v6684_v4  ;;  %v6723_v23 = vmul.f32 %v11600_v35, %v6685_v55 }
 0x4fb   : >> { %6948 = vst.msk [vmem:[%s11631_s27 + $0x30] sm:$0xf] %vm6935_vm7, %v7905_v22  ;;  %6949 = vst.msk [vmem:[%s11631_s27 + $0x34] sm:$0xf] %vm6935_vm7, %v7906_v59  ;;  %v6724_v0 = vmul.f32 %v11600_v35, %v6686_v26  ;;  %v6725_v43 = vmul.f32 %v11600_v35, %v6687_v16  ;;  %v6756_v6 = vadd.f32 %v11605_v34, %v6718_v51 }
 0x4fc   : >> { %6950 = vst.msk [vmem:[%s11631_s27 + $0x38] sm:$0xf] %vm6935_vm7, %v7907_v20  ;;  %6951 = vst.msk [vmem:[%s11631_s27 + $0x3c] sm:$0xf] %vm6935_vm7, %v7908_v13  ;;  %v6757_v14 = vadd.f32 %v11605_v34, %v6719_v37  ;;  %v6758_v28 = vadd.f32 %v11605_v34, %v6720_v41  ;;  %v6759_v12 = vadd.f32 %v11605_v34, %v6721_v52 }
 0x4fd   : >> { %v6760_v18 = vadd.f32 %v11605_v34, %v6722_v39  ;;  %v6761_v63 = vadd.f32 %v11605_v34, %v6723_v23  ;;  %v6762_v50 = vadd.f32 %v11605_v34, %v6724_v0  ;;  %v6763_v21 = vadd.f32 %v11605_v34, %v6725_v43 }
 0x4fe   : >> { %v6788_v33 = vmax.f32 %v6756_v6, 0.0  ;;  %v6789_v57 = vmax.f32 %v6757_v14, 0.0  ;;  %v6790_v7 = vmax.f32 %v6758_v28, 0.0  ;;  %v6791_v46 = vmax.f32 %v6759_v12, 0.0 }
 0x4ff   : >> { %v6792_v42 = vmax.f32 %v6760_v18, 0.0  ;;  %v6793_v15 = vmax.f32 %v6761_v63, 0.0  ;;  %v6794_v9 = vmax.f32 %v6762_v50, 0.0  ;;  %v6795_v5 = vmax.f32 %v6763_v21, 0.0 }
 0x500   : >> { %v7909_v24 = vpack.c.bf16 %v6788_v33, %v6788_v33  ;;  %v7910_v11 = vpack.c.bf16 %v6789_v57, %v6789_v57  ;;  %v7911_v62 = vpack.c.bf16 %v6790_v7, %v6790_v7  ;;  %v7912_v8 = vpack.c.bf16 %v6791_v46, %v6791_v46 }
 0x501   : >> { %v7913_v60 = vpack.c.bf16 %v6792_v42, %v6792_v42  ;;  %v7914_v54 = vpack.c.bf16 %v6793_v15, %v6793_v15  ;;  %v7915_v25 = vpack.c.bf16 %v6794_v9, %v6794_v9  ;;  %v7916_v48 = vpack.c.bf16 %v6795_v5, %v6795_v5 }
 0x502   : >> { %6952 = vst.msk [vmem:[%s11631_s27 + $0x40] sm:$0xf] %vm6935_vm7, %v7909_v24  ;;  %6953 = vst.msk [vmem:[%s11631_s27 + $0x44] sm:$0xf] %vm6935_vm7, %v7910_v11  ;;  %v6726_v19 = vmul.f32 %v11600_v35, %v6688_v36  ;;  %v6727_v49 = vmul.f32 %v11600_v35, %v6689_v27  ;;  %v6728_v40 = vmul.f32 %v11600_v35, %v6690_v1 }
 0x503   : >> { %6954 = vst.msk [vmem:[%s11631_s27 + $0x48] sm:$0xf] %vm6935_vm7, %v7911_v62  ;;  %6955 = vst.msk [vmem:[%s11631_s27 + $0x4c] sm:$0xf] %vm6935_vm7, %v7912_v8  ;;  %v6729_v47 = vmul.f32 %v11600_v35, %v6691_v56  ;;  %v6730_v38 = vmul.f32 %v11600_v35, %v6692_v31  ;;  %v6731_v2 = vmul.f32 %v11600_v35, %v6693_v3 }
 0x504   : >> { %6956 = vst.msk [vmem:[%s11631_s27 + $0x50] sm:$0xf] %vm6935_vm7, %v7913_v60  ;;  %6957 = vst.msk [vmem:[%s11631_s27 + $0x54] sm:$0xf] %vm6935_vm7, %v7914_v54  ;;  %v6732_v4 = vmul.f32 %v11600_v35, %v6694_v45  ;;  %v6733_v17 = vmul.f32 %v11600_v35, %v6695_v44  ;;  %v6764_v58 = vadd.f32 %v11605_v34, %v6726_v19 }
 0x505   : >> { %6958 = vst.msk [vmem:[%s11631_s27 + $0x58] sm:$0xf] %vm6935_vm7, %v7915_v25  ;;  %6959 = vst.msk [vmem:[%s11631_s27 + $0x5c] sm:$0xf] %vm6935_vm7, %v7916_v48  ;;  %v6765_v61 = vadd.f32 %v11605_v34, %v6727_v49  ;;  %v6766_v53 = vadd.f32 %v11605_v34, %v6728_v40  ;;  %v6767_v55 = vadd.f32 %v11605_v34, %v6729_v47 }
 0x506   : >> { %v6768_v26 = vadd.f32 %v11605_v34, %v6730_v38  ;;  %v6769_v16 = vadd.f32 %v11605_v34, %v6731_v2  ;;  %v6770_v22 = vadd.f32 %v11605_v34, %v6732_v4  ;;  %v6771_v59 = vadd.f32 %v11605_v34, %v6733_v17 }
 0x507   : >> { %v6796_v20 = vmax.f32 %v6764_v58, 0.0  ;;  %v6797_v13 = vmax.f32 %v6765_v61, 0.0  ;;  %v6798_v35 = vmax.f32 %v6766_v53, 0.0  ;;  %v6799_v51 = vmax.f32 %v6767_v55, 0.0 }
 0x508   : >> { %v6800_v37 = vmax.f32 %v6768_v26, 0.0  ;;  %v6801_v41 = vmax.f32 %v6769_v16, 0.0  ;;  %v6802_v52 = vmax.f32 %v6770_v22, 0.0  ;;  %v6803_v39 = vmax.f32 %v6771_v59, 0.0  ;;  %6659 = sbr.rel (!%p6657_p6) target bundleno = 1248 (0x4e0), region = 113 }
 0x509   : >> { %v7917_v23 = vpack.c.bf16 %v6796_v20, %v6796_v20  ;;  %v7918_v0 = vpack.c.bf16 %v6797_v13, %v6797_v13  ;;  %v7919_v43 = vpack.c.bf16 %v6798_v35, %v6798_v35  ;;  %v7920_v34 = vpack.c.bf16 %v6799_v51, %v6799_v51 }
 0x50a   : >> { %v7921_v6 = vpack.c.bf16 %v6800_v37, %v6800_v37  ;;  %v7922_v14 = vpack.c.bf16 %v6801_v41, %v6801_v41  ;;  %v7923_v28 = vpack.c.bf16 %v6802_v52, %v6802_v52  ;;  %v7924_v12 = vpack.c.bf16 %v6803_v39, %v6803_v39 }
 0x50b   : >> { %6960 = vst.msk [vmem:[%s11631_s27 + $0x60] sm:$0xf] %vm6935_vm7, %v7917_v23  ;;  %6961 = vst.msk [vmem:[%s11631_s27 + $0x64] sm:$0xf] %vm6935_vm7, %v7918_v0 }
 0x50c   : >> { %6962 = vst.msk [vmem:[%s11631_s27 + $0x68] sm:$0xf] %vm6935_vm7, %v7919_v43  ;;  %6963 = vst.msk [vmem:[%s11631_s27 + $0x6c] sm:$0xf] %vm6935_vm7, %v7920_v34 }
 0x50d   : >> { %6964 = vst.msk [vmem:[%s11631_s27 + $0x70] sm:$0xf] %vm6935_vm7, %v7921_v6  ;;  %6965 = vst.msk [vmem:[%s11631_s27 + $0x74] sm:$0xf] %vm6935_vm7, %v7922_v14 }
 0x50e   : >> { %6966 = vst.msk [vmem:[%s11631_s27 + $0x78] sm:$0xf] %vm6935_vm7, %v7923_v28  ;;  %6967 = vst.msk [vmem:[%s11631_s27 + $0x7c] sm:$0xf] %vm6935_vm7, %v7924_v12 }
 0x50f PF: > { %s14_s17 = sadd.s32 1, %s8618_s17   ;;  %s11875_s15 = smov %s8614_s16 }
 0x510   : > { %p11_p7 = scmp.ge.s32.totalorder %s14_s17, 4   ;;  %s11876_s16 = smov %s11878_s18 }
 0x512   :  { %13 = sbr.rel (!%p11_p7) target bundleno = 2 (0x2), region = 124 }

</bundles_post_ra>
